<compile_context>
chip_gen: v7x
topology: tpu7x:2x2x1
jax: 0.10.0
libtpu: 0.0.40
codegen_flags: <defaults>
</compile_context>

<pallas_src>
import functools

import jax
import jax.numpy as jnp
from jax.experimental import pallas as pl
from jax.experimental.pallas import tpu as pltpu


def _lap1d(n):
    """Tridiagonal 1-D second-difference matrix (zero boundary == zero padding)."""
    m = -2.0 * jnp.eye(n) + jnp.eye(n, k=1) + jnp.eye(n, k=-1)
    return m.astype(jnp.float32)


def _dft_matrices(n):
    """Real / imaginary parts of the ortho-normalized (symmetric) DFT matrix."""
    k = jnp.arange(n, dtype=jnp.float32)
    ang = -2.0 * jnp.pi * jnp.outer(k, k) / n
    scale = 1.0 / jnp.sqrt(jnp.float32(n))
    return (jnp.cos(ang) * scale).astype(jnp.float32), (jnp.sin(ang) * scale).astype(jnp.float32)


def _pick_images_per_step(bc, h, w, *, unroll_cap=16, max_block_elems=1 << 18):
    """Largest divisor of bc such that the (IB, H, W) block stays VMEM-friendly and
    the batched left-matmul stays a short unroll."""
    per_image = max(1, h * w)
    max_ib = max(1, min(bc, unroll_cap, max_block_elems // per_image))
    best = 1
    for ib in range(1, max_ib + 1):
        if bc % ib == 0:
            best = ib
    return best


def _deblur_kernel(pred_ref, targ_ref, ml_ref, tw_ref, b2_ref,
                   out_ref, acc_c_ref, acc_e_ref, acc_f_ref,
                   *, eps2, delta, lam, inv_n, precision, batched_lhs):
    step = pl.program_id(0)

    @pl.when(step == 0)
    def _():
        acc_c_ref[...] = jnp.zeros_like(acc_c_ref)
        acc_e_ref[...] = jnp.zeros_like(acc_e_ref)
        acc_f_ref[...] = jnp.zeros_like(acc_f_ref)

    ib, h, w = pred_ref.shape                      # static block shape

    d = pred_ref[...] - targ_ref[...]              # (IB, H, W)
    d2 = d.reshape(ib * h, w)                      # row-stacked images (IB*H, W)

    tw = tw_ref[...]                               # (W, W)   Laplacian right operator
    b2 = b2_ref[...]                               # (W, 2W)  = [Br | Bi]

    def mm(a, b):
        return jnp.dot(a, b, preferred_element_type=jnp.float32, precision=precision)

    def accumulate(acc_ref, x):
        # Reduce rows with pure VPU (8, W)-tile adds; keep lanes intact so the
        # expensive cross-lane reduction happens only once, on the last step.
        r, c = x.shape
        if r % 8 == 0:
            ps = x.reshape(r // 8, 8, c).sum(axis=0)
        else:
            ps = jnp.sum(x, axis=0, keepdims=True)
        if ps.shape == tuple(acc_ref.shape):
            acc_ref[...] += ps
        else:
            acc_ref[0:ps.shape[0], :] += ps

    # --- Charbonnier partial sum: sum(d^2)  (VPU only) ---
    accumulate(acc_c_ref, d2 * d2)

    # --- Left products, fused: per image [TH d_i; Ar d_i; Ai d_i]  → (IB, 3H, W) ---
    if batched_lhs:
        # ml_ref is (IB, 3H, H); one batched MXU matmul for all IB images, no concats.
        left = jnp.einsum('bri,biw->brw', ml_ref[...], d,
                          preferred_element_type=jnp.float32, precision=precision)
    else:
        # Fallback: ml_ref is (3H, H); per-image 2-D matmuls.
        ml = ml_ref[...]
        left = jnp.stack([mm(ml, d[i]) for i in range(ib)], axis=0)

    lap_left = left[:, 0:h, :].reshape(ib * h, w)        # TH d, row-stacked
    t_all = left[:, h:3 * h, :].reshape(ib * 2 * h, w)   # [Ar d; Ai d], row-stacked

    # --- Edge partial sum: lap(d) = TH d + d TW (Laplacian conv is linear) ---
    lap = lap_left + mm(d2, tw)                    # right-multiply batched over images
    accumulate(acc_e_ref, lap * lap)

    # --- Frequency partial sum: |fft2(p) - fft2(t)| = |fft2(d)| (DFT is linear) ---
    q = mm(t_all, b2)                              # (IB*2H, 2W)
    qbr = q[:, 0:w].reshape(ib, 2, h, w)           # [:, 0] = Ar d Br, [:, 1] = Ai d Br
    qbi = q[:, w:2 * w].reshape(ib, 2, h, w)       # [:, 0] = Ar d Bi, [:, 1] = Ai d Bi
    re = qbr[:, 0] - qbi[:, 1]
    im = qbi[:, 0] + qbr[:, 1]
    mag = jnp.sqrt(re * re + im * im).reshape(ib * h, w)
    accumulate(acc_f_ref, mag)

    # --- Finalize on the last grid step (single cross-lane reduction) ---
    @pl.when(step == pl.num_programs(0) - 1)
    def _():
        sc = jnp.sum(acc_c_ref[...], keepdims=True)    # (1, 1)
        se = jnp.sum(acc_e_ref[...], keepdims=True)
        sf = jnp.sum(acc_f_ref[...], keepdims=True)
        char = jnp.sqrt(sc * inv_n + eps2)
        edge = jnp.sqrt(se * inv_n + eps2)
        out_ref[...] = char + delta * edge + lam * (sf * inv_n)


def deblur_loss(pred, target, *, epsilon=0.001, delta=0.05, lam=0.1):
    """pred, target: (N, C, H, W) float32. Returns the scalar DeblurLoss."""
    B, C, H, W = pred.shape
    bc = B * C
    p = pred.reshape(bc, H, W).astype(jnp.float32)
    t = target.reshape(bc, H, W).astype(jnp.float32)

    th = _lap1d(H)
    tw = _lap1d(W)
    ar, ai = _dft_matrices(H)
    br, bi = _dft_matrices(W)
    ml = jnp.concatenate([th, ar, ai], axis=0)     # (3H, H)  stacked left operators
    b2 = jnp.concatenate([br, bi], axis=1)         # (W, 2W)  fused DFT right operators

    ib = _pick_images_per_step(bc, H, W)
    grid = (bc // ib,)
    acc_rows = 8 if (ib * H) % 8 == 0 else 1
    inv_n = 1.0 / float(bc * H * W)

    def run(precision, batched_lhs):
        if batched_lhs:
            # Pre-broadcast on the host so the constant operand is DMA'd once and
            # stays resident in VMEM (block index is constant across the grid).
            ml_arg = jnp.broadcast_to(ml[None], (ib, 3 * H, H))
            ml_spec = pl.BlockSpec((ib, 3 * H, H), lambda i: (0, 0, 0))
        else:
            ml_arg = ml
            ml_spec = pl.BlockSpec((3 * H, H), lambda i: (0, 0))

        kernel = functools.partial(
            _deblur_kernel,
            eps2=float(epsilon) ** 2, delta=float(delta), lam=float(lam),
            inv_n=inv_n, precision=precision, batched_lhs=batched_lhs)

        out = pl.pallas_call(
            kernel,
            out_shape=jax.ShapeDtypeStruct((1, 1), jnp.float32),
            grid_spec=pltpu.PrefetchScalarGridSpec(
                num_scalar_prefetch=0,
                grid=grid,
                in_specs=[
                    pl.BlockSpec((ib, H, W), lambda i: (i, 0, 0)),   # pred block (IB images)
                    pl.BlockSpec((ib, H, W), lambda i: (i, 0, 0)),   # target block
                    ml_spec,                                         # [TH; Ar; Ai]
                    pl.BlockSpec((W, W), lambda i: (0, 0)),          # TW
                    pl.BlockSpec((W, 2 * W), lambda i: (0, 0)),      # [Br | Bi]
                ],
                out_specs=pl.BlockSpec((1, 1), lambda i: (0, 0)),
                scratch_shapes=[
                    pltpu.VMEM((acc_rows, W), jnp.float32),   # charbonnier accumulator
                    pltpu.VMEM((acc_rows, W), jnp.float32),   # edge accumulator
                    pltpu.VMEM((acc_rows, W), jnp.float32),   # frequency accumulator
                ],
            ),
            compiler_params=pltpu.CompilerParams(
                dimension_semantics=("arbitrary",),   # sequential reduction over image blocks
            ),
        )(p, t, ml_arg, tw, b2)
        return out[0, 0]

    # Prefer 3-pass (HIGH) f32 matmuls with the batched left-product; fall back to
    # HIGHEST precision and/or per-image 2-D matmuls if a lowering rejects the form.
    last_err = None
    for precision, batched in ((jax.lax.Precision.HIGH, True),
                               (jax.lax.Precision.HIGHEST, True),
                               (jax.lax.Precision.HIGH, False),
                               (jax.lax.Precision.HIGHEST, False)):
        try:
            return run(precision, batched)
        except Exception as e:  # LoweringException / NotImplementedError etc.
            last_err = e
    raise last_err


def _reference(pred, target, epsilon=0.001, delta=0.05, lam=0.1):
    """Pure-JAX reference matching the PyTorch module (for a sanity check)."""
    d = (pred - target).astype(jnp.float32)
    char = jnp.sqrt(jnp.mean(d * d) + epsilon ** 2)
    dp = jnp.pad(d, ((0, 0), (0, 0), (1, 1), (1, 1)))
    lap = (dp[:, :, :-2, 1:-1] + dp[:, :, 2:, 1:-1]
           + dp[:, :, 1:-1, :-2] + dp[:, :, 1:-1, 2:] - 4.0 * d)
    edge = jnp.sqrt(jnp.mean(lap * lap) + epsilon ** 2)
    freq = jnp.mean(jnp.abs(jnp.fft.fft2(d, norm='ortho')))
    return char + delta * edge + lam * freq


if __name__ == "__main__":
    key = jax.random.PRNGKey(0)
    k1, k2 = jax.random.split(key)
    pred = jax.random.normal(k1, (2, 4, 16, 16), dtype=jnp.float32)
    target = jax.random.normal(k2, (2, 4, 16, 16), dtype=jnp.float32)

    loss = deblur_loss(pred, target)
    jax.block_until_ready(loss)

    ref = _reference(pred, target)
    err = abs(float(loss) - float(ref))
    if not (err <= 5e-3 * max(1.0, abs(float(ref)))):
        raise AssertionError(f"kernel={float(loss)} ref={float(ref)} err={err}")
    print("KERNEL_OK")
</pallas_src>

<mosaic_0001>
module attributes {stable_mosaic.version = 11 : i64} {
  func.func @_deblur_kernel(%arg0: i32, %arg1: memref<8x16x16xf32, #tpu.memory_space<vmem>>, %arg2: memref<8x16x16xf32, #tpu.memory_space<vmem>>, %arg3: memref<8x48x16xf32, #tpu.memory_space<vmem>>, %arg4: memref<16x16xf32, #tpu.memory_space<vmem>>, %arg5: memref<16x32xf32, #tpu.memory_space<vmem>>, %arg6: memref<1x1xf32, #tpu.memory_space<vmem>>, %arg7: memref<8x16xf32, #tpu.memory_space<vmem>>, %arg8: memref<8x16xf32, #tpu.memory_space<vmem>>, %arg9: memref<8x16xf32, #tpu.memory_space<vmem>>) attributes {dimension_semantics = [#tpu.dimension_semantics<arbitrary>], iteration_bounds = array<i64: 1>, scalar_prefetch = 0 : i64, scratch_operands = 3 : i64, tpu.core_type = #tpu.core_type<tc>, window_params = [{transform_indices = @transform_0, window_bounds = array<i64: 8, 16, 16>}, {transform_indices = @transform_1, window_bounds = array<i64: 8, 16, 16>}, {pipeline_mode = #tpu.pipeline_mode<synchronous>, transform_indices = @transform_2, window_bounds = array<i64: 8, 48, 16>}, {pipeline_mode = #tpu.pipeline_mode<synchronous>, transform_indices = @transform_3, window_bounds = array<i64: 16, 16>}, {pipeline_mode = #tpu.pipeline_mode<synchronous>, transform_indices = @transform_4, window_bounds = array<i64: 16, 32>}, {pipeline_mode = #tpu.pipeline_mode<synchronous>, transform_indices = @transform_5, window_bounds = array<i64: 1, 1>}]} {
    %c0_i32 = arith.constant 0 : i32
    %0 = arith.cmpi eq, %arg0, %c0_i32 : i32
    %1 = arith.extui %0 : i1 to i32
    %c0_i32_0 = arith.constant 0 : i32
    %2 = arith.cmpi ne, %1, %c0_i32_0 : i32
    scf.if %2 {
      %cst_32 = arith.constant 0.000000e+00 : f32
      %57 = vector.broadcast %cst_32 : f32 to vector<8x16xf32>
      %c0_33 = arith.constant 0 : index
      %c0_34 = arith.constant 0 : index
      %58 = vector.load %arg7[%c0_33, %c0_34] : memref<8x16xf32, #tpu.memory_space<vmem>>, vector<8x16xf32>
      tpu.vector_store %arg7[%c0_33, %c0_34], %57 {strides = array<i32>} : memref<8x16xf32, #tpu.memory_space<vmem>>, vector<8x16xf32>,
      %cst_35 = arith.constant 0.000000e+00 : f32
      %59 = vector.broadcast %cst_35 : f32 to vector<8x16xf32>
      %c0_36 = arith.constant 0 : index
      %c0_37 = arith.constant 0 : index
      %60 = vector.load %arg8[%c0_36, %c0_37] : memref<8x16xf32, #tpu.memory_space<vmem>>, vector<8x16xf32>
      tpu.vector_store %arg8[%c0_36, %c0_37], %59 {strides = array<i32>} : memref<8x16xf32, #tpu.memory_space<vmem>>, vector<8x16xf32>,
      %cst_38 = arith.constant 0.000000e+00 : f32
      %61 = vector.broadcast %cst_38 : f32 to vector<8x16xf32>
      %c0_39 = arith.constant 0 : index
      %c0_40 = arith.constant 0 : index
      %62 = vector.load %arg9[%c0_39, %c0_40] : memref<8x16xf32, #tpu.memory_space<vmem>>, vector<8x16xf32>
      tpu.vector_store %arg9[%c0_39, %c0_40], %61 {strides = array<i32>} : memref<8x16xf32, #tpu.memory_space<vmem>>, vector<8x16xf32>,
    } else {
    }
    %c0 = arith.constant 0 : index
    %c0_1 = arith.constant 0 : index
    %c0_2 = arith.constant 0 : index
    %3 = vector.load %arg1[%c0, %c0_1, %c0_2] : memref<8x16x16xf32, #tpu.memory_space<vmem>>, vector<8x16x16xf32>
    %c0_3 = arith.constant 0 : index
    %c0_4 = arith.constant 0 : index
    %c0_5 = arith.constant 0 : index
    %4 = vector.load %arg2[%c0_3, %c0_4, %c0_5] : memref<8x16x16xf32, #tpu.memory_space<vmem>>, vector<8x16x16xf32>
    %5 = arith.subf %3, %4 : vector<8x16x16xf32>
    %6 = vector.shape_cast %5 : vector<8x16x16xf32> to vector<128x16xf32>
    %c0_6 = arith.constant 0 : index
    %c0_7 = arith.constant 0 : index
    %7 = vector.load %arg4[%c0_6, %c0_7] : memref<16x16xf32, #tpu.memory_space<vmem>>, vector<16x16xf32>
    %c0_8 = arith.constant 0 : index
    %c0_9 = arith.constant 0 : index
    %8 = vector.load %arg5[%c0_8, %c0_9] : memref<16x32xf32, #tpu.memory_space<vmem>>, vector<16x32xf32>
    %9 = arith.mulf %6, %6 : vector<128x16xf32>
    %10 = vector.shape_cast %9 : vector<128x16xf32> to vector<16x8x16xf32>
    %cst = arith.constant dense<0.000000e+00> : vector<8x16xf32>
    %11 = vector.multi_reduction <add>, %10, %cst [0] : vector<16x8x16xf32> to vector<8x16xf32>
    %c0_10 = arith.constant 0 : index
    %c0_11 = arith.constant 0 : index
    %12 = vector.load %arg7[%c0_10, %c0_11] : memref<8x16xf32, #tpu.memory_space<vmem>>, vector<8x16xf32>
    %13 = arith.addf %12, %11 : vector<8x16xf32>
    %c0_12 = arith.constant 0 : index
    %c0_13 = arith.constant 0 : index
    %14 = vector.load %arg7[%c0_12, %c0_13] : memref<8x16xf32, #tpu.memory_space<vmem>>, vector<8x16xf32>
    tpu.vector_store %arg7[%c0_12, %c0_13], %13 {strides = array<i32>} : memref<8x16xf32, #tpu.memory_space<vmem>>, vector<8x16xf32>,
    %c0_14 = arith.constant 0 : index
    %c0_15 = arith.constant 0 : index
    %c0_16 = arith.constant 0 : index
    %15 = vector.load %arg3[%c0_14, %c0_15, %c0_16] : memref<8x48x16xf32, #tpu.memory_space<vmem>>, vector<8x48x16xf32>
    "tpu.trace_start"() <{level = 10 : i32, message = "bri,biw->brw"}> : () -> ()
    %cst_17 = arith.constant dense<0.000000e+00> : vector<8x48x16xf32>
    %16 = tpu.matmul %15, %5, %cst_17 {dimension_numbers = #tpu.dot_dimension_numbers<[2], [1], [1], [2], [0, 0, 0, 1, 1, 2], [0], [0]>, precision = #tpu.contract_precision<fp32>} : vector<8x48x16xf32>, vector<8x16x16xf32>, vector<8x48x16xf32> -> vector<8x48x16xf32>
    "tpu.trace_stop"() : () -> ()
    %17 = vector.extract_strided_slice %16 {offsets = [0, 0, 0], sizes = [8, 16, 16], strides = [1, 1, 1]} : vector<8x48x16xf32> to vector<8x16x16xf32>
    %18 = vector.shape_cast %17 : vector<8x16x16xf32> to vector<128x16xf32>
    %19 = vector.extract_strided_slice %16 {offsets = [0, 16, 0], sizes = [8, 32, 16], strides = [1, 1, 1]} : vector<8x48x16xf32> to vector<8x32x16xf32>
    %20 = vector.shape_cast %19 : vector<8x32x16xf32> to vector<256x16xf32>
    %cst_18 = arith.constant dense<0.000000e+00> : vector<128x16xf32>
    %21 = tpu.matmul %6, %7, %cst_18 {dimension_numbers = #tpu.dot_dimension_numbers<[1], [0], [0], [1], [0, 0, 1, 1], [], []>, precision = #tpu.contract_precision<fp32>} : vector<128x16xf32>, vector<16x16xf32>, vector<128x16xf32> -> vector<128x16xf32>
    %22 = arith.addf %18, %21 : vector<128x16xf32>
    %23 = arith.mulf %22, %22 : vector<128x16xf32>
    %24 = vector.shape_cast %23 : vector<128x16xf32> to vector<16x8x16xf32>
    %cst_19 = arith.constant dense<0.000000e+00> : vector<8x16xf32>
    %25 = vector.multi_reduction <add>, %24, %cst_19 [0] : vector<16x8x16xf32> to vector<8x16xf32>
    %c0_20 = arith.constant 0 : index
    %c0_21 = arith.constant 0 : index
    %26 = vector.load %arg8[%c0_20, %c0_21] : memref<8x16xf32, #tpu.memory_space<vmem>>, vector<8x16xf32>
    %27 = arith.addf %26, %25 : vector<8x16xf32>
    %c0_22 = arith.constant 0 : index
    %c0_23 = arith.constant 0 : index
    %28 = vector.load %arg8[%c0_22, %c0_23] : memref<8x16xf32, #tpu.memory_space<vmem>>, vector<8x16xf32>
    tpu.vector_store %arg8[%c0_22, %c0_23], %27 {strides = array<i32>} : memref<8x16xf32, #tpu.memory_space<vmem>>, vector<8x16xf32>,
    %cst_24 = arith.constant dense<0.000000e+00> : vector<256x32xf32>
    %29 = tpu.matmul %20, %8, %cst_24 {dimension_numbers = #tpu.dot_dimension_numbers<[1], [0], [0], [1], [0, 0, 1, 1], [], []>, precision = #tpu.contract_precision<fp32>} : vector<256x16xf32>, vector<16x32xf32>, vector<256x32xf32> -> vector<256x32xf32>
    %30 = vector.extract_strided_slice %29 {offsets = [0, 0], sizes = [256, 16], strides = [1, 1]} : vector<256x32xf32> to vector<256x16xf32>
    %31 = vector.shape_cast %30 : vector<256x16xf32> to vector<8x2x16x16xf32>
    %32 = vector.extract_strided_slice %29 {offsets = [0, 16], sizes = [256, 16], strides = [1, 1]} : vector<256x32xf32> to vector<256x16xf32>
    %33 = vector.shape_cast %32 : vector<256x16xf32> to vector<8x2x16x16xf32>
    %34 = vector.extract_strided_slice %31 {offsets = [0, 0, 0, 0], sizes = [8, 1, 16, 16], strides = [1, 1, 1, 1]} : vector<8x2x16x16xf32> to vector<8x1x16x16xf32>
    %35 = vector.shape_cast %34 : vector<8x1x16x16xf32> to vector<8x16x16xf32>
    %36 = vector.extract_strided_slice %33 {offsets = [0, 1, 0, 0], sizes = [8, 1, 16, 16], strides = [1, 1, 1, 1]} : vector<8x2x16x16xf32> to vector<8x1x16x16xf32>
    %37 = vector.shape_cast %36 : vector<8x1x16x16xf32> to vector<8x16x16xf32>
    %38 = arith.subf %35, %37 : vector<8x16x16xf32>
    %39 = vector.extract_strided_slice %33 {offsets = [0, 0, 0, 0], sizes = [8, 1, 16, 16], strides = [1, 1, 1, 1]} : vector<8x2x16x16xf32> to vector<8x1x16x16xf32>
    %40 = vector.shape_cast %39 : vector<8x1x16x16xf32> to vector<8x16x16xf32>
    %41 = vector.extract_strided_slice %31 {offsets = [0, 1, 0, 0], sizes = [8, 1, 16, 16], strides = [1, 1, 1, 1]} : vector<8x2x16x16xf32> to vector<8x1x16x16xf32>
    %42 = vector.shape_cast %41 : vector<8x1x16x16xf32> to vector<8x16x16xf32>
    %43 = arith.addf %40, %42 : vector<8x16x16xf32>
    %44 = arith.mulf %38, %38 : vector<8x16x16xf32>
    %45 = arith.mulf %43, %43 : vector<8x16x16xf32>
    %46 = arith.addf %44, %45 : vector<8x16x16xf32>
    %47 = math.sqrt %46 : vector<8x16x16xf32>
    %48 = vector.shape_cast %47 : vector<8x16x16xf32> to vector<128x16xf32>
    %49 = vector.shape_cast %48 : vector<128x16xf32> to vector<16x8x16xf32>
    %cst_25 = arith.constant dense<0.000000e+00> : vector<8x16xf32>
    %50 = vector.multi_reduction <add>, %49, %cst_25 [0] : vector<16x8x16xf32> to vector<8x16xf32>
    %c0_26 = arith.constant 0 : index
    %c0_27 = arith.constant 0 : index
    %51 = vector.load %arg9[%c0_26, %c0_27] : memref<8x16xf32, #tpu.memory_space<vmem>>, vector<8x16xf32>
    %52 = arith.addf %51, %50 : vector<8x16xf32>
    %c0_28 = arith.constant 0 : index
    %c0_29 = arith.constant 0 : index
    %53 = vector.load %arg9[%c0_28, %c0_29] : memref<8x16xf32, #tpu.memory_space<vmem>>, vector<8x16xf32>
    tpu.vector_store %arg9[%c0_28, %c0_29], %52 {strides = array<i32>} : memref<8x16xf32, #tpu.memory_space<vmem>>, vector<8x16xf32>,
    %c0_i32_30 = arith.constant 0 : i32
    %54 = arith.cmpi eq, %arg0, %c0_i32_30 : i32
    %55 = arith.extui %54 : i1 to i32
    %c0_i32_31 = arith.constant 0 : i32
    %56 = arith.cmpi ne, %55, %c0_i32_31 : i32
    scf.if %56 {
      %c0_32 = arith.constant 0 : index
      %c0_33 = arith.constant 0 : index
      %57 = vector.load %arg7[%c0_32, %c0_33] : memref<8x16xf32, #tpu.memory_space<vmem>>, vector<8x16xf32>
      %58 = vector.shape_cast %57 : vector<8x16xf32> to vector<1x8x16xf32>
      %cst_34 = arith.constant dense<0.000000e+00> : vector<1xf32>
      %59 = vector.multi_reduction <add>, %58, %cst_34 [1, 2] : vector<1x8x16xf32> to vector<1xf32>
      %60 = vector.shape_cast %59 : vector<1xf32> to vector<1x1x1xf32>
      %61 = vector.extract %60[0, 0, 0] : f32 from vector<1x1x1xf32>
      %62 = vector.broadcast %61 : f32 to vector<1x1xf32>
      %c0_35 = arith.constant 0 : index
      %c0_36 = arith.constant 0 : index
      %63 = vector.load %arg8[%c0_35, %c0_36] : memref<8x16xf32, #tpu.memory_space<vmem>>, vector<8x16xf32>
      %64 = vector.shape_cast %63 : vector<8x16xf32> to vector<1x8x16xf32>
      %cst_37 = arith.constant dense<0.000000e+00> : vector<1xf32>
      %65 = vector.multi_reduction <add>, %64, %cst_37 [1, 2] : vector<1x8x16xf32> to vector<1xf32>
      %66 = vector.shape_cast %65 : vector<1xf32> to vector<1x1x1xf32>
      %67 = vector.extract %66[0, 0, 0] : f32 from vector<1x1x1xf32>
      %68 = vector.broadcast %67 : f32 to vector<1x1xf32>
      %c0_38 = arith.constant 0 : index
      %c0_39 = arith.constant 0 : index
      %69 = vector.load %arg9[%c0_38, %c0_39] : memref<8x16xf32, #tpu.memory_space<vmem>>, vector<8x16xf32>
      %70 = vector.shape_cast %69 : vector<8x16xf32> to vector<1x8x16xf32>
      %cst_40 = arith.constant dense<0.000000e+00> : vector<1xf32>
      %71 = vector.multi_reduction <add>, %70, %cst_40 [1, 2] : vector<1x8x16xf32> to vector<1xf32>
      %72 = vector.shape_cast %71 : vector<1xf32> to vector<1x1x1xf32>
      %73 = vector.extract %72[0, 0, 0] : f32 from vector<1x1x1xf32>
      %74 = vector.broadcast %73 : f32 to vector<1x1xf32>
      %cst_41 = arith.constant 4.8828125E-4 : f32
      %75 = vector.broadcast %cst_41 : f32 to vector<1x1xf32>
      %76 = arith.mulf %62, %75 : vector<1x1xf32>
      %cst_42 = arith.constant 9.99999997E-7 : f32
      %77 = vector.broadcast %cst_42 : f32 to vector<1x1xf32>
      %78 = arith.addf %76, %77 : vector<1x1xf32>
      %79 = math.sqrt %78 : vector<1x1xf32>
      %cst_43 = arith.constant 4.8828125E-4 : f32
      %80 = vector.broadcast %cst_43 : f32 to vector<1x1xf32>
      %81 = arith.mulf %68, %80 : vector<1x1xf32>
      %cst_44 = arith.constant 9.99999997E-7 : f32
      %82 = vector.broadcast %cst_44 : f32 to vector<1x1xf32>
      %83 = arith.addf %81, %82 : vector<1x1xf32>
      %84 = math.sqrt %83 : vector<1x1xf32>
      %cst_45 = arith.constant 5.000000e-02 : f32
      %85 = vector.broadcast %cst_45 : f32 to vector<1x1xf32>
      %86 = arith.mulf %85, %84 : vector<1x1xf32>
      %87 = arith.addf %79, %86 : vector<1x1xf32>
      %cst_46 = arith.constant 4.8828125E-4 : f32
      %88 = vector.broadcast %cst_46 : f32 to vector<1x1xf32>
      %89 = arith.mulf %74, %88 : vector<1x1xf32>
      %cst_47 = arith.constant 1.000000e-01 : f32
      %90 = vector.broadcast %cst_47 : f32 to vector<1x1xf32>
      %91 = arith.mulf %90, %89 : vector<1x1xf32>
      %92 = arith.addf %87, %91 : vector<1x1xf32>
      %c0_48 = arith.constant 0 : index
      %c0_49 = arith.constant 0 : index
      %93 = vector.load %arg6[%c0_48, %c0_49] : memref<1x1xf32, #tpu.memory_space<vmem>>, vector<1x1xf32>
      tpu.vector_store %arg6[%c0_48, %c0_49], %92 {strides = array<i32>} : memref<1x1xf32, #tpu.memory_space<vmem>>, vector<1x1xf32>,
    } else {
    }
    return
  }
  func.func @transform_0(%arg0: i32) -> (i32, i32, i32) {
    %c0_i32 = arith.constant 0 : i32
    %c0_i32_0 = arith.constant 0 : i32
    %c0_i32_1 = arith.constant 0 : i32
    return %arg0, %c0_i32, %c0_i32_0 : i32, i32, i32
  }
  func.func @transform_1(%arg0: i32) -> (i32, i32, i32) {
    %c0_i32 = arith.constant 0 : i32
    %c0_i32_0 = arith.constant 0 : i32
    %c0_i32_1 = arith.constant 0 : i32
    return %arg0, %c0_i32, %c0_i32_0 : i32, i32, i32
  }
  func.func @transform_2(%arg0: i32) -> (i32, i32, i32) {
    %c0_i32 = arith.constant 0 : i32
    %c0_i32_0 = arith.constant 0 : i32
    %c0_i32_1 = arith.constant 0 : i32
    %c0_i32_2 = arith.constant 0 : i32
    return %c0_i32, %c0_i32_0, %c0_i32_1 : i32, i32, i32
  }
  func.func @transform_3(%arg0: i32) -> (i32, i32) {
    %c0_i32 = arith.constant 0 : i32
    %c0_i32_0 = arith.constant 0 : i32
    %c0_i32_1 = arith.constant 0 : i32
    return %c0_i32, %c0_i32_0 : i32, i32
  }
  func.func @transform_4(%arg0: i32) -> (i32, i32) {
    %c0_i32 = arith.constant 0 : i32
    %c0_i32_0 = arith.constant 0 : i32
    %c0_i32_1 = arith.constant 0 : i32
    return %c0_i32, %c0_i32_0 : i32, i32
  }
  func.func @transform_5(%arg0: i32) -> (i32, i32) {
    %c0_i32 = arith.constant 0 : i32
    %c0_i32_0 = arith.constant 0 : i32
    %c0_i32_1 = arith.constant 0 : i32
    return %c0_i32, %c0_i32_0 : i32, i32
  }
}

module attributes {stable_mosaic.version = 11 : i64} {
  func.func @_deblur_kernel(%arg0: i32, %arg1: memref<8x16x16xf32, #tpu.memory_space<vmem>>, %arg2: memref<8x16x16xf32, #tpu.memory_space<vmem>>, %arg3: memref<48x16xf32, #tpu.memory_space<vmem>>, %arg4: memref<16x16xf32, #tpu.memory_space<vmem>>, %arg5: memref<16x32xf32, #tpu.memory_space<vmem>>, %arg6: memref<1x1xf32, #tpu.memory_space<vmem>>, %arg7: memref<8x16xf32, #tpu.memory_space<vmem>>, %arg8: memref<8x16xf32, #tpu.memory_space<vmem>>, %arg9: memref<8x16xf32, #tpu.memory_space<vmem>>) attributes {dimension_semantics = [#tpu.dimension_semantics<arbitrary>], iteration_bounds = array<i64: 1>, scalar_prefetch = 0 : i64, scratch_operands = 3 : i64, tpu.core_type = #tpu.core_type<tc>, window_params = [{transform_indices = @transform_0, window_bounds = array<i64: 8, 16, 16>}, {transform_indices = @transform_1, window_bounds = array<i64: 8, 16, 16>}, {pipeline_mode = #tpu.pipeline_mode<synchronous>, transform_indices = @transform_2, window_bounds = array<i64: 48, 16>}, {pipeline_mode = #tpu.pipeline_mode<synchronous>, transform_indices = @transform_3, window_bounds = array<i64: 16, 16>}, {pipeline_mode = #tpu.pipeline_mode<synchronous>, transform_indices = @transform_4, window_bounds = array<i64: 16, 32>}, {pipeline_mode = #tpu.pipeline_mode<synchronous>, transform_indices = @transform_5, window_bounds = array<i64: 1, 1>}]} {
    %c0_i32 = arith.constant 0 : i32
    %0 = arith.cmpi eq, %arg0, %c0_i32 : i32
    %1 = arith.extui %0 : i1 to i32
    %c0_i32_0 = arith.constant 0 : i32
    %2 = arith.cmpi ne, %1, %c0_i32_0 : i32
    scf.if %2 {
      %cst_38 = arith.constant 0.000000e+00 : f32
      %89 = vector.broadcast %cst_38 : f32 to vector<8x16xf32>
      %c0_39 = arith.constant 0 : index
      %c0_40 = arith.constant 0 : index
      %90 = vector.load %arg7[%c0_39, %c0_40] : memref<8x16xf32, #tpu.memory_space<vmem>>, vector<8x16xf32>
      tpu.vector_store %arg7[%c0_39, %c0_40], %89 {strides = array<i32>} : memref<8x16xf32, #tpu.memory_space<vmem>>, vector<8x16xf32>,
      %cst_41 = arith.constant 0.000000e+00 : f32
      %91 = vector.broadcast %cst_41 : f32 to vector<8x16xf32>
      %c0_42 = arith.constant 0 : index
      %c0_43 = arith.constant 0 : index
      %92 = vector.load %arg8[%c0_42, %c0_43] : memref<8x16xf32, #tpu.memory_space<vmem>>, vector<8x16xf32>
      tpu.vector_store %arg8[%c0_42, %c0_43], %91 {strides = array<i32>} : memref<8x16xf32, #tpu.memory_space<vmem>>, vector<8x16xf32>,
      %cst_44 = arith.constant 0.000000e+00 : f32
      %93 = vector.broadcast %cst_44 : f32 to vector<8x16xf32>
      %c0_45 = arith.constant 0 : index
      %c0_46 = arith.constant 0 : index
      %94 = vector.load %arg9[%c0_45, %c0_46] : memref<8x16xf32, #tpu.memory_space<vmem>>, vector<8x16xf32>
      tpu.vector_store %arg9[%c0_45, %c0_46], %93 {strides = array<i32>} : memref<8x16xf32, #tpu.memory_space<vmem>>, vector<8x16xf32>,
    } else {
    }
    %c0 = arith.constant 0 : index
    %c0_1 = arith.constant 0 : index
    %c0_2 = arith.constant 0 : index
    %3 = vector.load %arg1[%c0, %c0_1, %c0_2] : memref<8x16x16xf32, #tpu.memory_space<vmem>>, vector<8x16x16xf32>
    %c0_3 = arith.constant 0 : index
    %c0_4 = arith.constant 0 : index
    %c0_5 = arith.constant 0 : index
    %4 = vector.load %arg2[%c0_3, %c0_4, %c0_5] : memref<8x16x16xf32, #tpu.memory_space<vmem>>, vector<8x16x16xf32>
    %5 = arith.subf %3, %4 : vector<8x16x16xf32>
    %6 = vector.shape_cast %5 : vector<8x16x16xf32> to vector<128x16xf32>
    %c0_6 = arith.constant 0 : index
    %c0_7 = arith.constant 0 : index
    %7 = vector.load %arg4[%c0_6, %c0_7] : memref<16x16xf32, #tpu.memory_space<vmem>>, vector<16x16xf32>
    %c0_8 = arith.constant 0 : index
    %c0_9 = arith.constant 0 : index
    %8 = vector.load %arg5[%c0_8, %c0_9] : memref<16x32xf32, #tpu.memory_space<vmem>>, vector<16x32xf32>
    %9 = arith.mulf %6, %6 : vector<128x16xf32>
    %10 = vector.shape_cast %9 : vector<128x16xf32> to vector<16x8x16xf32>
    %cst = arith.constant dense<0.000000e+00> : vector<8x16xf32>
    %11 = vector.multi_reduction <add>, %10, %cst [0] : vector<16x8x16xf32> to vector<8x16xf32>
    %c0_10 = arith.constant 0 : index
    %c0_11 = arith.constant 0 : index
    %12 = vector.load %arg7[%c0_10, %c0_11] : memref<8x16xf32, #tpu.memory_space<vmem>>, vector<8x16xf32>
    %13 = arith.addf %12, %11 : vector<8x16xf32>
    %c0_12 = arith.constant 0 : index
    %c0_13 = arith.constant 0 : index
    %14 = vector.load %arg7[%c0_12, %c0_13] : memref<8x16xf32, #tpu.memory_space<vmem>>, vector<8x16xf32>
    tpu.vector_store %arg7[%c0_12, %c0_13], %13 {strides = array<i32>} : memref<8x16xf32, #tpu.memory_space<vmem>>, vector<8x16xf32>,
    %c0_14 = arith.constant 0 : index
    %c0_15 = arith.constant 0 : index
    %15 = vector.load %arg3[%c0_14, %c0_15] : memref<48x16xf32, #tpu.memory_space<vmem>>, vector<48x16xf32>
    %16 = vector.extract_strided_slice %5 {offsets = [0, 0, 0], sizes = [1, 16, 16], strides = [1, 1, 1]} : vector<8x16x16xf32> to vector<1x16x16xf32>
    %17 = vector.shape_cast %16 : vector<1x16x16xf32> to vector<16x16xf32>
    %cst_16 = arith.constant dense<0.000000e+00> : vector<48x16xf32>
    %18 = tpu.matmul %15, %17, %cst_16 {dimension_numbers = #tpu.dot_dimension_numbers<[1], [0], [0], [1], [0, 0, 1, 1], [], []>, precision = #tpu.contract_precision<fp32>} : vector<48x16xf32>, vector<16x16xf32>, vector<48x16xf32> -> vector<48x16xf32>
    %19 = vector.extract_strided_slice %5 {offsets = [1, 0, 0], sizes = [1, 16, 16], strides = [1, 1, 1]} : vector<8x16x16xf32> to vector<1x16x16xf32>
    %20 = vector.shape_cast %19 : vector<1x16x16xf32> to vector<16x16xf32>
    %cst_17 = arith.constant dense<0.000000e+00> : vector<48x16xf32>
    %21 = tpu.matmul %15, %20, %cst_17 {dimension_numbers = #tpu.dot_dimension_numbers<[1], [0], [0], [1], [0, 0, 1, 1], [], []>, precision = #tpu.contract_precision<fp32>} : vector<48x16xf32>, vector<16x16xf32>, vector<48x16xf32> -> vector<48x16xf32>
    %22 = vector.extract_strided_slice %5 {offsets = [2, 0, 0], sizes = [1, 16, 16], strides = [1, 1, 1]} : vector<8x16x16xf32> to vector<1x16x16xf32>
    %23 = vector.shape_cast %22 : vector<1x16x16xf32> to vector<16x16xf32>
    %cst_18 = arith.constant dense<0.000000e+00> : vector<48x16xf32>
    %24 = tpu.matmul %15, %23, %cst_18 {dimension_numbers = #tpu.dot_dimension_numbers<[1], [0], [0], [1], [0, 0, 1, 1], [], []>, precision = #tpu.contract_precision<fp32>} : vector<48x16xf32>, vector<16x16xf32>, vector<48x16xf32> -> vector<48x16xf32>
    %25 = vector.extract_strided_slice %5 {offsets = [3, 0, 0], sizes = [1, 16, 16], strides = [1, 1, 1]} : vector<8x16x16xf32> to vector<1x16x16xf32>
    %26 = vector.shape_cast %25 : vector<1x16x16xf32> to vector<16x16xf32>
    %cst_19 = arith.constant dense<0.000000e+00> : vector<48x16xf32>
    %27 = tpu.matmul %15, %26, %cst_19 {dimension_numbers = #tpu.dot_dimension_numbers<[1], [0], [0], [1], [0, 0, 1, 1], [], []>, precision = #tpu.contract_precision<fp32>} : vector<48x16xf32>, vector<16x16xf32>, vector<48x16xf32> -> vector<48x16xf32>
    %28 = vector.extract_strided_slice %5 {offsets = [4, 0, 0], sizes = [1, 16, 16], strides = [1, 1, 1]} : vector<8x16x16xf32> to vector<1x16x16xf32>
    %29 = vector.shape_cast %28 : vector<1x16x16xf32> to vector<16x16xf32>
    %cst_20 = arith.constant dense<0.000000e+00> : vector<48x16xf32>
    %30 = tpu.matmul %15, %29, %cst_20 {dimension_numbers = #tpu.dot_dimension_numbers<[1], [0], [0], [1], [0, 0, 1, 1], [], []>, precision = #tpu.contract_precision<fp32>} : vector<48x16xf32>, vector<16x16xf32>, vector<48x16xf32> -> vector<48x16xf32>
    %31 = vector.extract_strided_slice %5 {offsets = [5, 0, 0], sizes = [1, 16, 16], strides = [1, 1, 1]} : vector<8x16x16xf32> to vector<1x16x16xf32>
    %32 = vector.shape_cast %31 : vector<1x16x16xf32> to vector<16x16xf32>
    %cst_21 = arith.constant dense<0.000000e+00> : vector<48x16xf32>
    %33 = tpu.matmul %15, %32, %cst_21 {dimension_numbers = #tpu.dot_dimension_numbers<[1], [0], [0], [1], [0, 0, 1, 1], [], []>, precision = #tpu.contract_precision<fp32>} : vector<48x16xf32>, vector<16x16xf32>, vector<48x16xf32> -> vector<48x16xf32>
    %34 = vector.extract_strided_slice %5 {offsets = [6, 0, 0], sizes = [1, 16, 16], strides = [1, 1, 1]} : vector<8x16x16xf32> to vector<1x16x16xf32>
    %35 = vector.shape_cast %34 : vector<1x16x16xf32> to vector<16x16xf32>
    %cst_22 = arith.constant dense<0.000000e+00> : vector<48x16xf32>
    %36 = tpu.matmul %15, %35, %cst_22 {dimension_numbers = #tpu.dot_dimension_numbers<[1], [0], [0], [1], [0, 0, 1, 1], [], []>, precision = #tpu.contract_precision<fp32>} : vector<48x16xf32>, vector<16x16xf32>, vector<48x16xf32> -> vector<48x16xf32>
    %37 = vector.extract_strided_slice %5 {offsets = [7, 0, 0], sizes = [1, 16, 16], strides = [1, 1, 1]} : vector<8x16x16xf32> to vector<1x16x16xf32>
    %38 = vector.shape_cast %37 : vector<1x16x16xf32> to vector<16x16xf32>
    %cst_23 = arith.constant dense<0.000000e+00> : vector<48x16xf32>
    %39 = tpu.matmul %15, %38, %cst_23 {dimension_numbers = #tpu.dot_dimension_numbers<[1], [0], [0], [1], [0, 0, 1, 1], [], []>, precision = #tpu.contract_precision<fp32>} : vector<48x16xf32>, vector<16x16xf32>, vector<48x16xf32> -> vector<48x16xf32>
    %40 = vector.shape_cast %18 : vector<48x16xf32> to vector<1x48x16xf32>
    %41 = vector.shape_cast %21 : vector<48x16xf32> to vector<1x48x16xf32>
    %42 = vector.shape_cast %24 : vector<48x16xf32> to vector<1x48x16xf32>
    %43 = vector.shape_cast %27 : vector<48x16xf32> to vector<1x48x16xf32>
    %44 = vector.shape_cast %30 : vector<48x16xf32> to vector<1x48x16xf32>
    %45 = vector.shape_cast %33 : vector<48x16xf32> to vector<1x48x16xf32>
    %46 = vector.shape_cast %36 : vector<48x16xf32> to vector<1x48x16xf32>
    %47 = vector.shape_cast %39 : vector<48x16xf32> to vector<1x48x16xf32>
    %48 = tpu.concatenate %40, %41, %42, %43, %44, %45, %46, %47 in 0 : vector<1x48x16xf32>, vector<1x48x16xf32>, vector<1x48x16xf32>, vector<1x48x16xf32>, vector<1x48x16xf32>, vector<1x48x16xf32>, vector<1x48x16xf32>, vector<1x48x16xf32> -> vector<8x48x16xf32>
    %49 = vector.extract_strided_slice %48 {offsets = [0, 0, 0], sizes = [8, 16, 16], strides = [1, 1, 1]} : vector<8x48x16xf32> to vector<8x16x16xf32>
    %50 = vector.shape_cast %49 : vector<8x16x16xf32> to vector<128x16xf32>
    %51 = vector.extract_strided_slice %48 {offsets = [0, 16, 0], sizes = [8, 32, 16], strides = [1, 1, 1]} : vector<8x48x16xf32> to vector<8x32x16xf32>
    %52 = vector.shape_cast %51 : vector<8x32x16xf32> to vector<256x16xf32>
    %cst_24 = arith.constant dense<0.000000e+00> : vector<128x16xf32>
    %53 = tpu.matmul %6, %7, %cst_24 {dimension_numbers = #tpu.dot_dimension_numbers<[1], [0], [0], [1], [0, 0, 1, 1], [], []>, precision = #tpu.contract_precision<fp32>} : vector<128x16xf32>, vector<16x16xf32>, vector<128x16xf32> -> vector<128x16xf32>
    %54 = arith.addf %50, %53 : vector<128x16xf32>
    %55 = arith.mulf %54, %54 : vector<128x16xf32>
    %56 = vector.shape_cast %55 : vector<128x16xf32> to vector<16x8x16xf32>
    %cst_25 = arith.constant dense<0.000000e+00> : vector<8x16xf32>
    %57 = vector.multi_reduction <add>, %56, %cst_25 [0] : vector<16x8x16xf32> to vector<8x16xf32>
    %c0_26 = arith.constant 0 : index
    %c0_27 = arith.constant 0 : index
    %58 = vector.load %arg8[%c0_26, %c0_27] : memref<8x16xf32, #tpu.memory_space<vmem>>, vector<8x16xf32>
    %59 = arith.addf %58, %57 : vector<8x16xf32>
    %c0_28 = arith.constant 0 : index
    %c0_29 = arith.constant 0 : index
    %60 = vector.load %arg8[%c0_28, %c0_29] : memref<8x16xf32, #tpu.memory_space<vmem>>, vector<8x16xf32>
    tpu.vector_store %arg8[%c0_28, %c0_29], %59 {strides = array<i32>} : memref<8x16xf32, #tpu.memory_space<vmem>>, vector<8x16xf32>,
    %cst_30 = arith.constant dense<0.000000e+00> : vector<256x32xf32>
    %61 = tpu.matmul %52, %8, %cst_30 {dimension_numbers = #tpu.dot_dimension_numbers<[1], [0], [0], [1], [0, 0, 1, 1], [], []>, precision = #tpu.contract_precision<fp32>} : vector<256x16xf32>, vector<16x32xf32>, vector<256x32xf32> -> vector<256x32xf32>
    %62 = vector.extract_strided_slice %61 {offsets = [0, 0], sizes = [256, 16], strides = [1, 1]} : vector<256x32xf32> to vector<256x16xf32>
    %63 = vector.shape_cast %62 : vector<256x16xf32> to vector<8x2x16x16xf32>
    %64 = vector.extract_strided_slice %61 {offsets = [0, 16], sizes = [256, 16], strides = [1, 1]} : vector<256x32xf32> to vector<256x16xf32>
    %65 = vector.shape_cast %64 : vector<256x16xf32> to vector<8x2x16x16xf32>
    %66 = vector.extract_strided_slice %63 {offsets = [0, 0, 0, 0], sizes = [8, 1, 16, 16], strides = [1, 1, 1, 1]} : vector<8x2x16x16xf32> to vector<8x1x16x16xf32>
    %67 = vector.shape_cast %66 : vector<8x1x16x16xf32> to vector<8x16x16xf32>
    %68 = vector.extract_strided_slice %65 {offsets = [0, 1, 0, 0], sizes = [8, 1, 16, 16], strides = [1, 1, 1, 1]} : vector<8x2x16x16xf32> to vector<8x1x16x16xf32>
    %69 = vector.shape_cast %68 : vector<8x1x16x16xf32> to vector<8x16x16xf32>
    %70 = arith.subf %67, %69 : vector<8x16x16xf32>
    %71 = vector.extract_strided_slice %65 {offsets = [0, 0, 0, 0], sizes = [8, 1, 16, 16], strides = [1, 1, 1, 1]} : vector<8x2x16x16xf32> to vector<8x1x16x16xf32>
    %72 = vector.shape_cast %71 : vector<8x1x16x16xf32> to vector<8x16x16xf32>
    %73 = vector.extract_strided_slice %63 {offsets = [0, 1, 0, 0], sizes = [8, 1, 16, 16], strides = [1, 1, 1, 1]} : vector<8x2x16x16xf32> to vector<8x1x16x16xf32>
    %74 = vector.shape_cast %73 : vector<8x1x16x16xf32> to vector<8x16x16xf32>
    %75 = arith.addf %72, %74 : vector<8x16x16xf32>
    %76 = arith.mulf %70, %70 : vector<8x16x16xf32>
    %77 = arith.mulf %75, %75 : vector<8x16x16xf32>
    %78 = arith.addf %76, %77 : vector<8x16x16xf32>
    %79 = math.sqrt %78 : vector<8x16x16xf32>
    %80 = vector.shape_cast %79 : vector<8x16x16xf32> to vector<128x16xf32>
    %81 = vector.shape_cast %80 : vector<128x16xf32> to vector<16x8x16xf32>
    %cst_31 = arith.constant dense<0.000000e+00> : vector<8x16xf32>
    %82 = vector.multi_reduction <add>, %81, %cst_31 [0] : vector<16x8x16xf32> to vector<8x16xf32>
    %c0_32 = arith.constant 0 : index
    %c0_33 = arith.constant 0 : index
    %83 = vector.load %arg9[%c0_32, %c0_33] : memref<8x16xf32, #tpu.memory_space<vmem>>, vector<8x16xf32>
    %84 = arith.addf %83, %82 : vector<8x16xf32>
    %c0_34 = arith.constant 0 : index
    %c0_35 = arith.constant 0 : index
    %85 = vector.load %arg9[%c0_34, %c0_35] : memref<8x16xf32, #tpu.memory_space<vmem>>, vector<8x16xf32>
    tpu.vector_store %arg9[%c0_34, %c0_35], %84 {strides = array<i32>} : memref<8x16xf32, #tpu.memory_space<vmem>>, vector<8x16xf32>,
    %c0_i32_36 = arith.constant 0 : i32
    %86 = arith.cmpi eq, %arg0, %c0_i32_36 : i32
    %87 = arith.extui %86 : i1 to i32
    %c0_i32_37 = arith.constant 0 : i32
    %88 = arith.cmpi ne, %87, %c0_i32_37 : i32
    scf.if %88 {
      %c0_38 = arith.constant 0 : index
      %c0_39 = arith.constant 0 : index
      %89 = vector.load %arg7[%c0_38, %c0_39] : memref<8x16xf32, #tpu.memory_space<vmem>>, vector<8x16xf32>
      %90 = vector.shape_cast %89 : vector<8x16xf32> to vector<1x8x16xf32>
      %cst_40 = arith.constant dense<0.000000e+00> : vector<1xf32>
      %91 = vector.multi_reduction <add>, %90, %cst_40 [1, 2] : vector<1x8x16xf32> to vector<1xf32>
      %92 = vector.shape_cast %91 : vector<1xf32> to vector<1x1x1xf32>
      %93 = vector.extract %92[0, 0, 0] : f32 from vector<1x1x1xf32>
      %94 = vector.broadcast %93 : f32 to vector<1x1xf32>
      %c0_41 = arith.constant 0 : index
      %c0_42 = arith.constant 0 : index
      %95 = vector.load %arg8[%c0_41, %c0_42] : memref<8x16xf32, #tpu.memory_space<vmem>>, vector<8x16xf32>
      %96 = vector.shape_cast %95 : vector<8x16xf32> to vector<1x8x16xf32>
      %cst_43 = arith.constant dense<0.000000e+00> : vector<1xf32>
      %97 = vector.multi_reduction <add>, %96, %cst_43 [1, 2] : vector<1x8x16xf32> to vector<1xf32>
      %98 = vector.shape_cast %97 : vector<1xf32> to vector<1x1x1xf32>
      %99 = vector.extract %98[0, 0, 0] : f32 from vector<1x1x1xf32>
      %100 = vector.broadcast %99 : f32 to vector<1x1xf32>
      %c0_44 = arith.constant 0 : index
      %c0_45 = arith.constant 0 : index
      %101 = vector.load %arg9[%c0_44, %c0_45] : memref<8x16xf32, #tpu.memory_space<vmem>>, vector<8x16xf32>
      %102 = vector.shape_cast %101 : vector<8x16xf32> to vector<1x8x16xf32>
      %cst_46 = arith.constant dense<0.000000e+00> : vector<1xf32>
      %103 = vector.multi_reduction <add>, %102, %cst_46 [1, 2] : vector<1x8x16xf32> to vector<1xf32>
      %104 = vector.shape_cast %103 : vector<1xf32> to vector<1x1x1xf32>
      %105 = vector.extract %104[0, 0, 0] : f32 from vector<1x1x1xf32>
      %106 = vector.broadcast %105 : f32 to vector<1x1xf32>
      %cst_47 = arith.constant 4.8828125E-4 : f32
      %107 = vector.broadcast %cst_47 : f32 to vector<1x1xf32>
      %108 = arith.mulf %94, %107 : vector<1x1xf32>
      %cst_48 = arith.constant 9.99999997E-7 : f32
      %109 = vector.broadcast %cst_48 : f32 to vector<1x1xf32>
      %110 = arith.addf %108, %109 : vector<1x1xf32>
      %111 = math.sqrt %110 : vector<1x1xf32>
      %cst_49 = arith.constant 4.8828125E-4 : f32
      %112 = vector.broadcast %cst_49 : f32 to vector<1x1xf32>
      %113 = arith.mulf %100, %112 : vector<1x1xf32>
      %cst_50 = arith.constant 9.99999997E-7 : f32
      %114 = vector.broadcast %cst_50 : f32 to vector<1x1xf32>
      %115 = arith.addf %113, %114 : vector<1x1xf32>
      %116 = math.sqrt %115 : vector<1x1xf32>
      %cst_51 = arith.constant 5.000000e-02 : f32
      %117 = vector.broadcast %cst_51 : f32 to vector<1x1xf32>
      %118 = arith.mulf %117, %116 : vector<1x1xf32>
      %119 = arith.addf %111, %118 : vector<1x1xf32>
      %cst_52 = arith.constant 4.8828125E-4 : f32
      %120 = vector.broadcast %cst_52 : f32 to vector<1x1xf32>
      %121 = arith.mulf %106, %120 : vector<1x1xf32>
      %cst_53 = arith.constant 1.000000e-01 : f32
      %122 = vector.broadcast %cst_53 : f32 to vector<1x1xf32>
      %123 = arith.mulf %122, %121 : vector<1x1xf32>
      %124 = arith.addf %119, %123 : vector<1x1xf32>
      %c0_54 = arith.constant 0 : index
      %c0_55 = arith.constant 0 : index
      %125 = vector.load %arg6[%c0_54, %c0_55] : memref<1x1xf32, #tpu.memory_space<vmem>>, vector<1x1xf32>
      tpu.vector_store %arg6[%c0_54, %c0_55], %124 {strides = array<i32>} : memref<1x1xf32, #tpu.memory_space<vmem>>, vector<1x1xf32>,
    } else {
    }
    return
  }
  func.func @transform_0(%arg0: i32) -> (i32, i32, i32) {
    %c0_i32 = arith.constant 0 : i32
    %c0_i32_0 = arith.constant 0 : i32
    %c0_i32_1 = arith.constant 0 : i32
    return %arg0, %c0_i32, %c0_i32_0 : i32, i32, i32
  }
  func.func @transform_1(%arg0: i32) -> (i32, i32, i32) {
    %c0_i32 = arith.constant 0 : i32
    %c0_i32_0 = arith.constant 0 : i32
    %c0_i32_1 = arith.constant 0 : i32
    return %arg0, %c0_i32, %c0_i32_0 : i32, i32, i32
  }
  func.func @transform_2(%arg0: i32) -> (i32, i32) {
    %c0_i32 = arith.constant 0 : i32
    %c0_i32_0 = arith.constant 0 : i32
    %c0_i32_1 = arith.constant 0 : i32
    return %c0_i32, %c0_i32_0 : i32, i32
  }
  func.func @transform_3(%arg0: i32) -> (i32, i32) {
    %c0_i32 = arith.constant 0 : i32
    %c0_i32_0 = arith.constant 0 : i32
    %c0_i32_1 = arith.constant 0 : i32
    return %c0_i32, %c0_i32_0 : i32, i32
  }
  func.func @transform_4(%arg0: i32) -> (i32, i32) {
    %c0_i32 = arith.constant 0 : i32
    %c0_i32_0 = arith.constant 0 : i32
    %c0_i32_1 = arith.constant 0 : i32
    return %c0_i32, %c0_i32_0 : i32, i32
  }
  func.func @transform_5(%arg0: i32) -> (i32, i32) {
    %c0_i32 = arith.constant 0 : i32
    %c0_i32_0 = arith.constant 0 : i32
    %c0_i32_1 = arith.constant 0 : i32
    return %c0_i32, %c0_i32_0 : i32, i32
  }
}

</mosaic_0001>

<bundles_post_ra>
// kernel: tpu_custom_call.1
= control target key start
LH: loop header
LB: loop body
LE: loop exit
PB: predicated region body
PF: predicated region fallthrough
CT: control target
= control target key end

     0   :  { %vm25_vm0 = vcmask 130048   ;;  %s14498_s0 = inlined_call_operand.vmem [shape: f32[8,16,16], index: 0, kind: input, shape index: {}]   ;;  %s14499_s1 = inlined_call_operand.vmem [shape: f32[8,16,16], index: 1, kind: input, shape index: {}]   ;;  %s14500_s2 = inlined_call_operand.vmem [shape: f32[8,48,16], index: 2, kind: input, shape index: {}]   ;;  %s14501_s3 = inlined_call_operand.vmem [shape: f32[16,16], index: 3, kind: input, shape index: {}]   ;;  %s14502_s4 = inlined_call_operand.vmem [shape: f32[16,32], index: 4, kind: input, shape index: {}]   ;;  %s14503_s5 = inlined_call_operand.hbm [shape: f32[1,1], index: 5, kind: output, shape index: {}]  }
   0x1   :  { %v29_v0 = vld [vmem:[%s14498_s0] sm:$0xff]  ;;  %v30_v1 = vld [vmem:[%s14498_s0 + $0x8] sm:$0xff]  ;;  %v31_v5 = vld [vmem:[%s14498_s0 + $0x10] sm:$0xff] }
   0x2   :  { %v45_v2 = vld [vmem:[%s14499_s1] sm:$0xff]  ;;  %v46_v3 = vld [vmem:[%s14499_s1 + $0x8] sm:$0xff]  ;;  %v32_v6 = vld [vmem:[%s14498_s0 + $0x18] sm:$0xff] }
   0x3   :  { %v11956_v4 = vsub.f32 %v29_v0, %v45_v2  ;;  %v11964_v7 = vsub.f32 %v30_v1, %v46_v3  ;;  %v47_v8 = vld [vmem:[%s14499_s1 + $0x10] sm:$0xff]  ;;  %v48_v9 = vld [vmem:[%s14499_s1 + $0x18] sm:$0xff]  ;;  %v132_v10 = vld [vmem:[%s14500_s2] sm:$0xff] }
   0x4   :  { %v11976_v12 = vsub.f32 %v31_v5, %v47_v8  ;;  %v11978_v13 = vsub.f32 %v32_v6, %v48_v9  ;;  %v138_v14 = vld [vmem:[%s14500_s2 + $0x30] sm:$0xff]  ;;  %v181_v16 = vsel %vm25_vm0, %v132_v10, 0  ;;  %v133_v19 = vld [vmem:[%s14500_s2 + $0x8] sm:$0xff]  ;;  %v139_v20 = vld [vmem:[%s14500_s2 + $0x38] sm:$0xff] }
   0x5   :  { %14621 = vst [vmem:[#allocation8_spill] sm:$0xff] %v11956_v4  ;;  %14622 = vst [vmem:[#allocation9_spill] sm:$0xff] %v11964_v7  ;;  %v199_v11 = vand.u32 4294901760, %v11956_v4  ;;  %v202_v15 = vand.u32 4294901760, %v11964_v7  ;;  %v873_v17 = vsel %vm25_vm0, %v138_v14, 0  ;;  %v11996_v23 = vand.u32 4294901760, %v181_v16 }
   0x6   :  { %14623 = vst [vmem:[#allocation10_spill] sm:$0xff] %v11976_v12  ;;  %14624 = vst [vmem:[#allocation11_spill] sm:$0xff] %v11978_v13  ;;  %v891_v18 = vand.u32 4294901760, %v11976_v12  ;;  %v894_v22 = vand.u32 4294901760, %v11978_v13  ;;  %v11998_v24 = vand.u32 4294901760, %v873_v17  ;;  %v134_v25 = vld [vmem:[%s14500_s2 + $0x10] sm:$0xff] }
   0x7   :  { %v11993_v21 = vpack.c.bf16 %v202_v15, %v199_v11  ;;  %v12011_v27 = vsub.f32 %v181_v16, %v11996_v23  ;;  %v184_v28 = vsel %vm25_vm0, %v133_v19, 0  ;;  %v876_v29 = vsel %vm25_vm0, %v139_v20, 0  ;;  %v140_v37 = vld [vmem:[%s14500_s2 + $0x40] sm:$0xff]  ;;  %v135_v49 = vld [vmem:[%s14500_s2 + $0x18] sm:$0xff] }
   0x8   :  { %v12008_v26 = vpack.c.bf16 %v894_v22, %v891_v18  ;;  %v12017_v30 = vsub.f32 %v873_v17, %v11998_v24  ;;  %v12019_v31 = vand.u32 4294901760, %v184_v28  ;;  %v12021_v32 = vand.u32 4294901760, %v876_v29 }
   0x9   :  { %11103 = vmatprep.subr.bf16.mxu0 %v11993_v21  ;;  %v267_v33 = vand.u32 4294901760, %v12011_v27  ;;  %v12026_v34 = vsub.f32 %v11956_v4, %v199_v11  ;;  %v12029_v35 = vsub.f32 %v11964_v7, %v202_v15  ;;  %v187_v36 = vsel %vm25_vm0, %v134_v25, 0 }
   0xa   :  { %11105 = vmatpush3.bf16.msra.mxu0 %v11993_v21  ;;  %11127 = vmatprep.subr.bf16.mxu1 %v12008_v26  ;;  %v959_v38 = vand.u32 4294901760, %v12017_v30  ;;  %v12038_v39 = vsub.f32 %v184_v28, %v12019_v31  ;;  %v12041_v40 = vsub.f32 %v876_v29, %v12021_v32  ;;  %v12048_v44 = vand.u32 4294901760, %v187_v36 }
   0xb   :  { %11129 = vmatpush3.bf16.msra.mxu1 %v12008_v26  ;;  %v268_v41 = vsub.f32 %v12011_v27, %v267_v33  ;;  %v328_v42 = vand.u32 4294901760, %v12026_v34  ;;  %v335_v43 = vand.u32 4294901760, %v12029_v35  ;;  %v879_v48 = vsel %vm25_vm0, %v140_v37, 0 }
   0xc   :  { %v960_v45 = vsub.f32 %v12017_v30, %v959_v38  ;;  %v277_v46 = vand.u32 4294901760, %v12038_v39  ;;  %v969_v47 = vand.u32 4294901760, %v12041_v40 }
   0xd   :  { %10 = vsyncpa [#allocation6], 0  ;;  %v269_v50 = vand.u32 4294901760, %v268_v41  ;;  %v329_v51 = vsub.f32 %v12026_v34, %v328_v42  ;;  %v336_v52 = vsub.f32 %v12029_v35, %v335_v43  ;;  %v12066_v53 = vsub.f32 %v187_v36, %v12048_v44  ;;  %v141_v58 = vld [vmem:[%s14500_s2 + $0x48] sm:$0xff]  ;;  %v136_v59 = vld [vmem:[%s14500_s2 + $0x20] sm:$0xff]  ;;  %s11912_s30 = smov 112  }
   0xe   :  { %v961_v54 = vand.u32 4294901760, %v960_v45  ;;  %v278_v55 = vsub.f32 %v12038_v39, %v277_v46  ;;  %v970_v56 = vsub.f32 %v12041_v40, %v969_v47  ;;  %v12074_v57 = vand.u32 4294901760, %v879_v48  ;;  %v142_v5 = vld [vmem:[%s14500_s2 + $0x50] sm:$0xff]  ;;  %v137_v6 = vld [vmem:[%s14500_s2 + $0x28] sm:$0xff]  ;;  %v143_v8 = vld [vmem:[%s14500_s2 + $0x58] sm:$0xff]  ;;  %s11913_s9 = smov [#allocation5]  }
   0xf   :  { %10002 = vmatprep.mubr.f32.mxu0 %v269_v50  ;;  %v330_v60 = vand.u32 4294901760, %v329_v51  ;;  %v337_v61 = vand.u32 4294901760, %v336_v52  ;;  %v287_v62 = vand.u32 4294901760, %v12066_v53  ;;  %v190_v63 = vsel %vm25_vm0, %v135_v49, 0  ;;  %s9294_s10 = sshll.u32 %s11913_s9, 4  ;;  %s9295_s10 = int_to_ptr.vmem [resolvable:$true] %s9294_s10 }
  0x10   :  { %10080 = vmatprep.mubr.f32.mxu1 %v961_v54  ;;  %v279_v0 = vand.u32 4294901760, %v278_v55  ;;  %v971_v1 = vand.u32 4294901760, %v970_v56  ;;  %v12085_v2 = vsub.f32 %v879_v48, %v12074_v57  ;;  %v12087_v3 = vand.u32 4294901760, %v190_v63  ;;  %s11886_s11 = scalar_lea.vmem %s9295_s10, 16  ;;  %s11890_s12 = scalar_lea.vmem %s9295_s10, 32 }
  0x11   :  { %v11106_v9 = vpack.c.bf16 %v337_v61, %v330_v60  ;;  %v288_v10 = vsub.f32 %v12066_v53, %v287_v62  ;;  %v882_v11 = vsel %vm25_vm0, %v141_v58, 0  ;;  %v193_v14 = vsel %vm25_vm0, %v136_v59, 0  ;;  %p11887_p0 = scmp.ne.s32.totalorder %s9295_s10, %s11886_s11  ;;  %p11891_p1 = scmp.lt.s32.totalorder %s9295_s10, %s9295_s10 }
  0x12   :  { %10003 = vmatmul.mubr.f32.vlgmr.msra.gmra.mrb[0].mxu0 %v279_v0  ;;  %10081 = vmatmul.mubr.f32.vlgmr.msra.gmra.mrb[0].mxu1 %v971_v1  ;;  %v979_v15 = vand.u32 4294901760, %v12085_v2  ;;  %v12105_v16 = vsub.f32 %v190_v63, %v12087_v3  ;;  %v12107_v17 = vand.u32 4294901760, %v882_v11  ;;  %v12109_v19 = vand.u32 4294901760, %v193_v14  ;;  %p11892_p2 = scmp.lt.s32.totalorder %s11890_s12, %s11886_s11 }
  0x13   :  { %11107 = vmatprep.subr.bf16.mxu0 %v11106_v9  ;;  %v289_v20 = vand.u32 4294901760, %v288_v10  ;;  %v885_v25 = vsel %vm25_vm0, %v142_v5, 0  ;;  %v196_v28 = vsel %vm25_vm0, %v137_v6, 0  ;;  %v888_v29 = vsel %vm25_vm0, %v143_v8, 0 }
  0x14   :  { %11109 = vmatpush3.bf16.msra.mxu0 %v11106_v9  ;;  %v980_v36 = vsub.f32 %v12085_v2, %v979_v15  ;;  %v297_v37 = vand.u32 4294901760, %v12105_v16  ;;  %v12119_v41 = vsub.f32 %v882_v11, %v12107_v17  ;;  %v12122_v45 = vsub.f32 %v193_v14, %v12109_v19  ;;  %p11893_p3 = por %p11892_p2, %p11891_p1 }
  0x15   :  { %10005 = vmatprep.mubr.f32.mxu0 %v289_v20  ;;  %v12124_v48 = vand.u32 4294901760, %v885_v25  ;;  %v12126_v49 = vand.u32 4294901760, %v196_v28  ;;  %v12128_v50 = vand.u32 4294901760, %v888_v29  ;;  %v12133_v51 = vsub.f32 %v11976_v12, %v891_v18 }
  0x16   :  { %v981_v52 = vand.u32 4294901760, %v980_v36  ;;  %v298_v54 = vsub.f32 %v12105_v16, %v297_v37  ;;  %v989_v55 = vand.u32 4294901760, %v12119_v41  ;;  %v307_v56 = vand.u32 4294901760, %v12122_v45  ;;  %p11894_p4 = pnand %p11893_p3, %p11887_p0 }
  0x17   :  { %v12141_v58 = vsub.f32 %v885_v25, %v12124_v48  ;;  %v12144_v59 = vsub.f32 %v196_v28, %v12126_v49  ;;  %v12147_v60 = vsub.f32 %v888_v29, %v12128_v50  ;;  %v1020_v18 = vand.u32 4294901760, %v12133_v51 }
  0x18   :  { %10083 = vmatprep.mubr.f32.mxu1 %v981_v52  ;;  %v299_v61 = vand.u32 4294901760, %v298_v54  ;;  %v990_v63 = vsub.f32 %v12119_v41, %v989_v55  ;;  %v308_v0 = vsub.f32 %v12122_v45, %v307_v56  ;;  %v1026_v1 = vsub.f32 %v11978_v13, %v894_v22 }
  0x19   :  { %v999_v5 = vand.u32 4294901760, %v12141_v58  ;;  %v14504_v6 = vand.u32 4294901760, %v12144_v59  ;;  %v1009_v8 = vand.u32 4294901760, %v12147_v60  ;;  %v1021_v9 = vsub.f32 %v12133_v51, %v1020_v18 }
  0x1a   :  { %10006 = vmatmul.mubr.f32.gmra.mrb[2].mxu0 %v299_v61  ;;  %v991_v10 = vand.u32 4294901760, %v990_v63  ;;  %v309_v11 = vand.u32 4294901760, %v308_v0  ;;  %v1027_v14 = vand.u32 4294901760, %v1026_v1  ;;  %v11110_v20 = vpack.c.bf16 %v12029_v35, %v12026_v34  ;;  %v33_v34 = vld [vmem:[%s14498_s0 + $0x20] sm:$0xff] }
  0x1b   :  { %v1000_v25 = vsub.f32 %v12141_v58, %v999_v5  ;;  %v318_v22 = vsub.f32 %v12144_v59, %v14504_v6  ;;  %v1010_v28 = vsub.f32 %v12147_v60, %v1009_v8  ;;  %v1022_v29 = vand.u32 4294901760, %v1021_v9  ;;  %v49_v35 = vld [vmem:[%s14499_s1 + $0x20] sm:$0xff] }
  0x1c   :  { %10084 = vmatmul.mubr.f32.gmra.mrb[2].mxu1 %v991_v10  ;;  %10008 = vmatprep.mubr.f32.mxu0 %v309_v11  ;;  %v1028_v36 = vsub.f32 %v1026_v1, %v1027_v14  ;;  %v11134_v6 = vpack.c.bf16 %v1026_v1, %v12133_v51  ;;  %v11118_v51 = vpack.c.bf16 %v335_v43, %v328_v42  ;;  %v34_v42 = vld [vmem:[%s14498_s0 + $0x28] sm:$0xff]  ;;  %v146_v11 = vld [vmem:[%s14500_s2 + $0x70] sm:$0xff] }
  0x1d   :  { %v1001_v52 = vand.u32 4294901760, %v1000_v25  ;;  %v319_v54 = vand.u32 4294901760, %v318_v22  ;;  %v1011_v61 = vand.u32 4294901760, %v1010_v28  ;;  %11111 = vmatprep.subr.bf16.mxu0 %v11110_v20  ;;  %v11142_v1 = vpack.c.bf16 %v1027_v14, %v1020_v18  ;;  %v50_v43 = vld [vmem:[%s14499_s1 + $0x28] sm:$0xff]  ;;  %v152_v28 = vld [vmem:[%s14500_s2 + $0xa0] sm:$0xff] }
  0x1e   :  { %v1029_v63 = vand.u32 4294901760, %v1028_v36  ;;  %v12221_v18 = vsub.f32 %v33_v34, %v49_v35  ;;  %v147_v36 = vld [vmem:[%s14500_s2 + $0x78] sm:$0xff] }
  0x1f   :  { %10086 = vmatprep.mubr.f32.mxu1 %v1001_v52  ;;  %10009 = vmatmul.mubr.f32.gmra.mrb[4].mxu0 %v319_v54 }
  0x20   :  { %10087 = vmatmul.mubr.f32.gmra.mrb[4].mxu1 %v1011_v61  ;;  %v11130_v0 = vpack.c.bf16 %v1029_v63, %v1022_v29  ;;  %10015 = vmatprep.mubr.f32.mxu0 %v11996_v23  ;;  %14625 = vst [vmem:[#allocation12_spill] sm:$0xff] %v12221_v18  ;;  %v1571_v29 = vsel %vm25_vm0, %v146_v11, 0  ;;  %v148_v63 = vld [vmem:[%s14500_s2 + $0x80] sm:$0xff] }
  0x21   :  { %10093 = vmatprep.mubr.f32.mxu1 %v11998_v24 }
  0x22   :  { %11131 = vmatprep.subr.bf16.mxu1 %v11130_v0 }
  0x23   :  { %11133 = vmatpush3.bf16.msra.mxu1 %v11130_v0  ;;  %10016 = vmatmul.mubr.f32.vlgmr.msra.gmra.mrb[0].mxu0 %v12019_v31 }
  0x24   :  { %10018 = vmatprep.mubr.f32.mxu0 %v12048_v44  ;;  %11113 = vmatpush3.bf16.msra.mxu0 %v11110_v20 }
  0x25   :  { %11135 = vmatprep.subr.bf16.mxu1 %v11134_v6  ;;  %11115 = vmatprep.subr.bf16.mxu0 %v11993_v21 }
  0x26   :  { %10094 = vmatmul.mubr.f32.vlgmr.msra.gmra.mrb[0].mxu1 %v12021_v32 }
  0x27   :  { %10096 = vmatprep.mubr.f32.mxu1 %v12074_v57  ;;  %10019 = vmatmul.mubr.f32.gmra.mrb[2].mxu0 %v12087_v3 }
  0x28   :  { %10021 = vmatprep.mubr.f32.mxu0 %v12109_v19  ;;  %11137 = vmatpush3.bf16.msra.mxu1 %v11134_v6  ;;  %v36_v6 = vld [vmem:[%s14498_s0 + $0x38] sm:$0xff] }
  0x29   :  { %11139 = vmatprep.subr.bf16.mxu1 %v12008_v26 }
  0x2a   :  { %10097 = vmatmul.mubr.f32.gmra.mrb[2].mxu1 %v12107_v17 }
  0x2b   :  { %10099 = vmatprep.mubr.f32.mxu1 %v12124_v48  ;;  %10022 = vmatmul.mubr.f32.gmra.mrb[4].mxu0 %v12126_v49 }
  0x2c   :  { %10028 = vmatprep.mubr.f32.mxu0 %v12011_v27  ;;  %v12227_v27 = vsub.f32 %v34_v42, %v50_v43  ;;  %v12348_v42 = vand.u32 4294901760, %v1571_v29  ;;  %v1574_v43 = vsel %vm25_vm0, %v147_v36, 0 }
  0x2e   :  { %10100 = vmatmul.mubr.f32.gmra.mrb[4].mxu1 %v12128_v50  ;;  %14626 = vst [vmem:[#allocation13_spill] sm:$0xff] %v12227_v27 }
  0x2f   :  { %10106 = vmatprep.mubr.f32.mxu1 %v12017_v30  ;;  %10029 = vmatmul.mubr.f32.vlgmr.msra.gmra.mrb[0].mxu0 %v12038_v39  ;;  %v51_v30 = vld [vmem:[%s14499_s1 + $0x30] sm:$0xff]  ;;  %v1583_v39 = vand.u32 4294901760, %v12221_v18 }
  0x30   :  { %10031 = vmatprep.mubr.f32.mxu0 %v12066_v53  ;;  %11117 = vmatpush3.bf16.msra.mxu0 %v11993_v21 }
  0x31   :  { %11119 = vmatprep.subr.bf16.mxu0 %v11118_v51 }
  0x32   :  { %10107 = vmatmul.mubr.f32.vlgmr.msra.gmra.mrb[0].mxu1 %v12041_v40  ;;  %v12259_v40 = vsub.f32 %v12221_v18, %v1583_v39 }
  0x33   :  { %10109 = vmatprep.mubr.f32.mxu1 %v12085_v2  ;;  %10032 = vmatmul.mubr.f32.gmra.mrb[2].mxu0 %v12105_v16  ;;  %v150_v2 = vld [vmem:[%s14500_s2 + $0x90] sm:$0xff]  ;;  %v14629_v16 = vand.u32 4294901760, %v12144_v59 }
  0x34   :  { %10034 = vmatprep.mubr.f32.mxu0 %v12122_v45  ;;  %11141 = vmatpush3.bf16.msra.mxu1 %v12008_v26  ;;  %v2257_v9 = vsel %vm25_vm0, %v150_v2, 0 }
  0x35   :  { %11143 = vmatprep.subr.bf16.mxu1 %v11142_v1 }
  0x36   :  { %10110 = vmatmul.mubr.f32.gmra.mrb[2].mxu1 %v12119_v41  ;;  %v145_v41 = vld [vmem:[%s14500_s2 + $0x68] sm:$0xff] }
  0x37   :  { %10112 = vmatprep.mubr.f32.mxu1 %v12141_v58  ;;  %10035 = vmatmul.mubr.f32.gmra.mrb[4].mxu0 %v12144_v59  ;;  %v1568_v20 = vsel %vm25_vm0, %v145_v41, 0 }
  0x38   :  { %10041 = vmatprep.mubr.f32.mxu0 %v267_v33  ;;  %v35_v33 = vld [vmem:[%s14498_s0 + $0x30] sm:$0xff]  ;;  %v12331_v61 = vand.u32 4294901760, %v1568_v20 }
  0x39   :  { %v12252_v53 = vsub.f32 %v35_v33, %v51_v30  ;;  %v153_v33 = vld [vmem:[%s14500_s2 + $0xa8] sm:$0xff]  ;;  %v1577_v30 = vsel %vm25_vm0, %v148_v63, 0 }
  0x3a   :  { %10113 = vmatmul.mubr.f32.gmra.mrb[4].mxu1 %v12147_v60  ;;  %v12309_v60 = vand.u32 4294901760, %v2257_v9  ;;  %v12386_v41 = vand.u32 4294901760, %v1577_v30 }
  0x3b   :  { %10119 = vmatprep.mubr.f32.mxu1 %v959_v38  ;;  %10042 = vmatmul.mubr.f32.vlgmr.msra.gmra.mrb[0].mxu0 %v277_v46  ;;  %v52_v38 = vld [vmem:[%s14499_s1 + $0x38] sm:$0xff]  ;;  %v1586_v46 = vand.u32 4294901760, %v12227_v27  ;;  %14627 = vst [vmem:[#allocation14_spill] sm:$0xff] %v12252_v53 }
  0x3c   :  { %10044 = vmatprep.mubr.f32.mxu0 %v287_v62  ;;  %11121 = vmatpush3.bf16.msra.mxu0 %v11118_v51  ;;  %v12254_v62 = vsub.f32 %v36_v6, %v52_v38  ;;  %v12346_v34 = vsub.f32 %v2257_v9, %v12309_v60  ;;  %v149_v38 = vld [vmem:[%s14500_s2 + $0x88] sm:$0xff]  ;;  %v12384_v9 = vsub.f32 %v1571_v29, %v12348_v42 }
  0x3d   :  { %11123 = vmatprep.subr.bf16.mxu0 %v11993_v21  ;;  %v12286_v58 = vpack.c.bf16 %v1586_v46, %v1583_v39 }
  0x3e   :  { %10120 = vmatmul.mubr.f32.vlgmr.msra.gmra.mrb[0].mxu1 %v969_v47  ;;  %14628 = vst [vmem:[#allocation15_spill] sm:$0xff] %v12254_v62  ;;  %v144_v47 = vld [vmem:[%s14500_s2 + $0x60] sm:$0xff]  ;;  %v2278_v45 = vand.u32 4294901760, %v12254_v62 }
  0x3f   :  { %10122 = vmatprep.mubr.f32.mxu1 %v979_v15  ;;  %10045 = vmatmul.mubr.f32.gmra.mrb[2].mxu0 %v297_v37  ;;  %v12269_v15 = vsub.f32 %v12227_v27, %v1586_v46  ;;  %v2275_v37 = vand.u32 4294901760, %v12252_v53 }
  0x40   :  { %10047 = vmatprep.mubr.f32.mxu0 %v307_v56  ;;  %11145 = vmatpush3.bf16.msra.mxu1 %v11142_v1  ;;  %v1565_v56 = vsel %vm25_vm0, %v144_v47, 0  ;;  %v12293_v10 = vsub.f32 %v12254_v62, %v2278_v45  ;;  %v2263_v1 = vsel %vm25_vm0, %v152_v28, 0  ;;  %v12370_v47 = vsub.f32 %v1568_v20, %v12331_v61 }
  0x41   :  { %11147 = vmatprep.subr.bf16.mxu1 %v12008_v26  ;;  %v1719_v59 = vand.u32 4294901760, %v12269_v15  ;;  %v12302_v14 = vand.u32 4294901760, %v1565_v56  ;;  %v12307_v25 = vpack.c.bf16 %v2278_v45, %v2275_v37  ;;  %v12379_v45 = vand.u32 4294901760, %v1574_v43 }
  0x42   :  { %10123 = vmatmul.mubr.f32.gmra.mrb[2].mxu1 %v989_v55  ;;  %v1712_v55 = vand.u32 4294901760, %v12259_v40  ;;  %v2411_v54 = vand.u32 4294901760, %v12293_v10  ;;  %v1580_v20 = vsel %vm25_vm0, %v149_v38, 0 }
  0x43   :  { %10125 = vmatprep.mubr.f32.mxu1 %v999_v5  ;;  %10048 = vmatmul.mubr.f32.gmra.mrb[4].mxu0 %v14629_v16  ;;  %v12290_v5 = vsub.f32 %v12252_v53, %v2275_v37  ;;  %v12339_v0 = vsub.f32 %v1565_v56, %v12302_v14  ;;  %v12374_v16 = vand.u32 4294901760, %v2263_v1  ;;  %v2266_v56 = vsel %vm25_vm0, %v153_v33, 0 }
  0x44   :  { %10054 = vmatprep.mubr.f32.mxu0 %v11996_v23  ;;  %v1713_v22 = vsub.f32 %v12259_v40, %v1712_v55  ;;  %v2412_v46 = vsub.f32 %v12293_v10, %v2411_v54  ;;  %v12404_v33 = vand.u32 4294901760, %v2266_v56 }
  0x45   :  { %v2404_v52 = vand.u32 4294901760, %v12290_v5  ;;  %v1651_v37 = vand.u32 4294901760, %v12339_v0  ;;  %v12402_v63 = vsub.f32 %v2263_v1, %v12374_v16 }
  0x46   :  { %10126 = vmatmul.mubr.f32.gmra.mrb[4].mxu1 %v1009_v8  ;;  %v151_v8 = vld [vmem:[%s14500_s2 + $0x98] sm:$0xff]  ;;  %v1714_v35 = vand.u32 4294901760, %v1713_v22  ;;  %v14506_v22 = vand.u32 4294901760, %v12346_v34  ;;  %v2413_v36 = vand.u32 4294901760, %v2412_v46  ;;  %v12435_v46 = vsub.f32 %v2266_v56, %v12404_v33 }
  0x47   :  { %10132 = vmatprep.mubr.f32.mxu1 %v11998_v24  ;;  %10055 = vmatmul.mubr.f32.vlgmr.msra.gmra.mrb[0].mxu0 %v12019_v31  ;;  %v2260_v51 = vsel %vm25_vm0, %v151_v8, 0  ;;  %v2405_v39 = vsub.f32 %v12290_v5, %v2404_v52  ;;  %v155_v8 = vld [vmem:[%s14500_s2 + $0xb8] sm:$0xff] }
  0x48   :  { %10057 = vmatprep.mubr.f32.mxu0 %v12048_v44  ;;  %11125 = vmatpush3.bf16.msra.mxu0 %v11993_v21  ;;  %v1720_v21 = vsub.f32 %v12269_v15, %v1719_v59  ;;  %v12372_v2 = vand.u32 4294901760, %v2260_v51  ;;  %v2272_v38 = vsel %vm25_vm0, %v155_v8, 0  ;;  %v2344_v1 = vsub.f32 %v12346_v34, %v14506_v22 }
  0x49   :  { %11151 = vmatprep.subr.bf16.mxu0 %v12286_v58  ;;  %v14509_v8 = vand.u32 4294901760, %v12402_v63 }
  0x4a   :  { %10133 = vmatmul.mubr.f32.vlgmr.msra.gmra.mrb[0].mxu1 %v12021_v32  ;;  %v1721_v6 = vand.u32 4294901760, %v1720_v21  ;;  %v2406_v21 = vand.u32 4294901760, %v2405_v39  ;;  %v12399_v29 = vsub.f32 %v2260_v51, %v12372_v2  ;;  %v1652_v51 = vsub.f32 %v12339_v0, %v1651_v37 }
  0x4b   :  { %10135 = vmatprep.mubr.f32.mxu1 %v12074_v57  ;;  %10058 = vmatmul.mubr.f32.gmra.mrb[2].mxu0 %v12087_v3 }
  0x4c   :  { %10060 = vmatprep.mubr.f32.mxu0 %v12109_v19  ;;  %11149 = vmatpush3.bf16.msra.mxu1 %v12008_v26  ;;  %v154_v26 = vld [vmem:[%s14500_s2 + $0xb0] sm:$0xff]  ;;  %v12394_v28 = vpack.c.bf16 %v1721_v6, %v1714_v35  ;;  %v12409_v35 = vsub.f32 %v1574_v43, %v12379_v45  ;;  %v11178_v43 = vpack.c.bf16 %v2413_v36, %v2406_v21  ;;  %v14507_v39 = vand.u32 4294901760, %v12399_v29 }
  0x4d   :  { %11175 = vmatprep.subr.bf16.mxu1 %v12307_v25  ;;  %v2269_v11 = vsel %vm25_vm0, %v154_v26, 0  ;;  %v12413_v26 = vand.u32 4294901760, %v1580_v20  ;;  %v1653_v56 = vand.u32 4294901760, %v1652_v51  ;;  %v2364_v51 = vsub.f32 %v12402_v63, %v14509_v8 }
  0x4e   :  { %10136 = vmatmul.mubr.f32.gmra.mrb[2].mxu1 %v12107_v17  ;;  %v12411_v6 = vand.u32 4294901760, %v2269_v11  ;;  %v14508_v21 = vand.u32 4294901760, %v12409_v35 }
  0x4f   :  { %10138 = vmatprep.mubr.f32.mxu1 %v12124_v48  ;;  %10061 = vmatmul.mubr.f32.gmra.mrb[4].mxu0 %v12126_v49  ;;  %v12447_v36 = vsub.f32 %v1580_v20, %v12413_v26  ;;  %v2354_v20 = vsub.f32 %v12399_v29, %v14507_v39 }
  0x50   :  { %10067 = vmatprep.mubr.f32.mxu0 %v11996_v23  ;;  %v14505_v23 = vand.u32 4294901760, %v12370_v47 }
  0x52   :  { %10139 = vmatmul.mubr.f32.gmra.mrb[4].mxu1 %v12128_v50 }
  0x53   :  { %10145 = vmatprep.mubr.f32.mxu1 %v11998_v24  ;;  %10068 = vmatmul.mubr.f32.vlgmr.msra.gmra.mrb[0].mxu0 %v12019_v31  ;;  %v14511_v24 = vand.u32 4294901760, %v12384_v9  ;;  %v12423_v31 = vsub.f32 %v1577_v30, %v12386_v41  ;;  %v12437_v30 = vand.u32 4294901760, %v2272_v38 }
  0x54   :  { %10070 = vmatprep.mubr.f32.mxu0 %v12048_v44  ;;  %11153 = vmatpush3.bf16.msra.mxu0 %v12286_v58  ;;  %v1662_v44 = vsub.f32 %v12370_v47, %v14505_v23  ;;  %v2345_v23 = vand.u32 4294901760, %v2344_v1 }
  0x55   :  { %11155 = vmatprep.subr.bf16.mxu0 %v12394_v28  ;;  %v12461_v22 = vsub.f32 %v2272_v38, %v12437_v30  ;;  %v2355_v38 = vand.u32 4294901760, %v2354_v20  ;;  %v11182_v20 = vpack.c.bf16 %v12293_v10, %v12290_v5  ;;  %v14631_v10 = vand.u32 4294901760, %v12346_v34 }
  0x56   :  { %10146 = vmatmul.mubr.f32.vlgmr.msra.gmra.mrb[0].mxu1 %v12021_v32  ;;  %v12444_v32 = vsub.f32 %v2269_v11, %v12411_v6  ;;  %v1663_v11 = vand.u32 4294901760, %v1662_v44  ;;  %v1701_v44 = vand.u32 4294901760, %v12447_v36 }
  0x57   :  { %10148 = vmatprep.mubr.f32.mxu1 %v12074_v57  ;;  %10071 = vmatmul.mubr.f32.gmra.mrb[2].mxu0 %v12087_v3  ;;  %v1672_v57 = vsub.f32 %v12384_v9, %v14511_v24  ;;  %v14510_v3 = vand.u32 4294901760, %v12423_v31  ;;  %v2393_v8 = vand.u32 4294901760, %v12461_v22 }
  0x58   :  { %10073 = vmatprep.mubr.f32.mxu0 %v12109_v19  ;;  %11177 = vmatpush3.bf16.msra.mxu1 %v12307_v25  ;;  %v2373_v19 = vand.u32 4294901760, %v12435_v46  ;;  %v2383_v1 = vand.u32 4294901760, %v12444_v32  ;;  %v1702_v24 = vsub.f32 %v12447_v36, %v1701_v44 }
  0x59   :  { %11179 = vmatprep.subr.bf16.mxu1 %v11178_v43  ;;  %v1673_v39 = vand.u32 4294901760, %v1672_v57 }
  0x5a   :  { %10149 = vmatmul.mubr.f32.gmra.mrb[2].mxu1 %v12107_v17  ;;  %v1682_v17 = vsub.f32 %v12409_v35, %v14508_v21  ;;  %v2374_v21 = vsub.f32 %v12435_v46, %v2373_v19 }
  0x5b   :  { %10151 = vmatprep.mubr.f32.mxu1 %v12124_v48  ;;  %10074 = vmatmul.mubr.f32.gmra.mrb[4].mxu0 %v12126_v49  ;;  %v1692_v48 = vsub.f32 %v12423_v31, %v14510_v3  ;;  %v11158_v49 = vpack.c.bf16 %v12269_v15, %v12259_v40  ;;  %v2384_v3 = vsub.f32 %v12444_v32, %v2383_v1  ;;  %v37_v40 = vld [vmem:[%s14498_s0 + $0x40] sm:$0xff] }
  0x5c   :  { %10158 = vmatprep.mubr.f32.mxu0 %v1653_v56  ;;  %v2365_v56 = vand.u32 4294901760, %v2364_v51  ;;  %v1683_v57 = vand.u32 4294901760, %v1682_v17  ;;  %v1703_v17 = vand.u32 4294901760, %v1702_v24  ;;  %v11166_v24 = vpack.c.bf16 %v1719_v59, %v1712_v55  ;;  %v53_v15 = vld [vmem:[%s14499_s1 + $0x40] sm:$0xff]  ;;  %v38_v55 = vld [vmem:[%s14498_s0 + $0x48] sm:$0xff] }
  0x5d   :  { %v2385_v51 = vand.u32 4294901760, %v2384_v3  ;;  %v54_v59 = vld [vmem:[%s14499_s1 + $0x48] sm:$0xff]  ;;  %v12545_v5 = vsub.f32 %v37_v40, %v53_v15  ;;  %v14636_v3 = vand.u32 4294901760, %v12402_v63  ;;  %v164_v40 = vld [vmem:[%s14500_s2 + $0x100] sm:$0xff] }
  0x5e   :  { %10152 = vmatmul.mubr.f32.gmra.mrb[4].mxu1 %v12128_v50  ;;  %v1693_v50 = vand.u32 4294901760, %v1692_v48  ;;  %v14637_v48 = vand.u32 4294901760, %v12409_v35 }
  0x5f   :  { %10236 = vmatprep.mubr.f32.mxu1 %v2345_v23  ;;  %10159 = vmatmul.mubr.f32.vlgmr.msra.gmra.mrb[6].mxu0 %v1663_v11  ;;  %v2375_v23 = vand.u32 4294901760, %v2374_v21  ;;  %v2394_v11 = vsub.f32 %v12461_v22, %v2393_v8  ;;  %14630 = vst [vmem:[#allocation16_spill] sm:$0xff] %v12545_v5  ;;  %v14635_v21 = vand.u32 4294901760, %v12399_v29 }
  0x60   :  { %10161 = vmatprep.mubr.f32.mxu0 %v1673_v39  ;;  %11157 = vmatpush3.bf16.msra.mxu0 %v12394_v28  ;;  %v40_v39 = vld [vmem:[%s14498_s0 + $0x58] sm:$0xff] }
  0x61   :  { %11159 = vmatprep.subr.bf16.mxu0 %v11158_v49  ;;  %v2395_v28 = vand.u32 4294901760, %v2394_v11 }
  0x62   :  { %10237 = vmatmul.mubr.f32.vlgmr.msra.gmra.mrb[6].mxu1 %v2355_v38 }
  0x63   :  { %10239 = vmatprep.mubr.f32.mxu1 %v2365_v56  ;;  %10162 = vmatmul.mubr.f32.gmra.mrb[8].mxu0 %v1683_v57  ;;  %v14640_v57 = vand.u32 4294901760, %v12423_v31 }
  0x64   :  { %10164 = vmatprep.mubr.f32.mxu0 %v1693_v50  ;;  %11181 = vmatpush3.bf16.msra.mxu1 %v11178_v43  ;;  %v11190_v43 = vpack.c.bf16 %v2411_v54, %v2404_v52  ;;  %v14632_v52 = vand.u32 4294901760, %v12370_v47  ;;  %v12551_v54 = vsub.f32 %v38_v55, %v54_v59  ;;  %v159_v55 = vld [vmem:[%s14500_s2 + $0xd8] sm:$0xff] }
  0x65   :  { %11183 = vmatprep.subr.bf16.mxu1 %v11182_v20 }
  0x66   :  { %10240 = vmatmul.mubr.f32.gmra.mrb[8].mxu1 %v2375_v23  ;;  %14633 = vst [vmem:[#allocation17_spill] sm:$0xff] %v12551_v54 }
  0x67   :  { %10242 = vmatprep.mubr.f32.mxu1 %v2385_v51  ;;  %10165 = vmatmul.mubr.f32.gmra.mrb[10].mxu0 %v1703_v17  ;;  %v158_v51 = vld [vmem:[%s14500_s2 + $0xd0] sm:$0xff] }
  0x68   :  { %10171 = vmatprep.mubr.f32.mxu0 %v12302_v14  ;;  %v2955_v15 = vsel %vm25_vm0, %v158_v51, 0 }
  0x6a   :  { %10243 = vmatmul.mubr.f32.gmra.mrb[10].mxu1 %v2395_v28 }
  0x6b   :  { %10249 = vmatprep.mubr.f32.mxu1 %v12309_v60  ;;  %10172 = vmatmul.mubr.f32.vlgmr.msra.gmra.mrb[6].mxu0 %v12331_v61 }
  0x6c   :  { %10174 = vmatprep.mubr.f32.mxu0 %v12348_v42  ;;  %11161 = vmatpush3.bf16.msra.mxu0 %v11158_v49  ;;  %v2970_v49 = vand.u32 4294901760, %v12551_v54 }
  0x6d   :  { %11163 = vmatprep.subr.bf16.mxu0 %v12286_v58 }
  0x6e   :  { %10250 = vmatmul.mubr.f32.vlgmr.msra.gmra.mrb[6].mxu1 %v12372_v2  ;;  %v12593_v50 = vsub.f32 %v12551_v54, %v2970_v49 }
  0x6f   :  { %10252 = vmatprep.mubr.f32.mxu1 %v12374_v16  ;;  %10175 = vmatmul.mubr.f32.gmra.mrb[8].mxu0 %v12379_v45 }
  0x70   :  { %10177 = vmatprep.mubr.f32.mxu0 %v12386_v41  ;;  %11185 = vmatpush3.bf16.msra.mxu1 %v11182_v20 }
  0x71   :  { %11187 = vmatprep.subr.bf16.mxu1 %v12307_v25 }
  0x72   :  { %10253 = vmatmul.mubr.f32.gmra.mrb[8].mxu1 %v12404_v33 }
  0x73   :  { %10255 = vmatprep.mubr.f32.mxu1 %v12411_v6  ;;  %10178 = vmatmul.mubr.f32.gmra.mrb[10].mxu0 %v12413_v26 }
  0x74   :  { %10184 = vmatprep.mubr.f32.mxu0 %v12339_v0  ;;  %v39_v0 = vld [vmem:[%s14498_s0 + $0x50] sm:$0xff] }
  0x76   :  { %10256 = vmatmul.mubr.f32.gmra.mrb[10].mxu1 %v12437_v30 }
  0x77   :  { %10262 = vmatprep.mubr.f32.mxu1 %v12346_v34  ;;  %10185 = vmatmul.mubr.f32.vlgmr.msra.gmra.mrb[6].mxu0 %v12370_v47  ;;  %v55_v34 = vld [vmem:[%s14499_s1 + $0x50] sm:$0xff]  ;;  %v56_v47 = vld [vmem:[%s14499_s1 + $0x58] sm:$0xff] }
  0x78   :  { %10187 = vmatprep.mubr.f32.mxu0 %v12384_v9  ;;  %11165 = vmatpush3.bf16.msra.mxu0 %v12286_v58  ;;  %v12576_v38 = vsub.f32 %v39_v0, %v55_v34  ;;  %v12578_v56 = vsub.f32 %v40_v39, %v56_v47  ;;  %v160_v0 = vld [vmem:[%s14500_s2 + $0xe0] sm:$0xff]  ;;  %v3647_v34 = vsel %vm25_vm0, %v164_v40, 0 }
  0x79   :  { %11167 = vmatprep.subr.bf16.mxu0 %v11166_v24 }
  0x7a   :  { %10263 = vmatmul.mubr.f32.vlgmr.msra.gmra.mrb[6].mxu1 %v12399_v29  ;;  %14638 = vst [vmem:[#allocation18_spill] sm:$0xff] %v12576_v38  ;;  %14639 = vst [vmem:[#allocation19_spill] sm:$0xff] %v12578_v56  ;;  %v3662_v20 = vand.u32 4294901760, %v12578_v56 }
  0x7b   :  { %10265 = vmatprep.mubr.f32.mxu1 %v12402_v63  ;;  %10188 = vmatmul.mubr.f32.gmra.mrb[8].mxu0 %v12409_v35  ;;  %v156_v63 = vld [vmem:[%s14500_s2 + $0xc0] sm:$0xff]  ;;  %v162_v35 = vld [vmem:[%s14500_s2 + $0xf0] sm:$0xff] }
  0x7c   :  { %10190 = vmatprep.mubr.f32.mxu0 %v12423_v31  ;;  %11189 = vmatpush3.bf16.msra.mxu1 %v12307_v25  ;;  %v3659_v31 = vand.u32 4294901760, %v12576_v38  ;;  %v2949_v23 = vsel %vm25_vm0, %v156_v63, 0  ;;  %v3641_v11 = vsel %vm25_vm0, %v162_v35, 0  ;;  %v161_v63 = vld [vmem:[%s14500_s2 + $0xe8] sm:$0xff] }
  0x7d   :  { %11191 = vmatprep.subr.bf16.mxu1 %v11190_v43  ;;  %v12626_v17 = vand.u32 4294901760, %v2949_v23 }
  0x7e   :  { %10266 = vmatmul.mubr.f32.gmra.mrb[8].mxu1 %v12435_v46  ;;  %v157_v46 = vld [vmem:[%s14500_s2 + $0xc8] sm:$0xff] }
  0x7f   :  { %10268 = vmatprep.mubr.f32.mxu1 %v12444_v32  ;;  %10191 = vmatmul.mubr.f32.gmra.mrb[10].mxu0 %v12447_v36  ;;  %v14517_v36 = vand.u32 4294901760, %v12593_v50  ;;  %v2952_v28 = vsel %vm25_vm0, %v157_v46, 0 }
  0x80   :  { %10197 = vmatprep.mubr.f32.mxu0 %v1651_v37  ;;  %v14634_v37 = vand.u32 4294901760, %v12384_v9  ;;  %v2967_v9 = vand.u32 4294901760, %v12545_v5 }
  0x82   :  { %10269 = vmatmul.mubr.f32.gmra.mrb[10].mxu1 %v12461_v22  ;;  %v12583_v29 = vsub.f32 %v12545_v5, %v2967_v9  ;;  %v12633_v22 = vand.u32 4294901760, %v3641_v11 }
  0x83   :  { %10275 = vmatprep.mubr.f32.mxu1 %v14631_v10  ;;  %10198 = vmatmul.mubr.f32.vlgmr.msra.gmra.mrb[6].mxu0 %v14632_v52  ;;  %v12655_v52 = vand.u32 4294901760, %v2952_v28 }
  0x84   :  { %10200 = vmatprep.mubr.f32.mxu0 %v14634_v37  ;;  %11169 = vmatpush3.bf16.msra.mxu0 %v11166_v24  ;;  %v3096_v32 = vand.u32 4294901760, %v12583_v29  ;;  %v12631_v24 = vpack.c.bf16 %v3662_v20, %v3659_v31  ;;  %v12663_v37 = vsub.f32 %v2949_v23, %v12626_v17  ;;  %v12670_v47 = vsub.f32 %v3641_v11, %v12633_v22 }
  0x85   :  { %11171 = vmatprep.subr.bf16.mxu0 %v12286_v58  ;;  %v12698_v11 = vand.u32 4294901760, %v3647_v34 }
  0x86   :  { %10276 = vmatmul.mubr.f32.vlgmr.msra.gmra.mrb[6].mxu1 %v14635_v21  ;;  %v14514_v46 = vand.u32 4294901760, %v12663_v37 }
  0x87   :  { %10278 = vmatprep.mubr.f32.mxu1 %v14636_v3  ;;  %10201 = vmatmul.mubr.f32.gmra.mrb[8].mxu0 %v14637_v48  ;;  %v2958_v3 = vsel %vm25_vm0, %v159_v55, 0  ;;  %v165_v48 = vld [vmem:[%s14500_s2 + $0x108] sm:$0xff]  ;;  %v167_v55 = vld [vmem:[%s14500_s2 + $0x118] sm:$0xff] }
  0x88   :  { %10203 = vmatprep.mubr.f32.mxu0 %v14640_v57  ;;  %11193 = vmatpush3.bf16.msra.mxu1 %v11190_v43  ;;  %v3097_v43 = vsub.f32 %v12583_v29, %v3096_v32  ;;  %v2961_v57 = vsel %vm25_vm0, %v160_v0, 0  ;;  %v12703_v51 = vand.u32 4294901760, %v2958_v3  ;;  %v14515_v0 = vand.u32 4294901760, %v12670_v47 }
  0x89   :  { %11195 = vmatprep.subr.bf16.mxu1 %v12307_v25 }
  0x8a   :  { %10279 = vmatmul.mubr.f32.gmra.mrb[8].mxu1 %v2373_v19  ;;  %v12610_v19 = vpack.c.bf16 %v2970_v49, %v2967_v9  ;;  %v3098_v21 = vand.u32 4294901760, %v3097_v43  ;;  %v12672_v9 = vand.u32 4294901760, %v2955_v15 }
  0x8b   :  { %10281 = vmatprep.mubr.f32.mxu1 %v2383_v1  ;;  %10204 = vmatmul.mubr.f32.gmra.mrb[10].mxu0 %v1701_v44  ;;  %v12614_v1 = vsub.f32 %v12576_v38, %v3659_v31  ;;  %v12617_v44 = vsub.f32 %v12578_v56, %v3662_v20  ;;  %v12694_v20 = vsub.f32 %v2952_v28, %v12655_v52  ;;  %v12710_v28 = vand.u32 4294901760, %v2961_v57 }
  0x8c   :  { %10210 = vmatprep.mubr.f32.mxu0 %v12302_v14  ;;  %v12708_v43 = vsub.f32 %v2955_v15, %v12672_v9 }
  0x8d   :  { %v14513_v59 = vand.u32 4294901760, %v12614_v1  ;;  %v14512_v10 = vand.u32 4294901760, %v12617_v44 }
  0x8e   :  { %10282 = vmatmul.mubr.f32.gmra.mrb[10].mxu1 %v2393_v8  ;;  %v163_v8 = vld [vmem:[%s14500_s2 + $0xf8] sm:$0xff] }
  0x8f   :  { %10288 = vmatprep.mubr.f32.mxu1 %v12309_v60  ;;  %10211 = vmatmul.mubr.f32.vlgmr.msra.gmra.mrb[6].mxu0 %v12331_v61  ;;  %v3644_v39 = vsel %vm25_vm0, %v163_v8, 0  ;;  %v3789_v35 = vsub.f32 %v12614_v1, %v14513_v59  ;;  %v3796_v31 = vsub.f32 %v12617_v44, %v14512_v10  ;;  %v3650_v8 = vsel %vm25_vm0, %v165_v48, 0 }
  0x90   :  { %10213 = vmatprep.mubr.f32.mxu0 %v12348_v42  ;;  %11173 = vmatpush3.bf16.msra.mxu0 %v12286_v58  ;;  %v3104_v58 = vsub.f32 %v12593_v50, %v14517_v36  ;;  %v12696_v23 = vand.u32 4294901760, %v3644_v39 }
  0x91   :  { %11199 = vmatprep.subr.bf16.mxu0 %v12610_v19  ;;  %v3790_v48 = vand.u32 4294901760, %v3789_v35  ;;  %v3797_v59 = vand.u32 4294901760, %v3796_v31  ;;  %v3656_v31 = vsel %vm25_vm0, %v167_v55, 0 }
  0x92   :  { %10289 = vmatmul.mubr.f32.vlgmr.msra.gmra.mrb[6].mxu1 %v12372_v2  ;;  %v3105_v49 = vand.u32 4294901760, %v3104_v58  ;;  %v2964_v58 = vsel %vm25_vm0, %v161_v63, 0  ;;  %v12723_v15 = vsub.f32 %v3644_v39, %v12696_v23  ;;  %v12728_v63 = vand.u32 4294901760, %v3650_v8 }
  0x93   :  { %10291 = vmatprep.mubr.f32.mxu1 %v12374_v16  ;;  %10214 = vmatmul.mubr.f32.gmra.mrb[8].mxu0 %v12379_v45  ;;  %v12737_v35 = vand.u32 4294901760, %v2964_v58  ;;  %v3036_v39 = vsub.f32 %v12663_v37, %v14514_v46 }
  0x94   :  { %10216 = vmatprep.mubr.f32.mxu0 %v12386_v41  ;;  %11197 = vmatpush3.bf16.msra.mxu1 %v12307_v25  ;;  %v166_v25 = vld [vmem:[%s14500_s2 + $0x110] sm:$0xff]  ;;  %v12718_v10 = vpack.c.bf16 %v3105_v49, %v3098_v21  ;;  %v12733_v21 = vsub.f32 %v2958_v3, %v12703_v51  ;;  %v11226_v3 = vpack.c.bf16 %v3797_v59, %v3790_v48  ;;  %v14518_v55 = vand.u32 4294901760, %v12723_v15 }
  0x95   :  { %11223 = vmatprep.subr.bf16.mxu1 %v12631_v24  ;;  %v3653_v40 = vsel %vm25_vm0, %v166_v25, 0  ;;  %v12726_v25 = vsub.f32 %v3647_v34, %v12698_v11  ;;  %v3728_v34 = vsub.f32 %v12670_v47, %v14515_v0  ;;  %v12759_v46 = vsub.f32 %v3650_v8, %v12728_v63 }
  0x96   :  { %10292 = vmatmul.mubr.f32.gmra.mrb[8].mxu1 %v12404_v33  ;;  %v12735_v49 = vand.u32 4294901760, %v3653_v40  ;;  %v14519_v59 = vand.u32 4294901760, %v12733_v21  ;;  %v12771_v48 = vsub.f32 %v2964_v58, %v12737_v35  ;;  %v3037_v8 = vand.u32 4294901760, %v3036_v39 }
  0x97   :  { %10294 = vmatprep.mubr.f32.mxu1 %v12411_v6  ;;  %10217 = vmatmul.mubr.f32.gmra.mrb[10].mxu0 %v12413_v26  ;;  %v14520_v0 = vand.u32 4294901760, %v12726_v25  ;;  %v3738_v58 = vsub.f32 %v12723_v15, %v14518_v55 }
  0x98   :  { %10223 = vmatprep.mubr.f32.mxu0 %v12302_v14  ;;  %v14516_v14 = vand.u32 4294901760, %v12694_v20 }
  0x99   :  { %v3748_v39 = vsub.f32 %v12726_v25, %v14520_v0 }
  0x9a   :  { %10295 = vmatmul.mubr.f32.gmra.mrb[10].mxu1 %v12437_v30 }
  0x9b   :  { %10301 = vmatprep.mubr.f32.mxu1 %v12309_v60  ;;  %10224 = vmatmul.mubr.f32.vlgmr.msra.gmra.mrb[6].mxu0 %v12331_v61  ;;  %v14522_v60 = vand.u32 4294901760, %v12708_v43  ;;  %v12747_v61 = vsub.f32 %v2961_v57, %v12710_v28  ;;  %v12761_v57 = vand.u32 4294901760, %v3656_v31 }
  0x9c   :  { %10226 = vmatprep.mubr.f32.mxu0 %v12348_v42  ;;  %11201 = vmatpush3.bf16.msra.mxu0 %v12610_v19  ;;  %v3046_v42 = vsub.f32 %v12694_v20, %v14516_v14  ;;  %v3729_v14 = vand.u32 4294901760, %v3728_v34 }
  0x9d   :  { %11203 = vmatprep.subr.bf16.mxu0 %v12718_v10  ;;  %v12785_v36 = vsub.f32 %v3656_v31, %v12761_v57  ;;  %v3739_v31 = vand.u32 4294901760, %v3738_v58  ;;  %v11230_v58 = vpack.c.bf16 %v12617_v44, %v12614_v1 }
  0x9e   :  { %10302 = vmatmul.mubr.f32.vlgmr.msra.gmra.mrb[6].mxu1 %v12372_v2  ;;  %v12768_v2 = vsub.f32 %v3653_v40, %v12735_v49  ;;  %v3047_v40 = vand.u32 4294901760, %v3046_v42  ;;  %v3085_v42 = vand.u32 4294901760, %v12771_v48 }
  0x9f   :  { %10304 = vmatprep.mubr.f32.mxu1 %v12374_v16  ;;  %10227 = vmatmul.mubr.f32.gmra.mrb[8].mxu0 %v12379_v45  ;;  %v3056_v16 = vsub.f32 %v12708_v43, %v14522_v60  ;;  %v14521_v45 = vand.u32 4294901760, %v12747_v61  ;;  %v3777_v0 = vand.u32 4294901760, %v12785_v36 }
  0xa0   :  { %10229 = vmatprep.mubr.f32.mxu0 %v12386_v41  ;;  %11225 = vmatpush3.bf16.msra.mxu1 %v12631_v24  ;;  %v3757_v41 = vand.u32 4294901760, %v12759_v46  ;;  %v3767_v34 = vand.u32 4294901760, %v12768_v2  ;;  %v3086_v60 = vsub.f32 %v12771_v48, %v3085_v42 }
  0xa1   :  { %11227 = vmatprep.subr.bf16.mxu1 %v11226_v3  ;;  %v3057_v55 = vand.u32 4294901760, %v3056_v16 }
  0xa2   :  { %10305 = vmatmul.mubr.f32.gmra.mrb[8].mxu1 %v12404_v33  ;;  %v3066_v33 = vsub.f32 %v12733_v21, %v14519_v59  ;;  %v3758_v59 = vsub.f32 %v12759_v46, %v3757_v41 }
  0xa3   :  { %10307 = vmatprep.mubr.f32.mxu1 %v12411_v6  ;;  %10230 = vmatmul.mubr.f32.gmra.mrb[10].mxu0 %v12413_v26  ;;  %v3076_v6 = vsub.f32 %v12747_v61, %v14521_v45  ;;  %v11206_v26 = vpack.c.bf16 %v12593_v50, %v12583_v29  ;;  %v3768_v45 = vsub.f32 %v12768_v2, %v3767_v34  ;;  %v41_v29 = vld [vmem:[%s14498_s0 + $0x60] sm:$0xff] }
  0xa4   :  { %10314 = vmatprep.mubr.f32.mxu0 %v3037_v8  ;;  %v3749_v8 = vand.u32 4294901760, %v3748_v39  ;;  %v3067_v16 = vand.u32 4294901760, %v3066_v33  ;;  %v3087_v33 = vand.u32 4294901760, %v3086_v60  ;;  %v14641_v60 = vand.u32 4294901760, %v12593_v50  ;;  %v57_v50 = vld [vmem:[%s14499_s1 + $0x60] sm:$0xff] }
  0xa5   :  { %v3769_v39 = vand.u32 4294901760, %v3768_v45 }
  0xa6   :  { %10308 = vmatmul.mubr.f32.gmra.mrb[10].mxu1 %v12437_v30  ;;  %v3077_v30 = vand.u32 4294901760, %v3076_v6  ;;  %v12869_v6 = vsub.f32 %v41_v29, %v57_v50  ;;  %v170_v29 = vld [vmem:[%s14500_s2 + $0x130] sm:$0xff] }
  0xa7   :  { %10392 = vmatprep.mubr.f32.mxu1 %v3729_v14  ;;  %10315 = vmatmul.mubr.f32.vlgmr.msra.gmra.mrb[12].mxu0 %v3047_v40  ;;  %v3759_v14 = vand.u32 4294901760, %v3758_v59  ;;  %v3778_v40 = vsub.f32 %v12785_v36, %v3777_v0  ;;  %v14643_v59 = vand.u32 4294901760, %v12617_v44  ;;  %v58_v44 = vld [vmem:[%s14499_s1 + $0x68] sm:$0xff] }
  0xa8   :  { %10317 = vmatprep.mubr.f32.mxu0 %v3057_v55  ;;  %11205 = vmatpush3.bf16.msra.mxu0 %v12718_v10  ;;  %v14642_v55 = vand.u32 4294901760, %v12614_v1  ;;  %v42_v1 = vld [vmem:[%s14498_s0 + $0x68] sm:$0xff]  ;;  %14645 = vst [vmem:[#allocation20_spill] sm:$0xff] %v12869_v6 }
  0xa9   :  { %11207 = vmatprep.subr.bf16.mxu0 %v11206_v26  ;;  %v3779_v10 = vand.u32 4294901760, %v3778_v40  ;;  %v14652_v40 = vand.u32 4294901760, %v12733_v21 }
  0xaa   :  { %10393 = vmatmul.mubr.f32.vlgmr.msra.gmra.mrb[12].mxu1 %v3739_v31  ;;  %v11238_v45 = vpack.c.bf16 %v14643_v59, %v14642_v55  ;;  %v14647_v31 = vand.u32 4294901760, %v12694_v20 }
  0xab   :  { %10395 = vmatprep.mubr.f32.mxu1 %v3749_v8  ;;  %10318 = vmatmul.mubr.f32.gmra.mrb[14].mxu0 %v3067_v16  ;;  %v43_v8 = vld [vmem:[%s14498_s0 + $0x70] sm:$0xff]  ;;  %v14649_v16 = vand.u32 4294901760, %v12708_v43 }
  0xac   :  { %10320 = vmatprep.mubr.f32.mxu0 %v3077_v30  ;;  %11229 = vmatpush3.bf16.msra.mxu1 %v11226_v3  ;;  %v11214_v3 = vpack.c.bf16 %v14641_v60, %v3096_v32  ;;  %v14644_v32 = vand.u32 4294901760, %v12663_v37  ;;  %v44_v30 = vld [vmem:[%s14498_s0 + $0x78] sm:$0xff]  ;;  %v14655_v60 = vand.u32 4294901760, %v12747_v61 }
  0xad   :  { %11231 = vmatprep.subr.bf16.mxu1 %v11230_v58 }
  0xae   :  { %10396 = vmatmul.mubr.f32.gmra.mrb[14].mxu1 %v3759_v14  ;;  %v14651_v14 = vand.u32 4294901760, %v12726_v25 }
  0xaf   :  { %10398 = vmatprep.mubr.f32.mxu1 %v3769_v39  ;;  %10321 = vmatmul.mubr.f32.gmra.mrb[16].mxu0 %v3087_v33 }
  0xb0   :  { %10327 = vmatprep.mubr.f32.mxu0 %v12626_v17 }
  0xb2   :  { %10399 = vmatmul.mubr.f32.gmra.mrb[16].mxu1 %v3779_v10 }
  0xb3   :  { %10405 = vmatprep.mubr.f32.mxu1 %v12633_v22  ;;  %10328 = vmatmul.mubr.f32.vlgmr.msra.gmra.mrb[12].mxu0 %v12655_v52 }
  0xb4   :  { %10330 = vmatprep.mubr.f32.mxu0 %v12672_v9  ;;  %11209 = vmatpush3.bf16.msra.mxu0 %v11206_v26  ;;  %v14646_v26 = vand.u32 4294901760, %v12670_v47 }
  0xb5   :  { %11211 = vmatprep.subr.bf16.mxu0 %v12610_v19 }
  0xb6   :  { %10406 = vmatmul.mubr.f32.vlgmr.msra.gmra.mrb[12].mxu1 %v12696_v23 }
  0xb7   :  { %10408 = vmatprep.mubr.f32.mxu1 %v12698_v11  ;;  %10331 = vmatmul.mubr.f32.gmra.mrb[14].mxu0 %v12703_v51 }
  0xb8   :  { %10333 = vmatprep.mubr.f32.mxu0 %v12710_v28  ;;  %11233 = vmatpush3.bf16.msra.mxu1 %v11230_v58  ;;  %v14650_v58 = vand.u32 4294901760, %v12723_v15 }
  0xb9   :  { %11235 = vmatprep.subr.bf16.mxu1 %v12631_v24 }
  0xba   :  { %10409 = vmatmul.mubr.f32.gmra.mrb[14].mxu1 %v12728_v63 }
  0xbb   :  { %10411 = vmatprep.mubr.f32.mxu1 %v12735_v49  ;;  %10334 = vmatmul.mubr.f32.gmra.mrb[16].mxu0 %v12737_v35 }
  0xbc   :  { %10340 = vmatprep.mubr.f32.mxu0 %v12663_v37  ;;  %v12875_v37 = vsub.f32 %v42_v1, %v58_v44 }
  0xbe   :  { %10412 = vmatmul.mubr.f32.gmra.mrb[16].mxu1 %v12761_v57  ;;  %14648 = vst [vmem:[#allocation21_spill] sm:$0xff] %v12875_v37  ;;  %v4354_v39 = vand.u32 4294901760, %v12875_v37 }
  0xbf   :  { %10418 = vmatprep.mubr.f32.mxu1 %v12670_v47  ;;  %10341 = vmatmul.mubr.f32.vlgmr.msra.gmra.mrb[12].mxu0 %v12694_v20  ;;  %v59_v47 = vld [vmem:[%s14499_s1 + $0x70] sm:$0xff]  ;;  %v60_v20 = vld [vmem:[%s14499_s1 + $0x78] sm:$0xff] }
  0xc0   :  { %10343 = vmatprep.mubr.f32.mxu0 %v12708_v43  ;;  %11213 = vmatpush3.bf16.msra.mxu0 %v12610_v19  ;;  %v4351_v43 = vand.u32 4294901760, %v12869_v6  ;;  %v12900_v33 = vsub.f32 %v43_v8, %v59_v47  ;;  %v12902_v10 = vsub.f32 %v44_v30, %v60_v20  ;;  %v171_v8 = vld [vmem:[%s14500_s2 + $0x138] sm:$0xff]  ;;  %v172_v20 = vld [vmem:[%s14500_s2 + $0x140] sm:$0xff] }
  0xc1   :  { %11215 = vmatprep.subr.bf16.mxu0 %v11214_v3 }
  0xc2   :  { %10419 = vmatmul.mubr.f32.vlgmr.msra.gmra.mrb[12].mxu1 %v12723_v15  ;;  %14653 = vst [vmem:[#allocation22_spill] sm:$0xff] %v12900_v33  ;;  %14654 = vst [vmem:[#allocation23_spill] sm:$0xff] %v12902_v10  ;;  %v12907_v15 = vsub.f32 %v12869_v6, %v4351_v43  ;;  %v5046_v55 = vand.u32 4294901760, %v12902_v10 }
  0xc3   :  { %10421 = vmatprep.mubr.f32.mxu1 %v12726_v25  ;;  %10344 = vmatmul.mubr.f32.gmra.mrb[14].mxu0 %v12733_v21  ;;  %v168_v25 = vld [vmem:[%s14500_s2 + $0x120] sm:$0xff]  ;;  %v174_v21 = vld [vmem:[%s14500_s2 + $0x150] sm:$0xff] }
  0xc4   :  { %10346 = vmatprep.mubr.f32.mxu0 %v12747_v61  ;;  %11237 = vmatpush3.bf16.msra.mxu1 %v12631_v24  ;;  %v5043_v61 = vand.u32 4294901760, %v12900_v33  ;;  %v4333_v59 = vsel %vm25_vm0, %v168_v25, 0  ;;  %v4342_v25 = vsel %vm25_vm0, %v171_v8, 0 }
  0xc5   :  { %11239 = vmatprep.subr.bf16.mxu1 %v11238_v45  ;;  %v12950_v50 = vand.u32 4294901760, %v4333_v59 }
  0xc6   :  { %10422 = vmatmul.mubr.f32.gmra.mrb[14].mxu1 %v12759_v46  ;;  %v169_v46 = vld [vmem:[%s14500_s2 + $0x128] sm:$0xff]  ;;  %v12955_v1 = vpack.c.bf16 %v5046_v55, %v5043_v61 }
  0xc7   :  { %10424 = vmatprep.mubr.f32.mxu1 %v12768_v2  ;;  %10347 = vmatmul.mubr.f32.gmra.mrb[16].mxu0 %v12771_v48  ;;  %v14526_v2 = vand.u32 4294901760, %v12907_v15 }
  0xc8   :  { %10353 = vmatprep.mubr.f32.mxu0 %v14644_v32  ;;  %v4336_v32 = vsel %vm25_vm0, %v169_v46, 0 }
  0xc9   :  { %v4481_v44 = vsub.f32 %v12907_v15, %v14526_v2  ;;  %v12979_v47 = vand.u32 4294901760, %v4336_v32 }
  0xca   :  { %10425 = vmatmul.mubr.f32.gmra.mrb[16].mxu1 %v12785_v36 }
  0xcb   :  { %10431 = vmatprep.mubr.f32.mxu1 %v14646_v26  ;;  %10354 = vmatmul.mubr.f32.vlgmr.msra.gmra.mrb[12].mxu0 %v14647_v31  ;;  %v176_v26 = vld [vmem:[%s14500_s2 + $0x160] sm:$0xff]  ;;  %v4339_v31 = vsel %vm25_vm0, %v170_v29, 0  ;;  %v13018_v29 = vsub.f32 %v4336_v32, %v12979_v47 }
  0xcc   :  { %10356 = vmatprep.mubr.f32.mxu0 %v14649_v16  ;;  %11217 = vmatpush3.bf16.msra.mxu0 %v11214_v3  ;;  %v12917_v3 = vsub.f32 %v12875_v37, %v4354_v39 }
  0xcd   :  { %11219 = vmatprep.subr.bf16.mxu0 %v12610_v19 }
  0xce   :  { %10432 = vmatmul.mubr.f32.vlgmr.msra.gmra.mrb[12].mxu1 %v14650_v58  ;;  %v14525_v48 = vand.u32 4294901760, %v12917_v3  ;;  %v12987_v58 = vsub.f32 %v4333_v59, %v12950_v50  ;;  %v173_v59 = vld [vmem:[%s14500_s2 + $0x148] sm:$0xff] }
  0xcf   :  { %10434 = vmatprep.mubr.f32.mxu1 %v14651_v14  ;;  %10357 = vmatmul.mubr.f32.gmra.mrb[14].mxu0 %v14652_v40  ;;  %v5031_v14 = vsel %vm25_vm0, %v176_v26, 0 }
  0xd0   :  { %10359 = vmatprep.mubr.f32.mxu0 %v14655_v60  ;;  %11241 = vmatpush3.bf16.msra.mxu1 %v11238_v45  ;;  %v5025_v45 = vsel %vm25_vm0, %v174_v21, 0  ;;  %v12996_v60 = vand.u32 4294901760, %v4339_v31  ;;  %v177_v21 = vld [vmem:[%s14500_s2 + $0x168] sm:$0xff] }
  0xd1   :  { %11243 = vmatprep.subr.bf16.mxu1 %v12631_v24  ;;  %v12957_v36 = vand.u32 4294901760, %v5025_v45  ;;  %v5034_v8 = vsel %vm25_vm0, %v177_v21, 0 }
  0xd2   :  { %10435 = vmatmul.mubr.f32.gmra.mrb[14].mxu1 %v3757_v41  ;;  %v12934_v41 = vpack.c.bf16 %v4354_v39, %v4351_v43  ;;  %v4482_v39 = vand.u32 4294901760, %v4481_v44  ;;  %v13022_v44 = vand.u32 4294901760, %v5031_v14 }
  0xd3   :  { %10437 = vmatprep.mubr.f32.mxu1 %v3767_v34  ;;  %10360 = vmatmul.mubr.f32.gmra.mrb[16].mxu0 %v3085_v42  ;;  %v12938_v34 = vsub.f32 %v12900_v33, %v5043_v61  ;;  %v12941_v42 = vsub.f32 %v12902_v10, %v5046_v55  ;;  %v12994_v40 = vsub.f32 %v5025_v45, %v12957_v36  ;;  %v4345_v55 = vsel %vm25_vm0, %v172_v20, 0 }
  0xd4   :  { %10366 = vmatprep.mubr.f32.mxu0 %v12626_v17  ;;  %v13032_v20 = vsub.f32 %v4339_v31, %v12996_v60  ;;  %v13034_v32 = vand.u32 4294901760, %v4345_v55 }
  0xd5   :  { %v14524_v16 = vand.u32 4294901760, %v12938_v34  ;;  %v14523_v30 = vand.u32 4294901760, %v12941_v42  ;;  %v14529_v2 = vand.u32 4294901760, %v12994_v40 }
  0xd6   :  { %10438 = vmatmul.mubr.f32.gmra.mrb[16].mxu1 %v3777_v0  ;;  %v175_v0 = vld [vmem:[%s14500_s2 + $0x158] sm:$0xff] }
  0xd7   :  { %10444 = vmatprep.mubr.f32.mxu1 %v12633_v22  ;;  %10367 = vmatmul.mubr.f32.vlgmr.msra.gmra.mrb[12].mxu0 %v12655_v52  ;;  %v5028_v43 = vsel %vm25_vm0, %v175_v0, 0  ;;  %v5173_v45 = vsub.f32 %v12938_v34, %v14524_v16  ;;  %v5180_v46 = vsub.f32 %v12941_v42, %v14523_v30  ;;  %v4348_v16 = vsel %vm25_vm0, %v173_v59, 0 }
  0xd8   :  { %10369 = vmatprep.mubr.f32.mxu0 %v12672_v9  ;;  %11221 = vmatpush3.bf16.msra.mxu0 %v12610_v19  ;;  %v4488_v19 = vsub.f32 %v12917_v3, %v14525_v48  ;;  %v13020_v0 = vand.u32 4294901760, %v5028_v43  ;;  %v179_v48 = vld [vmem:[%s14500_s2 + $0x178] sm:$0xff]  ;;  %v13052_v59 = vand.u32 4294901760, %v5034_v8 }
  0xd9   :  { %11247 = vmatprep.subr.bf16.mxu0 %v12934_v41  ;;  %v5174_v21 = vand.u32 4294901760, %v5173_v45  ;;  %v5181_v10 = vand.u32 4294901760, %v5180_v46  ;;  %v13061_v45 = vand.u32 4294901760, %v4348_v16  ;;  %v5040_v46 = vsel %vm25_vm0, %v179_v48, 0 }
  0xda   :  { %10445 = vmatmul.mubr.f32.vlgmr.msra.gmra.mrb[12].mxu1 %v12696_v23  ;;  %v4489_v61 = vand.u32 4294901760, %v4488_v19  ;;  %v13027_v19 = vand.u32 4294901760, %v4342_v25  ;;  %v13047_v31 = vsub.f32 %v5028_v43, %v13020_v0  ;;  %v14656_v43 = vand.u32 4294901760, %v12987_v58 }
  0xdb   :  { %10447 = vmatprep.mubr.f32.mxu1 %v12698_v11  ;;  %10370 = vmatmul.mubr.f32.gmra.mrb[14].mxu0 %v12703_v51  ;;  %v11274_v48 = vpack.c.bf16 %v5181_v10, %v5174_v21  ;;  %v13095_v21 = vsub.f32 %v4348_v16, %v13061_v45 }
  0xdc   :  { %10372 = vmatprep.mubr.f32.mxu0 %v12710_v28  ;;  %11245 = vmatpush3.bf16.msra.mxu1 %v12631_v24  ;;  %v178_v24 = vld [vmem:[%s14500_s2 + $0x170] sm:$0xff]  ;;  %v13042_v26 = vpack.c.bf16 %v4489_v61, %v4482_v39  ;;  %v13057_v39 = vsub.f32 %v4342_v25, %v13027_v19  ;;  %v5112_v25 = vsub.f32 %v12994_v40, %v14529_v2 }
  0xdd   :  { %11271 = vmatprep.subr.bf16.mxu1 %v12955_v1  ;;  %v5037_v30 = vsel %vm25_vm0, %v178_v24, 0  ;;  %v13050_v24 = vsub.f32 %v5031_v14, %v13022_v44  ;;  %v4420_v14 = vsub.f32 %v12987_v58, %v14656_v43  ;;  %v14531_v43 = vand.u32 4294901760, %v13047_v31 }
  0xde   :  { %10448 = vmatmul.mubr.f32.gmra.mrb[14].mxu1 %v12728_v63  ;;  %v13059_v61 = vand.u32 4294901760, %v5037_v30  ;;  %v5113_v2 = vand.u32 4294901760, %v5112_v25  ;;  %v14662_v33 = vand.u32 4294901760, %v13095_v21 }
  0xdf   :  { %10450 = vmatprep.mubr.f32.mxu1 %v12735_v49  ;;  %10373 = vmatmul.mubr.f32.gmra.mrb[16].mxu0 %v12737_v35  ;;  %v5122_v16 = vsub.f32 %v13047_v31, %v14531_v43 }
  0xe0   :  { %10379 = vmatprep.mubr.f32.mxu0 %v12626_v17  ;;  %v14530_v17 = vand.u32 4294901760, %v13018_v29  ;;  %v4470_v37 = vsub.f32 %v13095_v21, %v14662_v33 }
  0xe2   :  { %10451 = vmatmul.mubr.f32.gmra.mrb[16].mxu1 %v12761_v57 }
  0xe3   :  { %10457 = vmatprep.mubr.f32.mxu1 %v12633_v22  ;;  %10380 = vmatmul.mubr.f32.vlgmr.msra.gmra.mrb[12].mxu0 %v12655_v52  ;;  %v13071_v52 = vsub.f32 %v4345_v55, %v13034_v32  ;;  %v13083_v22 = vsub.f32 %v5034_v8, %v13052_v59  ;;  %v13085_v55 = vand.u32 4294901760, %v5040_v46  ;;  %v4421_v8 = vand.u32 4294901760, %v4420_v14 }
  0xe4   :  { %10382 = vmatprep.mubr.f32.mxu0 %v12672_v9  ;;  %11249 = vmatpush3.bf16.msra.mxu0 %v12934_v41  ;;  %v4430_v9 = vsub.f32 %v13018_v29, %v14530_v17  ;;  %v14657_v17 = vand.u32 4294901760, %v13032_v20 }
  0xe5   :  { %11251 = vmatprep.subr.bf16.mxu0 %v13042_v26  ;;  %v13109_v10 = vsub.f32 %v5040_v46, %v13085_v55  ;;  %v5123_v46 = vand.u32 4294901760, %v5122_v16  ;;  %v11278_v16 = vpack.c.bf16 %v12941_v42, %v12938_v34 }
  0xe6   :  { %10458 = vmatmul.mubr.f32.vlgmr.msra.gmra.mrb[12].mxu1 %v12696_v23  ;;  %v13092_v23 = vsub.f32 %v5037_v30, %v13059_v61  ;;  %v4431_v30 = vand.u32 4294901760, %v4430_v9 }
  0xe7   :  { %10460 = vmatprep.mubr.f32.mxu1 %v12698_v11  ;;  %10383 = vmatmul.mubr.f32.gmra.mrb[14].mxu0 %v12703_v51  ;;  %v4440_v11 = vsub.f32 %v13032_v20, %v14657_v17  ;;  %v14532_v51 = vand.u32 4294901760, %v13071_v52  ;;  %v14658_v17 = vand.u32 4294901760, %v13050_v24  ;;  %v5161_v9 = vand.u32 4294901760, %v13109_v10 }
  0xe8   :  { %10385 = vmatprep.mubr.f32.mxu0 %v12710_v28  ;;  %11273 = vmatpush3.bf16.msra.mxu1 %v12955_v1  ;;  %v14661_v43 = vand.u32 4294901760, %v13092_v23 }
  0xe9   :  { %11275 = vmatprep.subr.bf16.mxu1 %v11274_v48  ;;  %v5132_v14 = vsub.f32 %v13050_v24, %v14658_v17  ;;  %v4441_v28 = vand.u32 4294901760, %v4440_v11  ;;  %v14660_v17 = vand.u32 4294901760, %v13083_v22 }
  0xea   :  { %10461 = vmatmul.mubr.f32.gmra.mrb[14].mxu1 %v12728_v63  ;;  %v14659_v63 = vand.u32 4294901760, %v13057_v39 }
  0xeb   :  { %10463 = vmatprep.mubr.f32.mxu1 %v12735_v49  ;;  %10386 = vmatmul.mubr.f32.gmra.mrb[16].mxu0 %v12737_v35  ;;  %v4460_v49 = vsub.f32 %v13071_v52, %v14532_v51  ;;  %v11254_v35 = vpack.c.bf16 %v12917_v3, %v12907_v15  ;;  %v5152_v51 = vsub.f32 %v13092_v23, %v14661_v43 }
  0xec   :  { %v4450_v25 = vsub.f32 %v13057_v39, %v14659_v63  ;;  %10470 = vmatprep.mubr.f32.mxu0 %v4421_v8  ;;  %v5142_v63 = vsub.f32 %v13083_v22, %v14660_v17  ;;  %v5133_v8 = vand.u32 4294901760, %v5132_v14  ;;  %v4471_v14 = vand.u32 4294901760, %v4470_v37 }
  0xed   :  { %v5153_v43 = vand.u32 4294901760, %v5152_v51  ;;  %v14663_v37 = vand.u32 4294901760, %v12907_v15  ;;  %v13165_v51 = vld [vmem:[%s14502_s4] sm:$0xff]  ;;  %v14665_v15 = vand.u32 4294901760, %v12938_v34 }
  0xee   :  { %10464 = vmatmul.mubr.f32.gmra.mrb[16].mxu1 %v12761_v57  ;;  %v4451_v11 = vand.u32 4294901760, %v4450_v25  ;;  %v4461_v57 = vand.u32 4294901760, %v4460_v49  ;;  %v14543_v49 = vand.u32 4294901760, %v13165_v51 }
  0xef   :  { %10548 = vmatprep.mubr.f32.mxu1 %v5113_v2  ;;  %10471 = vmatmul.mubr.f32.vlgmr.msra.gmra.mrb[18].mxu0 %v4431_v30  ;;  %v5143_v2 = vand.u32 4294901760, %v5142_v63  ;;  %v5162_v30 = vsub.f32 %v13109_v10, %v5161_v9 }
  0xf0   :  { %10473 = vmatprep.mubr.f32.mxu0 %v4441_v28  ;;  %11253 = vmatpush3.bf16.msra.mxu0 %v13042_v26  ;;  %v14664_v26 = vand.u32 4294901760, %v12917_v3  ;;  %v13170_v28 = vld [vmem:[%s14502_s4 + $0x8] sm:$0xff]  ;;  %v14666_v3 = vand.u32 4294901760, %v12941_v42  ;;  %v13190_v34 = vsub.f32 %v13165_v51, %v14543_v49 }
  0xf1   :  { %11255 = vmatprep.subr.bf16.mxu0 %v11254_v35  ;;  %v5163_v33 = vand.u32 4294901760, %v5162_v30  ;;  %v77_v30 = vld [vmem:[%s14501_s3] sm:$0xff] }
  0xf2   :  { %10549 = vmatmul.mubr.f32.vlgmr.msra.gmra.mrb[18].mxu1 %v5123_v46  ;;  %v11286_v25 = vpack.c.bf16 %v14666_v3, %v14665_v15  ;;  %14667 = vst [vmem:[#allocation24_spill] sm:$0xff] %v13190_v34  ;;  %v14669_v46 = vand.u32 4294901760, %v12987_v58  ;;  %v14538_v17 = vand.u32 4294901760, %v13190_v34 }
  0xf3   :  { %10551 = vmatprep.mubr.f32.mxu1 %v5133_v8  ;;  %10474 = vmatmul.mubr.f32.gmra.mrb[20].mxu0 %v4451_v11  ;;  %v14670_v8 = vand.u32 4294901760, %v12994_v40  ;;  %v14671_v11 = vand.u32 4294901760, %v13018_v29 }
  0xf4   :  { %10476 = vmatprep.mubr.f32.mxu0 %v4461_v57  ;;  %11277 = vmatpush3.bf16.msra.mxu1 %v11274_v48  ;;  %v11262_v48 = vpack.c.bf16 %v14664_v26, %v14663_v37  ;;  %v14672_v57 = vand.u32 4294901760, %v13032_v20 }
  0xf5   :  { %11279 = vmatprep.subr.bf16.mxu1 %v11278_v16 }
  0xf6   :  { %10552 = vmatmul.mubr.f32.gmra.mrb[20].mxu1 %v5143_v2  ;;  %v14676_v2 = vand.u32 4294901760, %v13071_v52 }
  0xf7   :  { %10554 = vmatprep.mubr.f32.mxu1 %v5153_v43  ;;  %10477 = vmatmul.mubr.f32.gmra.mrb[22].mxu0 %v4471_v14  ;;  %v78_v43 = vld [vmem:[%s14501_s3 + $0x8] sm:$0xff]  ;;  %v14677_v14 = vand.u32 4294901760, %v13083_v22  ;;  %s11911_s3 = smov 16  }
  0xf8   :  { %10483 = vmatprep.mubr.f32.mxu0 %v12950_v50  ;;  %v5768_v37 = vand.u32 4294901760, %v78_v43 }
  0xfa   :  { %10555 = vmatmul.mubr.f32.gmra.mrb[22].mxu1 %v5163_v33  ;;  %v5765_v33 = vand.u32 4294901760, %v77_v30  ;;  %v13244_v15 = vsub.f32 %v78_v43, %v5768_v37  ;;  %v5735_v43 = vsel %vm25_vm0, %v12252_v53, 0 }
  0xfb   :  { %10561 = vmatprep.mubr.f32.mxu1 %v12957_v36  ;;  %10484 = vmatmul.mubr.f32.vlgmr.msra.gmra.mrb[18].mxu0 %v12979_v47 }
  0xfc   :  { %10486 = vmatprep.mubr.f32.mxu0 %v12996_v60  ;;  %11257 = vmatpush3.bf16.msra.mxu0 %v11254_v35  ;;  %v14542_v35 = vand.u32 4294901760, %v13170_v28  ;;  %v14539_v3 = vand.u32 4294901760, %v13244_v15 }
  0xfd   :  { %11259 = vmatprep.subr.bf16.mxu0 %v12934_v41 }
  0xfe   :  { %10562 = vmatmul.mubr.f32.vlgmr.msra.gmra.mrb[18].mxu1 %v13020_v0  ;;  %v13195_v42 = vsub.f32 %v13170_v28, %v14542_v35 }
  0xff   :  { %10564 = vmatprep.mubr.f32.mxu1 %v13022_v44  ;;  %10487 = vmatmul.mubr.f32.gmra.mrb[20].mxu0 %v13027_v19 }
 0x100   :  { %10489 = vmatprep.mubr.f32.mxu0 %v13034_v32  ;;  %11281 = vmatpush3.bf16.msra.mxu1 %v11278_v16  ;;  %14668 = vst [vmem:[#allocation25_spill] sm:$0xff] %v13195_v42  ;;  %v14537_v63 = vand.u32 4294901760, %v13195_v42 }
 0x101   :  { %11283 = vmatprep.subr.bf16.mxu1 %v12955_v1 }
 0x102   :  { %10565 = vmatmul.mubr.f32.gmra.mrb[20].mxu1 %v13052_v59  ;;  %v7428_v16 = vsub.f32 %v13195_v42, %v14537_v63 }
 0x103   :  { %10567 = vmatprep.mubr.f32.mxu1 %v13059_v61  ;;  %10490 = vmatmul.mubr.f32.gmra.mrb[22].mxu0 %v13061_v45 }
 0x104   :  { %10496 = vmatprep.mubr.f32.mxu0 %v12987_v58  ;;  %v7421_v58 = vsub.f32 %v13190_v34, %v14538_v17  ;;  %v5741_v17 = vsel %vm25_vm0, %v12545_v5, 0 }
 0x106   :  { %10568 = vmatmul.mubr.f32.gmra.mrb[22].mxu1 %v13085_v55 }
 0x107   :  { %10574 = vmatprep.mubr.f32.mxu1 %v12994_v40  ;;  %10497 = vmatmul.mubr.f32.vlgmr.msra.gmra.mrb[18].mxu0 %v13018_v29  ;;  %v14673_v40 = vand.u32 4294901760, %v13047_v31  ;;  %v14674_v29 = vand.u32 4294901760, %v13050_v24 }
 0x108   :  { %10499 = vmatprep.mubr.f32.mxu0 %v13032_v20  ;;  %11261 = vmatpush3.bf16.msra.mxu0 %v12934_v41  ;;  %v14675_v20 = vand.u32 4294901760, %v13057_v39 }
 0x109   :  { %11263 = vmatprep.subr.bf16.mxu0 %v11262_v48 }
 0x10a   :  { %10575 = vmatmul.mubr.f32.vlgmr.msra.gmra.mrb[18].mxu1 %v13047_v31  ;;  %v7422_v31 = vand.u32 4294901760, %v7421_v58 }
 0x10b   :  { %10577 = vmatprep.mubr.f32.mxu1 %v13050_v24  ;;  %10500 = vmatmul.mubr.f32.gmra.mrb[20].mxu0 %v13057_v39  ;;  %v7429_v24 = vand.u32 4294901760, %v7428_v16  ;;  %v14678_v39 = vand.u32 4294901760, %v13092_v23 }
 0x10c   :  { %10502 = vmatprep.mubr.f32.mxu0 %v13071_v52  ;;  %11285 = vmatpush3.bf16.msra.mxu1 %v12955_v1  ;;  %v14679_v52 = vand.u32 4294901760, %v13095_v21 }
 0x10d   :  { %11287 = vmatprep.subr.bf16.mxu1 %v11286_v25  ;;  %v13240_v26 = vpack.c.bf16 %v7429_v24, %v7422_v31 }
 0x10e   :  { %10578 = vmatmul.mubr.f32.gmra.mrb[20].mxu1 %v13083_v22  ;;  %v5717_v22 = vsel %vm25_vm0, %v11956_v4, 0 }
 0x10f   :  { %10580 = vmatprep.mubr.f32.mxu1 %v13092_v23  ;;  %10503 = vmatmul.mubr.f32.gmra.mrb[22].mxu0 %v13095_v21  ;;  %14680 = vst [vmem:[#allocation26_spill] sm:$0xff] %v13240_v26  ;;  %v5720_v23 = vsel %vm25_vm0, %v11964_v7, 0  ;;  %v13256_v21 = vpack.c.bf16 %v5768_v37, %v5765_v33 }
 0x110   :  { %10509 = vmatprep.mubr.f32.mxu0 %v14669_v46 }
 0x112   :  { %10581 = vmatmul.mubr.f32.gmra.mrb[22].mxu1 %v13109_v10  ;;  %v5723_v10 = vsel %vm25_vm0, %v11976_v12, 0 }
 0x113   :  { %10587 = vmatprep.mubr.f32.mxu1 %v14670_v8  ;;  %10510 = vmatmul.mubr.f32.vlgmr.msra.gmra.mrb[18].mxu0 %v14671_v11  ;;  %v13272_v46 = vand.u32 4294901760, %v5723_v10  ;;  %v5726_v8 = vsel %vm25_vm0, %v11978_v13, 0 }
 0x114   :  { %10512 = vmatprep.mubr.f32.mxu0 %v14672_v57  ;;  %11265 = vmatpush3.bf16.msra.mxu0 %v11262_v48  ;;  %v13242_v48 = vsub.f32 %v77_v30, %v5765_v33  ;;  %v6002_v57 = vsub.f32 %v13244_v15, %v14539_v3  ;;  %v5732_v30 = vsel %vm25_vm0, %v12227_v27, 0 }
 0x115   :  { %11267 = vmatprep.subr.bf16.mxu0 %v12934_v41 }
 0x116   :  { %10588 = vmatmul.mubr.f32.vlgmr.msra.gmra.mrb[18].mxu1 %v14673_v40  ;;  %v13293_v40 = vand.u32 4294901760, %v5726_v8  ;;  %v6003_v24 = vand.u32 4294901760, %v6002_v57 }
 0x117   :  { %10590 = vmatprep.mubr.f32.mxu1 %v14674_v29  ;;  %10513 = vmatmul.mubr.f32.gmra.mrb[20].mxu0 %v14675_v20  ;;  %v5729_v29 = vsel %vm25_vm0, %v12221_v18, 0 }
 0x118   :  { %10515 = vmatprep.mubr.f32.mxu0 %v14676_v2  ;;  %11289 = vmatpush3.bf16.msra.mxu1 %v11286_v25  ;;  %v13270_v25 = vand.u32 4294901760, %v5720_v23  ;;  %v13302_v2 = vsub.f32 %v5723_v10, %v13272_v46  ;;  %v13319_v37 = vsub.f32 %v5726_v8, %v13293_v40 }
 0x119   :  { %11291 = vmatprep.subr.bf16.mxu1 %v12955_v1 }
 0x11a   :  { %10591 = vmatmul.mubr.f32.gmra.mrb[20].mxu1 %v14677_v14  ;;  %v13299_v20 = vsub.f32 %v5720_v23, %v13270_v25  ;;  %v13310_v14 = vpack.c.bf16 %v13195_v42, %v13190_v34  ;;  %v13325_v23 = vand.u32 4294901760, %v5735_v43 }
 0x11b   :  { %10593 = vmatprep.mubr.f32.mxu1 %v14678_v39  ;;  %10516 = vmatmul.mubr.f32.gmra.mrb[22].mxu0 %v14679_v52  ;;  %v13313_v39 = vand.u32 4294901760, %v5729_v29 }
 0x11c   :  { %10522 = vmatprep.mubr.f32.mxu0 %v12950_v50 }
 0x11d   :  { %v13338_v63 = vsub.f32 %v5729_v29, %v13313_v39 }
 0x11e   :  { %10594 = vmatmul.mubr.f32.gmra.mrb[22].mxu1 %v5161_v9  ;;  %v14540_v9 = vand.u32 4294901760, %v13242_v48 }
 0x11f   :  { %10600 = vmatprep.mubr.f32.mxu1 %v12957_v36  ;;  %10523 = vmatmul.mubr.f32.vlgmr.msra.gmra.mrb[18].mxu0 %v12979_v47 }
 0x120   :  { %10525 = vmatprep.mubr.f32.mxu0 %v12996_v60  ;;  %11269 = vmatpush3.bf16.msra.mxu0 %v12934_v41  ;;  %v13266_v41 = vand.u32 4294901760, %v5717_v22  ;;  %v5995_v11 = vsub.f32 %v13242_v48, %v14540_v9 }
 0x121   :  { %11323 = vmatprep.subr.bf16.mxu0 %v13240_v26 }
 0x122   :  { %10601 = vmatmul.mubr.f32.vlgmr.msra.gmra.mrb[18].mxu1 %v13020_v0  ;;  %v13291_v16 = vsub.f32 %v5717_v22, %v13266_v41  ;;  %v5996_v31 = vand.u32 4294901760, %v5995_v11  ;;  %v13323_v22 = vand.u32 4294901760, %v5732_v30  ;;  %v14545_v11 = vand.u32 4294901760, %v13302_v2 }
 0x123   :  { %10603 = vmatprep.mubr.f32.mxu1 %v13022_v44  ;;  %10526 = vmatmul.mubr.f32.gmra.mrb[20].mxu0 %v13027_v19 }
 0x124   :  { %10528 = vmatprep.mubr.f32.mxu0 %v13034_v32  ;;  %11293 = vmatpush3.bf16.msra.mxu1 %v12955_v1  ;;  %v14541_v33 = vand.u32 4294901760, %v13291_v16  ;;  %v13333_v57 = vpack.c.bf16 %v6003_v24, %v5996_v31  ;;  %v13354_v29 = vsub.f32 %v5732_v30, %v13323_v22  ;;  %v13357_v24 = vsub.f32 %v5735_v43, %v13325_v23 }
 0x125   :  { %11295 = vmatprep.subr.bf16.mxu1 %v13256_v21 }
 0x126   :  { %10604 = vmatmul.mubr.f32.gmra.mrb[20].mxu1 %v13052_v59  ;;  %v13284_v1 = vpop.f32.mrb[0].mxu0  ;;  %v5834_v31 = vsub.f32 %v13291_v16, %v14541_v33  ;;  %v13369_v33 = vand.u32 4294901760, %v5741_v17 }
 0x127   :  { %14681 = vst [vmem:[#allocation27_spill] sm:$0xff] %v13284_v1  ;;  %10606 = vmatprep.mubr.f32.mxu1 %v13059_v61  ;;  %v13287_v58 = vpop.f32.mrb[1].mxu0  ;;  %10529 = vmatmul.mubr.f32.gmra.mrb[22].mxu0 %v13061_v45 }
 0x128   :  { %14682 = vst [vmem:[#allocation28_spill] sm:$0xff] %v13287_v58  ;;  %10535 = vmatprep.mubr.f32.mxu0 %v12950_v50 }
 0x12a   :  { %10607 = vmatmul.mubr.f32.gmra.mrb[22].mxu1 %v13085_v55  ;;  %v10072_v50 = vpop.f32.mrb[2].mxu0 }
 0x12b   :  { %10613 = vmatprep.mubr.f32.mxu1 %v12957_v36  ;;  %v850_v52 = vpop.f32.mrb[3].mxu0  ;;  %10536 = vmatmul.mubr.f32.vlgmr.msra.gmra.mrb[18].mxu0 %v12979_v47  ;;  %v14544_v36 = vand.u32 4294901760, %v13299_v20  ;;  %v5738_v47 = vsel %vm25_vm0, %v12254_v62, 0  ;;  %v13373_v30 = vsel %vm25_vm0, %v10072_v50, 0  ;;  %v5835_v50 = vand.u32 4294901760, %v5834_v31 }
 0x12c   :  { %10538 = vmatprep.mubr.f32.mxu0 %v12996_v60  ;;  %11325 = vmatpush3.bf16.msra.mxu0 %v13240_v26  ;;  %v13343_v3 = vsel %vm25_vm0, %v850_v52, 0  ;;  %v13402_v31 = vsub.f32 %v5741_v17, %v13369_v33 }
 0x12d   :  { %v13327_v10 = vpop.f32.mrb[2].mxu1  ;;  %11327 = vmatprep.subr.bf16.mxu0 %v13310_v14  ;;  %v13376_v43 = vand.u32 4294901760, %v13343_v3 }
 0x12e   :  { %v1542_v60 = vpop.f32.mrb[3].mxu1  ;;  %10614 = vmatmul.mubr.f32.vlgmr.msra.gmra.mrb[18].mxu1 %v13020_v0  ;;  %v10075_v8 = vpop.f32.mrb[4].mxu0  ;;  %v14546_v0 = vand.u32 4294901760, %v13319_v37  ;;  %v14696_v7 = vand.u32 4294901760, %v13402_v31 }
 0x12f   :  { %10616 = vmatprep.mubr.f32.mxu1 %v13022_v44  ;;  %v862_v9 = vpop.f32.mrb[5].mxu0  ;;  %10539 = vmatmul.mubr.f32.gmra.mrb[20].mxu0 %v13027_v19  ;;  %v13359_v44 = vand.u32 4294901760, %v5738_v47  ;;  %v5844_v19 = vsub.f32 %v13299_v20, %v14544_v36  ;;  %14683 = vst [vmem:[#allocation29_spill] sm:$0xff] %v13376_v43  ;;  %v5744_v36 = vsel %vm25_vm0, %v12551_v54, 0  ;;  %v13407_v54 = vsel %vm25_vm0, %v10075_v8, 0 }
 0x130   :  { %10541 = vmatprep.mubr.f32.mxu0 %v13034_v32  ;;  %11297 = vmatpush3.bf16.msra.mxu1 %v13256_v21  ;;  %v5854_v32 = vsub.f32 %v13302_v2, %v14545_v11  ;;  %v13383_v11 = vsel %vm25_vm0, %v862_v9, 0  ;;  %v5864_v58 = vsub.f32 %v13319_v37, %v14546_v0  ;;  %v5747_v9 = vsel %vm25_vm0, %v12576_v38, 0 }
 0x131   :  { %v13361_v52 = vpop.f32.mrb[4].mxu1  ;;  %11299 = vmatprep.subr.bf16.mxu1 %v13333_v57  ;;  %v13394_v1 = vsub.f32 %v5738_v47, %v13359_v44  ;;  %v13404_v0 = vand.u32 4294901760, %v5744_v36  ;;  %v13410_v49 = vand.u32 4294901760, %v13383_v11  ;;  %v13420_v5 = vand.u32 4294901760, %v5747_v9 }
 0x132   :  { %v1554_v35 = vpop.f32.mrb[5].mxu1  ;;  %10617 = vmatmul.mubr.f32.gmra.mrb[20].mxu1 %v13052_v59  ;;  %v5855_v47 = vand.u32 4294901760, %v5854_v32  ;;  %v14686_v59 = vand.u32 4294901760, %v13338_v63  ;;  %v5865_v17 = vand.u32 4294901760, %v5864_v58  ;;  %v5750_v8 = vsel %vm25_vm0, %v12578_v56, 0 }
 0x133   :  { %10619 = vmatprep.mubr.f32.mxu1 %v13059_v61  ;;  %10542 = vmatmul.mubr.f32.gmra.mrb[22].mxu0 %v13061_v45  ;;  %v13399_v61 = vand.u32 4294901760, %v13373_v30  ;;  %v5845_v45 = vand.u32 4294901760, %v5844_v19  ;;  %14685 = vst [vmem:[#allocation31_spill] sm:$0xff] %v13410_v49  ;;  %v13417_v19 = vsel %vm25_vm0, %v1542_v60, 0  ;;  %v5753_v58 = vsel %vm25_vm0, %v12869_v6, 0 }
 0x134   :  { %10846 = vmatprep.mubr.f32.mxu0 %v13376_v43  ;;  %v5874_v38 = vsub.f32 %v13338_v63, %v14686_v59  ;;  %v14688_v59 = vand.u32 4294901760, %v13357_v24  ;;  %v13436_v62 = vand.u32 4294901760, %v13407_v54  ;;  %v13440_v53 = vsub.f32 %v5744_v36, %v13404_v0 }
 0x135   :  { %14684 = vst [vmem:[#allocation30_spill] sm:$0xff] %v13399_v61  ;;  %v13453_v6 = vand.u32 4294901760, %v5750_v8  ;;  %v13456_v56 = vsel %vm25_vm0, %v1554_v35, 0  ;;  %v13460_v36 = vsub.f32 %v5747_v9, %v13420_v5  ;;  %v13462_v27 = vand.u32 4294901760, %v5753_v58  ;;  %v14694_v35 = vld [vmem:[#allocation22_spill] sm:$0xff] }
 0x136   :  { %10620 = vmatmul.mubr.f32.gmra.mrb[22].mxu1 %v13085_v55  ;;  %v14687_v55 = vand.u32 4294901760, %v13354_v29  ;;  %v5894_v60 = vsub.f32 %v13357_v24, %v14688_v59  ;;  %14689 = vst [vmem:[#allocation32_spill] sm:$0xff] %v13436_v62  ;;  %v13448_v59 = vsel %vm25_vm0, %v13327_v10, 0  ;;  %14691 = vst [vmem:[#allocation34_spill] sm:$0xff] %v13456_v56  ;;  %v14692_v10 = vld [vmem:[#allocation21_spill] sm:$0xff] }
 0x137   :  { %10626 = vmatprep.mubr.f32.mxu1 %v5835_v50  ;;  %10847 = vmatmul.mubr.f32.vlgmr.msra.gmra.mrb[24].mxu0 %v13399_v61  ;;  %v13451_v50 = vand.u32 4294901760, %v13417_v19  ;;  %v5756_v18 = vsel %vm25_vm0, %v14692_v10, 0  ;;  %v13474_v9 = vand.u32 4294901760, %v13448_v59  ;;  %v5914_v10 = vsub.f32 %v13402_v31, %v14696_v7 }
 0x138   :  { %10849 = vmatprep.mubr.f32.mxu0 %v13410_v49  ;;  %v5884_v32 = vsub.f32 %v13354_v29, %v14687_v55  ;;  %11329 = vmatpush3.bf16.msra.mxu0 %v13310_v14  ;;  %v13444_v55 = vpack.c.bf16 %v13244_v15, %v13242_v48  ;;  %v5875_v14 = vand.u32 4294901760, %v5874_v38  ;;  %v14693_v38 = vand.u32 4294901760, %v13394_v1 }
 0x139   :  { %14690 = vst [vmem:[#allocation33_spill] sm:$0xff] %v13451_v50  ;;  %14695 = vst [vmem:[#allocation35_spill] sm:$0xff] %v13474_v9  ;;  %v5895_v12 = vand.u32 4294901760, %v5894_v60  ;;  %v13491_v60 = vand.u32 4294901760, %v5756_v18  ;;  %v13496_v4 = vsub.f32 %v5753_v58, %v13462_v27 }
 0x13a   :  { %10627 = vmatmul.mubr.f32.vlgmr.msra.gmra.mrb[24].mxu1 %v5845_v45  ;;  %v5885_v45 = vand.u32 4294901760, %v5884_v32  ;;  %v5904_v13 = vsub.f32 %v13394_v1, %v14693_v38  ;;  %v13483_v32 = vsel %vm25_vm0, %v13361_v52, 0  ;;  %v13486_v38 = vand.u32 4294901760, %v13456_v56  ;;  %v14700_v52 = vld [vmem:[#allocation23_spill] sm:$0xff] }
 0x13b   :  { %10629 = vmatprep.mubr.f32.mxu1 %v5855_v47  ;;  %10850 = vmatmul.mubr.f32.gmra.mrb[26].mxu0 %v13436_v62  ;;  %v5759_v47 = vsel %vm25_vm0, %v14694_v35, 0  ;;  %14697 = vst [vmem:[#allocation36_spill] sm:$0xff] %v13483_v32  ;;  %v5762_v26 = vsel %vm25_vm0, %v14700_v52, 0  ;;  %v13511_v58 = vsub.f32 %v5756_v18, %v13491_v60  ;;  %v5915_v52 = vand.u32 4294901760, %v5914_v10 }
 0x13c   :  { %10852 = vmatprep.mubr.f32.mxu0 %v13451_v50  ;;  %11301 = vmatpush3.bf16.msra.mxu1 %v13333_v57  ;;  %14698 = vst [vmem:[#allocation37_spill] sm:$0xff] %v13486_v38  ;;  %v13489_v57 = vsub.f32 %v5750_v8, %v13453_v6  ;;  %v13498_v35 = vand.u32 4294901760, %v5759_v47  ;;  %v5905_v8 = vand.u32 4294901760, %v5904_v13  ;;  %v13513_v34 = vand.u32 4294901760, %v5762_v26 }
 0x13d   :  { %11303 = vmatprep.subr.bf16.mxu1 %v13444_v55 }
 0x13e   :  { %10630 = vmatmul.mubr.f32.gmra.mrb[0].mxu1 %v5865_v17  ;;  %14699 = vst [vmem:[#allocation38_spill] sm:$0xff] %v13498_v35  ;;  %v13504_v17 = vand.u32 4294901760, %v13483_v32  ;;  %v14568_v7 = vand.u32 4294901760, %v13489_v57  ;;  %14703 = vst [vmem:[#allocation40_spill] sm:$0xff] %v13513_v34  ;;  %v14704_v32 = vand.u32 4294901760, %v13460_v36  ;;  %v13521_v56 = vsub.f32 %v5759_v47, %v13498_v35 }
 0x13f   :  { %10632 = vmatprep.mubr.f32.mxu1 %v5875_v14  ;;  %10853 = vmatmul.mubr.f32.gmra.mrb[28].mxu0 %v13474_v9  ;;  %v14702_v14 = vand.u32 4294901760, %v13440_v53 }
 0x140   :  { %10855 = vmatprep.mubr.f32.mxu0 %v13486_v38  ;;  %14701 = vst [vmem:[#allocation39_spill] sm:$0xff] %v13504_v17  ;;  %v5934_v13 = vsub.f32 %v13460_v36, %v14704_v32  ;;  %v5944_v18 = vsub.f32 %v13489_v57, %v14568_v7  ;;  %v14572_v47 = vand.u32 4294901760, %v13521_v56 }
 0x141   :  { %v5924_v42 = vsub.f32 %v13440_v53, %v14702_v14 }
 0x142   :  { %10633 = vmatmul.mubr.f32.gmra.mrb[26].mxu1 %v5885_v45  ;;  %v14574_v45 = vand.u32 4294901760, %v13496_v4  ;;  %v5935_v10 = vand.u32 4294901760, %v5934_v13 }
 0x143   :  { %10635 = vmatprep.mubr.f32.mxu1 %v5895_v12  ;;  %10856 = vmatmul.mubr.f32.gmra.mrb[30].mxu0 %v13504_v17  ;;  %v5925_v14 = vand.u32 4294901760, %v5924_v42  ;;  %v14573_v12 = vand.u32 4294901760, %v13511_v58  ;;  %v13528_v17 = vsub.f32 %v5762_v26, %v13513_v34  ;;  %v5974_v26 = vsub.f32 %v13521_v56, %v14572_v47 }
 0x144   :  { %v5954_v32 = vsub.f32 %v13496_v4, %v14574_v45  ;;  %v14712_v45 = vand.u32 4294901760, %v13242_v48 }
 0x145   :  { %v5964_v42 = vsub.f32 %v13511_v58, %v14573_v12  ;;  %v14571_v7 = vand.u32 4294901760, %v13528_v17 }
 0x146   :  { %10636 = vmatmul.mubr.f32.gmra.mrb[6].mxu1 %v5905_v8  ;;  %v5945_v8 = vand.u32 4294901760, %v5944_v18  ;;  %v5955_v38 = vand.u32 4294901760, %v5954_v32 }
 0x147   :  { %10638 = vmatprep.mubr.f32.mxu1 %v5915_v52  ;;  %v5965_v52 = vand.u32 4294901760, %v5964_v42  ;;  %v5984_v13 = vsub.f32 %v13528_v17, %v14571_v7 }
 0x149   :  { %v5985_v18 = vand.u32 4294901760, %v5984_v13 }
 0x14a   :  { %10639 = vmatmul.mubr.f32.gmra.mrb[28].mxu1 %v5925_v14  ;;  %v5975_v14 = vand.u32 4294901760, %v5974_v26 }
 0x14b   :  { %10641 = vmatprep.mubr.f32.mxu1 %v5935_v10  ;;  %v14705_v10 = vand.u32 4294901760, %v13165_v51 }
 0x14e   :  { %10642 = vmatmul.mubr.f32.gmra.mrb[12].mxu1 %v5945_v8 }
 0x14f   :  { %10644 = vmatprep.mubr.f32.mxu1 %v5955_v38  ;;  %v14706_v38 = vand.u32 4294901760, %v13170_v28 }
 0x151   :  { %v13554_v32 = vpack.c.bf16 %v14706_v38, %v14705_v10 }
 0x152   :  { %10645 = vmatmul.mubr.f32.gmra.mrb[30].mxu1 %v5965_v52 }
 0x153   :  { %10647 = vmatprep.mubr.f32.mxu1 %v5975_v14  ;;  %11331 = vmatprep.subr.bf16.mxu0 %v13554_v32 }
 0x156   :  { %10648 = vmatmul.mubr.f32.gmra.mrb[18].mxu1 %v5985_v18 }
 0x157   :  { %10654 = vmatprep.mubr.f32.mxu1 %v13266_v41 }
 0x15a   :  { %10655 = vmatmul.mubr.f32.vlgmr.msra.gmra.mrb[24].mxu1 %v13270_v25 }
 0x15b   :  { %10657 = vmatprep.mubr.f32.mxu1 %v13272_v46  ;;  %11305 = vmatpush3.bf16.msra.mxu1 %v13444_v55 }
 0x15c   :  { %11307 = vmatprep.subr.bf16.mxu1 %v13256_v21 }
 0x15e   :  { %10658 = vmatmul.mubr.f32.gmra.mrb[0].mxu1 %v13293_v40 }
 0x15f   :  { %10660 = vmatprep.mubr.f32.mxu1 %v13313_v39 }
 0x162   :  { %10661 = vmatmul.mubr.f32.gmra.mrb[26].mxu1 %v13323_v22 }
 0x163   :  { %10663 = vmatprep.mubr.f32.mxu1 %v13325_v23 }
 0x166   :  { %10664 = vmatmul.mubr.f32.gmra.mrb[6].mxu1 %v13359_v44 }
 0x167   :  { %10666 = vmatprep.mubr.f32.mxu1 %v13369_v33 }
 0x16a   :  { %10667 = vmatmul.mubr.f32.gmra.mrb[28].mxu1 %v13404_v0 }
 0x16b   :  { %10669 = vmatprep.mubr.f32.mxu1 %v13420_v5 }
 0x16e   :  { %10670 = vmatmul.mubr.f32.gmra.mrb[12].mxu1 %v13453_v6  ;;  %v13565_v51 = vpop.f32.mrb[6].mxu0 }
 0x16f   :  { %14707 = vst [vmem:[#allocation41_spill] sm:$0xff] %v13565_v51  ;;  %10672 = vmatprep.mubr.f32.mxu1 %v13462_v27  ;;  %v13568_v28 = vpop.f32.mrb[7].mxu0 }
 0x170   :  { %14708 = vst [vmem:[#allocation42_spill] sm:$0xff] %v13568_v28 }
 0x172   :  { %10673 = vmatmul.mubr.f32.gmra.mrb[30].mxu1 %v13491_v60  ;;  %v10228_v55 = vpop.f32.mrb[8].mxu0 }
 0x173   :  { %v13572_v8 = vsel %vm25_vm0, %v10228_v55, 0  ;;  %10675 = vmatprep.mubr.f32.mxu1 %v13498_v35  ;;  %v2234_v42 = vpop.f32.mrb[9].mxu0  ;;  %v13641_v35 = vsub.f32 %v13383_v11, %v13410_v49  ;;  %v13661_v11 = vsub.f32 %v13448_v59, %v13474_v9 }
 0x174   :  { %v13576_v26 = vsel %vm25_vm0, %v2234_v42, 0  ;;  %v13582_v14 = vand.u32 4294901760, %v13572_v8 }
 0x175   :  { %v10306_v52 = vpop.f32.mrb[8].mxu1  ;;  %v13579_v13 = vand.u32 4294901760, %v13576_v26 }
 0x176   :  { %14710 = vst [vmem:[#allocation44_spill] sm:$0xff] %v13582_v14  ;;  %v2926_v18 = vpop.f32.mrb[9].mxu1  ;;  %10676 = vmatmul.mubr.f32.gmra.mrb[18].mxu1 %v13513_v34  ;;  %v10231_v10 = vpop.f32.mrb[10].mxu0 }
 0x177   :  { %14709 = vst [vmem:[#allocation43_spill] sm:$0xff] %v13579_v13  ;;  %v13586_v38 = vsel %vm25_vm0, %v10231_v10, 0  ;;  %10682 = vmatprep.mubr.f32.mxu1 %v13291_v16  ;;  %v2246_v55 = vpop.f32.mrb[11].mxu0  ;;  %10858 = vmatprep.mubr.f32.mxu0 %v13579_v13  ;;  %v13591_v42 = vsel %vm25_vm0, %v2926_v18, 0  ;;  %v14713_v10 = vand.u32 4294901760, %v13244_v15  ;;  %v6974_v18 = vsel %vm25_vm0, %v10306_v52, 0 }
 0x178   :  { %v6965_v7 = vsel %vm25_vm0, %v2246_v55, 0  ;;  %10859 = vmatmul.mubr.f32.gmra.mrb[32].mxu0 %v13582_v14  ;;  %v13602_v51 = vand.u32 4294901760, %v13586_v38  ;;  %v13607_v55 = vand.u32 4294901760, %v13591_v42  ;;  %v13615_v15 = vand.u32 4294901760, %v6974_v18 }
 0x179   :  { %v10309_v47 = vpop.f32.mrb[10].mxu1  ;;  %v13595_v12 = vand.u32 4294901760, %v6965_v7  ;;  %v11310_v28 = vpack.c.bf16 %v14713_v10, %v14712_v45  ;;  %v13629_v10 = vsub.f32 %v13343_v3, %v13376_v43  ;;  %v13649_v3 = vsub.f32 %v13407_v54, %v13436_v62  ;;  %v14719_v54 = vld [vmem:[#allocation37_spill] sm:$0xff]  ;;  %v14720_v62 = vld [vmem:[#allocation34_spill] sm:$0xff] }
 0x17a   :  { %14714 = vst [vmem:[#allocation46_spill] sm:$0xff] %v13602_v51  ;;  %v2938_v34 = vpop.f32.mrb[11].mxu1  ;;  %10683 = vmatmul.mubr.f32.vlgmr.msra.gmra.mrb[24].mxu1 %v13299_v20  ;;  %14715 = vst [vmem:[#allocation47_spill] sm:$0xff] %v13607_v55  ;;  %v6980_v45 = vsel %vm25_vm0, %v10309_v47, 0  ;;  %v13636_v47 = vsub.f32 %v13373_v30, %v13399_v61  ;;  %v13654_v30 = vsub.f32 %v13417_v19, %v13451_v50  ;;  %v14721_v19 = vld [vmem:[#allocation39_spill] sm:$0xff]  ;;  %v14722_v50 = vld [vmem:[#allocation36_spill] sm:$0xff] }
 0x17b   :  { %14711 = vst [vmem:[#allocation45_spill] sm:$0xff] %v13595_v12  ;;  %10685 = vmatprep.mubr.f32.mxu1 %v13302_v2  ;;  %10861 = vmatprep.mubr.f32.mxu0 %v13595_v12  ;;  %v6977_v48 = vsel %vm25_vm0, %v2938_v34, 0  ;;  %14716 = vst [vmem:[#allocation48_spill] sm:$0xff] %v13615_v15  ;;  %v13624_v34 = vand.u32 4294901760, %v6980_v45  ;;  %v13666_v49 = vsub.f32 %v14720_v62, %v14719_v54 }
 0x17c   :  { %10862 = vmatmul.mubr.f32.gmra.mrb[34].mxu0 %v13602_v51  ;;  %11309 = vmatpush3.bf16.msra.mxu1 %v13256_v21  ;;  %v13619_v52 = vand.u32 4294901760, %v6977_v48  ;;  %v13673_v61 = vsub.f32 %v14722_v50, %v14721_v19  ;;  %v13678_v59 = vsub.f32 %v13576_v26, %v13579_v13  ;;  %v13685_v62 = vsub.f32 %v13572_v8, %v13582_v14 }
 0x17d   :  { %10864 = vmatprep.mubr.f32.mxu0 %v13607_v55  ;;  %11311 = vmatprep.subr.bf16.mxu1 %v11310_v28  ;;  %14718 = vst [vmem:[#allocation50_spill] sm:$0xff] %v13624_v34  ;;  %v13689_v50 = vsub.f32 %v6965_v7, %v13595_v12  ;;  %v14723_v19 = vand.u32 4294901760, %v13291_v16  ;;  %v13697_v26 = vsub.f32 %v13586_v38, %v13602_v51  ;;  %v14724_v13 = vand.u32 4294901760, %v13299_v20 }
 0x17e   :  { %10686 = vmatmul.mubr.f32.gmra.mrb[0].mxu1 %v13319_v37  ;;  %14717 = vst [vmem:[#allocation49_spill] sm:$0xff] %v13619_v52  ;;  %v13703_v8 = vsub.f32 %v13591_v42, %v13607_v55  ;;  %v14725_v7 = vand.u32 4294901760, %v13302_v2  ;;  %v13711_v16 = vsub.f32 %v6974_v18, %v13615_v15  ;;  %v14726_v20 = vand.u32 4294901760, %v13319_v37  ;;  %v14728_v2 = vld [vmem:[#allocation24_spill] sm:$0xff]  ;;  %v14730_v42 = vld [vmem:[#allocation25_spill] sm:$0xff] }
 0x17f   :  { %10688 = vmatprep.mubr.f32.mxu1 %v13338_v63  ;;  %v14727_v38 = vand.u32 4294901760, %v13338_v63  ;;  %v13730_v37 = vsub.f32 %v6980_v45, %v13624_v34  ;;  %v14732_v18 = vand.u32 4294901760, %v13354_v29  ;;  %v14733_v63 = vand.u32 4294901760, %v13357_v24 }
 0x180   :  { %10865 = vmatmul.mubr.f32.gmra.mrb[36].mxu0 %v13615_v15  ;;  %v14737_v45 = vand.u32 4294901760, %v13460_v36 }
 0x181   :  { %10867 = vmatprep.mubr.f32.mxu0 %v13619_v52 }
 0x182   :  { %10689 = vmatmul.mubr.f32.gmra.mrb[26].mxu1 %v13354_v29  ;;  %v14738_v29 = vand.u32 4294901760, %v13489_v57 }
 0x183   :  { %10691 = vmatprep.mubr.f32.mxu1 %v13357_v24  ;;  %v14739_v24 = vand.u32 4294901760, %v13496_v4 }
 0x184   :  { %10868 = vmatmul.mubr.f32.gmra.mrb[38].mxu0 %v13624_v34 }
 0x185   :  { %10898 = vmatprep.mubr.f32.mxu0 %v13629_v10 }
 0x186   :  { %10692 = vmatmul.mubr.f32.gmra.mrb[6].mxu1 %v13394_v1 }
 0x187   :  { %10694 = vmatprep.mubr.f32.mxu1 %v13402_v31 }
 0x188   :  { %10899 = vmatmul.mubr.f32.vlgmr.msra.gmra.mrb[24].mxu0 %v13636_v47 }
 0x189   :  { %10901 = vmatprep.mubr.f32.mxu0 %v13641_v35  ;;  %11333 = vmatpush3.bf16.msra.mxu0 %v13554_v32 }
 0x18a   :  { %10695 = vmatmul.mubr.f32.gmra.mrb[28].mxu1 %v13440_v53 }
 0x18b   :  { %10697 = vmatprep.mubr.f32.mxu1 %v13460_v36 }
 0x18c   :  { %10902 = vmatmul.mubr.f32.gmra.mrb[26].mxu0 %v13649_v3 }
 0x18d   :  { %10904 = vmatprep.mubr.f32.mxu0 %v13654_v30 }
 0x18e   :  { %10698 = vmatmul.mubr.f32.gmra.mrb[12].mxu1 %v13489_v57 }
 0x18f   :  { %10700 = vmatprep.mubr.f32.mxu1 %v13496_v4 }
 0x190   :  { %10905 = vmatmul.mubr.f32.gmra.mrb[28].mxu0 %v13661_v11 }
 0x191   :  { %10907 = vmatprep.mubr.f32.mxu0 %v13666_v49 }
 0x192   :  { %10701 = vmatmul.mubr.f32.gmra.mrb[30].mxu1 %v13511_v58 }
 0x193   :  { %10703 = vmatprep.mubr.f32.mxu1 %v13521_v56 }
 0x194   :  { %10908 = vmatmul.mubr.f32.gmra.mrb[30].mxu0 %v13673_v61 }
 0x195   :  { %10910 = vmatprep.mubr.f32.mxu0 %v13678_v59 }
 0x196   :  { %10704 = vmatmul.mubr.f32.gmra.mrb[18].mxu1 %v13528_v17 }
 0x197   :  { %10710 = vmatprep.mubr.f32.mxu1 %v14723_v19  ;;  %v14731_v19 = vand.u32 4294901760, %v14730_v42 }
 0x198   :  { %10911 = vmatmul.mubr.f32.gmra.mrb[32].mxu0 %v13685_v62 }
 0x199   :  { %10913 = vmatprep.mubr.f32.mxu0 %v13689_v50 }
 0x19a   :  { %10711 = vmatmul.mubr.f32.vlgmr.msra.gmra.mrb[24].mxu1 %v14724_v13  ;;  %v13716_v13 = vsub.f32 %v6977_v48, %v13619_v52  ;;  %v14734_v48 = vand.u32 4294901760, %v13394_v1  ;;  %v14741_v1 = vand.u32 4294901760, %v13521_v56 }
 0x19b   :  { %10713 = vmatprep.mubr.f32.mxu1 %v14725_v7  ;;  %11313 = vmatpush3.bf16.msra.mxu1 %v11310_v28  ;;  %v14729_v28 = vand.u32 4294901760, %v14728_v2  ;;  %v14740_v2 = vand.u32 4294901760, %v13511_v58 }
 0x19c   :  { %10914 = vmatmul.mubr.f32.gmra.mrb[34].mxu0 %v13697_v26  ;;  %11315 = vmatprep.subr.bf16.mxu1 %v13256_v21  ;;  %v14754_v12 = vand.u32 4294901760, %v13716_v13 }
 0x19d   :  { %10916 = vmatprep.mubr.f32.mxu0 %v13703_v8  ;;  %v13724_v7 = vpack.c.bf16 %v14731_v19, %v14729_v28 }
 0x19e   :  { %10714 = vmatmul.mubr.f32.gmra.mrb[0].mxu1 %v14726_v20  ;;  %v14735_v20 = vand.u32 4294901760, %v13402_v31  ;;  %v14742_v31 = vand.u32 4294901760, %v13528_v17  ;;  %v7240_v14 = vsub.f32 %v13716_v13, %v14754_v12 }
 0x19f   :  { %10716 = vmatprep.mubr.f32.mxu1 %v14727_v38  ;;  %11335 = vmatprep.subr.bf16.mxu0 %v13724_v7  ;;  %v14736_v38 = vand.u32 4294901760, %v13440_v53 }
 0x1a0   :  { %10917 = vmatmul.mubr.f32.gmra.mrb[36].mxu0 %v13711_v16 }
 0x1a1   :  { %10919 = vmatprep.mubr.f32.mxu0 %v13716_v13 }
 0x1a2   :  { %10717 = vmatmul.mubr.f32.gmra.mrb[26].mxu1 %v14732_v18 }
 0x1a3   :  { %10719 = vmatprep.mubr.f32.mxu1 %v14733_v63 }
 0x1a4   :  { %10920 = vmatmul.mubr.f32.gmra.mrb[38].mxu0 %v13730_v37 }
 0x1a6   :  { %10720 = vmatmul.mubr.f32.gmra.mrb[6].mxu1 %v14734_v48 }
 0x1a7   :  { %10722 = vmatprep.mubr.f32.mxu1 %v14735_v20 }
 0x1aa   :  { %10723 = vmatmul.mubr.f32.gmra.mrb[28].mxu1 %v14736_v38 }
 0x1ab   :  { %10725 = vmatprep.mubr.f32.mxu1 %v14737_v45 }
 0x1ae   :  { %10726 = vmatmul.mubr.f32.gmra.mrb[12].mxu1 %v14738_v29 }
 0x1af   :  { %10728 = vmatprep.mubr.f32.mxu1 %v14739_v24 }
 0x1b2   :  { %10729 = vmatmul.mubr.f32.gmra.mrb[30].mxu1 %v14740_v2 }
 0x1b3   :  { %10731 = vmatprep.mubr.f32.mxu1 %v14741_v1 }
 0x1b6   :  { %10732 = vmatmul.mubr.f32.gmra.mrb[18].mxu1 %v14742_v31  ;;  %v13755_v53 = vpop.f32.mrb[12].mxu0 }
 0x1b7   :  { %14743 = vst [vmem:[#allocation34_spill] sm:$0xff] %v13755_v53  ;;  %10738 = vmatprep.mubr.f32.mxu1 %v13266_v41  ;;  %v13758_v36 = vpop.f32.mrb[13].mxu0 }
 0x1b8   :  { %14744 = vst [vmem:[#allocation36_spill] sm:$0xff] %v13758_v36 }
 0x1ba   :  { %10739 = vmatmul.mubr.f32.vlgmr.msra.gmra.mrb[24].mxu1 %v13270_v25  ;;  %v10384_v57 = vpop.f32.mrb[14].mxu0 }
 0x1bb   :  { %v6986_v4 = vsel %vm25_vm0, %v10384_v57, 0  ;;  %10741 = vmatprep.mubr.f32.mxu1 %v13272_v46  ;;  %v3618_v58 = vpop.f32.mrb[15].mxu0  ;;  %11317 = vmatpush3.bf16.msra.mxu1 %v13256_v21 }
 0x1bc   :  { %v13764_v56 = vand.u32 4294901760, %v6986_v4  ;;  %v6983_v17 = vsel %vm25_vm0, %v3618_v58, 0  ;;  %11319 = vmatprep.subr.bf16.mxu1 %v13554_v32 }
 0x1bd   :  { %v10462_v28 = vpop.f32.mrb[14].mxu1  ;;  %v13768_v42 = vand.u32 4294901760, %v6983_v17 }
 0x1be   :  { %v4310_v19 = vpop.f32.mrb[15].mxu1  ;;  %10742 = vmatmul.mubr.f32.gmra.mrb[0].mxu1 %v13293_v40  ;;  %v10387_v18 = vpop.f32.mrb[16].mxu0  ;;  %v13778_v38 = vsub.f32 %v6986_v4, %v13764_v56  ;;  %v6998_v24 = vsel %vm25_vm0, %v10462_v28, 0 }
 0x1bf   :  { %v13772_v63 = vsub.f32 %v6983_v17, %v13768_v42  ;;  %v6995_v48 = vsel %vm25_vm0, %v4310_v19, 0  ;;  %v6992_v21 = vsel %vm25_vm0, %v10387_v18, 0  ;;  %10744 = vmatprep.mubr.f32.mxu1 %v13313_v39  ;;  %v3630_v20 = vpop.f32.mrb[17].mxu0  ;;  %v13796_v17 = vand.u32 4294901760, %v6998_v24 }
 0x1c0   :  { %v13780_v45 = vand.u32 4294901760, %v6992_v21  ;;  %v6989_v29 = vsel %vm25_vm0, %v3630_v20, 0  ;;  %v13784_v2 = vand.u32 4294901760, %v6995_v48  ;;  %v14614_v12 = vand.u32 4294901760, %v13778_v38 }
 0x1c1   :  { %v10465_v1 = vpop.f32.mrb[16].mxu1  ;;  %v13786_v31 = vand.u32 4294901760, %v6989_v29  ;;  %10922 = vmatprep.mubr.f32.mxu0 %v13772_v63 }
 0x1c2   :  { %v4322_v57 = vpop.f32.mrb[17].mxu1  ;;  %10745 = vmatmul.mubr.f32.gmra.mrb[26].mxu1 %v13323_v22  ;;  %10923 = vmatmul.mubr.f32.gmra.mrb[40].mxu0 %v13778_v38  ;;  %v13799_v28 = vsub.f32 %v6992_v21, %v13780_v45  ;;  %v13802_v19 = vsub.f32 %v6995_v48, %v13784_v2  ;;  %v7004_v18 = vsel %vm25_vm0, %v10465_v1, 0  ;;  %v13813_v21 = vsub.f32 %v6998_v24, %v13796_v17  ;;  %v14745_v24 = vld [vmem:[#allocation38_spill] sm:$0xff] }
 0x1c3   :  { %v13792_v4 = vsub.f32 %v6989_v29, %v13786_v31  ;;  %v7001_v58 = vsel %vm25_vm0, %v4322_v57, 0  ;;  %10747 = vmatprep.mubr.f32.mxu1 %v13325_v23  ;;  %v13815_v29 = vand.u32 4294901760, %v7004_v18  ;;  %v14746_v57 = vld [vmem:[#allocation40_spill] sm:$0xff] }
 0x1c4   :  { %v13805_v20 = vand.u32 4294901760, %v7001_v58  ;;  %v14761_v9 = vand.u32 4294901760, %v13799_v28 }
 0x1c5   :  { %10925 = vmatprep.mubr.f32.mxu0 %v13792_v4  ;;  %v13825_v1 = vsub.f32 %v7004_v18, %v13815_v29 }
 0x1c6   :  { %10748 = vmatmul.mubr.f32.gmra.mrb[6].mxu1 %v13359_v44  ;;  %10926 = vmatmul.mubr.f32.gmra.mrb[42].mxu0 %v13799_v28  ;;  %v13818_v48 = vsub.f32 %v7001_v58, %v13805_v20  ;;  %v14747_v58 = vld [vmem:[#allocation26_spill] sm:$0xff] }
 0x1c7   :  { %10750 = vmatprep.mubr.f32.mxu1 %v13369_v33  ;;  %10928 = vmatprep.mubr.f32.mxu0 %v13802_v19 }
 0x1ca   :  { %10751 = vmatmul.mubr.f32.gmra.mrb[28].mxu1 %v13404_v0  ;;  %10929 = vmatmul.mubr.f32.gmra.mrb[44].mxu0 %v13813_v21 }
 0x1cb   :  { %10753 = vmatprep.mubr.f32.mxu1 %v13420_v5  ;;  %10931 = vmatprep.mubr.f32.mxu0 %v13818_v48 }
 0x1ce   :  { %10754 = vmatmul.mubr.f32.gmra.mrb[12].mxu1 %v13453_v6  ;;  %10932 = vmatmul.mubr.f32.gmra.mrb[46].mxu0 %v13825_v1 }
 0x1cf   :  { %10756 = vmatprep.mubr.f32.mxu1 %v13462_v27 }
 0x1d2   :  { %10757 = vmatmul.mubr.f32.gmra.mrb[30].mxu1 %v13491_v60 }
 0x1d3   :  { %10759 = vmatprep.mubr.f32.mxu1 %v14745_v24 }
 0x1d6   :  { %10760 = vmatmul.mubr.f32.gmra.mrb[18].mxu1 %v14746_v57 }
 0x1d7   :  { %10766 = vmatprep.mubr.f32.mxu1 %v13266_v41  ;;  %v14596_v41 = vand.u32 4294901760, %v13629_v10 }
 0x1da   :  { %10767 = vmatmul.mubr.f32.vlgmr.msra.gmra.mrb[24].mxu1 %v13270_v25  ;;  %v14595_v25 = vand.u32 4294901760, %v13636_v47 }
 0x1db   :  { %10769 = vmatprep.mubr.f32.mxu1 %v13272_v46  ;;  %11321 = vmatpush3.bf16.msra.mxu1 %v13554_v32  ;;  %v14594_v46 = vand.u32 4294901760, %v13641_v35 }
 0x1dc   :  { %11342 = vmatprep.subr.bf16.mxu1 %v14747_v58 }
 0x1de   :  { %10770 = vmatmul.mubr.f32.gmra.mrb[0].mxu1 %v13293_v40  ;;  %v7100_v40 = vsub.f32 %v13629_v10, %v14596_v41 }
 0x1df   :  { %10772 = vmatprep.mubr.f32.mxu1 %v13313_v39 }
 0x1e0   :  { %v7101_v39 = vand.u32 4294901760, %v7100_v40 }
 0x1e2   :  { %10773 = vmatmul.mubr.f32.gmra.mrb[26].mxu1 %v13323_v22 }
 0x1e3   :  { %10775 = vmatprep.mubr.f32.mxu1 %v13325_v23  ;;  %v14590_v23 = vand.u32 4294901760, %v13661_v11 }
 0x1e5   :  { %v7150_v40 = vsub.f32 %v13661_v11, %v14590_v23 }
 0x1e6   :  { %10776 = vmatmul.mubr.f32.gmra.mrb[6].mxu1 %v13359_v44  ;;  %v14591_v44 = vand.u32 4294901760, %v13666_v49 }
 0x1e7   :  { %10778 = vmatprep.mubr.f32.mxu1 %v13369_v33  ;;  %v7120_v33 = vsub.f32 %v13641_v35, %v14594_v46 }
 0x1ea   :  { %10779 = vmatmul.mubr.f32.gmra.mrb[28].mxu1 %v13404_v0 }
 0x1eb   :  { %10781 = vmatprep.mubr.f32.mxu1 %v13420_v5  ;;  %v7110_v5 = vsub.f32 %v13636_v47, %v14595_v25 }
 0x1ed   :  { %v7111_v22 = vand.u32 4294901760, %v7110_v5  ;;  %v14597_v5 = vand.u32 4294901760, %v13678_v59 }
 0x1ee   :  { %10782 = vmatmul.mubr.f32.gmra.mrb[12].mxu1 %v13453_v6  ;;  %v14592_v6 = vand.u32 4294901760, %v13649_v3 }
 0x1ef   :  { %10784 = vmatprep.mubr.f32.mxu1 %v13462_v27  ;;  %v14589_v27 = vand.u32 4294901760, %v13654_v30 }
 0x1f0   :  { %v7130_v0 = vsub.f32 %v13649_v3, %v14592_v6  ;;  %v14750_v6 = vand.u32 4294901760, %v13689_v50 }
 0x1f1   :  { %v7140_v18 = vsub.f32 %v13654_v30, %v14589_v27  ;;  %v14598_v27 = vand.u32 4294901760, %v13685_v62 }
 0x1f2   :  { %10785 = vmatmul.mubr.f32.gmra.mrb[30].mxu1 %v13491_v60  ;;  %v7121_v60 = vand.u32 4294901760, %v7120_v33  ;;  %v7160_v33 = vsub.f32 %v13666_v49, %v14591_v44  ;;  %v7180_v44 = vsub.f32 %v13678_v59, %v14597_v5 }
 0x1f3   :  { %10787 = vmatprep.mubr.f32.mxu1 %v14745_v24  ;;  %v14593_v24 = vand.u32 4294901760, %v13673_v61 }
 0x1f6   :  { %10788 = vmatmul.mubr.f32.gmra.mrb[18].mxu1 %v14746_v57  ;;  %v7131_v57 = vand.u32 4294901760, %v7130_v0  ;;  %v7151_v0 = vand.u32 4294901760, %v7150_v40 }
 0x1f7   :  { %10794 = vmatprep.mubr.f32.mxu1 %v7101_v39  ;;  %v7141_v39 = vand.u32 4294901760, %v7140_v18  ;;  %v7161_v18 = vand.u32 4294901760, %v7160_v33 }
 0x1fa   :  { %10795 = vmatmul.mubr.f32.vlgmr.msra.gmra.mrb[32].mxu1 %v7111_v22 }
 0x1fb   :  { %10797 = vmatprep.mubr.f32.mxu1 %v7121_v60  ;;  %11343 = vmatpush3.bf16.msra.mxu1 %v14747_v58  ;;  %v7170_v60 = vsub.f32 %v13673_v61, %v14593_v24 }
 0x1fd   :  { %v7171_v41 = vand.u32 4294901760, %v7170_v60 }
 0x1fe   :  { %10798 = vmatmul.mubr.f32.gmra.mrb[34].mxu1 %v7131_v57  ;;  %v13883_v22 = vpop.f32.mrb[18].mxu0 }
 0x1ff   :  { %14748 = vst [vmem:[#allocation24_spill] sm:$0xff] %v13883_v22  ;;  %10800 = vmatprep.mubr.f32.mxu1 %v7141_v39  ;;  %v13885_v58 = vpop.f32.mrb[19].mxu0  ;;  %v7190_v39 = vsub.f32 %v13685_v62, %v14598_v27  ;;  %v14751_v22 = vand.u32 4294901760, %v13697_v26 }
 0x200   :  { %14749 = vst [vmem:[#allocation25_spill] sm:$0xff] %v13885_v58  ;;  %v7200_v58 = vsub.f32 %v13689_v50, %v14750_v6  ;;  %v14752_v6 = vand.u32 4294901760, %v13703_v8 }
 0x201   :  { %v7210_v36 = vsub.f32 %v13697_v26, %v14751_v22 }
 0x202   :  { %10801 = vmatmul.mubr.f32.gmra.mrb[36].mxu1 %v7151_v0  ;;  %v10540_v57 = vpop.f32.mrb[20].mxu0  ;;  %v7181_v0 = vand.u32 4294901760, %v7180_v44  ;;  %v7220_v27 = vsub.f32 %v13703_v8, %v14752_v6  ;;  %v7201_v52 = vand.u32 4294901760, %v7200_v58 }
 0x203   :  { %10803 = vmatprep.mubr.f32.mxu1 %v7161_v18  ;;  %v7010_v24 = vsel %vm25_vm0, %v10540_v57, 0  ;;  %v5002_v46 = vpop.f32.mrb[21].mxu0  ;;  %v7191_v57 = vand.u32 4294901760, %v7190_v39  ;;  %v7211_v55 = vand.u32 4294901760, %v7210_v36 }
 0x204   :  { %v13900_v25 = vand.u32 4294901760, %v7010_v24  ;;  %v7007_v33 = vsel %vm25_vm0, %v5002_v46, 0 }
 0x205   :  { %v10618_v5 = vpop.f32.mrb[20].mxu1  ;;  %v13903_v23 = vand.u32 4294901760, %v7007_v33 }
 0x206   :  { %v5694_v40 = vpop.f32.mrb[21].mxu1  ;;  %10804 = vmatmul.mubr.f32.gmra.mrb[38].mxu1 %v7171_v41  ;;  %v10543_v18 = vpop.f32.mrb[22].mxu0  ;;  %v13922_v39 = vsub.f32 %v7010_v24, %v13900_v25  ;;  %v14753_v24 = vand.u32 4294901760, %v13711_v16 }
 0x207   :  { %v13913_v46 = vsub.f32 %v7007_v33, %v13903_v23  ;;  %v7019_v60 = vsel %vm25_vm0, %v5694_v40, 0  ;;  %10806 = vmatprep.mubr.f32.mxu1 %v7181_v0  ;;  %v7016_v44 = vsel %vm25_vm0, %v10543_v18, 0  ;;  %v5014_v53 = vpop.f32.mrb[23].mxu0  ;;  %v7022_v33 = vsel %vm25_vm0, %v10618_v5, 0 }
 0x208   :  { %v13924_v34 = vand.u32 4294901760, %v7016_v44  ;;  %v7013_v22 = vsel %vm25_vm0, %v5014_v53, 0  ;;  %v13928_v40 = vand.u32 4294901760, %v7019_v60  ;;  %v7230_v41 = vsub.f32 %v13711_v16, %v14753_v24 }
 0x209   :  { %v10621_v0 = vpop.f32.mrb[22].mxu1  ;;  %v13930_v18 = vand.u32 4294901760, %v7013_v22  ;;  %10934 = vmatprep.mubr.f32.mxu0 %v13913_v46  ;;  %v13942_v58 = vand.u32 4294901760, %v7022_v33  ;;  %v14613_v24 = vand.u32 4294901760, %v13772_v63 }
 0x20a   :  { %v5706_v6 = vpop.f32.mrb[23].mxu1  ;;  %10807 = vmatmul.mubr.f32.gmra.mrb[40].mxu1 %v7191_v57  ;;  %10935 = vmatmul.mubr.f32.gmra.mrb[48].mxu0 %v13922_v39  ;;  %v13945_v51 = vsub.f32 %v7016_v44, %v13924_v34  ;;  %v7221_v57 = vand.u32 4294901760, %v7220_v27  ;;  %v13952_v53 = vsub.f32 %v7019_v60, %v13928_v40  ;;  %v14756_v60 = vand.u32 4294901760, %v13730_v37 }
 0x20b   :  { %v13939_v5 = vsub.f32 %v7013_v22, %v13930_v18  ;;  %v7025_v15 = vsel %vm25_vm0, %v5706_v6, 0  ;;  %10809 = vmatprep.mubr.f32.mxu1 %v7201_v52  ;;  %v7028_v22 = vsel %vm25_vm0, %v10621_v0, 0  ;;  %v7231_v52 = vand.u32 4294901760, %v7230_v41 }
 0x20c   :  { %v13955_v6 = vand.u32 4294901760, %v7025_v15  ;;  %v13962_v36 = vsub.f32 %v7022_v33, %v13942_v58  ;;  %v13964_v27 = vand.u32 4294901760, %v7028_v22  ;;  %v7250_v44 = vsub.f32 %v13730_v37, %v14756_v60 }
 0x20d   :  { %10937 = vmatprep.mubr.f32.mxu0 %v13939_v5  ;;  %v7260_v41 = vsub.f32 %v13772_v63, %v14613_v24 }
 0x20e   :  { %10810 = vmatmul.mubr.f32.gmra.mrb[42].mxu1 %v7211_v55  ;;  %10938 = vmatmul.mubr.f32.gmra.mrb[50].mxu0 %v13945_v51  ;;  %14755 = vst [vmem:[#allocation38_spill] sm:$0xff] %v13964_v27  ;;  %v13971_v55 = vsub.f32 %v7025_v15, %v13955_v6  ;;  %v13980_v60 = vsub.f32 %v7028_v22, %v13964_v27  ;;  %v7251_v0 = vand.u32 4294901760, %v7250_v44  ;;  %v14759_v22 = vand.u32 4294901760, %v13629_v10  ;;  %v14760_v44 = vld [vmem:[#allocation9_spill] sm:$0xff] }
 0x20f   :  { %10812 = vmatprep.mubr.f32.mxu1 %v7221_v57  ;;  %10940 = vmatprep.mubr.f32.mxu0 %v13952_v53  ;;  %v7241_v57 = vand.u32 4294901760, %v7240_v14  ;;  %v7270_v14 = vsub.f32 %v13778_v38, %v14614_v12  ;;  %v7261_v54 = vand.u32 4294901760, %v7260_v41  ;;  %v82_v12 = vmul.f32 %v14760_v44, %v14760_v44 }
 0x210   :  { %v7309_v15 = vand.u32 4294901760, %v13813_v21  ;;  %v14762_v27 = vand.u32 4294901760, %v13802_v19  ;;  %v14763_v10 = vand.u32 4294901760, %v13636_v47  ;;  %v14765_v44 = vand.u32 4294901760, %v13641_v35 }
 0x211   :  { %v7271_v41 = vand.u32 4294901760, %v7270_v14  ;;  %v14767_v35 = vand.u32 4294901760, %v13649_v3  ;;  %v7359_v3 = vand.u32 4294901760, %v13939_v5 }
 0x212   :  { %10813 = vmatmul.mubr.f32.gmra.mrb[44].mxu1 %v7231_v52  ;;  %10941 = vmatmul.mubr.f32.gmra.mrb[52].mxu0 %v13962_v36  ;;  %v14757_v52 = vand.u32 4294901760, %v13792_v4  ;;  %v7310_v47 = vsub.f32 %v13813_v21, %v7309_v15 }
 0x213   :  { %10815 = vmatprep.mubr.f32.mxu1 %v7241_v57  ;;  %10943 = vmatprep.mubr.f32.mxu0 %v13971_v55  ;;  %v14758_v57 = vld [vmem:[#allocation8_spill] sm:$0xff] }
 0x214   :  { %v7280_v24 = vsub.f32 %v13792_v4, %v14757_v52  ;;  %v81_v33 = vmul.f32 %v14758_v57, %v14758_v57  ;;  %v7290_v52 = vsub.f32 %v13799_v28, %v14761_v9  ;;  %v99_v9 = vsel %vm25_vm0, %v82_v12, 0.0 }
 0x216   :  { %10816 = vmatmul.mubr.f32.gmra.mrb[46].mxu1 %v7251_v0  ;;  %10944 = vmatmul.mubr.f32.gmra.mrb[54].mxu0 %v13980_v60  ;;  %v7281_v43 = vand.u32 4294901760, %v7280_v24  ;;  %v98_v57 = vsel %vm25_vm0, %v81_v33, 0.0  ;;  %v7329_v24 = vand.u32 4294901760, %v13825_v1  ;;  %v7291_v0 = vand.u32 4294901760, %v7290_v52  ;;  %v14768_v52 = vld [vmem:[#allocation11_spill] sm:$0xff] }
 0x217   :  { %10818 = vmatprep.mubr.f32.mxu1 %v7261_v54  ;;  %10950 = vmatprep.mubr.f32.mxu0 %v14759_v22  ;;  %v7300_v54 = vsub.f32 %v13802_v19, %v14762_v27  ;;  %v14764_v22 = vld [vmem:[#allocation10_spill] sm:$0xff]  ;;  %v7339_v27 = vand.u32 4294901760, %v13913_v46  ;;  %v100_v12 = vadd.f32 %v99_v9, %v98_v57 }
 0x218   :  { %v83_v14 = vmul.f32 %v14764_v22, %v14764_v22  ;;  %v7349_v22 = vand.u32 4294901760, %v13922_v39 }
 0x219   :  { %v7301_v33 = vand.u32 4294901760, %v7300_v54  ;;  %v7340_v57 = vsub.f32 %v13913_v46, %v7339_v27 }
 0x21a   :  { %10819 = vmatmul.mubr.f32.gmra.mrb[48].mxu1 %v7271_v41  ;;  %10951 = vmatmul.mubr.f32.vlgmr.msra.gmra.mrb[24].mxu0 %v14763_v10  ;;  %v14766_v41 = vand.u32 4294901760, %v13818_v48  ;;  %v14769_v10 = vand.u32 4294901760, %v13654_v30  ;;  %v101_v54 = vsel %vm25_vm0, %v83_v14, 0.0  ;;  %v14770_v30 = vand.u32 4294901760, %v13661_v11 }
 0x21b   :  { %10821 = vmatprep.mubr.f32.mxu1 %v7281_v43  ;;  %10953 = vmatprep.mubr.f32.mxu0 %v14765_v44  ;;  %v7311_v44 = vand.u32 4294901760, %v7310_v47  ;;  %v102_v9 = vadd.f32 %v101_v54, %v100_v12  ;;  %v14771_v14 = vand.u32 4294901760, %v13666_v49  ;;  %v7379_v11 = vand.u32 4294901760, %v13952_v53 }
 0x21c   :  { %11337 = vmatpush3.bf16.msra.mxu0 %v13724_v7  ;;  %v7320_v43 = vsub.f32 %v13818_v48, %v14766_v41  ;;  %v84_v7 = vmul.f32 %v14768_v52, %v14768_v52  ;;  %v14772_v52 = vld [vmem:[#allocation12_spill] sm:$0xff]  ;;  %v7360_v49 = vsub.f32 %v13939_v5, %v7359_v3  ;;  %v14773_v12 = vand.u32 4294901760, %v13673_v61 }
 0x21d   :  { %11339 = vmatprep.subr.bf16.mxu0 %v13554_v32  ;;  %v14774_v54 = vand.u32 4294901760, %v13678_v59  ;;  %v7399_v61 = vand.u32 4294901760, %v13971_v55  ;;  %v7380_v59 = vsub.f32 %v13952_v53, %v7379_v11  ;;  %v14800_v53 = vld [vmem:[#allocation29_spill] sm:$0xff] }
 0x21e   :  { %10822 = vmatmul.mubr.f32.gmra.mrb[50].mxu1 %v7291_v0  ;;  %10954 = vmatmul.mubr.f32.gmra.mrb[26].mxu0 %v14767_v35  ;;  %v7330_v0 = vsub.f32 %v13825_v1, %v7329_v24  ;;  %v7321_v41 = vand.u32 4294901760, %v7320_v43  ;;  %v103_v47 = vsel %vm25_vm0, %v84_v7, 0.0  ;;  %v7350_v43 = vsub.f32 %v13922_v39, %v7349_v22  ;;  %v14798_v1 = vld [vmem:[#allocation23_spill] sm:$0xff] }
 0x21f   :  { %10824 = vmatprep.mubr.f32.mxu1 %v7301_v33  ;;  %10956 = vmatprep.mubr.f32.mxu0 %v14769_v10  ;;  %v7369_v33 = vand.u32 4294901760, %v13945_v51  ;;  %v85_v10 = vmul.f32 %v14772_v52, %v14772_v52  ;;  %v104_v7 = vadd.f32 %v103_v47, %v102_v9  ;;  %v7361_v52 = vand.u32 4294901760, %v7360_v49 }
 0x220   :  { %v7331_v35 = vand.u32 4294901760, %v7330_v0  ;;  %v14775_v0 = vld [vmem:[#allocation13_spill] sm:$0xff]  ;;  %v14776_v9 = vand.u32 4294901760, %v13685_v62  ;;  %v14777_v47 = vand.u32 4294901760, %v13689_v50  ;;  %v7400_v62 = vsub.f32 %v13971_v55, %v7399_v61 }
 0x221   :  { %v14779_v50 = vand.u32 4294901760, %v13697_v26  ;;  %v14782_v26 = vand.u32 4294901760, %v13711_v16  ;;  %v14786_v16 = vand.u32 4294901760, %v13772_v63  ;;  %v96_v46 = vmul.f32 %v14798_v1, %v14798_v1  ;;  %v14804_v55 = vld [vmem:[#allocation33_spill] sm:$0xff] }
 0x222   :  { %10825 = vmatmul.mubr.f32.gmra.mrb[52].mxu1 %v7311_v44  ;;  %10957 = vmatmul.mubr.f32.gmra.mrb[28].mxu0 %v14770_v30  ;;  %v7341_v44 = vand.u32 4294901760, %v7340_v57  ;;  %v7389_v30 = vand.u32 4294901760, %v13962_v36  ;;  %v7370_v57 = vsub.f32 %v13945_v51, %v7369_v33 }
 0x223   :  { %10827 = vmatprep.mubr.f32.mxu1 %v7321_v41  ;;  %10959 = vmatprep.mubr.f32.mxu0 %v14771_v14  ;;  %v86_v41 = vmul.f32 %v14775_v0, %v14775_v0  ;;  %v7351_v14 = vand.u32 4294901760, %v7350_v43 }
 0x225   :  { %v107_v49 = vsel %vm25_vm0, %v86_v41, 0.0 }
 0x226   :  { %10828 = vmatmul.mubr.f32.gmra.mrb[54].mxu1 %v7331_v35  ;;  %10960 = vmatmul.mubr.f32.gmra.mrb[30].mxu0 %v14773_v12  ;;  %v105_v35 = vsel %vm25_vm0, %v85_v10, 0.0  ;;  %v7371_v12 = vand.u32 4294901760, %v7370_v57  ;;  %v7390_v10 = vsub.f32 %v13962_v36, %v7389_v30  ;;  %v14802_v36 = vld [vmem:[#allocation31_spill] sm:$0xff] }
 0x227   :  { %10830 = vmatprep.mubr.f32.mxu1 %v7341_v44  ;;  %10962 = vmatprep.mubr.f32.mxu0 %v14774_v54  ;;  %v106_v43 = vadd.f32 %v105_v35, %v104_v7  ;;  %v7409_v44 = vand.u32 4294901760, %v13980_v60  ;;  %v14778_v54 = vld [vmem:[#allocation14_spill] sm:$0xff]  ;;  %v14780_v7 = vand.u32 4294901760, %v13703_v8  ;;  %v14783_v8 = vand.u32 4294901760, %v13716_v13 }
 0x228   :  { %v87_v0 = vmul.f32 %v14778_v54, %v14778_v54  ;;  %v7391_v35 = vand.u32 4294901760, %v7390_v10 }
 0x229   :  { %v108_v57 = vadd.f32 %v107_v49, %v106_v43  ;;  %v7410_v41 = vsub.f32 %v13980_v60, %v7409_v44  ;;  %v14784_v49 = vld [vmem:[#allocation16_spill] sm:$0xff]  ;;  %v14807_v60 = vld [vmem:[#allocation39_spill] sm:$0xff] }
 0x22a   :  { %10831 = vmatmul.mubr.f32.gmra.mrb[56].mxu1 %v7351_v14  ;;  %10963 = vmatmul.mubr.f32.gmra.mrb[32].mxu0 %v14776_v9  ;;  %v7381_v14 = vand.u32 4294901760, %v7380_v59  ;;  %v109_v9 = vsel %vm25_vm0, %v87_v0, 0.0  ;;  %v89_v54 = vmul.f32 %v14784_v49, %v14784_v49 }
 0x22b   :  { %10833 = vmatprep.mubr.f32.mxu1 %v7361_v52  ;;  %10965 = vmatprep.mubr.f32.mxu0 %v14777_v47  ;;  %v14781_v52 = vld [vmem:[#allocation15_spill] sm:$0xff]  ;;  %v7401_v47 = vand.u32 4294901760, %v7400_v62  ;;  %v110_v43 = vadd.f32 %v109_v9, %v108_v57  ;;  %v14787_v62 = vld [vmem:[#allocation17_spill] sm:$0xff] }
 0x22c   :  { %v88_v59 = vmul.f32 %v14781_v52, %v14781_v52  ;;  %v90_v13 = vmul.f32 %v14787_v62, %v14787_v62  ;;  %v14791_v52 = vand.u32 4294901760, %v13799_v28  ;;  %v14793_v9 = vld [vmem:[#allocation19_spill] sm:$0xff]  ;;  %v14794_v28 = vand.u32 4294901760, %v13818_v48  ;;  %v14809_v62 = vld [vmem:[#allocation44_spill] sm:$0xff] }
 0x22e   :  { %10834 = vmatmul.mubr.f32.gmra.mrb[58].mxu1 %v7371_v12  ;;  %10966 = vmatmul.mubr.f32.gmra.mrb[34].mxu0 %v14779_v50  ;;  %v7411_v12 = vand.u32 4294901760, %v7410_v41  ;;  %v111_v10 = vsel %vm25_vm0, %v88_v59, 0.0  ;;  %v113_v50 = vsel %vm25_vm0, %v89_v54, 0.0  ;;  %v115_v63 = vsel %vm25_vm0, %v90_v13, 0.0  ;;  %v14810_v13 = vld [vmem:[#allocation45_spill] sm:$0xff] }
 0x22f   :  { %10836 = vmatprep.mubr.f32.mxu1 %v7381_v14  ;;  %10968 = vmatprep.mubr.f32.mxu0 %v14780_v7  ;;  %v14785_v14 = vand.u32 4294901760, %v13730_v37  ;;  %v112_v0 = vadd.f32 %v111_v10, %v110_v43  ;;  %v14788_v7 = vand.u32 4294901760, %v13778_v38  ;;  %v14789_v37 = vand.u32 4294901760, %v13792_v4  ;;  %v14797_v10 = vld [vmem:[#allocation22_spill] sm:$0xff] }
 0x230   :  { %v14792_v38 = vand.u32 4294901760, %v13802_v19  ;;  %v92_v4 = vmul.f32 %v14793_v9, %v14793_v9  ;;  %v95_v49 = vmul.f32 %v14797_v10, %v14797_v10  ;;  %v11910_v54 = vmov 0.0   ;;  %v14818_v10 = vld [vmem:[#allocation41_spill] sm:$0xff] }
 0x231   :  { %v114_v57 = vadd.f32 %v113_v50, %v112_v0  ;;  %26 = vst.msk [vmem:[#allocation2] sm:$0xff] %vm25_vm0, %v11910_v54  ;;  %27 = vst.msk [vmem:[#allocation3] sm:$0xff] %vm25_vm0, %v11910_v54  ;;  %v14806_v0 = vld [vmem:[#allocation37_spill] sm:$0xff]  ;;  %v14811_v50 = vld [vmem:[#allocation46_spill] sm:$0xff] }
 0x232   :  { %10837 = vmatmul.mubr.f32.gmra.mrb[60].mxu1 %v7391_v35  ;;  %10969 = vmatmul.mubr.f32.gmra.mrb[36].mxu0 %v14782_v26  ;;  %v14790_v35 = vld [vmem:[#allocation18_spill] sm:$0xff]  ;;  %v119_v19 = vsel %vm25_vm0, %v92_v4, 0.0  ;;  %28 = vst.msk [vmem:[#allocation4] sm:$0xff] %vm25_vm0, %v11910_v54  ;;  %v125_v39 = vsel %vm25_vm0, %v95_v49, 0.0 }
 0x233   :  { %10839 = vmatprep.mubr.f32.mxu1 %v7401_v47  ;;  %10971 = vmatprep.mubr.f32.mxu0 %v14783_v8  ;;  %v91_v41 = vmul.f32 %v14790_v35, %v14790_v35  ;;  %v116_v59 = vadd.f32 %v115_v63, %v114_v57  ;;  %v14795_v8 = vld [vmem:[#allocation20_spill] sm:$0xff]  ;;  %v14815_v57 = vld [vmem:[#allocation50_spill] sm:$0xff]  ;;  %v14816_v35 = vld [vmem:[#allocation27_spill] sm:$0xff] }
 0x234   :  { %v93_v43 = vmul.f32 %v14795_v8, %v14795_v8 }
 0x235   :  { %v117_v47 = vsel %vm25_vm0, %v91_v41, 0.0 }
 0x236   :  { %10840 = vmatmul.mubr.f32.gmra.mrb[62].mxu1 %v7411_v12  ;;  %10972 = vmatmul.mubr.f32.gmra.mrb[38].mxu0 %v14785_v14  ;;  %v118_v26 = vadd.f32 %v117_v47, %v116_v59  ;;  %v121_v12 = vsel %vm25_vm0, %v93_v43, 0.0 }
 0x237   :  { %10870 = vmatprep.mubr.f32.mxu1 %v13768_v42  ;;  %10974 = vmatprep.mubr.f32.mxu0 %v14786_v16  ;;  %v14799_v16 = vld [vmem:[#allocation38_spill] sm:$0xff] }
 0x238   :  { %v120_v21 = vadd.f32 %v119_v19, %v118_v26  ;;  %v129_v51 = vld [vmem:[#allocation2] sm:$0xff] }
 0x23a   :  { %10871 = vmatmul.mubr.f32.vlgmr.msra.gmra.mrb[48].mxu1 %v13764_v56  ;;  %10975 = vmatmul.mubr.f32.gmra.mrb[40].mxu0 %v14788_v7  ;;  %v14812_v7 = vld [vmem:[#allocation47_spill] sm:$0xff] }
 0x23b   :  { %10873 = vmatprep.mubr.f32.mxu1 %v13786_v31  ;;  %10977 = vmatprep.mubr.f32.mxu0 %v14789_v37  ;;  %v14814_v37 = vld [vmem:[#allocation49_spill] sm:$0xff] }
 0x23e   :  { %10874 = vmatmul.mubr.f32.gmra.mrb[50].mxu1 %v13780_v45  ;;  %10978 = vmatmul.mubr.f32.gmra.mrb[42].mxu0 %v14791_v52 }
 0x23f   :  { %10876 = vmatprep.mubr.f32.mxu1 %v13784_v2  ;;  %10980 = vmatprep.mubr.f32.mxu0 %v14792_v38  ;;  %v14817_v38 = vld [vmem:[#allocation28_spill] sm:$0xff] }
 0x242   :  { %10877 = vmatmul.mubr.f32.gmra.mrb[52].mxu1 %v13796_v17  ;;  %10981 = vmatmul.mubr.f32.gmra.mrb[44].mxu0 %v7309_v15  ;;  %v14796_v15 = vld [vmem:[#allocation21_spill] sm:$0xff] }
 0x243   :  { %10879 = vmatprep.mubr.f32.mxu1 %v13805_v20  ;;  %10983 = vmatprep.mubr.f32.mxu0 %v14794_v28  ;;  %v94_v48 = vmul.f32 %v14796_v15, %v14796_v15 }
 0x246   :  { %10880 = vmatmul.mubr.f32.gmra.mrb[54].mxu1 %v13815_v29  ;;  %10984 = vmatmul.mubr.f32.gmra.mrb[46].mxu0 %v7329_v24  ;;  %v122_v24 = vadd.f32 %v121_v12, %v120_v21 }
 0x247   :  { %10882 = vmatprep.mubr.f32.mxu1 %v13903_v23  ;;  %10986 = vmatprep.mubr.f32.mxu0 %v7339_v27  ;;  %v123_v27 = vsel %vm25_vm0, %v94_v48, 0.0 }
 0x248   :  { %v124_v5 = vadd.f32 %v123_v27, %v122_v24  ;;  %v14819_v24 = vld [vmem:[#allocation42_spill] sm:$0xff] }
 0x24a   :  { %10883 = vmatmul.mubr.f32.gmra.mrb[56].mxu1 %v13900_v25  ;;  %10987 = vmatmul.mubr.f32.gmra.mrb[48].mxu0 %v7349_v22  ;;  %v127_v22 = vsel %vm25_vm0, %v96_v46, 0.0 }
 0x24b   :  { %10885 = vmatprep.mubr.f32.mxu1 %v13930_v18  ;;  %10989 = vmatprep.mubr.f32.mxu0 %v7359_v3  ;;  %v126_v3 = vadd.f32 %v125_v39, %v124_v5 }
 0x24d   :  { %v128_v14 = vadd.f32 %v127_v22, %v126_v3 }
 0x24e   :  { %10886 = vmatmul.mubr.f32.gmra.mrb[58].mxu1 %v13924_v34  ;;  %10990 = vmatmul.mubr.f32.gmra.mrb[50].mxu0 %v7369_v33 }
 0x24f   :  { %10888 = vmatprep.mubr.f32.mxu1 %v13928_v40  ;;  %10992 = vmatprep.mubr.f32.mxu0 %v7379_v11  ;;  %v130_v33 = vadd.f32 %v129_v51, %v128_v14  ;;  %v14801_v11 = vld [vmem:[#allocation30_spill] sm:$0xff] }
 0x251   :  { %131 = vst.msk [vmem:[#allocation2] sm:$0xff] %vm25_vm0, %v130_v33 }
 0x252   :  { %10889 = vmatmul.mubr.f32.gmra.mrb[60].mxu1 %v13942_v58  ;;  %10993 = vmatmul.mubr.f32.gmra.mrb[52].mxu0 %v7389_v30  ;;  %v14803_v30 = vld [vmem:[#allocation32_spill] sm:$0xff] }
 0x253   :  { %10891 = vmatprep.mubr.f32.mxu1 %v13955_v6  ;;  %10995 = vmatprep.mubr.f32.mxu0 %v7399_v61  ;;  %v14805_v61 = vld [vmem:[#allocation35_spill] sm:$0xff] }
 0x256   :  { %10892 = vmatmul.mubr.f32.gmra.mrb[62].mxu1 %v14799_v16  ;;  %10996 = vmatmul.mubr.f32.gmra.mrb[54].mxu0 %v7409_v44  ;;  %v14808_v44 = vld [vmem:[#allocation43_spill] sm:$0xff] }
 0x257   :  { %11002 = vmatprep.mubr.f32.mxu0 %v14800_v53 }
 0x25a   :  { %11003 = vmatmul.mubr.f32.vlgmr.msra.gmra.mrb[24].mxu0 %v14801_v11 }
 0x25b   :  { %11005 = vmatprep.mubr.f32.mxu0 %v14802_v36  ;;  %11341 = vmatpush3.bf16.msra.mxu0 %v13554_v32  ;;  %v14813_v32 = vld [vmem:[#allocation48_spill] sm:$0xff] }
 0x25e   :  { %11006 = vmatmul.mubr.f32.gmra.mrb[26].mxu0 %v14803_v30 }
 0x25f   :  { %11008 = vmatprep.mubr.f32.mxu0 %v14804_v55 }
 0x262   :  { %11009 = vmatmul.mubr.f32.gmra.mrb[28].mxu0 %v14805_v61 }
 0x263   :  { %11011 = vmatprep.mubr.f32.mxu0 %v14806_v0 }
 0x266   :  { %11012 = vmatmul.mubr.f32.gmra.mrb[30].mxu0 %v14807_v60 }
 0x267   :  { %11014 = vmatprep.mubr.f32.mxu0 %v14808_v44 }
 0x26a   :  { %11015 = vmatmul.mubr.f32.gmra.mrb[32].mxu0 %v14809_v62 }
 0x26b   :  { %11017 = vmatprep.mubr.f32.mxu0 %v14810_v13 }
 0x26e   :  { %11018 = vmatmul.mubr.f32.gmra.mrb[34].mxu0 %v14811_v50 }
 0x26f   :  { %11020 = vmatprep.mubr.f32.mxu0 %v14812_v7 }
 0x272   :  { %11021 = vmatmul.mubr.f32.gmra.mrb[36].mxu0 %v14813_v32 }
 0x273   :  { %11023 = vmatprep.mubr.f32.mxu0 %v14814_v37 }
 0x276   :  { %11024 = vmatmul.mubr.f32.gmra.mrb[38].mxu0 %v14815_v57 }
 0x277   :  { %11026 = vmatprep.mubr.f32.mxu0 %v13768_v42 }
 0x27a   :  { %11027 = vmatmul.mubr.f32.gmra.mrb[40].mxu0 %v13764_v56 }
 0x27b   :  { %11029 = vmatprep.mubr.f32.mxu0 %v13786_v31 }
 0x27e   :  { %11030 = vmatmul.mubr.f32.gmra.mrb[42].mxu0 %v13780_v45 }
 0x27f   :  { %11032 = vmatprep.mubr.f32.mxu0 %v13784_v2 }
 0x282   :  { %11033 = vmatmul.mubr.f32.gmra.mrb[44].mxu0 %v13796_v17 }
 0x283   :  { %11035 = vmatprep.mubr.f32.mxu0 %v13805_v20 }
 0x286   :  { %11036 = vmatmul.mubr.f32.gmra.mrb[46].mxu0 %v13815_v29 }
 0x287   :  { %11038 = vmatprep.mubr.f32.mxu0 %v13903_v23 }
 0x28a   :  { %11039 = vmatmul.mubr.f32.gmra.mrb[48].mxu0 %v13900_v25 }
 0x28b   :  { %11041 = vmatprep.mubr.f32.mxu0 %v13930_v18 }
 0x28e   :  { %11042 = vmatmul.mubr.f32.gmra.mrb[50].mxu0 %v13924_v34 }
 0x28f   :  { %11044 = vmatprep.mubr.f32.mxu0 %v13928_v40 }
 0x292   :  { %11045 = vmatmul.mubr.f32.gmra.mrb[52].mxu0 %v13942_v58 }
 0x293   :  { %11047 = vmatprep.mubr.f32.mxu0 %v13955_v6 }
 0x296   :  { %11048 = vmatmul.mubr.f32.gmra.mrb[54].mxu0 %v14799_v16 }
 0x297   :  { %11054 = vmatprep.mubr.f32.mxu0 %v14800_v53 }
 0x29a   :  { %11055 = vmatmul.mubr.f32.vlgmr.msra.gmra.mrb[24].mxu0 %v14801_v11 }
 0x29b   :  { %11057 = vmatprep.mubr.f32.mxu0 %v14802_v36 }
 0x29e   :  { %11058 = vmatmul.mubr.f32.gmra.mrb[26].mxu0 %v14803_v30 }
 0x29f   :  { %11060 = vmatprep.mubr.f32.mxu0 %v14804_v55  ;;  %v14820_v55 = vld [vmem:[#allocation34_spill] sm:$0xff] }
 0x2a2   :  { %11061 = vmatmul.mubr.f32.gmra.mrb[28].mxu0 %v14805_v61 }
 0x2a3   :  { %11063 = vmatprep.mubr.f32.mxu0 %v14806_v0 }
 0x2a6   :  { %11064 = vmatmul.mubr.f32.gmra.mrb[30].mxu0 %v14807_v60  ;;  %v14821_v60 = vld [vmem:[#allocation36_spill] sm:$0xff] }
 0x2a7   :  { %11066 = vmatprep.mubr.f32.mxu0 %v14808_v44 }
 0x2aa   :  { %11067 = vmatmul.mubr.f32.gmra.mrb[32].mxu0 %v14809_v62 }
 0x2ab   :  { %11069 = vmatprep.mubr.f32.mxu0 %v14810_v13 }
 0x2ad   :  { %v10768_v63 = vpop.f32.mrb[24].mxu1 }
 0x2ae   :  { %v11344_v41 = vadd.f32 %v10768_v63, %v14816_v35  ;;  %v6774_v52 = vpop.f32.mrb[25].mxu1  ;;  %11070 = vmatmul.mubr.f32.gmra.mrb[34].mxu0 %v14811_v50 }
 0x2af   :  { %v11345_v59 = vadd.f32 %v6774_v52, %v14817_v38  ;;  %11072 = vmatprep.mubr.f32.mxu0 %v14812_v7  ;;  %v14822_v52 = vld [vmem:[#allocation24_spill] sm:$0xff] }
 0x2b0   :  { %v6885_v9 = vmul.f32 %v11344_v41, %v11344_v41 }
 0x2b1   :  { %v6884_v4 = vmul.f32 %v11345_v59, %v11345_v59  ;;  %v10771_v47 = vpop.f32.mrb[0].mxu1 }
 0x2b2   :  { %v6901_v28 = vsel %vm25_vm0, %v6885_v9, 0.0  ;;  %v6786_v26 = vpop.f32.mrb[1].mxu1  ;;  %11073 = vmatmul.mubr.f32.gmra.mrb[36].mxu0 %v14813_v32  ;;  %v6887_v8 = vmul.f32 %v10771_v47, %v10771_v47 }
 0x2b3   :  { %v6900_v19 = vsel %vm25_vm0, %v6884_v4, 0.0  ;;  %v6886_v43 = vmul.f32 %v6786_v26, %v6786_v26  ;;  %11075 = vmatprep.mubr.f32.mxu0 %v14814_v37  ;;  %v14823_v4 = vld [vmem:[#allocation25_spill] sm:$0xff] }
 0x2b4   :  { %v6902_v21 = vadd.f32 %v6901_v28, %v6900_v19  ;;  %v6905_v46 = vsel %vm25_vm0, %v6887_v8, 0.0 }
 0x2b5   :  { %v6903_v15 = vsel %vm25_vm0, %v6886_v43, 0.0  ;;  %v10774_v48 = vpop.f32.mrb[26].mxu1 }
 0x2b6   :  { %v6904_v12 = vadd.f32 %v6903_v15, %v6902_v21  ;;  %v11346_v49 = vadd.f32 %v10774_v48, %v14818_v10  ;;  %v6798_v1 = vpop.f32.mrb[27].mxu1  ;;  %11076 = vmatmul.mubr.f32.gmra.mrb[38].mxu0 %v14815_v57 }
 0x2b7   :  { %v11347_v27 = vadd.f32 %v6798_v1, %v14819_v24  ;;  %11078 = vmatprep.mubr.f32.mxu0 %v13768_v42  ;;  %v6931_v24 = vld [vmem:[#allocation3] sm:$0xff] }
 0x2b8   :  { %v6906_v54 = vadd.f32 %v6905_v46, %v6904_v12  ;;  %v6889_v39 = vmul.f32 %v11346_v49, %v11346_v49 }
 0x2b9   :  { %v6888_v5 = vmul.f32 %v11347_v27, %v11347_v27  ;;  %v10777_v22 = vpop.f32.mrb[6].mxu1 }
 0x2ba   :  { %v6810_v3 = vpop.f32.mrb[7].mxu1  ;;  %11079 = vmatmul.mubr.f32.gmra.mrb[40].mxu0 %v13764_v56  ;;  %v6909_v53 = vsel %vm25_vm0, %v6889_v39, 0.0  ;;  %v6891_v11 = vmul.f32 %v10777_v22, %v10777_v22 }
 0x2bb   :  { %v6907_v14 = vsel %vm25_vm0, %v6888_v5, 0.0  ;;  %v6890_v51 = vmul.f32 %v6810_v3, %v6810_v3  ;;  %11081 = vmatprep.mubr.f32.mxu0 %v13786_v31 }
 0x2bc   :  { %v6908_v33 = vadd.f32 %v6907_v14, %v6906_v54  ;;  %v6913_v31 = vsel %vm25_vm0, %v6891_v11, 0.0 }
 0x2bd   :  { %v10780_v36 = vpop.f32.mrb[28].mxu1  ;;  %v6911_v0 = vsel %vm25_vm0, %v6890_v51, 0.0 }
 0x2be   :  { %v6910_v30 = vadd.f32 %v6909_v53, %v6908_v33  ;;  %v11348_v42 = vadd.f32 %v10780_v36, %v14820_v55  ;;  %v6822_v61 = vpop.f32.mrb[29].mxu1  ;;  %11082 = vmatmul.mubr.f32.gmra.mrb[42].mxu0 %v13780_v45 }
 0x2bf   :  { %v11349_v56 = vadd.f32 %v6822_v61, %v14821_v60  ;;  %11084 = vmatprep.mubr.f32.mxu0 %v13784_v2 }
 0x2c0   :  { %v6912_v44 = vadd.f32 %v6911_v0, %v6910_v30  ;;  %v6893_v62 = vmul.f32 %v11348_v42, %v11348_v42 }
 0x2c1   :  { %v6892_v13 = vmul.f32 %v11349_v56, %v11349_v56  ;;  %v10783_v50 = vpop.f32.mrb[12].mxu1 }
 0x2c2   :  { %v6914_v7 = vadd.f32 %v6913_v31, %v6912_v44  ;;  %v6834_v32 = vpop.f32.mrb[13].mxu1  ;;  %11085 = vmatmul.mubr.f32.gmra.mrb[44].mxu0 %v13796_v17  ;;  %v6917_v63 = vsel %vm25_vm0, %v6893_v62, 0.0  ;;  %v6895_v35 = vmul.f32 %v10783_v50, %v10783_v50 }
 0x2c3   :  { %v6915_v37 = vsel %vm25_vm0, %v6892_v13, 0.0  ;;  %v6894_v57 = vmul.f32 %v6834_v32, %v6834_v32  ;;  %11087 = vmatprep.mubr.f32.mxu0 %v13805_v20 }
 0x2c4   :  { %v6916_v45 = vadd.f32 %v6915_v37, %v6914_v7  ;;  %v6921_v20 = vsel %vm25_vm0, %v6895_v35, 0.0 }
 0x2c5   :  { %v10786_v2 = vpop.f32.mrb[30].mxu1  ;;  %v6919_v9 = vsel %vm25_vm0, %v6894_v57, 0.0 }
 0x2c6   :  { %v6918_v41 = vadd.f32 %v6917_v63, %v6916_v45  ;;  %v11350_v38 = vadd.f32 %v10786_v2, %v14822_v52  ;;  %v6846_v59 = vpop.f32.mrb[31].mxu1  ;;  %11088 = vmatmul.mubr.f32.gmra.mrb[46].mxu0 %v13815_v29 }
 0x2c7   :  { %v11351_v17 = vadd.f32 %v6846_v59, %v14823_v4  ;;  %11090 = vmatprep.mubr.f32.mxu0 %v13903_v23 }
 0x2c8   :  { %v6920_v47 = vadd.f32 %v6919_v9, %v6918_v41  ;;  %v6897_v28 = vmul.f32 %v11350_v38, %v11350_v38 }
 0x2c9   :  { %v6896_v26 = vmul.f32 %v11351_v17, %v11351_v17  ;;  %v10789_v19 = vpop.f32.mrb[18].mxu1 }
 0x2ca   :  { %v6922_v8 = vadd.f32 %v6921_v20, %v6920_v47  ;;  %v6858_v43 = vpop.f32.mrb[19].mxu1  ;;  %11091 = vmatmul.mubr.f32.gmra.mrb[48].mxu0 %v13900_v25  ;;  %v6925_v48 = vsel %vm25_vm0, %v6897_v28, 0.0  ;;  %v6899_v12 = vmul.f32 %v10789_v19, %v10789_v19 }
 0x2cb   :  { %v6923_v21 = vsel %vm25_vm0, %v6896_v26, 0.0  ;;  %v6898_v15 = vmul.f32 %v6858_v43, %v6858_v43  ;;  %11093 = vmatprep.mubr.f32.mxu0 %v13930_v18 }
 0x2cc   :  { %v6924_v29 = vadd.f32 %v6923_v21, %v6922_v8  ;;  %v6929_v25 = vsel %vm25_vm0, %v6899_v12, 0.0 }
 0x2cd   :  { %v10796_v23 = vpop.f32.mrb[32].mxu1  ;;  %v6927_v1 = vsel %vm25_vm0, %v6898_v15, 0.0 }
 0x2ce   :  { %v6926_v10 = vadd.f32 %v6925_v48, %v6924_v29  ;;  %v7103_v49 = vpop.f32.mrb[33].mxu1  ;;  %11094 = vmatmul.mubr.f32.gmra.mrb[50].mxu0 %v13924_v34 }
 0x2cf   :  { %11096 = vmatprep.mubr.f32.mxu0 %v13928_v40 }
 0x2d0   :  { %v6928_v46 = vadd.f32 %v6927_v1, %v6926_v10 }
 0x2d1   :  { %v10799_v27 = vpop.f32.mrb[34].mxu1 }
 0x2d2   :  { %v6930_v54 = vadd.f32 %v6929_v25, %v6928_v46  ;;  %v7123_v18 = vpop.f32.mrb[35].mxu1  ;;  %11097 = vmatmul.mubr.f32.gmra.mrb[52].mxu0 %v13942_v58 }
 0x2d3   :  { %11099 = vmatprep.mubr.f32.mxu0 %v13955_v6 }
 0x2d4   :  { %v6932_v39 = vadd.f32 %v6931_v24, %v6930_v54 }
 0x2d5   :  { %v10802_v5 = vpop.f32.mrb[36].mxu1 }
 0x2d6   :  { %6933 = vst.msk [vmem:[#allocation3] sm:$0xff] %vm25_vm0, %v6932_v39  ;;  %v7143_v34 = vpop.f32.mrb[37].mxu1  ;;  %11100 = vmatmul.mubr.f32.gmra.mrb[54].mxu0 %v14799_v16 }
 0x2d9   :  { %v10805_v22 = vpop.f32.mrb[38].mxu1 }
 0x2da   :  { %v7163_v40 = vpop.f32.mrb[39].mxu1 }
 0x2dd   :  { %v10808_v3 = vpop.f32.mrb[40].mxu1 }
 0x2de   :  { %v7183_v14 = vpop.f32.mrb[41].mxu1 }
 0x2e1   :  { %v10811_v51 = vpop.f32.mrb[42].mxu1 }
 0x2e2   :  { %v7203_v33 = vpop.f32.mrb[43].mxu1 }
 0x2e5   :  { %v10814_v53 = vpop.f32.mrb[44].mxu1 }
 0x2e6   :  { %v7223_v11 = vpop.f32.mrb[45].mxu1 }
 0x2e9   :  { %v10817_v36 = vpop.f32.mrb[46].mxu1 }
 0x2ea   :  { %v7243_v30 = vpop.f32.mrb[47].mxu1 }
 0x30d   :  { %v10872_v58 = vpop.f32.mrb[48].mxu1 }
 0x30e   :  { %v7590_v55 = vpop.f32.mrb[49].mxu1 }
 0x311   :  { %v10875_v6 = vpop.f32.mrb[50].mxu1 }
 0x312   :  { %v7602_v42 = vpop.f32.mrb[51].mxu1 }
 0x315   :  { %v14264_v61 = vpop.f32.mrb[52].mxu1 }
 0x316   :  { %v14266_v0 = vpop.f32.mrb[53].mxu1 }
 0x319   :  { %v14268_v60 = vpop.f32.mrb[54].mxu1 }
 0x31a   :  { %v14270_v16 = vpop.f32.mrb[55].mxu1 }
 0x31d   :  { %v14272_v56 = vpop.f32.mrb[56].mxu1 }
 0x31e   :  { %v14274_v44 = vpop.f32.mrb[57].mxu1 }
 0x321   :  { %v14276_v31 = vpop.f32.mrb[58].mxu1 }
 0x322   :  { %v14278_v62 = vpop.f32.mrb[59].mxu1 }
 0x325   :  { %v14280_v13 = vpop.f32.mrb[60].mxu1 }
 0x326   :  { %v14282_v50 = vpop.f32.mrb[61].mxu1 }
 0x329   :  { %v14284_v7 = vpop.f32.mrb[62].mxu1 }
 0x32a   :  { %v14286_v32 = vpop.f32.mrb[63].mxu1 }
 0x36d   :  { %v11056_v37 = vpop.f32.mrb[24].mxu0 }
 0x36e   :  { %v14288_v57 = vadd.f32 %v11056_v37, %v10796_v23  ;;  %v8632_v45 = vpop.f32.mrb[25].mxu0 }
 0x36f   :  { %v14290_v63 = vadd.f32 %v8632_v45, %v7103_v49 }
 0x371   :  { %v11059_v35 = vpop.f32.mrb[26].mxu0 }
 0x372   :  { %v14292_v2 = vadd.f32 %v11059_v35, %v10799_v27  ;;  %v8644_v41 = vpop.f32.mrb[27].mxu0 }
 0x373   :  { %v14294_v52 = vadd.f32 %v8644_v41, %v7123_v18 }
 0x374   :  { %8904 = vrot.lane.b32.xlu0 %v14292_v2, %s11911_s3 }
 0x375   :  { %v11062_v38 = vpop.f32.mrb[28].mxu0 }
 0x376   :  { %v14298_v59 = vadd.f32 %v11062_v38, %v10802_v5  ;;  %v8656_v9 = vpop.f32.mrb[29].mxu0 }
 0x377   :  { %v14300_v4 = vadd.f32 %v8656_v9, %v7143_v34 }
 0x378   :  { %8902 = vrot.lane.b32.xlu0 %v14294_v52, %s11911_s3 }
 0x379   :  { %v11065_v17 = vpop.f32.mrb[30].mxu0 }
 0x37a   :  { %v14304_v47 = vadd.f32 %v11065_v17, %v10805_v22  ;;  %v8668_v20 = vpop.f32.mrb[31].mxu0 }
 0x37b   :  { %v14306_v28 = vadd.f32 %v8668_v20, %v7163_v40 }
 0x37c   :  { %8908 = vrot.lane.b32.xlu1 %v14304_v47, %s11911_s3 }
 0x37d   :  { %v11068_v26 = vpop.f32.mrb[32].mxu0 }
 0x37e   :  { %v14310_v19 = vadd.f32 %v11068_v26, %v10808_v3  ;;  %v8680_v8 = vpop.f32.mrb[33].mxu0 }
 0x37f   :  { %v14312_v43 = vadd.f32 %v8680_v8, %v7183_v14 }
 0x380   :  { %8906 = vrot.lane.b32.xlu1 %v14306_v28, %s11911_s3 }
 0x381   :  { %v11071_v21 = vpop.f32.mrb[34].mxu0 }
 0x382   :  { %v11362_v15 = vadd.f32 %v11071_v21, %v10811_v51  ;;  %v8692_v29 = vpop.f32.mrb[35].mxu0 }
 0x383   :  { %v11363_v48 = vadd.f32 %v8692_v29, %v7203_v33 }
 0x384   :  { %8912 = vrot.lane.b32.xlu1 %v11362_v15, %s11911_s3 }
 0x385   :  { %v11074_v12 = vpop.f32.mrb[36].mxu0  ;;  %8910 = vrot.lane.b32.xlu0 %v11363_v48, %s11911_s3 }
 0x386   :  { %v14318_v23 = vadd.f32 %v11074_v12, %v10814_v53  ;;  %v8704_v10 = vpop.f32.mrb[37].mxu0 }
 0x387   :  { %v14320_v49 = vadd.f32 %v8704_v10, %v7223_v11 }
 0x389   :  { %v11077_v1 = vpop.f32.mrb[38].mxu0 }
 0x38a   :  { %v11366_v46 = vadd.f32 %v11077_v1, %v10817_v36  ;;  %v8716_v25 = vpop.f32.mrb[39].mxu0 }
 0x38b   :  { %v11367_v24 = vadd.f32 %v8716_v25, %v7243_v30 }
 0x38c   :  { %8916 = vrot.lane.b32.xlu1 %v11366_v46, %s11911_s3 }
 0x38d   :  { %v11080_v27 = vpop.f32.mrb[40].mxu0  ;;  %8914 = vrot.lane.b32.xlu0 %v11367_v24, %s11911_s3 }
 0x38e   :  { %v14324_v54 = vadd.f32 %v11080_v27, %v10872_v58  ;;  %v8728_v18 = vpop.f32.mrb[41].mxu0 }
 0x38f   :  { %v14326_v39 = vadd.f32 %v8728_v18, %v7590_v55 }
 0x391   :  { %v11083_v5 = vpop.f32.mrb[42].mxu0 }
 0x392   :  { %v11370_v34 = vadd.f32 %v11083_v5, %v10875_v6  ;;  %v8740_v22 = vpop.f32.mrb[43].mxu0 }
 0x393   :  { %v11371_v40 = vadd.f32 %v8740_v22, %v7602_v42 }
 0x394   :  { %8920 = vrot.lane.b32.xlu1 %v11370_v34, %s11911_s3 }
 0x395   :  { %v11086_v3 = vpop.f32.mrb[44].mxu0  ;;  %8918 = vrot.lane.b32.xlu0 %v11371_v40, %s11911_s3 }
 0x396   :  { %v14331_v14 = vadd.f32 %v11086_v3, %v14264_v61  ;;  %v8752_v51 = vpop.f32.mrb[45].mxu0 }
 0x397   :  { %v14334_v33 = vadd.f32 %v8752_v51, %v14266_v0 }
 0x399   :  { %v11089_v53 = vpop.f32.mrb[46].mxu0 }
 0x39a   :  { %v11374_v11 = vadd.f32 %v11089_v53, %v14268_v60  ;;  %v8764_v36 = vpop.f32.mrb[47].mxu0 }
 0x39b   :  { %v11375_v30 = vadd.f32 %v8764_v36, %v14270_v16 }
 0x39c   :  { %8924 = vrot.lane.b32.xlu1 %v11374_v11, %s11911_s3 }
 0x39d   :  { %v11092_v58 = vpop.f32.mrb[48].mxu0  ;;  %8922 = vrot.lane.b32.xlu0 %v11375_v30, %s11911_s3 }
 0x39e   :  { %v14341_v55 = vadd.f32 %v11092_v58, %v14272_v56  ;;  %v8776_v6 = vpop.f32.mrb[49].mxu0 }
 0x39f   :  { %v14344_v42 = vadd.f32 %v8776_v6, %v14274_v44 }
 0x3a1   :  { %v11095_v61 = vpop.f32.mrb[50].mxu0 }
 0x3a2   :  { %v11378_v0 = vadd.f32 %v11095_v61, %v14276_v31  ;;  %v8788_v37 = vpop.f32.mrb[51].mxu0 }
 0x3a3   :  { %v11379_v60 = vadd.f32 %v8788_v37, %v14278_v62 }
 0x3a4   :  { %8928 = vrot.lane.b32.xlu1 %v11378_v0, %s11911_s3 }
 0x3a5   :  { %v11098_v16 = vpop.f32.mrb[52].mxu0  ;;  %8926 = vrot.lane.b32.xlu0 %v11379_v60, %s11911_s3 }
 0x3a6   :  { %v14351_v45 = vadd.f32 %v11098_v16, %v14280_v13  ;;  %v8800_v56 = vpop.f32.mrb[53].mxu0 }
 0x3a7   :  { %v14354_v35 = vadd.f32 %v8800_v56, %v14282_v50 }
 0x3a9   :  { %v11101_v44 = vpop.f32.mrb[54].mxu0 }
 0x3aa   :  { %v11382_v41 = vadd.f32 %v11101_v44, %v14284_v7  ;;  %v8812_v38 = vpop.f32.mrb[55].mxu0 }
 0x3ab   :  { %v11383_v31 = vadd.f32 %v8812_v38, %v14286_v32 }
 0x3ac   :  { %8932 = vrot.lane.b32.xlu1 %v11382_v41, %s11911_s3 }
 0x3ad   :  { %8930 = vrot.lane.b32.xlu0 %v11383_v31, %s11911_s3 }
 0x3b0   :  { %8840 = vrot.lane.b32.xlu1 %v14292_v2, %s11912_s30 }
 0x3b1   :  { %8838 = vrot.lane.b32.xlu0 %v14294_v52, %s11912_s30 }
 0x3b4   :  { %8844 = vrot.lane.b32.xlu1 %v14304_v47, %s11912_s30 }
 0x3b5   :  { %8842 = vrot.lane.b32.xlu0 %v14306_v28, %s11912_s30 }
 0x3b9   :  { %8846 = vrot.lane.b32.xlu0 %v11363_v48, %s11912_s30 }
 0x3bd   :  { %8848 = vrot.lane.b32.xlu0 %v11362_v15, %s11912_s30 }
 0x3c1   :  { %8850 = vrot.lane.b32.xlu0 %v11367_v24, %s11912_s30 }
 0x3c5   :  { %8852 = vrot.lane.b32.xlu0 %v11366_v46, %s11912_s30 }
 0x3c9   :  { %8854 = vrot.lane.b32.xlu0 %v11371_v40, %s11912_s30 }
 0x3cd   :  { %8856 = vrot.lane.b32.xlu0 %v11370_v34, %s11912_s30 }
 0x3e6   :  { %v8905_v62 = vpop.permute.xlu0 %8904 }
 0x3e7   :  { %v8951_v13 = vadd.f32 %v14288_v57, %v8905_v62 }
 0x3e9   :  { %v8983_v50 = vmul.f32 %v8951_v13, %v8951_v13 }
 0x3ea   :  { %v8903_v7 = vpop.permute.xlu0 %8902 }
 0x3eb   :  { %v8950_v32 = vadd.f32 %v14290_v63, %v8903_v7  ;;  %9016 = vrot.lane.b32.xlu1 %v8983_v50, %s11912_s30  ;;  %v9227_v50 = vld [vmem:[#allocation2] sm:$0xff] }
 0x3ed   :  { %v8982_v2 = vmul.f32 %v8950_v32, %v8950_v32  ;;  %v9228_v32 = vsel %vm25_vm0, %v9227_v50, 0.0 }
 0x3ee   :  { %v8909_v52 = vpop.permute.xlu1 %8908 }
 0x3ef   :  { %v8953_v9 = vadd.f32 %v14298_v59, %v8909_v52  ;;  %9014 = vrot.lane.b32.xlu0 %v8982_v2, %s11912_s30  ;;  %v9239_v2 = vld [vmem:[#allocation3] sm:$0xff] }
 0x3f1   :  { %v8985_v17 = vmul.f32 %v8953_v9, %v8953_v9  ;;  %v9240_v9 = vsel %vm25_vm0, %v9239_v2, 0.0 }
 0x3f2   :  { %v8907_v47 = vpop.permute.xlu1 %8906 }
 0x3f3   :  { %v8952_v20 = vadd.f32 %v14300_v4, %v8907_v47  ;;  %9020 = vrot.lane.b32.xlu1 %v8985_v17, %s11912_s30  ;;  %8858 = vrot.lane.b32.xlu0 %v11375_v30, %s11912_s30 }
 0x3f5   :  { %v8984_v28 = vmul.f32 %v8952_v20, %v8952_v20 }
 0x3f6   :  { %v8913_v26 = vpop.permute.xlu1 %8912 }
 0x3f7   :  { %v8955_v8 = vadd.f32 %v14310_v19, %v8913_v26  ;;  %v8911_v21 = vpop.permute.xlu0 %8910  ;;  %9018 = vrot.lane.b32.xlu1 %v8984_v28, %s11912_s30  ;;  %8860 = vrot.lane.b32.xlu0 %v11374_v11, %s11912_s30 }
 0x3f8   :  { %v8954_v29 = vadd.f32 %v14312_v43, %v8911_v21 }
 0x3f9   :  { %v8987_v15 = vmul.f32 %v8955_v8, %v8955_v8 }
 0x3fa   :  { %v8986_v48 = vmul.f32 %v8954_v29, %v8954_v29 }
 0x3fb   :  { %9024 = vrot.lane.b32.xlu1 %v8987_v15, %s11912_s30  ;;  %8862 = vrot.lane.b32.xlu0 %v11379_v60, %s11912_s30 }
 0x3fe   :  { %v8917_v12 = vpop.permute.xlu1 %8916 }
 0x3ff   :  { %v8957_v10 = vadd.f32 %v14318_v23, %v8917_v12  ;;  %v8915_v1 = vpop.permute.xlu0 %8914  ;;  %9022 = vrot.lane.b32.xlu1 %v8986_v48, %s11912_s30  ;;  %8864 = vrot.lane.b32.xlu0 %v11378_v0, %s11912_s30 }
 0x400   :  { %v8956_v25 = vadd.f32 %v14320_v49, %v8915_v1 }
 0x401   :  { %v8989_v46 = vmul.f32 %v8957_v10, %v8957_v10 }
 0x402   :  { %v8988_v24 = vmul.f32 %v8956_v25, %v8956_v25 }
 0x403   :  { %9028 = vrot.lane.b32.xlu1 %v8989_v46, %s11912_s30  ;;  %8866 = vrot.lane.b32.xlu0 %v11383_v31, %s11912_s30 }
 0x406   :  { %v8921_v27 = vpop.permute.xlu1 %8920 }
 0x407   :  { %v8959_v18 = vadd.f32 %v14324_v54, %v8921_v27  ;;  %v8919_v5 = vpop.permute.xlu0 %8918  ;;  %9026 = vrot.lane.b32.xlu1 %v8988_v24, %s11912_s30  ;;  %8868 = vrot.lane.b32.xlu0 %v11382_v41, %s11912_s30 }
 0x408   :  { %v8958_v22 = vadd.f32 %v14326_v39, %v8919_v5 }
 0x409   :  { %v8991_v34 = vmul.f32 %v8959_v18, %v8959_v18 }
 0x40a   :  { %v8990_v40 = vmul.f32 %v8958_v22, %v8958_v22 }
 0x40b   :  { %9032 = vrot.lane.b32.xlu1 %v8991_v34, %s11912_s30 }
 0x40e   :  { %v8925_v3 = vpop.permute.xlu1 %8924 }
 0x40f   :  { %v8961_v51 = vadd.f32 %v14331_v14, %v8925_v3  ;;  %v8923_v53 = vpop.permute.xlu0 %8922  ;;  %9030 = vrot.lane.b32.xlu1 %v8990_v40, %s11912_s30 }
 0x410   :  { %v8960_v36 = vadd.f32 %v14334_v33, %v8923_v53 }
 0x411   :  { %v8993_v11 = vmul.f32 %v8961_v51, %v8961_v51 }
 0x412   :  { %v8992_v30 = vmul.f32 %v8960_v36, %v8960_v36 }
 0x413   :  { %9036 = vrot.lane.b32.xlu1 %v8993_v11, %s11912_s30 }
 0x416   :  { %v8929_v58 = vpop.permute.xlu1 %8928 }
 0x417   :  { %v8927_v6 = vpop.permute.xlu0 %8926  ;;  %9034 = vrot.lane.b32.xlu1 %v8992_v30, %s11912_s30  ;;  %v8963_v0 = vadd.f32 %v14341_v55, %v8929_v58 }
 0x418   :  { %v8962_v61 = vadd.f32 %v14344_v42, %v8927_v6 }
 0x419   :  { %v8995_v60 = vmul.f32 %v8963_v0, %v8963_v0 }
 0x41a   :  { %v8994_v37 = vmul.f32 %v8962_v61, %v8962_v61 }
 0x41c   :  { %9038 = vrot.lane.b32.xlu1 %v8994_v37, %s11912_s30 }
 0x41e   :  { %v8933_v16 = vpop.permute.xlu1 %8932 }
 0x41f   :  { %v8965_v56 = vadd.f32 %v14351_v45, %v8933_v16  ;;  %v8931_v44 = vpop.permute.xlu0 %8930 }
 0x420   :  { %v8964_v41 = vadd.f32 %v14354_v35, %v8931_v44  ;;  %9040 = vrot.lane.b32.xlu1 %v8995_v60, %s11912_s30 }
 0x421   :  { %v8997_v38 = vmul.f32 %v8965_v56, %v8965_v56 }
 0x422   :  { %v8996_v31 = vmul.f32 %v8964_v41, %v8964_v41  ;;  %v8841_v20 = vpop.permute.xlu1 %8840 }
 0x423   :  { %v8839_v62 = vpop.permute.xlu0 %8838  ;;  %v8887_v26 = vsub.f32 %v14288_v57, %v8841_v20 }
 0x424   :  { %9044 = vrot.lane.b32.xlu1 %v8997_v38, %s11912_s30  ;;  %9042 = vrot.lane.b32.xlu0 %v8996_v31, %s11912_s30  ;;  %v8886_v15 = vsub.f32 %v14290_v63, %v8839_v62 }
 0x425   :  { %v8967_v21 = vmul.f32 %v8887_v26, %v8887_v26 }
 0x426   :  { %v8845_v8 = vpop.permute.xlu1 %8844  ;;  %v8966_v10 = vmul.f32 %v8886_v15, %v8886_v15 }
 0x427   :  { %v8843_v13 = vpop.permute.xlu0 %8842  ;;  %v8889_v1 = vsub.f32 %v14298_v59, %v8845_v8 }
 0x428   :  { %v8888_v27 = vsub.f32 %v14300_v4, %v8843_v13 }
 0x429   :  { %v8969_v24 = vmul.f32 %v8889_v1, %v8889_v1 }
 0x42a   :  { %v8968_v57 = vmul.f32 %v8888_v27, %v8888_v27 }
 0x42b   :  { %v8847_v7 = vpop.permute.xlu0 %8846 }
 0x42c   :  { %v8890_v3 = vsub.f32 %v14312_v43, %v8847_v7 }
 0x42e   :  { %v8970_v58 = vmul.f32 %v8890_v3, %v8890_v3 }
 0x42f   :  { %v8849_v52 = vpop.permute.xlu0 %8848 }
 0x430   :  { %v8891_v34 = vsub.f32 %v14310_v19, %v8849_v52 }
 0x432   :  { %v8971_v59 = vmul.f32 %v8891_v34, %v8891_v34 }
 0x433   :  { %v8851_v17 = vpop.permute.xlu0 %8850 }
 0x434   :  { %v8892_v41 = vsub.f32 %v14320_v49, %v8851_v17 }
 0x436   :  { %v8972_v52 = vmul.f32 %v8892_v41, %v8892_v41 }
 0x437   :  { %v8853_v47 = vpop.permute.xlu0 %8852 }
 0x438   :  { %v8893_v6 = vsub.f32 %v14318_v23, %v8853_v47 }
 0x43a   :  { %v8973_v62 = vmul.f32 %v8893_v6, %v8893_v6 }
 0x43b   :  { %v14414_v28 = vpop.permute.xlu0 %8854 }
 0x43f   :  { %v8857_v29 = vpop.permute.xlu0 %8856 }
 0x443   :  { %9229 = vadd.xlane.f32.xlu0 %v9228_v32 }
 0x448   :  { %9241 = vadd.xlane.f32.xlu1 %v9240_v9  ;;  %v8895_v9 = vsub.f32 %v14324_v54, %v8857_v29 }
 0x45d   :  { %v9017_v48 = vpop.permute.xlu1 %9016 }
 0x45e   :  { %v9063_v12 = vadd.f32 %v9017_v48, %v8967_v21 }
 0x460   :  { %11850 = vrsqrt.f32 %v9063_v12  ;;  %vm9087_vm1 = vcmp.eq.f32.partialorder %v9063_v12, inf  ;;  %v9090_v4 = vand.u32 2147483648, %v9063_v12  ;;  %vm9089_vm2 = vcmp.eq.f32.partialorder %v9063_v12, 0.0 }
 0x461   :  { %v9015_v46 = vpop.permute.xlu0 %9014 }
 0x462   :  { %v9062_v25 = vadd.f32 %v9015_v46, %v8966_v10  ;;  %v8894_v10 = vsub.f32 %v14326_v39, %v14414_v28  ;;  %v8975_v46 = vmul.f32 %v8895_v9, %v8895_v9 }
 0x464   :  { %11852 = vrsqrt.f32 %v9062_v25  ;;  %vm9080_vm3 = vcmp.eq.f32.partialorder %v9062_v25, inf  ;;  %v9083_v43 = vand.u32 2147483648, %v9062_v25  ;;  %vm9082_vm4 = vcmp.eq.f32.partialorder %v9062_v25, 0.0 }
 0x465   :  { %v9021_v18 = vpop.permute.xlu1 %9020  ;;  %v14425_v61 = vpop.permute.xlu0 %8858  ;;  %v8974_v34 = vmul.f32 %v8894_v10, %v8894_v10 }
 0x466   :  { %v9065_v5 = vadd.f32 %v9021_v18, %v8969_v24 }
 0x468   :  { %11854 = vrsqrt.f32 %v9065_v5  ;;  %vm9101_vm5 = vcmp.eq.f32.partialorder %v9065_v5, inf  ;;  %v9104_v49 = vand.u32 2147483648, %v9065_v5  ;;  %vm9103_vm7 = vcmp.eq.f32.partialorder %v9065_v5, 0.0 }
 0x469   :  { %v9019_v63 = vpop.permute.xlu1 %9018  ;;  %v8861_v50 = vpop.permute.xlu0 %8860 }
 0x46a   :  { %v11851_v22 = vpop.eup %11850  ;;  %v9064_v40 = vadd.f32 %v9019_v63, %v8968_v57  ;;  %v8897_v39 = vsub.f32 %v14331_v14, %v8861_v50  ;;  %v8896_v14 = vsub.f32 %v14334_v33, %v14425_v61 }
 0x46b   :  { %v9086_v51 = vmul.f32 %v11851_v22, %v9063_v12 }
 0x46c   :  { %11856 = vrsqrt.f32 %v9064_v40  ;;  %vm9094_vm6 = vcmp.eq.f32.partialorder %v9064_v40, inf  ;;  %v9097_v17 = vand.u32 2147483648, %v9064_v40  ;;  %vm9096_vm8 = vcmp.eq.f32.partialorder %v9064_v40, 0.0 }
 0x46d   :  { %v9088_v53 = vsel %vm9087_vm1, %v9063_v12, %v9086_v51  ;;  %v9025_v11 = vpop.permute.xlu1 %9024  ;;  %v8863_v1 = vpop.permute.xlu0 %8862 }
 0x46e   :  { %v11853_v36 = vpop.eup %11852  ;;  %v14422_v30 = vadd.f32 %v9025_v11, %v8971_v59  ;;  %v9091_v0 = vsel %vm9089_vm2, %v9090_v4, %v9088_v53  ;;  %v8898_v41 = vsub.f32 %v14344_v42, %v8863_v1 }
 0x46f   :  { %v9079_v19 = vmul.f32 %v11853_v36, %v9062_v25  ;;  %v9191_v38 = vsel %vm25_vm0, %v9091_v0, 0.0 }
 0x470   :  { %11858 = vrsqrt.f32 %v14422_v30  ;;  %vm9115_vm9 = vcmp.eq.f32.partialorder %v14422_v30, inf  ;;  %v9118_v22 = vand.u32 2147483648, %v14422_v30  ;;  %vm9117_vm11 = vcmp.eq.f32.partialorder %v14422_v30, 0.0 }
 0x471   :  { %v9081_v37 = vsel %vm9080_vm3, %v9062_v25, %v9079_v19  ;;  %v9023_v60 = vpop.permute.xlu1 %9022  ;;  %v8865_v51 = vpop.permute.xlu0 %8864  ;;  %v8977_v19 = vmul.f32 %v8897_v39, %v8897_v39 }
 0x472   :  { %v11855_v16 = vpop.eup %11854  ;;  %v9084_v56 = vsel %vm9082_vm4, %v9083_v43, %v9081_v37  ;;  %v9066_v44 = vadd.f32 %v9023_v60, %v8970_v58 }
 0x473   :  { %v9190_v23 = vsel %vm25_vm0, %v9084_v56, 0.0  ;;  %v9100_v31 = vmul.f32 %v11855_v16, %v9065_v5  ;;  %v8976_v56 = vmul.f32 %v8896_v14, %v8896_v14 }
 0x474   :  { %v9192_v13 = vadd.f32 %v9191_v38, %v9190_v23  ;;  %11860 = vrsqrt.f32 %v9066_v44  ;;  %vm9108_vm10 = vcmp.eq.f32.partialorder %v9066_v44, inf  ;;  %vm9110_vm12 = vcmp.eq.f32.partialorder %v9066_v44, 0.0 }
 0x475   :  { %v9029_v7 = vpop.permute.xlu1 %9028  ;;  %v9102_v47 = vsel %vm9101_vm5, %v9065_v5, %v9100_v31  ;;  %v8867_v33 = vpop.permute.xlu0 %8866  ;;  %v8899_v31 = vsub.f32 %v14341_v55, %v8865_v51 }
 0x476   :  { %v11857_v32 = vpop.eup %11856  ;;  %v14431_v2 = vadd.f32 %v9029_v7, %v8973_v62  ;;  %v9105_v15 = vsel %vm9103_vm7, %v9104_v49, %v9102_v47 }
 0x477   :  { %v9093_v20 = vmul.f32 %v11857_v32, %v9064_v40  ;;  %v9195_v24 = vsel %vm25_vm0, %v9105_v15, 0.0 }
 0x478   :  { %11862 = vrsqrt.f32 %v14431_v2  ;;  %vm9129_vm13 = vcmp.eq.f32.partialorder %v14431_v2, inf  ;;  %v9132_v38 = vand.u32 2147483648, %v14431_v2  ;;  %vm9131_vm15 = vcmp.eq.f32.partialorder %v14431_v2, 0.0 }
 0x479   :  { %v9095_v26 = vsel %vm9094_vm6, %v9064_v40, %v9093_v20  ;;  %v9027_v8 = vpop.permute.xlu1 %9026  ;;  %v9111_v40 = vand.u32 2147483648, %v9066_v44  ;;  %v8978_v20 = vmul.f32 %v8898_v41, %v8898_v41  ;;  %v8869_v49 = vpop.permute.xlu0 %8868 }
 0x47a   :  { %v11859_v21 = vpop.eup %11858  ;;  %v9098_v48 = vsel %vm9096_vm8, %v9097_v17, %v9095_v26  ;;  %v9068_v12 = vadd.f32 %v9027_v8, %v8972_v52  ;;  %v8979_v17 = vmul.f32 %v8899_v31, %v8899_v31  ;;  %v8901_v10 = vsub.f32 %v14351_v45, %v8869_v49 }
 0x47b   :  { %v9193_v54 = vsel %vm25_vm0, %v9098_v48, 0.0  ;;  %v9114_v29 = vmul.f32 %v11859_v21, %v14422_v30  ;;  %v8900_v21 = vsub.f32 %v14354_v35, %v8867_v33 }
 0x47c   :  { %v9194_v25 = vadd.f32 %v9193_v54, %v9192_v13  ;;  %11864 = vrsqrt.f32 %v9068_v12  ;;  %vm9122_vm14 = vcmp.eq.f32.partialorder %v9068_v12, inf  ;;  %v9125_v23 = vand.u32 2147483648, %v9068_v12 }
 0x47d   :  { %v9033_v27 = vpop.permute.xlu1 %9032  ;;  %v9116_v28 = vsel %vm9115_vm9, %v14422_v30, %v9114_v29  ;;  %vm9124_vm1 = vcmp.eq.f32.partialorder %v9068_v12, 0.0  ;;  %v8981_v39 = vmul.f32 %v8901_v10, %v8901_v10 }
 0x47e   :  { %v11861_v18 = vpop.eup %11860  ;;  %v9196_v5 = vadd.f32 %v9195_v24, %v9194_v25  ;;  %v14441_v57 = vadd.f32 %v9033_v27, %v8975_v46  ;;  %v9119_v11 = vsel %vm9117_vm11, %v9118_v22, %v9116_v28 }
 0x47f   :  { %v9107_v63 = vmul.f32 %v11861_v18, %v9066_v44  ;;  %v9199_v30 = vsel %vm25_vm0, %v9119_v11, 0.0 }
 0x480   :  { %11866 = vrsqrt.f32 %v14441_v57  ;;  %vm9143_vm2 = vcmp.eq.f32.partialorder %v14441_v57, inf  ;;  %v9146_v54 = vand.u32 2147483648, %v14441_v57  ;;  %vm9145_vm4 = vcmp.eq.f32.partialorder %v14441_v57, 0.0 }
 0x481   :  { %v9109_v3 = vsel %vm9108_vm10, %v9066_v44, %v9107_v63  ;;  %v9031_v59 = vpop.permute.xlu1 %9030 }
 0x482   :  { %v11863_v53 = vpop.eup %11862  ;;  %v9112_v36 = vsel %vm9110_vm12, %v9111_v40, %v9109_v3  ;;  %v9070_v4 = vadd.f32 %v9031_v59, %v8974_v34  ;;  %v8980_v34 = vmul.f32 %v8900_v21, %v8900_v21 }
 0x483   :  { %v9197_v58 = vsel %vm25_vm0, %v9112_v36, 0.0  ;;  %v9128_v6 = vmul.f32 %v11863_v53, %v14431_v2 }
 0x484   :  { %v9198_v0 = vadd.f32 %v9197_v58, %v9196_v5  ;;  %11868 = vrsqrt.f32 %v9070_v4  ;;  %vm9136_vm3 = vcmp.eq.f32.partialorder %v9070_v4, inf  ;;  %v9139_v29 = vand.u32 2147483648, %v9070_v4 }
 0x485   :  { %v9037_v43 = vpop.permute.xlu1 %9036  ;;  %v9130_v44 = vsel %vm9129_vm13, %v14431_v2, %v9128_v6  ;;  %vm9138_vm5 = vcmp.eq.f32.partialorder %v9070_v4, 0.0 }
 0x486   :  { %v11865_v37 = vpop.eup %11864  ;;  %v9200_v60 = vadd.f32 %v9199_v30, %v9198_v0  ;;  %v14454_v16 = vadd.f32 %v9037_v43, %v8977_v19  ;;  %v9133_v7 = vsel %vm9131_vm15, %v9132_v38, %v9130_v44 }
 0x487   :  { %v9121_v61 = vmul.f32 %v11865_v37, %v9068_v12  ;;  %v9203_v55 = vsel %vm25_vm0, %v9133_v7, 0.0 }
 0x488   :  { %11870 = vrsqrt.f32 %v14454_v16  ;;  %vm9157_vm8 = vcmp.eq.f32.partialorder %v14454_v16, inf  ;;  %v9160_v6 = vand.u32 2147483648, %v14454_v16  ;;  %vm9159_vm9 = vcmp.eq.f32.partialorder %v14454_v16, 0.0 }
 0x489   :  { %v9123_v62 = vsel %vm9122_vm14, %v9068_v12, %v9121_v61  ;;  %v9035_v13 = vpop.permute.xlu1 %9034 }
 0x48a   :  { %v11867_v50 = vpop.eup %11866  ;;  %v9126_v32 = vsel %vm9124_vm1, %v9125_v23, %v9123_v62  ;;  %v9072_v52 = vadd.f32 %v9035_v13, %v8976_v56 }
 0x48b   :  { %v9201_v9 = vsel %vm25_vm0, %v9126_v32, 0.0  ;;  %v9142_v42 = vmul.f32 %v11867_v50, %v14441_v57 }
 0x48c   :  { %v9202_v47 = vadd.f32 %v9201_v9, %v9200_v60  ;;  %11872 = vrsqrt.f32 %v9072_v52  ;;  %vm9150_vm6 = vcmp.eq.f32.partialorder %v9072_v52, inf  ;;  %v9153_v53 = vand.u32 2147483648, %v9072_v52 }
 0x48d   :  { %v9144_v15 = vsel %vm9143_vm2, %v14441_v57, %v9142_v42  ;;  %vm9152_vm7 = vcmp.eq.f32.partialorder %v9072_v52, 0.0 }
 0x48e   :  { %v11869_v2 = vpop.eup %11868  ;;  %v9204_v26 = vadd.f32 %v9203_v55, %v9202_v47  ;;  %v9039_v8 = vpop.permute.xlu1 %9038  ;;  %v9147_v46 = vsel %vm9145_vm4, %v9146_v54, %v9144_v15 }
 0x48f   :  { %v9135_v48 = vmul.f32 %v11869_v2, %v9070_v4  ;;  %v9074_v12 = vadd.f32 %v9039_v8, %v8978_v20  ;;  %v9207_v45 = vsel %vm25_vm0, %v9147_v46, 0.0  ;;  %v9221_v8 = vld [vmem:[#allocation4] sm:$0xff] }
 0x491   :  { %v9137_v1 = vsel %vm9136_vm3, %v9070_v4, %v9135_v48  ;;  %11874 = vrsqrt.f32 %v9074_v12  ;;  %vm9164_vm10 = vcmp.eq.f32.partialorder %v9074_v12, inf  ;;  %v9167_v37 = vand.u32 2147483648, %v9074_v12 }
 0x492   :  { %v9140_v25 = vsel %vm9138_vm5, %v9139_v29, %v9137_v1  ;;  %v9041_v24 = vpop.permute.xlu1 %9040  ;;  %v11871_v18 = vpop.eup %11870  ;;  %vm9166_vm11 = vcmp.eq.f32.partialorder %v9074_v12, 0.0 }
 0x493   :  { %v9205_v35 = vsel %vm25_vm0, %v9140_v25, 0.0  ;;  %v9075_v27 = vadd.f32 %v9041_v24, %v8979_v17  ;;  %v9156_v40 = vmul.f32 %v11871_v18, %v14454_v16 }
 0x494   :  { %v9206_v5 = vadd.f32 %v9205_v35, %v9204_v26 }
 0x495   :  { %11876 = vrsqrt.f32 %v9075_v27  ;;  %v9158_v14 = vsel %vm9157_vm8, %v14454_v16, %v9156_v40  ;;  %vm9171_vm12 = vcmp.eq.f32.partialorder %v9075_v27, inf  ;;  %v9174_v61 = vand.u32 2147483648, %v9075_v27 }
 0x496   :  { %v11873_v28 = vpop.eup %11872  ;;  %v9208_v63 = vadd.f32 %v9207_v45, %v9206_v5  ;;  %v9045_v22 = vpop.permute.xlu1 %9044  ;;  %v9161_v0 = vsel %vm9159_vm9, %v9160_v6, %v9158_v14  ;;  %vm9173_vm13 = vcmp.eq.f32.partialorder %v9075_v27, 0.0 }
 0x497   :  { %v9043_v57 = vpop.permute.xlu0 %9042  ;;  %v9149_v3 = vmul.f32 %v11873_v28, %v9072_v52  ;;  %v9077_v51 = vadd.f32 %v9045_v22, %v8981_v39  ;;  %v9211_v33 = vsel %vm25_vm0, %v9161_v0, 0.0 }
 0x498   :  { %v9076_v59 = vadd.f32 %v9043_v57, %v8980_v34 }
 0x499   :  { %v9151_v11 = vsel %vm9150_vm6, %v9072_v52, %v9149_v3  ;;  %11878 = vrsqrt.f32 %v9077_v51  ;;  %vm9185_vm14 = vcmp.eq.f32.partialorder %v9077_v51, inf  ;;  %v9188_v7 = vand.u32 2147483648, %v9077_v51 }
 0x49a   :  { %v9154_v36 = vsel %vm9152_vm7, %v9153_v53, %v9151_v11  ;;  %11880 = vrsqrt.f32 %v9076_v59  ;;  %vm9178_vm15 = vcmp.eq.f32.partialorder %v9076_v59, inf  ;;  %v9181_v42 = vand.u32 2147483648, %v9076_v59 }
 0x49b   :  { %v11875_v4 = vpop.eup %11874  ;;  %v9209_v58 = vsel %vm25_vm0, %v9154_v36, 0.0  ;;  %vm9187_vm1 = vcmp.eq.f32.partialorder %v9077_v51, 0.0  ;;  %vm9180_vm2 = vcmp.eq.f32.partialorder %v9076_v59, 0.0  ;;  %vm9286_vm6 = vcmask 0  }
 0x49c   :  { %v9163_v19 = vmul.f32 %v11875_v4, %v9074_v12  ;;  %v9210_v30 = vadd.f32 %v9209_v58, %v9208_v63 }
 0x49e   :  { %v9165_v43 = vsel %vm9164_vm10, %v9074_v12, %v9163_v19  ;;  %v9212_v41 = vadd.f32 %v9211_v33, %v9210_v30 }
 0x49f   :  { %v11877_v60 = vpop.eup %11876  ;;  %v9168_v56 = vsel %vm9166_vm11, %v9167_v37, %v9165_v43 }
 0x4a0   :  { %v9170_v44 = vmul.f32 %v11877_v60, %v9075_v27  ;;  %v9213_v31 = vsel %vm25_vm0, %v9168_v56, 0.0 }
 0x4a1   :  { %v9214_v52 = vadd.f32 %v9213_v31, %v9212_v41 }
 0x4a2   :  { %v9172_v38 = vsel %vm9171_vm12, %v9075_v27, %v9170_v44 }
 0x4a3   :  { %v11879_v23 = vpop.eup %11878  ;;  %v9175_v16 = vsel %vm9173_vm13, %v9174_v61, %v9172_v38 }
 0x4a4   :  { %v11881_v62 = vpop.eup %11880  ;;  %v9184_v13 = vmul.f32 %v11879_v23, %v9077_v51  ;;  %v9215_v50 = vsel %vm25_vm0, %v9175_v16, 0.0 }
 0x4a5   :  { %v9177_v32 = vmul.f32 %v11881_v62, %v9076_v59  ;;  %v9216_v20 = vadd.f32 %v9215_v50, %v9214_v52 }
 0x4a6   :  { %v9186_v9 = vsel %vm9185_vm14, %v9077_v51, %v9184_v13 }
 0x4a7   :  { %v9179_v47 = vsel %vm9178_vm15, %v9076_v59, %v9177_v32  ;;  %v9189_v55 = vsel %vm9187_vm1, %v9188_v7, %v9186_v9 }
 0x4a8   :  { %v9182_v49 = vsel %vm9180_vm2, %v9181_v42, %v9179_v47  ;;  %v9219_v26 = vsel %vm25_vm0, %v9189_v55, 0.0 }
 0x4a9   :  { %v9217_v2 = vsel %vm25_vm0, %v9182_v49, 0.0 }
 0x4aa   :  { %v9218_v17 = vadd.f32 %v9217_v2, %v9216_v20 }
 0x4ac   :  { %v9220_v21 = vadd.f32 %v9219_v26, %v9218_v17 }
 0x4ae   :  { %v9222_v15 = vadd.f32 %v9221_v8, %v9220_v21 }
 0x4b0   :  { %9223 = vst.msk [vmem:[#allocation4] sm:$0xff] %vm25_vm0, %v9222_v15 }
 0x4b7   :  { %v9251_v48 = vld [vmem:[#allocation4] sm:$0xff] }
 0x4b8   :  { %v9252_v12 = vsel %vm25_vm0, %v9251_v48, 0.0 }
 0x4b9   :  { %9253 = vadd.xlane.f32.xlu0 %v9252_v12 }
 0x4d0   :  { %v9230_v10 = vpop.xlane.xlu0 %9229 }
 0x4d1   :  { %v9231_v54 = vrot.slane %v9230_v10, 4 }
 0x4d3   :  { %v9232_v29 = vadd.f32 %v9231_v54, %v9230_v10 }
 0x4d5   :  { %v9242_v1 = vpop.xlane.xlu1 %9241  ;;  %v9233_v46 = vrot.slane %v9232_v29, 2 }
 0x4d6   :  { %v9243_v25 = vrot.slane %v9242_v1, 4 }
 0x4d7   :  { %v9234_v24 = vadd.f32 %v9233_v46, %v9232_v29 }
 0x4d8   :  { %v9244_v35 = vadd.f32 %v9243_v25, %v9242_v1 }
 0x4d9   :  { %v9235_v27 = vrot.slane %v9234_v24, 1 }
 0x4da   :  { %v9245_v18 = vrot.slane %v9244_v35, 2 }
 0x4db   :  { %v9236_v5 = vadd.f32 %v9235_v27, %v9234_v24 }
 0x4dc   :  { %v9246_v34 = vadd.f32 %v9245_v18, %v9244_v35 }
 0x4dd   :  { %11840 = vpush %v9236_v5 }
 0x4de   :  { %v9247_v39 = vrot.slane %v9246_v34, 1 }
 0x4e0   :  { %v9248_v45 = vadd.f32 %v9247_v39, %v9246_v34 }
 0x4e2   :  { %11842 = vpush %v9248_v45 }
 0x50e   :  { %s11841_s6 = spop %11840 }
 0x50f   :  { %v9238_v11 = vstv %s11841_s6 }
 0x510   :  { %v9263_v36 = vmul.f32 0.00048828125, %v9238_v11 }
 0x512   :  { %v9264_v14 = vadd.f32 1e-06, %v9263_v36 }
 0x513   :  { %s11843_s7 = spop %11842 }
 0x514   :  { %v9250_v59 = vstv %s11843_s7  ;;  %vm9267_vm3 = vcmp.eq.f32.partialorder %v9264_v14, inf  ;;  %v9270_v37 = vand.u32 2147483648, %v9264_v14  ;;  %vm9269_vm5 = vcmp.eq.f32.partialorder %v9264_v14, 0.0 }
 0x515   :  { %v9272_v53 = vmul.f32 0.00048828125, %v9250_v59 }
 0x517   :  { %v9273_v4 = vadd.f32 1e-06, %v9272_v53 }
 0x519   :  { %11882 = vrsqrt.f32 %v9273_v4  ;;  %vm9276_vm0 = vcmp.eq.f32.partialorder %v9273_v4, inf  ;;  %v9279_v43 = vand.u32 2147483648, %v9273_v4  ;;  %vm9278_vm4 = vcmp.eq.f32.partialorder %v9273_v4, 0.0 }
 0x51a   :  { %11884 = vrsqrt.f32 %v9264_v14 }
 0x523   :  { %v11883_v58 = vpop.eup %11882 }
 0x524   :  { %v9275_v6 = vmul.f32 %v11883_v58, %v9273_v4  ;;  %v11885_v19 = vpop.eup %11884 }
 0x525   :  { %v9266_v0 = vmul.f32 %v11885_v19, %v9264_v14 }
 0x526   :  { %v9277_v30 = vsel %vm9276_vm0, %v9273_v4, %v9275_v6 }
 0x527   :  { %v9280_v60 = vsel %vm9278_vm4, %v9279_v43, %v9277_v30  ;;  %v9268_v56 = vsel %vm9267_vm3, %v9264_v14, %v9266_v0 }
 0x528   :  { %v9281_v44 = vmul.f32 0.05, %v9280_v60  ;;  %v9271_v61 = vsel %vm9269_vm5, %v9270_v37, %v9268_v56 }
 0x52a   :  { %v9282_v38 = vadd.f32 %v9281_v44, %v9271_v61 }
 0x546   :  { %v9254_v28 = vpop.xlane.xlu0 %9253 }
 0x547   :  { %v9255_v63 = vrot.slane %v9254_v28, 4 }
 0x549   :  { %v9256_v22 = vadd.f32 %v9255_v63, %v9254_v28 }
 0x54b   :  { %v9257_v57 = vrot.slane %v9256_v22, 2 }
 0x54d   :  { %v9258_v40 = vadd.f32 %v9257_v57, %v9256_v22 }
 0x54f   :  { %v9259_v3 = vrot.slane %v9258_v40, 1 }
 0x551   :  { %v9260_v51 = vadd.f32 %v9259_v3, %v9258_v40 }
 0x553   :  { %11844 = vpush %v9260_v51 }
 0x584   :  { %s11845_s8 = spop %11844 }
 0x585   :  { %v9262_v33 = vstv %s11845_s8 }
 0x586   :  { %v9283_v41 = vmul.f32 0.00048828125, %v9262_v33 }
 0x588   :  { %v9284_v23 = vmul.f32 0.1, %v9283_v41 }
 0x58a   :  { %v9285_v31 = vadd.f32 %v9284_v23, %v9282_v38 }
 0x58c   :  { %9287 = vst.msk [vmem:[#allocation5] sm:$0x1] %vm9286_vm6, %v9285_v31 }
 0x58d   :  { %11897 = shalt.err (!%p11894_p4)
}
 0x58e   :  { %s11898_s15 = scalar_lea.hbm %s14503_s5, 16 }
 0x58f   :  { %p11899_p5 = scmp.ne.s32.totalorder %s14503_s5, %s11898_s15  ;;  %p11902_p6 = scmp.lt.u32.totalorder %s11898_s15, %s14503_s5 }
 0x591   :  { %p11904_p7 = pnand %p11902_p6, %p11899_p5 }
 0x593   :  { %11907 = shalt.err (!%p11904_p7)
}
 0x594   :  { %9297 = dma.vmem_to_hbm [thread:$0]  %s9295_s10, 16, %s14503_s5, [#allocation6]  }
 0x595   :  { %11908 = dma.done.wait [#allocation6], 16  }
 0x596   :  { %11909 = vsyncadd [#allocation6], 4294967280 }
 0x597   :  { %9301 = vsyncpa [#allocation6], 1 }

// kernel: tpu_custom_call.1
= control target key start
LH: loop header
LB: loop body
LE: loop exit
PB: predicated region body
PF: predicated region fallthrough
CT: control target
= control target key end

     0   :  { %10 = vsyncpa [#allocation6], 0  ;;  %s13795_s0 = inlined_call_operand.hbm [shape: f32[8,16,16], index: 0, kind: input, shape index: {}]   ;;  %s13796_s1 = inlined_call_operand.hbm [shape: f32[8,16,16], index: 1, kind: input, shape index: {}]   ;;  %s13797_s2 = inlined_call_operand.vmem [shape: f32[48,16], index: 2, kind: input, shape index: {}]   ;;  %s13798_s3 = inlined_call_operand.vmem [shape: f32[16,16], index: 3, kind: input, shape index: {}]   ;;  %s13799_s4 = inlined_call_operand.vmem [shape: f32[16,32], index: 4, kind: input, shape index: {}]   ;;  %s13800_s5 = inlined_call_operand.hbm [shape: f32[1,1], index: 5, kind: output, shape index: {}]  }
   0x1   :  { %11 = vsyncpa [#allocation9], 0 }
   0x2   :  { %12 = vsyncpa [#allocation7], 0  ;;  %s11824_s18 = smov [#allocation5]   ;;  %s11752_s22 = scalar_lea.hbm %s13795_s0, 2048 }
   0x3   :  { %s18_s19 = sshll.u32 %s11824_s18, 4  ;;  %p11753_p0 = scmp.ne.s32.totalorder %s13795_s0, %s11752_s22  ;;  %s19_s19 = int_to_ptr.vmem [resolvable:$true] %s18_s19 }
   0x4   :  { %p11756_p1 = scmp.lt.u32.totalorder %s11752_s22, %s13795_s0 }
   0x6   :  { %p11758_p2 = pnand %p11756_p1, %p11753_p0 }
   0x8   :  { %11761 = shalt.err (!%p11758_p2)
}
   0x9   :  { %s11762_s27 = scalar_lea.vmem %s19_s19, 2048  ;;  %p11767_p4 = scmp.lt.s32.totalorder %s19_s19, %s19_s19 }
   0xa   :  { %p11763_p3 = scmp.ne.s32.totalorder %s19_s19, %s11762_s27  ;;  %p11768_p5 = scmp.lt.s32.totalorder %s11762_s27, %s11762_s27 }
   0xc   :  { %p11769_p6 = por %p11768_p5, %p11767_p4 }
   0xe   :  { %p11770_p7 = pnand %p11769_p6, %p11763_p3 }
  0x10   :  { %11773 = shalt.err (!%p11770_p7)
}
  0x11   :  { %s11825_s28 = smov 128   ;;  %s11826_s29 = smov 8  }
  0x12   :  { %24 = dma.hbm_to_vmem [thread:$0]  %s13795_s0, 2048, %s19_s19, [#allocation6], %s11825_s28, %s11825_s28, %s11826_s29  }
  0x13   :  { %s11827_s7 = smov [#allocation8]   ;;  %s11774_s11 = scalar_lea.hbm %s13796_s1, 2048 }
  0x14   :  { %s30_s8 = sshll.u32 %s11827_s7, 4  ;;  %p11775_p8 = scmp.ne.s32.totalorder %s13796_s1, %s11774_s11  ;;  %s31_s8 = int_to_ptr.vmem [resolvable:$true] %s30_s8 }
  0x15   :  { %p11778_p9 = scmp.lt.u32.totalorder %s11774_s11, %s13796_s1 }
  0x17   :  { %p11780_p10 = pnand %p11778_p9, %p11775_p8 }
  0x19   :  { %11783 = shalt.err (!%p11780_p10)
}
  0x1a   :  { %s11784_s16 = scalar_lea.vmem %s31_s8, 2048  ;;  %p11789_p12 = scmp.lt.s32.totalorder %s31_s8, %s31_s8 }
  0x1b   :  { %p11785_p11 = scmp.ne.s32.totalorder %s31_s8, %s11784_s16  ;;  %p11790_p13 = scmp.lt.s32.totalorder %s11784_s16, %s11784_s16 }
  0x1d   :  { %p11791_p0 = por %p11790_p13, %p11789_p12 }
  0x1f   :  { %p11792_p1 = pnand %p11791_p0, %p11785_p11 }
  0x21   :  { %11795 = shalt.err (!%p11792_p1)
}
  0x22   :  { %36 = dma.hbm_to_vmem [thread:$0]  %s13796_s1, 2048, %s31_s8, [#allocation9], %s11825_s28, %s11825_s28, %s11826_s29  }
  0x23   :  { %11818 = dma.done.wait [#allocation6], 2048  }
  0x24   :  { %11819 = vsyncadd [#allocation6], 4294965248 }
  0x25   :  { %11820 = dma.done.wait [#allocation9], 2048  }
  0x26   :  { %11821 = vsyncadd [#allocation9], 4294965248  ;;  %v57_v0 = vld [vmem:[#allocation5] sm:$0xff]  ;;  %v58_v1 = vld [vmem:[#allocation5 + $0x8] sm:$0xff]  ;;  %vm53_vm0 = vcmask 130048   ;;  %s11830_s10 = smov 112  }
  0x27   :  { %v73_v2 = vld [vmem:[#allocation8] sm:$0xff]  ;;  %v74_v3 = vld [vmem:[#allocation8 + $0x8] sm:$0xff]  ;;  %v59_v5 = vld [vmem:[#allocation5 + $0x10] sm:$0xff]  ;;  %s11831_s14 = smov [#allocation10]  }
  0x28   :  { %v11886_v4 = vsub.f32 %v57_v0, %v73_v2  ;;  %v60_v6 = vld [vmem:[#allocation5 + $0x18] sm:$0xff]  ;;  %v11888_v7 = vsub.f32 %v58_v1, %v74_v3  ;;  %v75_v8 = vld [vmem:[#allocation8 + $0x10] sm:$0xff]  ;;  %v160_v10 = vld [vmem:[%s13797_s2] sm:$0xff]  ;;  %s9154_s15 = sshll.u32 %s11831_s14, 4  ;;  %s9155_s15 = int_to_ptr.vmem [resolvable:$true] %s9154_s15 }
  0x29   :  { %v76_v9 = vld [vmem:[#allocation8 + $0x18] sm:$0xff]  ;;  %v11894_v12 = vsub.f32 %v59_v5, %v75_v8  ;;  %v161_v14 = vld [vmem:[%s13797_s2 + $0x8] sm:$0xff]  ;;  %v167_v16 = vsel %vm53_vm0, %v160_v10, 0  ;;  %v163_v23 = vld [vmem:[%s13797_s2 + $0x18] sm:$0xff]  ;;  %s11796_s16 = scalar_lea.vmem %s9155_s15, 16  ;;  %s11800_s0 = scalar_lea.vmem %s9155_s15, 32 }
  0x2a   :  { %13891 = vst [vmem:[#allocation14_spill] sm:$0xff] %v11886_v4  ;;  %13892 = vst [vmem:[#allocation15_spill] sm:$0xff] %v11888_v7  ;;  %v185_v11 = vand.u32 4294901760, %v11886_v4  ;;  %v11896_v13 = vsub.f32 %v60_v6, %v76_v9  ;;  %v188_v15 = vand.u32 4294901760, %v11888_v7  ;;  %v170_v17 = vsel %vm53_vm0, %v161_v14, 0  ;;  %v162_v22 = vld [vmem:[%s13797_s2 + $0x10] sm:$0xff]  ;;  %p11797_p2 = scmp.ne.s32.totalorder %s9155_s15, %s11796_s16  ;;  %p11801_p3 = scmp.lt.s32.totalorder %s9155_s15, %s9155_s15 }
  0x2b   :  { %13893 = vst [vmem:[#allocation16_spill] sm:$0xff] %v11894_v12  ;;  %v859_v18 = vand.u32 4294901760, %v11894_v12  ;;  %v11908_v21 = vand.u32 4294901760, %v167_v16  ;;  %v11916_v24 = vand.u32 4294901760, %v170_v17  ;;  %v164_v29 = vld [vmem:[%s13797_s2 + $0x20] sm:$0xff]  ;;  %v173_v31 = vsel %vm53_vm0, %v162_v22, 0  ;;  %p11802_p4 = scmp.lt.s32.totalorder %s11800_s0, %s11796_s16 }
  0x2c   :  { %13894 = vst [vmem:[#allocation17_spill] sm:$0xff] %v11896_v13  ;;  %v11905_v19 = vpack.c.bf16 %v188_v15, %v185_v11  ;;  %v862_v20 = vand.u32 4294901760, %v11896_v13  ;;  %v11925_v27 = vsub.f32 %v11886_v4, %v185_v11  ;;  %v11928_v28 = vsub.f32 %v11888_v7, %v188_v15  ;;  %v165_v37 = vld [vmem:[%s13797_s2 + $0x28] sm:$0xff] }
  0x2d   :  { %v11922_v26 = vsub.f32 %v167_v16, %v11908_v21  ;;  %v11935_v30 = vsub.f32 %v170_v17, %v11916_v24  ;;  %v176_v32 = vsel %vm53_vm0, %v163_v23, 0  ;;  %v11945_v36 = vand.u32 4294901760, %v173_v31  ;;  %p11803_p5 = por %p11802_p4, %p11801_p3 }
  0x2e   :  { %10965 = vmatprep.subr.bf16.mxu0 %v11905_v19  ;;  %v11919_v25 = vpack.c.bf16 %v862_v20, %v859_v18  ;;  %v314_v34 = vand.u32 4294901760, %v11925_v27  ;;  %v321_v35 = vand.u32 4294901760, %v11928_v28  ;;  %v11954_v39 = vand.u32 4294901760, %v176_v32 }
  0x2f   :  { %10967 = vmatpush3.bf16.msra.mxu0 %v11905_v19  ;;  %v11941_v33 = vand.u32 4294901760, %v11922_v26  ;;  %v11952_v38 = vand.u32 4294901760, %v11935_v30  ;;  %v179_v40 = vsel %vm53_vm0, %v164_v29, 0  ;;  %v11966_v44 = vsub.f32 %v173_v31, %v11945_v36  ;;  %v77_v29 = vld [vmem:[#allocation8 + $0x20] sm:$0xff]  ;;  %v78_v31 = vld [vmem:[#allocation8 + $0x28] sm:$0xff]  ;;  %p11804_p6 = pnand %p11803_p5, %p11797_p2 }
  0x30   :  { %10989 = vmatprep.subr.bf16.mxu1 %v11919_v25  ;;  %v315_v42 = vsub.f32 %v11925_v27, %v314_v34  ;;  %v322_v43 = vsub.f32 %v11928_v28, %v321_v35  ;;  %v11971_v46 = vsub.f32 %v176_v32, %v11954_v39  ;;  %v11973_v47 = vand.u32 4294901760, %v179_v40  ;;  %v63_v32 = vld [vmem:[#allocation5 + $0x30] sm:$0xff] }
  0x31   :  { %10991 = vmatpush3.bf16.msra.mxu1 %v11919_v25  ;;  %v254_v41 = vsub.f32 %v11922_v26, %v11941_v33  ;;  %v264_v45 = vsub.f32 %v11935_v30, %v11952_v38  ;;  %v182_v48 = vsel %vm53_vm0, %v165_v37, 0  ;;  %v11979_v52 = vand.u32 4294901760, %v11966_v44  ;;  %v80_v37 = vld [vmem:[#allocation8 + $0x38] sm:$0xff] }
  0x32   :  { %v316_v50 = vand.u32 4294901760, %v315_v42  ;;  %v323_v51 = vand.u32 4294901760, %v322_v43  ;;  %v11984_v54 = vand.u32 4294901760, %v11971_v46  ;;  %v11987_v55 = vsub.f32 %v179_v40, %v11973_v47 }
  0x33   :  { %v11976_v49 = vand.u32 4294901760, %v254_v41  ;;  %v11981_v53 = vand.u32 4294901760, %v264_v45  ;;  %v11989_v56 = vand.u32 4294901760, %v182_v48  ;;  %v274_v58 = vsub.f32 %v11966_v44, %v11979_v52 }
  0x34   :  { %v10968_v57 = vpack.c.bf16 %v323_v51, %v316_v50  ;;  %v987_v59 = vsub.f32 %v11894_v12, %v859_v18  ;;  %v284_v60 = vsub.f32 %v11971_v46, %v11984_v54  ;;  %v12001_v61 = vand.u32 4294901760, %v11987_v55 }
  0x35   :  { %9864 = vmatprep.mubr.f32.mxu0 %v11976_v49  ;;  %9942 = vmatprep.mubr.f32.mxu1 %v11976_v49  ;;  %v12004_v62 = vsub.f32 %v182_v48, %v11989_v56  ;;  %v994_v63 = vsub.f32 %v11896_v13, %v862_v20  ;;  %v12007_v0 = vand.u32 4294901760, %v274_v58  ;;  %v10972_v2 = vpack.c.bf16 %v11928_v28, %v11925_v27  ;;  %v61_v27 = vld [vmem:[#allocation5 + $0x20] sm:$0xff]  ;;  %v62_v28 = vld [vmem:[#allocation5 + $0x28] sm:$0xff] }
  0x36   :  { %9865 = vmatmul.mubr.f32.vlgmr.msra.gmra.mrb[0].mxu0 %v11981_v53  ;;  %9943 = vmatmul.mubr.f32.vlgmr.msra.gmra.mrb[0].mxu1 %v11981_v53  ;;  %v988_v1 = vand.u32 4294901760, %v987_v59  ;;  %v12011_v3 = vand.u32 4294901760, %v284_v60  ;;  %v294_v5 = vsub.f32 %v11987_v55, %v12001_v61  ;;  %v10980_v22 = vpack.c.bf16 %v321_v35, %v314_v34  ;;  %v64_v34 = vld [vmem:[#allocation5 + $0x38] sm:$0xff]  ;;  %v79_v35 = vld [vmem:[#allocation8 + $0x30] sm:$0xff] }
  0x37   :  { %10969 = vmatprep.subr.bf16.mxu0 %v10968_v57  ;;  %v12016_v6 = vand.u32 4294901760, %v12004_v62  ;;  %v995_v8 = vand.u32 4294901760, %v994_v63  ;;  %9867 = vmatprep.mubr.f32.mxu0 %v12007_v0  ;;  %v10996_v20 = vpack.c.bf16 %v994_v63, %v987_v59  ;;  %v12067_v40 = vsub.f32 %v61_v27, %v77_v29 }
  0x38   :  { %10971 = vmatpush3.bf16.msra.mxu0 %v10968_v57  ;;  %9945 = vmatprep.mubr.f32.mxu1 %v12007_v0  ;;  %v989_v9 = vsub.f32 %v987_v59, %v988_v1  ;;  %v12022_v10 = vand.u32 4294901760, %v294_v5  ;;  %v12069_v41 = vsub.f32 %v62_v28, %v78_v31  ;;  %v12074_v42 = vsub.f32 %v63_v32, %v79_v35  ;;  %v65_v32 = vld [vmem:[#allocation5 + $0x40] sm:$0xff] }
  0x39   :  { %v304_v11 = vsub.f32 %v12004_v62, %v12016_v6  ;;  %v996_v14 = vsub.f32 %v994_v63, %v995_v8  ;;  %10973 = vmatprep.subr.bf16.mxu0 %v10972_v2  ;;  %v11004_v23 = vpack.c.bf16 %v995_v8, %v988_v1  ;;  %13895 = vst [vmem:[#allocation18_spill] sm:$0xff] %v12067_v40  ;;  %v1533_v45 = vand.u32 4294901760, %v12067_v40  ;;  %v81_v35 = vld [vmem:[#allocation8 + $0x40] sm:$0xff] }
  0x3a   :  { %9868 = vmatmul.mubr.f32.gmra.mrb[2].mxu0 %v12011_v3  ;;  %9946 = vmatmul.mubr.f32.gmra.mrb[2].mxu1 %v12011_v3  ;;  %v990_v15 = vand.u32 4294901760, %v989_v9  ;;  %13896 = vst [vmem:[#allocation19_spill] sm:$0xff] %v12069_v41  ;;  %13897 = vst [vmem:[#allocation20_spill] sm:$0xff] %v12074_v42  ;;  %v12076_v43 = vsub.f32 %v64_v34, %v80_v37  ;;  %v1536_v48 = vand.u32 4294901760, %v12069_v41  ;;  %v2207_v50 = vand.u32 4294901760, %v12074_v42  ;;  %v66_v34 = vld [vmem:[#allocation5 + $0x48] sm:$0xff] }
  0x3b   :  { %9870 = vmatprep.mubr.f32.mxu0 %v12022_v10  ;;  %9948 = vmatprep.mubr.f32.mxu1 %v12022_v10  ;;  %v12028_v16 = vand.u32 4294901760, %v304_v11  ;;  %v997_v17 = vand.u32 4294901760, %v996_v14  ;;  %v12088_v57 = vsub.f32 %v12067_v40, %v1533_v45  ;;  %v82_v37 = vld [vmem:[#allocation8 + $0x48] sm:$0xff] }
  0x3c   :  { %13898 = vst [vmem:[#allocation21_spill] sm:$0xff] %v12076_v43  ;;  %v2210_v51 = vand.u32 4294901760, %v12076_v43  ;;  %v12091_v58 = vsub.f32 %v12069_v41, %v1536_v48  ;;  %v12096_v59 = vsub.f32 %v12074_v42, %v2207_v50  ;;  %v12103_v63 = vpack.c.bf16 %v1536_v48, %v1533_v45  ;;  %v67_v45 = vld [vmem:[#allocation5 + $0x50] sm:$0xff]  ;;  %v68_v48 = vld [vmem:[#allocation5 + $0x58] sm:$0xff] }
  0x3d   :  { %v10992_v18 = vpack.c.bf16 %v997_v17, %v990_v15  ;;  %v1662_v1 = vand.u32 4294901760, %v12088_v57 }
  0x3e   :  { %9871 = vmatmul.mubr.f32.gmra.mrb[4].mxu0 %v12028_v16  ;;  %9949 = vmatmul.mubr.f32.gmra.mrb[4].mxu1 %v12028_v16  ;;  %v12099_v60 = vsub.f32 %v12076_v43, %v2210_v51  ;;  %v12109_v5 = vpack.c.bf16 %v2210_v51, %v2207_v50  ;;  %v2336_v8 = vand.u32 4294901760, %v12096_v59  ;;  %v11020_v27 = vpack.c.bf16 %v12091_v58, %v12088_v57  ;;  %v83_v50 = vld [vmem:[#allocation8 + $0x50] sm:$0xff]  ;;  %v84_v51 = vld [vmem:[#allocation8 + $0x58] sm:$0xff] }
  0x3f   :  { %9877 = vmatprep.mubr.f32.mxu0 %v11908_v21  ;;  %9955 = vmatprep.mubr.f32.mxu1 %v11908_v21  ;;  %v1663_v11 = vsub.f32 %v12088_v57, %v1662_v1  ;;  %v12207_v57 = vsub.f32 %v65_v32, %v81_v35 }
  0x40   :  { %10993 = vmatprep.subr.bf16.mxu1 %v10992_v18  ;;  %v2343_v9 = vand.u32 4294901760, %v12099_v60  ;;  %v11044_v28 = vpack.c.bf16 %v12099_v60, %v12096_v59 }
  0x41   :  { %10995 = vmatpush3.bf16.msra.mxu1 %v10992_v18  ;;  %v1664_v17 = vand.u32 4294901760, %v1663_v11  ;;  %13899 = vst [vmem:[#allocation22_spill] sm:$0xff] %v12207_v57 }
  0x42   :  { %9878 = vmatmul.mubr.f32.vlgmr.msra.gmra.mrb[0].mxu0 %v11916_v24  ;;  %10997 = vmatprep.subr.bf16.mxu1 %v10996_v20  ;;  %v2344_v15 = vsub.f32 %v12099_v60, %v2343_v9  ;;  %v11052_v31 = vpack.c.bf16 %v2343_v9, %v2336_v8  ;;  %v12216_v60 = vsub.f32 %v68_v48, %v84_v51 }
  0x43   :  { %9880 = vmatprep.mubr.f32.mxu0 %v11945_v36  ;;  %10975 = vmatpush3.bf16.msra.mxu0 %v10972_v2  ;;  %v1669_v2 = vand.u32 4294901760, %v12091_v58 }
  0x44   :  { %9956 = vmatmul.mubr.f32.vlgmr.msra.gmra.mrb[0].mxu1 %v11916_v24  ;;  %10977 = vmatprep.subr.bf16.mxu0 %v11905_v19  ;;  %13902 = vst [vmem:[#allocation25_spill] sm:$0xff] %v12216_v60  ;;  %v3558_v9 = vand.u32 4294901760, %v12216_v60 }
  0x45   :  { %9958 = vmatprep.mubr.f32.mxu1 %v11945_v36  ;;  %10999 = vmatpush3.bf16.msra.mxu1 %v10996_v20  ;;  %v1670_v14 = vsub.f32 %v12091_v58, %v1669_v2  ;;  %v2345_v20 = vand.u32 4294901760, %v2344_v15  ;;  %v11028_v29 = vpack.c.bf16 %v1669_v2, %v1662_v1  ;;  %v12209_v58 = vsub.f32 %v66_v34, %v82_v37 }
  0x46   :  { %9881 = vmatmul.mubr.f32.gmra.mrb[2].mxu0 %v11954_v39  ;;  %11001 = vmatprep.subr.bf16.mxu1 %v11919_v25  ;;  %v2881_v1 = vand.u32 4294901760, %v12207_v57  ;;  %v12239_v15 = vsub.f32 %v12216_v60, %v3558_v9 }
  0x47   :  { %9883 = vmatprep.mubr.f32.mxu0 %v11973_v47  ;;  %v1671_v18 = vand.u32 4294901760, %v1670_v14  ;;  %13900 = vst [vmem:[#allocation23_spill] sm:$0xff] %v12209_v58  ;;  %v2884_v2 = vand.u32 4294901760, %v12209_v58 }
  0x48   :  { %9959 = vmatmul.mubr.f32.gmra.mrb[2].mxu1 %v11954_v39  ;;  %v12228_v11 = vsub.f32 %v12207_v57, %v2881_v1 }
  0x49   :  { %9961 = vmatprep.mubr.f32.mxu1 %v11973_v47  ;;  %v12231_v14 = vsub.f32 %v12209_v58, %v2884_v2 }
  0x4a   :  { %9884 = vmatmul.mubr.f32.gmra.mrb[4].mxu0 %v11989_v56 }
  0x4b   :  { %9890 = vmatprep.mubr.f32.mxu0 %v11922_v26 }
  0x4c   :  { %9962 = vmatmul.mubr.f32.gmra.mrb[4].mxu1 %v11989_v56 }
  0x4d   :  { %9968 = vmatprep.mubr.f32.mxu1 %v11922_v26 }
  0x4e   :  { %9891 = vmatmul.mubr.f32.vlgmr.msra.gmra.mrb[0].mxu0 %v11935_v30 }
  0x4f   :  { %9893 = vmatprep.mubr.f32.mxu0 %v11966_v44  ;;  %10979 = vmatpush3.bf16.msra.mxu0 %v11905_v19 }
  0x50   :  { %9969 = vmatmul.mubr.f32.vlgmr.msra.gmra.mrb[0].mxu1 %v11935_v30  ;;  %10981 = vmatprep.subr.bf16.mxu0 %v10980_v22 }
  0x51   :  { %9971 = vmatprep.mubr.f32.mxu1 %v11966_v44  ;;  %11003 = vmatpush3.bf16.msra.mxu1 %v11919_v25 }
  0x52   :  { %9894 = vmatmul.mubr.f32.gmra.mrb[2].mxu0 %v11971_v46  ;;  %11005 = vmatprep.subr.bf16.mxu1 %v11004_v23 }
  0x53   :  { %9896 = vmatprep.mubr.f32.mxu0 %v11987_v55 }
  0x54   :  { %9972 = vmatmul.mubr.f32.gmra.mrb[2].mxu1 %v11971_v46 }
  0x55   :  { %9974 = vmatprep.mubr.f32.mxu1 %v11987_v55 }
  0x56   :  { %9897 = vmatmul.mubr.f32.gmra.mrb[4].mxu0 %v12004_v62 }
  0x57   :  { %9903 = vmatprep.mubr.f32.mxu0 %v11941_v33 }
  0x58   :  { %9975 = vmatmul.mubr.f32.gmra.mrb[4].mxu1 %v12004_v62 }
  0x59   :  { %9981 = vmatprep.mubr.f32.mxu1 %v11941_v33 }
  0x5a   :  { %9904 = vmatmul.mubr.f32.vlgmr.msra.gmra.mrb[0].mxu0 %v11952_v38 }
  0x5b   :  { %9906 = vmatprep.mubr.f32.mxu0 %v11979_v52  ;;  %10983 = vmatpush3.bf16.msra.mxu0 %v10980_v22  ;;  %v11016_v22 = vpack.c.bf16 %v1671_v18, %v1664_v17  ;;  %v12243_v17 = vpack.c.bf16 %v2884_v2, %v2881_v1  ;;  %v3010_v18 = vand.u32 4294901760, %v12228_v11  ;;  %v69_v1 = vld [vmem:[#allocation5 + $0x60] sm:$0xff]  ;;  %v70_v2 = vld [vmem:[#allocation5 + $0x68] sm:$0xff] }
  0x5c   :  { %9982 = vmatmul.mubr.f32.vlgmr.msra.gmra.mrb[0].mxu1 %v11952_v38  ;;  %10985 = vmatprep.subr.bf16.mxu0 %v11905_v19 }
  0x5d   :  { %9984 = vmatprep.mubr.f32.mxu1 %v11979_v52  ;;  %11007 = vmatpush3.bf16.msra.mxu1 %v11004_v23 }
  0x5e   :  { %9907 = vmatmul.mubr.f32.gmra.mrb[2].mxu0 %v11984_v54  ;;  %11009 = vmatprep.subr.bf16.mxu1 %v11919_v25 }
  0x5f   :  { %9909 = vmatprep.mubr.f32.mxu0 %v12001_v61 }
  0x60   :  { %9985 = vmatmul.mubr.f32.gmra.mrb[2].mxu1 %v11984_v54 }
  0x61   :  { %9987 = vmatprep.mubr.f32.mxu1 %v12001_v61 }
  0x62   :  { %9910 = vmatmul.mubr.f32.gmra.mrb[4].mxu0 %v12016_v6 }
  0x63   :  { %9916 = vmatprep.mubr.f32.mxu0 %v11908_v21 }
  0x64   :  { %9988 = vmatmul.mubr.f32.gmra.mrb[4].mxu1 %v12016_v6 }
  0x65   :  { %9994 = vmatprep.mubr.f32.mxu1 %v11908_v21 }
  0x66   :  { %9917 = vmatmul.mubr.f32.vlgmr.msra.gmra.mrb[0].mxu0 %v11916_v24 }
  0x67   :  { %9919 = vmatprep.mubr.f32.mxu0 %v11945_v36  ;;  %10987 = vmatpush3.bf16.msra.mxu0 %v11905_v19  ;;  %v2337_v19 = vsub.f32 %v12096_v59, %v2336_v8  ;;  %v12214_v59 = vsub.f32 %v67_v45, %v83_v50  ;;  %v11068_v45 = vpack.c.bf16 %v12231_v14, %v12228_v11 }
  0x68   :  { %9995 = vmatmul.mubr.f32.vlgmr.msra.gmra.mrb[0].mxu1 %v11916_v24  ;;  %11013 = vmatprep.subr.bf16.mxu0 %v12103_v63 }
  0x69   :  { %9997 = vmatprep.mubr.f32.mxu1 %v11945_v36  ;;  %11011 = vmatpush3.bf16.msra.mxu1 %v11919_v25  ;;  %v2338_v25 = vand.u32 4294901760, %v2337_v19  ;;  %13901 = vst [vmem:[#allocation24_spill] sm:$0xff] %v12214_v59  ;;  %v3555_v8 = vand.u32 4294901760, %v12214_v59 }
  0x6a   :  { %9920 = vmatmul.mubr.f32.gmra.mrb[2].mxu0 %v11954_v39  ;;  %11037 = vmatprep.subr.bf16.mxu1 %v12109_v5 }
  0x6b   :  { %9922 = vmatprep.mubr.f32.mxu0 %v11973_v47  ;;  %v11040_v23 = vpack.c.bf16 %v2345_v20, %v2338_v25  ;;  %v12236_v19 = vsub.f32 %v12214_v59, %v3555_v8  ;;  %v3017_v25 = vand.u32 4294901760, %v12231_v14  ;;  %v12249_v20 = vpack.c.bf16 %v3558_v9, %v3555_v8  ;;  %v85_v8 = vld [vmem:[#allocation8 + $0x60] sm:$0xff]  ;;  %v86_v9 = vld [vmem:[#allocation8 + $0x68] sm:$0xff] }
  0x6c   :  { %9998 = vmatmul.mubr.f32.gmra.mrb[2].mxu1 %v11954_v39 }
  0x6d   :  { %10000 = vmatprep.mubr.f32.mxu1 %v11973_v47  ;;  %v11092_v48 = vpack.c.bf16 %v12239_v15, %v12236_v19  ;;  %v11076_v50 = vpack.c.bf16 %v3017_v25, %v3010_v18 }
  0x6e   :  { %9923 = vmatmul.mubr.f32.gmra.mrb[4].mxu0 %v11989_v56 }
  0x6f   :  { %9929 = vmatprep.mubr.f32.mxu0 %v11908_v21 }
  0x70   :  { %10001 = vmatmul.mubr.f32.gmra.mrb[4].mxu1 %v11989_v56 }
  0x71   :  { %10007 = vmatprep.mubr.f32.mxu1 %v11908_v21 }
  0x72   :  { %9930 = vmatmul.mubr.f32.vlgmr.msra.gmra.mrb[0].mxu0 %v11916_v24 }
  0x73   :  { %9932 = vmatprep.mubr.f32.mxu0 %v11945_v36  ;;  %11015 = vmatpush3.bf16.msra.mxu0 %v12103_v63 }
  0x74   :  { %10008 = vmatmul.mubr.f32.vlgmr.msra.gmra.mrb[0].mxu1 %v11916_v24  ;;  %11017 = vmatprep.subr.bf16.mxu0 %v11016_v22 }
  0x75   :  { %10010 = vmatprep.mubr.f32.mxu1 %v11945_v36  ;;  %11039 = vmatpush3.bf16.msra.mxu1 %v12109_v5 }
  0x76   :  { %9933 = vmatmul.mubr.f32.gmra.mrb[2].mxu0 %v11954_v39  ;;  %11041 = vmatprep.subr.bf16.mxu1 %v11040_v23 }
  0x77   :  { %9935 = vmatprep.mubr.f32.mxu0 %v11973_v47 }
  0x78   :  { %10011 = vmatmul.mubr.f32.gmra.mrb[2].mxu1 %v11954_v39 }
  0x79   :  { %10013 = vmatprep.mubr.f32.mxu1 %v11973_v47 }
  0x7a   :  { %9936 = vmatmul.mubr.f32.gmra.mrb[4].mxu0 %v11989_v56 }
  0x7b   :  { %10020 = vmatprep.mubr.f32.mxu0 %v11976_v49 }
  0x7c   :  { %10014 = vmatmul.mubr.f32.gmra.mrb[4].mxu1 %v11989_v56 }
  0x7d   :  { %10098 = vmatprep.mubr.f32.mxu1 %v11976_v49 }
  0x7e   :  { %10021 = vmatmul.mubr.f32.vlgmr.msra.gmra.mrb[6].mxu0 %v11981_v53 }
  0x7f   :  { %10023 = vmatprep.mubr.f32.mxu0 %v12007_v0  ;;  %11019 = vmatpush3.bf16.msra.mxu0 %v11016_v22  ;;  %v3684_v22 = vand.u32 4294901760, %v12236_v19 }
  0x80   :  { %10099 = vmatmul.mubr.f32.vlgmr.msra.gmra.mrb[6].mxu1 %v11981_v53  ;;  %11021 = vmatprep.subr.bf16.mxu0 %v11020_v27 }
  0x81   :  { %10101 = vmatprep.mubr.f32.mxu1 %v12007_v0  ;;  %11043 = vmatpush3.bf16.msra.mxu1 %v11040_v23  ;;  %v3691_v23 = vand.u32 4294901760, %v12239_v15 }
  0x82   :  { %10024 = vmatmul.mubr.f32.gmra.mrb[8].mxu0 %v12011_v3  ;;  %11045 = vmatprep.subr.bf16.mxu1 %v11044_v28 }
  0x83   :  { %10026 = vmatprep.mubr.f32.mxu0 %v12022_v10  ;;  %v11100_v51 = vpack.c.bf16 %v3691_v23, %v3684_v22 }
  0x84   :  { %10102 = vmatmul.mubr.f32.gmra.mrb[8].mxu1 %v12011_v3 }
  0x85   :  { %10104 = vmatprep.mubr.f32.mxu1 %v12022_v10 }
  0x86   :  { %10027 = vmatmul.mubr.f32.gmra.mrb[10].mxu0 %v12028_v16 }
  0x87   :  { %10033 = vmatprep.mubr.f32.mxu0 %v11908_v21 }
  0x88   :  { %10105 = vmatmul.mubr.f32.gmra.mrb[10].mxu1 %v12028_v16 }
  0x89   :  { %10111 = vmatprep.mubr.f32.mxu1 %v11908_v21 }
  0x8a   :  { %10034 = vmatmul.mubr.f32.vlgmr.msra.gmra.mrb[6].mxu0 %v11916_v24 }
  0x8b   :  { %10036 = vmatprep.mubr.f32.mxu0 %v11945_v36  ;;  %11023 = vmatpush3.bf16.msra.mxu0 %v11020_v27  ;;  %v3011_v27 = vsub.f32 %v12228_v11, %v3010_v18  ;;  %v71_v11 = vld [vmem:[#allocation5 + $0x70] sm:$0xff]  ;;  %v12347_v18 = vsub.f32 %v69_v1, %v85_v8 }
  0x8c   :  { %10112 = vmatmul.mubr.f32.vlgmr.msra.gmra.mrb[6].mxu1 %v11916_v24  ;;  %11025 = vmatprep.subr.bf16.mxu0 %v12103_v63 }
  0x8d   :  { %10114 = vmatprep.mubr.f32.mxu1 %v11945_v36  ;;  %11047 = vmatpush3.bf16.msra.mxu1 %v11044_v28  ;;  %v3018_v28 = vsub.f32 %v12231_v14, %v3017_v25  ;;  %v72_v14 = vld [vmem:[#allocation5 + $0x78] sm:$0xff]  ;;  %13903 = vst [vmem:[#allocation26_spill] sm:$0xff] %v12347_v18  ;;  %v12349_v25 = vsub.f32 %v70_v2, %v86_v9 }
  0x8e   :  { %10037 = vmatmul.mubr.f32.gmra.mrb[8].mxu0 %v11954_v39  ;;  %11049 = vmatprep.subr.bf16.mxu1 %v12109_v5 }
  0x8f   :  { %10039 = vmatprep.mubr.f32.mxu0 %v11973_v47  ;;  %v3019_v32 = vand.u32 4294901760, %v3018_v28  ;;  %13904 = vst [vmem:[#allocation27_spill] sm:$0xff] %v12349_v25  ;;  %v4232_v28 = vand.u32 4294901760, %v12349_v25 }
  0x90   :  { %10115 = vmatmul.mubr.f32.gmra.mrb[8].mxu1 %v11954_v39 }
  0x91   :  { %10117 = vmatprep.mubr.f32.mxu1 %v11973_v47 }
  0x92   :  { %10040 = vmatmul.mubr.f32.gmra.mrb[10].mxu0 %v11989_v56 }
  0x93   :  { %10046 = vmatprep.mubr.f32.mxu0 %v11922_v26 }
  0x94   :  { %10118 = vmatmul.mubr.f32.gmra.mrb[10].mxu1 %v11989_v56 }
  0x95   :  { %10124 = vmatprep.mubr.f32.mxu1 %v11922_v26 }
  0x96   :  { %10047 = vmatmul.mubr.f32.vlgmr.msra.gmra.mrb[6].mxu0 %v11935_v30 }
  0x97   :  { %10049 = vmatprep.mubr.f32.mxu0 %v11966_v44  ;;  %11027 = vmatpush3.bf16.msra.mxu0 %v12103_v63 }
  0x98   :  { %10125 = vmatmul.mubr.f32.vlgmr.msra.gmra.mrb[6].mxu1 %v11935_v30  ;;  %11029 = vmatprep.subr.bf16.mxu0 %v11028_v29 }
  0x99   :  { %10127 = vmatprep.mubr.f32.mxu1 %v11966_v44  ;;  %11051 = vmatpush3.bf16.msra.mxu1 %v12109_v5 }
  0x9a   :  { %10050 = vmatmul.mubr.f32.gmra.mrb[8].mxu0 %v11971_v46  ;;  %11053 = vmatprep.subr.bf16.mxu1 %v11052_v31 }
  0x9b   :  { %10052 = vmatprep.mubr.f32.mxu0 %v11987_v55 }
  0x9c   :  { %10128 = vmatmul.mubr.f32.gmra.mrb[8].mxu1 %v11971_v46 }
  0x9d   :  { %10130 = vmatprep.mubr.f32.mxu1 %v11987_v55 }
  0x9e   :  { %10053 = vmatmul.mubr.f32.gmra.mrb[10].mxu0 %v12004_v62 }
  0x9f   :  { %10059 = vmatprep.mubr.f32.mxu0 %v11941_v33 }
  0xa0   :  { %10131 = vmatmul.mubr.f32.gmra.mrb[10].mxu1 %v12004_v62 }
  0xa1   :  { %10137 = vmatprep.mubr.f32.mxu1 %v11941_v33 }
  0xa2   :  { %10060 = vmatmul.mubr.f32.vlgmr.msra.gmra.mrb[6].mxu0 %v11952_v38 }
  0xa3   :  { %10062 = vmatprep.mubr.f32.mxu0 %v11979_v52  ;;  %11031 = vmatpush3.bf16.msra.mxu0 %v11028_v29  ;;  %v3692_v29 = vsub.f32 %v12239_v15, %v3691_v23  ;;  %v88_v15 = vld [vmem:[#allocation8 + $0x78] sm:$0xff] }
  0xa4   :  { %10138 = vmatmul.mubr.f32.vlgmr.msra.gmra.mrb[6].mxu1 %v11952_v38  ;;  %11033 = vmatprep.subr.bf16.mxu0 %v12103_v63  ;;  %v12356_v23 = vsub.f32 %v72_v14, %v88_v15 }
  0xa5   :  { %10140 = vmatprep.mubr.f32.mxu1 %v11979_v52  ;;  %11055 = vmatpush3.bf16.msra.mxu1 %v11052_v31  ;;  %v3012_v31 = vand.u32 4294901760, %v3011_v27  ;;  %v3693_v34 = vand.u32 4294901760, %v3692_v29  ;;  %v4229_v27 = vand.u32 4294901760, %v12347_v18 }
  0xa6   :  { %10063 = vmatmul.mubr.f32.gmra.mrb[8].mxu0 %v11984_v54  ;;  %11057 = vmatprep.subr.bf16.mxu1 %v12109_v5  ;;  %13906 = vst [vmem:[#allocation29_spill] sm:$0xff] %v12356_v23  ;;  %v4906_v29 = vand.u32 4294901760, %v12356_v23 }
  0xa7   :  { %10065 = vmatprep.mubr.f32.mxu0 %v12001_v61  ;;  %v11064_v35 = vpack.c.bf16 %v3019_v32, %v3012_v31  ;;  %v12368_v31 = vsub.f32 %v12347_v18, %v4229_v27  ;;  %v12371_v32 = vsub.f32 %v12349_v25, %v4232_v28 }
  0xa8   :  { %10141 = vmatmul.mubr.f32.gmra.mrb[8].mxu1 %v11984_v54 }
  0xa9   :  { %10143 = vmatprep.mubr.f32.mxu1 %v12001_v61 }
  0xaa   :  { %10066 = vmatmul.mubr.f32.gmra.mrb[10].mxu0 %v12016_v6 }
  0xab   :  { %10072 = vmatprep.mubr.f32.mxu0 %v11908_v21 }
  0xac   :  { %10144 = vmatmul.mubr.f32.gmra.mrb[10].mxu1 %v12016_v6 }
  0xad   :  { %10150 = vmatprep.mubr.f32.mxu1 %v11908_v21 }
  0xae   :  { %10073 = vmatmul.mubr.f32.vlgmr.msra.gmra.mrb[6].mxu0 %v11916_v24 }
  0xaf   :  { %10075 = vmatprep.mubr.f32.mxu0 %v11945_v36  ;;  %11035 = vmatpush3.bf16.msra.mxu0 %v12103_v63  ;;  %v3685_v63 = vsub.f32 %v12236_v19, %v3684_v22  ;;  %v87_v19 = vld [vmem:[#allocation8 + $0x70] sm:$0xff] }
  0xb0   :  { %10151 = vmatmul.mubr.f32.vlgmr.msra.gmra.mrb[6].mxu1 %v11916_v24  ;;  %11061 = vmatprep.subr.bf16.mxu0 %v12243_v17  ;;  %v12354_v22 = vsub.f32 %v71_v11, %v87_v19 }
  0xb1   :  { %10153 = vmatprep.mubr.f32.mxu1 %v11945_v36  ;;  %11059 = vmatpush3.bf16.msra.mxu1 %v12109_v5  ;;  %v3686_v5 = vand.u32 4294901760, %v3685_v63 }
  0xb2   :  { %10076 = vmatmul.mubr.f32.gmra.mrb[8].mxu0 %v11954_v39  ;;  %11085 = vmatprep.subr.bf16.mxu1 %v12249_v20  ;;  %13905 = vst [vmem:[#allocation28_spill] sm:$0xff] %v12354_v22  ;;  %v4903_v63 = vand.u32 4294901760, %v12354_v22 }
  0xb3   :  { %10078 = vmatprep.mubr.f32.mxu0 %v11973_v47  ;;  %v11088_v37 = vpack.c.bf16 %v3693_v34, %v3686_v5  ;;  %v12379_v34 = vsub.f32 %v12356_v23, %v4906_v29 }
  0xb4   :  { %10154 = vmatmul.mubr.f32.gmra.mrb[8].mxu1 %v11954_v39  ;;  %v12376_v5 = vsub.f32 %v12354_v22, %v4903_v63 }
  0xb5   :  { %10156 = vmatprep.mubr.f32.mxu1 %v11973_v47 }
  0xb6   :  { %10079 = vmatmul.mubr.f32.gmra.mrb[10].mxu0 %v11989_v56 }
  0xb7   :  { %10085 = vmatprep.mubr.f32.mxu0 %v11908_v21 }
  0xb8   :  { %10157 = vmatmul.mubr.f32.gmra.mrb[10].mxu1 %v11989_v56 }
  0xb9   :  { %10163 = vmatprep.mubr.f32.mxu1 %v11908_v21 }
  0xba   :  { %10086 = vmatmul.mubr.f32.vlgmr.msra.gmra.mrb[6].mxu0 %v11916_v24 }
  0xbb   :  { %10088 = vmatprep.mubr.f32.mxu0 %v11945_v36  ;;  %11063 = vmatpush3.bf16.msra.mxu0 %v12243_v17 }
  0xbc   :  { %10164 = vmatmul.mubr.f32.vlgmr.msra.gmra.mrb[6].mxu1 %v11916_v24  ;;  %11065 = vmatprep.subr.bf16.mxu0 %v11064_v35 }
  0xbd   :  { %10166 = vmatprep.mubr.f32.mxu1 %v11945_v36  ;;  %11087 = vmatpush3.bf16.msra.mxu1 %v12249_v20 }
  0xbe   :  { %10089 = vmatmul.mubr.f32.gmra.mrb[8].mxu0 %v11954_v39  ;;  %11089 = vmatprep.subr.bf16.mxu1 %v11088_v37 }
  0xbf   :  { %10091 = vmatprep.mubr.f32.mxu0 %v11973_v47 }
  0xc0   :  { %10167 = vmatmul.mubr.f32.gmra.mrb[8].mxu1 %v11954_v39 }
  0xc1   :  { %10169 = vmatprep.mubr.f32.mxu1 %v11973_v47 }
  0xc2   :  { %10092 = vmatmul.mubr.f32.gmra.mrb[10].mxu0 %v11989_v56 }
  0xc3   :  { %10176 = vmatprep.mubr.f32.mxu0 %v11976_v49 }
  0xc4   :  { %10170 = vmatmul.mubr.f32.gmra.mrb[10].mxu1 %v11989_v56 }
  0xc5   :  { %10254 = vmatprep.mubr.f32.mxu1 %v11976_v49 }
  0xc6   :  { %10177 = vmatmul.mubr.f32.vlgmr.msra.gmra.mrb[12].mxu0 %v11981_v53 }
  0xc7   :  { %10179 = vmatprep.mubr.f32.mxu0 %v12007_v0  ;;  %11067 = vmatpush3.bf16.msra.mxu0 %v11064_v35  ;;  %v12383_v35 = vpack.c.bf16 %v4232_v28, %v4229_v27  ;;  %v11116_v27 = vpack.c.bf16 %v12371_v32, %v12368_v31  ;;  %v11140_v28 = vpack.c.bf16 %v12379_v34, %v12376_v5 }
  0xc8   :  { %10255 = vmatmul.mubr.f32.vlgmr.msra.gmra.mrb[12].mxu1 %v11981_v53  ;;  %11069 = vmatprep.subr.bf16.mxu0 %v11068_v45 }
  0xc9   :  { %10257 = vmatprep.mubr.f32.mxu1 %v12007_v0  ;;  %11091 = vmatpush3.bf16.msra.mxu1 %v11088_v37  ;;  %v4358_v37 = vand.u32 4294901760, %v12368_v31 }
  0xca   :  { %10180 = vmatmul.mubr.f32.gmra.mrb[14].mxu0 %v12011_v3  ;;  %11093 = vmatprep.subr.bf16.mxu1 %v11092_v48 }
  0xcb   :  { %10182 = vmatprep.mubr.f32.mxu0 %v12022_v10  ;;  %v4359_v1 = vsub.f32 %v12368_v31, %v4358_v37 }
  0xcc   :  { %10258 = vmatmul.mubr.f32.gmra.mrb[14].mxu1 %v12011_v3 }
  0xcd   :  { %10260 = vmatprep.mubr.f32.mxu1 %v12022_v10  ;;  %v4360_v9 = vand.u32 4294901760, %v4359_v1 }
  0xce   :  { %10183 = vmatmul.mubr.f32.gmra.mrb[16].mxu0 %v12028_v16 }
  0xcf   :  { %10189 = vmatprep.mubr.f32.mxu0 %v11908_v21 }
  0xd0   :  { %10261 = vmatmul.mubr.f32.gmra.mrb[16].mxu1 %v12028_v16 }
  0xd1   :  { %10267 = vmatprep.mubr.f32.mxu1 %v11908_v21 }
  0xd2   :  { %10190 = vmatmul.mubr.f32.vlgmr.msra.gmra.mrb[12].mxu0 %v11916_v24 }
  0xd3   :  { %10192 = vmatprep.mubr.f32.mxu0 %v11945_v36  ;;  %11071 = vmatpush3.bf16.msra.mxu0 %v11068_v45  ;;  %v4365_v45 = vand.u32 4294901760, %v12371_v32 }
  0xd4   :  { %10268 = vmatmul.mubr.f32.vlgmr.msra.gmra.mrb[12].mxu1 %v11916_v24  ;;  %11073 = vmatprep.subr.bf16.mxu0 %v12243_v17 }
  0xd5   :  { %10270 = vmatprep.mubr.f32.mxu1 %v11945_v36  ;;  %11095 = vmatpush3.bf16.msra.mxu1 %v11092_v48  ;;  %v12389_v48 = vpack.c.bf16 %v4906_v29, %v4903_v63  ;;  %v4366_v2 = vsub.f32 %v12371_v32, %v4365_v45 }
  0xd6   :  { %10193 = vmatmul.mubr.f32.gmra.mrb[14].mxu0 %v11954_v39  ;;  %11097 = vmatprep.subr.bf16.mxu1 %v12249_v20 }
  0xd7   :  { %10195 = vmatprep.mubr.f32.mxu0 %v11973_v47  ;;  %v4367_v11 = vand.u32 4294901760, %v4366_v2 }
  0xd8   :  { %10271 = vmatmul.mubr.f32.gmra.mrb[14].mxu1 %v11954_v39 }
  0xd9   :  { %10273 = vmatprep.mubr.f32.mxu1 %v11973_v47  ;;  %v11112_v19 = vpack.c.bf16 %v4367_v11, %v4360_v9 }
  0xda   :  { %10196 = vmatmul.mubr.f32.gmra.mrb[16].mxu0 %v11989_v56 }
  0xdb   :  { %10202 = vmatprep.mubr.f32.mxu0 %v11922_v26 }
  0xdc   :  { %10274 = vmatmul.mubr.f32.gmra.mrb[16].mxu1 %v11989_v56 }
  0xdd   :  { %10280 = vmatprep.mubr.f32.mxu1 %v11922_v26 }
  0xde   :  { %10203 = vmatmul.mubr.f32.vlgmr.msra.gmra.mrb[12].mxu0 %v11935_v30 }
  0xdf   :  { %10205 = vmatprep.mubr.f32.mxu0 %v11966_v44  ;;  %11075 = vmatpush3.bf16.msra.mxu0 %v12243_v17 }
  0xe0   :  { %10281 = vmatmul.mubr.f32.vlgmr.msra.gmra.mrb[12].mxu1 %v11935_v30  ;;  %11077 = vmatprep.subr.bf16.mxu0 %v11076_v50 }
  0xe1   :  { %10283 = vmatprep.mubr.f32.mxu1 %v11966_v44  ;;  %11099 = vmatpush3.bf16.msra.mxu1 %v12249_v20 }
  0xe2   :  { %10206 = vmatmul.mubr.f32.gmra.mrb[14].mxu0 %v11971_v46  ;;  %11101 = vmatprep.subr.bf16.mxu1 %v11100_v51 }
  0xe3   :  { %10208 = vmatprep.mubr.f32.mxu0 %v11987_v55 }
  0xe4   :  { %10284 = vmatmul.mubr.f32.gmra.mrb[14].mxu1 %v11971_v46 }
  0xe5   :  { %10286 = vmatprep.mubr.f32.mxu1 %v11987_v55 }
  0xe6   :  { %10209 = vmatmul.mubr.f32.gmra.mrb[16].mxu0 %v12004_v62 }
  0xe7   :  { %10215 = vmatprep.mubr.f32.mxu0 %v11941_v33 }
  0xe8   :  { %10287 = vmatmul.mubr.f32.gmra.mrb[16].mxu1 %v12004_v62 }
  0xe9   :  { %10293 = vmatprep.mubr.f32.mxu1 %v11941_v33 }
  0xea   :  { %10216 = vmatmul.mubr.f32.vlgmr.msra.gmra.mrb[12].mxu0 %v11952_v38 }
  0xeb   :  { %10218 = vmatprep.mubr.f32.mxu0 %v11979_v52  ;;  %11079 = vmatpush3.bf16.msra.mxu0 %v11076_v50  ;;  %v5032_v50 = vand.u32 4294901760, %v12376_v5 }
  0xec   :  { %10294 = vmatmul.mubr.f32.vlgmr.msra.gmra.mrb[12].mxu1 %v11952_v38  ;;  %11081 = vmatprep.subr.bf16.mxu0 %v12243_v17 }
  0xed   :  { %10296 = vmatprep.mubr.f32.mxu1 %v11979_v52  ;;  %11103 = vmatpush3.bf16.msra.mxu1 %v11100_v51  ;;  %v5039_v51 = vand.u32 4294901760, %v12379_v34 }
  0xee   :  { %10219 = vmatmul.mubr.f32.gmra.mrb[14].mxu0 %v11984_v54  ;;  %11105 = vmatprep.subr.bf16.mxu1 %v12249_v20 }
  0xef   :  { %10221 = vmatprep.mubr.f32.mxu0 %v12001_v61  ;;  %v5040_v8 = vsub.f32 %v12379_v34, %v5039_v51 }
  0xf0   :  { %10297 = vmatmul.mubr.f32.gmra.mrb[14].mxu1 %v11984_v54 }
  0xf1   :  { %10299 = vmatprep.mubr.f32.mxu1 %v12001_v61  ;;  %v5041_v14 = vand.u32 4294901760, %v5040_v8  ;;  %v5586_v8 = vsel %vm53_vm0, %v11896_v13, 0 }
  0xf2   :  { %10222 = vmatmul.mubr.f32.gmra.mrb[16].mxu0 %v12016_v6 }
  0xf3   :  { %10228 = vmatprep.mubr.f32.mxu0 %v11908_v21 }
  0xf4   :  { %10300 = vmatmul.mubr.f32.gmra.mrb[16].mxu1 %v12016_v6 }
  0xf5   :  { %10306 = vmatprep.mubr.f32.mxu1 %v11908_v21 }
  0xf6   :  { %10229 = vmatmul.mubr.f32.vlgmr.msra.gmra.mrb[12].mxu0 %v11916_v24 }
  0xf7   :  { %10231 = vmatprep.mubr.f32.mxu0 %v11945_v36  ;;  %11083 = vmatpush3.bf16.msra.mxu0 %v12243_v17  ;;  %v5033_v17 = vsub.f32 %v12376_v5, %v5032_v50 }
  0xf8   :  { %10307 = vmatmul.mubr.f32.vlgmr.msra.gmra.mrb[12].mxu1 %v11916_v24  ;;  %11109 = vmatprep.subr.bf16.mxu0 %v12383_v35 }
  0xf9   :  { %10309 = vmatprep.mubr.f32.mxu1 %v11945_v36  ;;  %11107 = vmatpush3.bf16.msra.mxu1 %v12249_v20  ;;  %v5034_v20 = vand.u32 4294901760, %v5033_v17 }
  0xfa   :  { %10232 = vmatmul.mubr.f32.gmra.mrb[14].mxu0 %v11954_v39  ;;  %11133 = vmatprep.subr.bf16.mxu1 %v12389_v48 }
  0xfb   :  { %10234 = vmatprep.mubr.f32.mxu0 %v11973_v47  ;;  %v11136_v15 = vpack.c.bf16 %v5041_v14, %v5034_v20  ;;  %v5589_v14 = vsel %vm53_vm0, %v12067_v40, 0 }
  0xfc   :  { %10310 = vmatmul.mubr.f32.gmra.mrb[14].mxu1 %v11954_v39 }
  0xfd   :  { %10312 = vmatprep.mubr.f32.mxu1 %v11973_v47 }
  0xfe   :  { %10235 = vmatmul.mubr.f32.gmra.mrb[16].mxu0 %v11989_v56 }
  0xff   :  { %10241 = vmatprep.mubr.f32.mxu0 %v11908_v21 }
 0x100   :  { %10313 = vmatmul.mubr.f32.gmra.mrb[16].mxu1 %v11989_v56 }
 0x101   :  { %10319 = vmatprep.mubr.f32.mxu1 %v11908_v21 }
 0x102   :  { %10242 = vmatmul.mubr.f32.vlgmr.msra.gmra.mrb[12].mxu0 %v11916_v24 }
 0x103   :  { %10244 = vmatprep.mubr.f32.mxu0 %v11945_v36  ;;  %11111 = vmatpush3.bf16.msra.mxu0 %v12383_v35 }
 0x104   :  { %10320 = vmatmul.mubr.f32.vlgmr.msra.gmra.mrb[12].mxu1 %v11916_v24  ;;  %11113 = vmatprep.subr.bf16.mxu0 %v11112_v19 }
 0x105   :  { %10322 = vmatprep.mubr.f32.mxu1 %v11945_v36  ;;  %11135 = vmatpush3.bf16.msra.mxu1 %v12389_v48 }
 0x106   :  { %10245 = vmatmul.mubr.f32.gmra.mrb[14].mxu0 %v11954_v39  ;;  %11137 = vmatprep.subr.bf16.mxu1 %v11136_v15 }
 0x107   :  { %10247 = vmatprep.mubr.f32.mxu0 %v11973_v47 }
 0x108   :  { %10323 = vmatmul.mubr.f32.gmra.mrb[14].mxu1 %v11954_v39 }
 0x109   :  { %10325 = vmatprep.mubr.f32.mxu1 %v11973_v47 }
 0x10a   :  { %10248 = vmatmul.mubr.f32.gmra.mrb[16].mxu0 %v11989_v56 }
 0x10b   :  { %10332 = vmatprep.mubr.f32.mxu0 %v11976_v49 }
 0x10c   :  { %10326 = vmatmul.mubr.f32.gmra.mrb[16].mxu1 %v11989_v56 }
 0x10d   :  { %10410 = vmatprep.mubr.f32.mxu1 %v11976_v49  ;;  %v11124_v49 = vpack.c.bf16 %v4365_v45, %v4358_v37 }
 0x10e   :  { %10333 = vmatmul.mubr.f32.vlgmr.msra.gmra.mrb[18].mxu0 %v11981_v53 }
 0x10f   :  { %10335 = vmatprep.mubr.f32.mxu0 %v12007_v0  ;;  %11115 = vmatpush3.bf16.msra.mxu0 %v11112_v19 }
 0x110   :  { %10411 = vmatmul.mubr.f32.vlgmr.msra.gmra.mrb[18].mxu1 %v11981_v53  ;;  %11117 = vmatprep.subr.bf16.mxu0 %v11116_v27  ;;  %v12471_v53 = vld [vmem:[%s13799_s4] sm:$0xff] }
 0x111   :  { %10413 = vmatprep.mubr.f32.mxu1 %v12007_v0  ;;  %11139 = vmatpush3.bf16.msra.mxu1 %v11136_v15  ;;  %v12476_v0 = vld [vmem:[%s13799_s4 + $0x8] sm:$0xff] }
 0x112   :  { %10336 = vmatmul.mubr.f32.gmra.mrb[20].mxu0 %v12011_v3  ;;  %11141 = vmatprep.subr.bf16.mxu1 %v11140_v28 }
 0x113   :  { %10338 = vmatprep.mubr.f32.mxu0 %v12022_v10 }
 0x114   :  { %10414 = vmatmul.mubr.f32.gmra.mrb[20].mxu1 %v12011_v3  ;;  %v11148_v3 = vpack.c.bf16 %v5039_v51, %v5032_v50  ;;  %v5583_v51 = vsel %vm53_vm0, %v11894_v12, 0 }
 0x115   :  { %10416 = vmatprep.mubr.f32.mxu1 %v12022_v10  ;;  %v13806_v10 = vand.u32 4294901760, %v12476_v0  ;;  %v12576_v17 = vand.u32 4294901760, %v5583_v51 }
 0x116   :  { %10339 = vmatmul.mubr.f32.gmra.mrb[22].mxu0 %v12028_v16 }
 0x117   :  { %10345 = vmatprep.mubr.f32.mxu0 %v11908_v21 }
 0x118   :  { %10417 = vmatmul.mubr.f32.gmra.mrb[22].mxu1 %v12028_v16  ;;  %v12501_v16 = vsub.f32 %v12476_v0, %v13806_v10 }
 0x119   :  { %10423 = vmatprep.mubr.f32.mxu1 %v11908_v21 }
 0x11a   :  { %10346 = vmatmul.mubr.f32.vlgmr.msra.gmra.mrb[18].mxu0 %v11916_v24  ;;  %13908 = vst [vmem:[#allocation31_spill] sm:$0xff] %v12501_v16 }
 0x11b   :  { %10348 = vmatprep.mubr.f32.mxu0 %v11945_v36  ;;  %11119 = vmatpush3.bf16.msra.mxu0 %v11116_v27  ;;  %v12592_v27 = vand.u32 4294901760, %v5586_v8 }
 0x11c   :  { %10424 = vmatmul.mubr.f32.vlgmr.msra.gmra.mrb[18].mxu1 %v11916_v24  ;;  %11121 = vmatprep.subr.bf16.mxu0 %v12383_v35 }
 0x11d   :  { %10426 = vmatprep.mubr.f32.mxu1 %v11945_v36  ;;  %11143 = vmatpush3.bf16.msra.mxu1 %v11140_v28  ;;  %v5592_v28 = vsel %vm53_vm0, %v12069_v41, 0 }
 0x11e   :  { %10349 = vmatmul.mubr.f32.gmra.mrb[20].mxu0 %v11954_v39  ;;  %11145 = vmatprep.subr.bf16.mxu1 %v12389_v48 }
 0x11f   :  { %10351 = vmatprep.mubr.f32.mxu0 %v11973_v47 }
 0x120   :  { %10427 = vmatmul.mubr.f32.gmra.mrb[20].mxu1 %v11954_v39 }
 0x121   :  { %10429 = vmatprep.mubr.f32.mxu1 %v11973_v47 }
 0x122   :  { %10352 = vmatmul.mubr.f32.gmra.mrb[22].mxu0 %v11989_v56 }
 0x123   :  { %10358 = vmatprep.mubr.f32.mxu0 %v11922_v26 }
 0x124   :  { %10430 = vmatmul.mubr.f32.gmra.mrb[22].mxu1 %v11989_v56 }
 0x125   :  { %10436 = vmatprep.mubr.f32.mxu1 %v11922_v26  ;;  %v13807_v26 = vand.u32 4294901760, %v12471_v53 }
 0x126   :  { %10359 = vmatmul.mubr.f32.vlgmr.msra.gmra.mrb[18].mxu0 %v11935_v30 }
 0x127   :  { %10361 = vmatprep.mubr.f32.mxu0 %v11966_v44  ;;  %11123 = vmatpush3.bf16.msra.mxu0 %v12383_v35 }
 0x128   :  { %10437 = vmatmul.mubr.f32.vlgmr.msra.gmra.mrb[18].mxu1 %v11935_v30  ;;  %11125 = vmatprep.subr.bf16.mxu0 %v11124_v49  ;;  %v12496_v30 = vsub.f32 %v12471_v53, %v13807_v26 }
 0x129   :  { %10439 = vmatprep.mubr.f32.mxu1 %v11966_v44  ;;  %11147 = vmatpush3.bf16.msra.mxu1 %v12389_v48 }
 0x12a   :  { %10362 = vmatmul.mubr.f32.gmra.mrb[20].mxu0 %v11971_v46  ;;  %11149 = vmatprep.subr.bf16.mxu1 %v11148_v3  ;;  %13907 = vst [vmem:[#allocation30_spill] sm:$0xff] %v12496_v30  ;;  %v13802_v44 = vand.u32 4294901760, %v12496_v30 }
 0x12b   :  { %10364 = vmatprep.mubr.f32.mxu0 %v11987_v55 }
 0x12c   :  { %10440 = vmatmul.mubr.f32.gmra.mrb[20].mxu1 %v11971_v46  ;;  %v13801_v46 = vand.u32 4294901760, %v12501_v16 }
 0x12d   :  { %10442 = vmatprep.mubr.f32.mxu1 %v11987_v55  ;;  %v7281_v55 = vsub.f32 %v12496_v30, %v13802_v44 }
 0x12e   :  { %10365 = vmatmul.mubr.f32.gmra.mrb[22].mxu0 %v12004_v62 }
 0x12f   :  { %10371 = vmatprep.mubr.f32.mxu0 %v11941_v33 }
 0x130   :  { %10443 = vmatmul.mubr.f32.gmra.mrb[22].mxu1 %v12004_v62  ;;  %v7288_v62 = vsub.f32 %v12501_v16, %v13801_v46 }
 0x131   :  { %10449 = vmatprep.mubr.f32.mxu1 %v11941_v33  ;;  %v105_v33 = vld [vmem:[%s13798_s3] sm:$0xff] }
 0x132   :  { %10372 = vmatmul.mubr.f32.vlgmr.msra.gmra.mrb[18].mxu0 %v11952_v38  ;;  %v5625_v63 = vand.u32 4294901760, %v105_v33  ;;  %v7289_v31 = vand.u32 4294901760, %v7288_v62  ;;  %v12605_v62 = vpack.c.bf16 %v12501_v16, %v12496_v30 }
 0x133   :  { %10374 = vmatprep.mubr.f32.mxu0 %v11979_v52  ;;  %11127 = vmatpush3.bf16.msra.mxu0 %v11124_v49 }
 0x134   :  { %10450 = vmatmul.mubr.f32.vlgmr.msra.gmra.mrb[18].mxu1 %v11952_v38  ;;  %11129 = vmatprep.subr.bf16.mxu0 %v12383_v35  ;;  %v106_v38 = vld [vmem:[%s13798_s3 + $0x8] sm:$0xff]  ;;  %v12533_v32 = vsub.f32 %v105_v33, %v5625_v63  ;;  %s11829_s3 = smov 16  }
 0x135   :  { %10452 = vmatprep.mubr.f32.mxu1 %v11979_v52  ;;  %11151 = vmatpush3.bf16.msra.mxu1 %v11148_v3  ;;  %v5628_v29 = vand.u32 4294901760, %v106_v38  ;;  %v7282_v52 = vand.u32 4294901760, %v7281_v55  ;;  %v12599_v3 = vsub.f32 %v5583_v51, %v12576_v17  ;;  %v5595_v55 = vsel %vm53_vm0, %v12074_v42, 0 }
 0x136   :  { %10375 = vmatmul.mubr.f32.gmra.mrb[20].mxu0 %v11984_v54  ;;  %11153 = vmatprep.subr.bf16.mxu1 %v12389_v48  ;;  %v13805_v37 = vand.u32 4294901760, %v12533_v32  ;;  %v5598_v51 = vsel %vm53_vm0, %v12076_v43, 0  ;;  %v5610_v43 = vsel %vm53_vm0, %v12216_v60, 0 }
 0x137   :  { %10377 = vmatprep.mubr.f32.mxu0 %v12001_v61  ;;  %v12535_v5 = vsub.f32 %v106_v38, %v5628_v29  ;;  %v12539_v34 = vpack.c.bf16 %v7289_v31, %v7282_v52  ;;  %v12608_v38 = vand.u32 4294901760, %v5589_v14  ;;  %v12612_v52 = vand.u32 4294901760, %v5592_v28 }
 0x138   :  { %10453 = vmatmul.mubr.f32.gmra.mrb[20].mxu1 %v11984_v54  ;;  %v5577_v54 = vsel %vm53_vm0, %v11886_v4, 0  ;;  %v5855_v1 = vsub.f32 %v12533_v32, %v13805_v37  ;;  %v12650_v37 = vand.u32 4294901760, %v5598_v51  ;;  %v12735_v13 = vand.u32 4294901760, %v5610_v43 }
 0x139   :  { %10455 = vmatprep.mubr.f32.mxu1 %v12001_v61  ;;  %13909 = vst [vmem:[#allocation32_spill] sm:$0xff] %v12539_v34  ;;  %v12545_v61 = vpack.c.bf16 %v5628_v29, %v5625_v63  ;;  %v13804_v45 = vand.u32 4294901760, %v12535_v5  ;;  %v12555_v50 = vand.u32 4294901760, %v5577_v54  ;;  %v12638_v46 = vsub.f32 %v5589_v14, %v12608_v38 }
 0x13a   :  { %10378 = vmatmul.mubr.f32.gmra.mrb[22].mxu0 %v12016_v6  ;;  %v5856_v19 = vand.u32 4294901760, %v5855_v1  ;;  %v5619_v4 = vsel %vm53_vm0, %v12354_v22, 0 }
 0x13b   :  { %10384 = vmatprep.mubr.f32.mxu0 %v11908_v21  ;;  %v5862_v2 = vsub.f32 %v12535_v5, %v13804_v45  ;;  %v12648_v45 = vsub.f32 %v5592_v28, %v12612_v52 }
 0x13c   :  { %10456 = vmatmul.mubr.f32.gmra.mrb[22].mxu1 %v12016_v6  ;;  %v5580_v6 = vsel %vm53_vm0, %v11888_v7, 0 }
 0x13d   :  { %10462 = vmatprep.mubr.f32.mxu1 %v11908_v21  ;;  %v5863_v15 = vand.u32 4294901760, %v5862_v2  ;;  %v13917_v60 = vand.u32 4294901760, %v12648_v45 }
 0x13e   :  { %10385 = vmatmul.mubr.f32.vlgmr.msra.gmra.mrb[18].mxu0 %v11916_v24 }
 0x13f   :  { %10387 = vmatprep.mubr.f32.mxu0 %v11945_v36  ;;  %11131 = vmatpush3.bf16.msra.mxu0 %v12383_v35  ;;  %v12563_v35 = vand.u32 4294901760, %v5580_v6  ;;  %v12614_v31 = vpack.c.bf16 %v5863_v15, %v5856_v19  ;;  %v13809_v19 = vand.u32 4294901760, %v12599_v3  ;;  %v5601_v15 = vsel %vm53_vm0, %v12207_v57, 0 }
 0x140   :  { %10463 = vmatmul.mubr.f32.vlgmr.msra.gmra.mrb[18].mxu1 %v11916_v24  ;;  %11185 = vmatprep.subr.bf16.mxu0 %v12539_v34  ;;  %v12660_v10 = vand.u32 4294901760, %v5601_v15 }
 0x141   :  { %10465 = vmatprep.mubr.f32.mxu1 %v11945_v36  ;;  %11155 = vmatpush3.bf16.msra.mxu1 %v12389_v48  ;;  %v12574_v48 = vsub.f32 %v5577_v54, %v12555_v50  ;;  %v12587_v20 = vsub.f32 %v5580_v6, %v12563_v35  ;;  %v12621_v6 = vsub.f32 %v5586_v8, %v12592_v27 }
 0x142   :  { %10388 = vmatmul.mubr.f32.gmra.mrb[20].mxu0 %v11954_v39  ;;  %11157 = vmatprep.subr.bf16.mxu1 %v12545_v61 }
 0x143   :  { %10390 = vmatprep.mubr.f32.mxu0 %v11973_v47  ;;  %v13803_v49 = vand.u32 4294901760, %v12574_v48  ;;  %v13808_v29 = vand.u32 4294901760, %v12587_v20 }
 0x144   :  { %10466 = vmatmul.mubr.f32.gmra.mrb[20].mxu1 %v11954_v39 }
 0x145   :  { %v12580_v9 = vpop.f32.mrb[0].mxu0  ;;  %10468 = vmatprep.mubr.f32.mxu1 %v11973_v47  ;;  %v5694_v2 = vsub.f32 %v12574_v48, %v13803_v49  ;;  %v5704_v49 = vsub.f32 %v12587_v20, %v13808_v29  ;;  %v5714_v29 = vsub.f32 %v12599_v3, %v13809_v19 }
 0x146   :  { %13910 = vst [vmem:[#allocation33_spill] sm:$0xff] %v12580_v9  ;;  %v12583_v11 = vpop.f32.mrb[1].mxu0  ;;  %10391 = vmatmul.mubr.f32.gmra.mrb[22].mxu0 %v11989_v56 }
 0x147   :  { %13911 = vst [vmem:[#allocation34_spill] sm:$0xff] %v12583_v11  ;;  %10397 = vmatprep.mubr.f32.mxu0 %v11908_v21  ;;  %v5695_v28 = vand.u32 4294901760, %v5694_v2  ;;  %v5604_v11 = vsel %vm53_vm0, %v12209_v58, 0  ;;  %v5705_v19 = vand.u32 4294901760, %v5704_v49 }
 0x148   :  { %10469 = vmatmul.mubr.f32.gmra.mrb[22].mxu1 %v11989_v56 }
 0x149   :  { %v9934_v33 = vpop.f32.mrb[2].mxu0  ;;  %10475 = vmatprep.mubr.f32.mxu1 %v11908_v21  ;;  %v12623_v21 = vand.u32 4294901760, %v5595_v55 }
 0x14a   :  { %v836_v63 = vpop.f32.mrb[3].mxu0  ;;  %10398 = vmatmul.mubr.f32.vlgmr.msra.gmra.mrb[18].mxu0 %v11916_v24  ;;  %v12669_v9 = vsel %vm53_vm0, %v9934_v33, 0  ;;  %v12684_v33 = vsub.f32 %v5598_v51, %v12650_v37  ;;  %v5715_v51 = vand.u32 4294901760, %v5714_v29 }
 0x14b   :  { %v12616_v54 = vpop.f32.mrb[2].mxu1  ;;  %10400 = vmatprep.mubr.f32.mxu0 %v11945_v36  ;;  %11187 = vmatpush3.bf16.msra.mxu0 %v12539_v34  ;;  %v12697_v49 = vand.u32 4294901760, %v12669_v9 }
 0x14c   :  { %v1510_v1 = vpop.f32.mrb[3].mxu1  ;;  %10476 = vmatmul.mubr.f32.vlgmr.msra.gmra.mrb[18].mxu1 %v11916_v24  ;;  %11189 = vmatprep.subr.bf16.mxu0 %v12605_v62  ;;  %v12641_v24 = vsel %vm53_vm0, %v836_v63, 0  ;;  %v12658_v63 = vsub.f32 %v5595_v55, %v12623_v21 }
 0x14d   :  { %v9937_v8 = vpop.f32.mrb[4].mxu0  ;;  %10478 = vmatprep.mubr.f32.mxu1 %v11945_v36  ;;  %11159 = vmatpush3.bf16.msra.mxu1 %v12545_v61  ;;  %v12672_v14 = vand.u32 4294901760, %v12641_v24  ;;  %13914 = vst [vmem:[#allocation36_spill] sm:$0xff] %v12697_v49  ;;  %v12716_v29 = vsel %vm53_vm0, %v1510_v1, 0 }
 0x14e   :  { %v848_v44 = vpop.f32.mrb[5].mxu0  ;;  %10401 = vmatmul.mubr.f32.gmra.mrb[20].mxu0 %v11954_v39  ;;  %11161 = vmatprep.subr.bf16.mxu1 %v12614_v31 }
 0x14f   :  { %v12653_v36 = vpop.f32.mrb[4].mxu1  ;;  %10403 = vmatprep.mubr.f32.mxu0 %v11973_v47  ;;  %13912 = vst [vmem:[#allocation35_spill] sm:$0xff] %v12672_v14  ;;  %v12679_v2 = vsel %vm53_vm0, %v848_v44, 0  ;;  %v12694_v44 = vand.u32 4294901760, %v5604_v11 }
 0x150   :  { %v1522_v26 = vpop.f32.mrb[5].mxu1  ;;  %10479 = vmatmul.mubr.f32.gmra.mrb[20].mxu1 %v11954_v39  ;;  %v5607_v39 = vsel %vm53_vm0, %v12214_v59, 0  ;;  %v12692_v59 = vsub.f32 %v5601_v15, %v12660_v10  ;;  %v12708_v57 = vand.u32 4294901760, %v12679_v2  ;;  %v13916_v15 = vand.u32 4294901760, %v12638_v46 }
 0x151   :  { %10481 = vmatprep.mubr.f32.mxu1 %v11973_v47  ;;  %v13913_v47 = vand.u32 4294901760, %v12621_v6  ;;  %v12700_v58 = vand.u32 4294901760, %v5607_v39  ;;  %v12733_v40 = vsub.f32 %v5604_v11, %v12694_v44  ;;  %v12751_v11 = vand.u32 4294901760, %v12716_v29 }
 0x152   :  { %10404 = vmatmul.mubr.f32.gmra.mrb[22].mxu0 %v11989_v56  ;;  %13915 = vst [vmem:[#allocation37_spill] sm:$0xff] %v12708_v57  ;;  %v5734_v42 = vsub.f32 %v12638_v46, %v13916_v15  ;;  %v13918_v15 = vand.u32 4294901760, %v12658_v63 }
 0x153   :  { %10708 = vmatprep.mubr.f32.mxu0 %v12672_v14  ;;  %v5724_v55 = vsub.f32 %v12621_v6, %v13913_v47  ;;  %v12705_v47 = vsel %vm53_vm0, %v9937_v8, 0  ;;  %v5744_v8 = vsub.f32 %v12648_v45, %v13917_v60  ;;  %v12742_v12 = vsub.f32 %v5607_v39, %v12700_v58  ;;  %13920 = vst [vmem:[#allocation39_spill] sm:$0xff] %v12751_v11 }
 0x154   :  { %10482 = vmatmul.mubr.f32.gmra.mrb[22].mxu1 %v11989_v56  ;;  %v5613_v56 = vsel %vm53_vm0, %v12347_v18, 0  ;;  %v5754_v18 = vsub.f32 %v12658_v63, %v13918_v15  ;;  %v12739_v60 = vand.u32 4294901760, %v12705_v47  ;;  %v12748_v15 = vsel %vm53_vm0, %v12616_v54, 0 }
 0x155   :  { %10488 = vmatprep.mubr.f32.mxu1 %v5695_v28  ;;  %v12725_v28 = vpack.c.bf16 %v12535_v5, %v12533_v32  ;;  %v5725_v41 = vand.u32 4294901760, %v5724_v55  ;;  %v12744_v7 = vand.u32 4294901760, %v5613_v56  ;;  %v5735_v1 = vand.u32 4294901760, %v5734_v42 }
 0x156   :  { %10709 = vmatmul.mubr.f32.vlgmr.msra.gmra.mrb[24].mxu0 %v12697_v49  ;;  %13919 = vst [vmem:[#allocation38_spill] sm:$0xff] %v12739_v60  ;;  %v5745_v55 = vand.u32 4294901760, %v5744_v8  ;;  %v13922_v39 = vand.u32 4294901760, %v12684_v33  ;;  %v5755_v42 = vand.u32 4294901760, %v5754_v18  ;;  %v12772_v8 = vsub.f32 %v5610_v43, %v12735_v13 }
 0x157   :  { %10711 = vmatprep.mubr.f32.mxu0 %v12708_v57  ;;  %11191 = vmatpush3.bf16.msra.mxu0 %v12605_v62  ;;  %v5616_v62 = vsel %vm53_vm0, %v12349_v25, 0  ;;  %v12775_v25 = vand.u32 4294901760, %v12748_v15  ;;  %v12779_v22 = vsub.f32 %v5613_v56, %v12744_v7  ;;  %v12785_v18 = vsel %vm53_vm0, %v12653_v36, 0 }
 0x158   :  { %10489 = vmatmul.mubr.f32.vlgmr.msra.gmra.mrb[24].mxu1 %v5705_v19  ;;  %v12757_v19 = vsel %vm53_vm0, %v1522_v26, 0  ;;  %v5764_v54 = vsub.f32 %v12684_v33, %v13922_v39  ;;  %v12781_v34 = vand.u32 4294901760, %v5616_v62  ;;  %13925 = vst [vmem:[#allocation42_spill] sm:$0xff] %v12785_v18  ;;  %v12790_v43 = vand.u32 4294901760, %v5619_v4 }
 0x159   :  { %10491 = vmatprep.mubr.f32.mxu1 %v5715_v51  ;;  %11163 = vmatpush3.bf16.msra.mxu1 %v12614_v31  ;;  %13921 = vst [vmem:[#allocation40_spill] sm:$0xff] %v12757_v19  ;;  %v13923_v31 = vand.u32 4294901760, %v12692_v59  ;;  %v13833_v51 = vand.u32 4294901760, %v12733_v40  ;;  %13924 = vst [vmem:[#allocation41_spill] sm:$0xff] %v12775_v25  ;;  %v12800_v36 = vand.u32 4294901760, %v12785_v18 }
 0x15a   :  { %10712 = vmatmul.mubr.f32.gmra.mrb[26].mxu0 %v12739_v60  ;;  %11165 = vmatprep.subr.bf16.mxu1 %v12725_v28  ;;  %13927 = vst [vmem:[#allocation44_spill] sm:$0xff] %v12790_v43  ;;  %v5765_v56 = vand.u32 4294901760, %v5764_v54  ;;  %v12804_v16 = vsub.f32 %v5616_v62, %v12781_v34 }
 0x15b   :  { %10714 = vmatprep.mubr.f32.mxu0 %v12751_v11  ;;  %v5774_v26 = vsub.f32 %v12692_v59, %v13923_v31  ;;  %v12788_v31 = vand.u32 4294901760, %v12757_v19  ;;  %v5784_v39 = vsub.f32 %v12733_v40, %v13833_v51  ;;  %13928 = vst [vmem:[#allocation45_spill] sm:$0xff] %v12800_v36  ;;  %v13930_v19 = vand.u32 4294901760, %v12742_v12 }
 0x15c   :  { %10492 = vmatmul.mubr.f32.gmra.mrb[0].mxu1 %v5725_v41  ;;  %v5622_v41 = vsel %vm53_vm0, %v12356_v23, 0  ;;  %v12813_v51 = vsub.f32 %v5619_v4, %v12790_v43 }
 0x15d   :  { %13926 = vst [vmem:[#allocation43_spill] sm:$0xff] %v12788_v31  ;;  %10494 = vmatprep.mubr.f32.mxu1 %v5735_v1  ;;  %v13835_v1 = vand.u32 4294901760, %v12772_v8  ;;  %v12806_v30 = vand.u32 4294901760, %v5622_v41  ;;  %v5775_v23 = vand.u32 4294901760, %v5774_v26  ;;  %v5794_v54 = vsub.f32 %v12742_v12, %v13930_v19 }
 0x15e   :  { %10715 = vmatmul.mubr.f32.gmra.mrb[28].mxu0 %v12775_v25  ;;  %v13839_v18 = vand.u32 4294901760, %v12813_v51 }
 0x15f   :  { %10717 = vmatprep.mubr.f32.mxu0 %v12788_v31  ;;  %13929 = vst [vmem:[#allocation46_spill] sm:$0xff] %v12806_v30  ;;  %v13841_v31 = vand.u32 4294901760, %v12779_v22  ;;  %v5804_v62 = vsub.f32 %v12772_v8, %v13835_v1  ;;  %v12821_v26 = vsub.f32 %v5622_v41, %v12806_v30  ;;  %v5795_v19 = vand.u32 4294901760, %v5794_v54 }
 0x160   :  { %10495 = vmatmul.mubr.f32.gmra.mrb[26].mxu1 %v5745_v55  ;;  %v5785_v55 = vand.u32 4294901760, %v5784_v39 }
 0x161   :  { %10497 = vmatprep.mubr.f32.mxu1 %v5755_v42  ;;  %v13840_v42 = vand.u32 4294901760, %v12804_v16  ;;  %v5814_v4 = vsub.f32 %v12779_v22, %v13841_v31  ;;  %v13838_v1 = vand.u32 4294901760, %v12821_v26 }
 0x162   :  { %10718 = vmatmul.mubr.f32.gmra.mrb[30].mxu0 %v12800_v36 }
 0x163   :  { %v5824_v39 = vsub.f32 %v12804_v16, %v13840_v42  ;;  %v5815_v36 = vand.u32 4294901760, %v5814_v4  ;;  %v5844_v54 = vsub.f32 %v12821_v26, %v13838_v1  ;;  %v13938_v1 = vand.u32 4294901760, %v12535_v5 }
 0x164   :  { %10498 = vmatmul.mubr.f32.gmra.mrb[6].mxu1 %v5765_v56  ;;  %v5805_v56 = vand.u32 4294901760, %v5804_v62 }
 0x165   :  { %10500 = vmatprep.mubr.f32.mxu1 %v5775_v23  ;;  %v5834_v23 = vsub.f32 %v12813_v51, %v13839_v18  ;;  %v5825_v41 = vand.u32 4294901760, %v5824_v39  ;;  %v5845_v62 = vand.u32 4294901760, %v5844_v54 }
 0x168   :  { %10501 = vmatmul.mubr.f32.gmra.mrb[28].mxu1 %v5785_v55  ;;  %v5835_v55 = vand.u32 4294901760, %v5834_v23 }
 0x169   :  { %10503 = vmatprep.mubr.f32.mxu1 %v5795_v19  ;;  %v13931_v19 = vand.u32 4294901760, %v12471_v53 }
 0x16c   :  { %10504 = vmatmul.mubr.f32.gmra.mrb[12].mxu1 %v5805_v56 }
 0x16d   :  { %10506 = vmatprep.mubr.f32.mxu1 %v5815_v36  ;;  %v13932_v36 = vand.u32 4294901760, %v12476_v0 }
 0x16f   :  { %v12847_v4 = vpack.c.bf16 %v13932_v36, %v13931_v19 }
 0x170   :  { %10507 = vmatmul.mubr.f32.gmra.mrb[30].mxu1 %v5825_v41 }
 0x171   :  { %10509 = vmatprep.mubr.f32.mxu1 %v5835_v55  ;;  %11193 = vmatprep.subr.bf16.mxu0 %v12847_v4 }
 0x174   :  { %10510 = vmatmul.mubr.f32.gmra.mrb[18].mxu1 %v5845_v62 }
 0x175   :  { %10516 = vmatprep.mubr.f32.mxu1 %v12555_v50 }
 0x178   :  { %10517 = vmatmul.mubr.f32.vlgmr.msra.gmra.mrb[24].mxu1 %v12563_v35 }
 0x179   :  { %10519 = vmatprep.mubr.f32.mxu1 %v12576_v17  ;;  %11167 = vmatpush3.bf16.msra.mxu1 %v12725_v28 }
 0x17a   :  { %11169 = vmatprep.subr.bf16.mxu1 %v12545_v61 }
 0x17c   :  { %10520 = vmatmul.mubr.f32.gmra.mrb[0].mxu1 %v12592_v27 }
 0x17d   :  { %10522 = vmatprep.mubr.f32.mxu1 %v12608_v38 }
 0x180   :  { %10523 = vmatmul.mubr.f32.gmra.mrb[26].mxu1 %v12612_v52 }
 0x181   :  { %10525 = vmatprep.mubr.f32.mxu1 %v12623_v21 }
 0x184   :  { %10526 = vmatmul.mubr.f32.gmra.mrb[6].mxu1 %v12650_v37 }
 0x185   :  { %10528 = vmatprep.mubr.f32.mxu1 %v12660_v10 }
 0x188   :  { %10529 = vmatmul.mubr.f32.gmra.mrb[28].mxu1 %v12694_v44 }
 0x189   :  { %10531 = vmatprep.mubr.f32.mxu1 %v12700_v58 }
 0x18c   :  { %10532 = vmatmul.mubr.f32.gmra.mrb[12].mxu1 %v12735_v13 }
 0x18d   :  { %v12858_v53 = vpop.f32.mrb[6].mxu0  ;;  %10534 = vmatprep.mubr.f32.mxu1 %v12744_v7 }
 0x18e   :  { %13933 = vst [vmem:[#allocation47_spill] sm:$0xff] %v12858_v53  ;;  %v12861_v0 = vpop.f32.mrb[7].mxu0 }
 0x18f   :  { %13934 = vst [vmem:[#allocation48_spill] sm:$0xff] %v12861_v0 }
 0x190   :  { %10535 = vmatmul.mubr.f32.gmra.mrb[30].mxu1 %v12781_v34 }
 0x191   :  { %v10090_v28 = vpop.f32.mrb[8].mxu0  ;;  %10537 = vmatprep.mubr.f32.mxu1 %v12790_v43  ;;  %v12938_v43 = vsub.f32 %v12679_v2, %v12708_v57  ;;  %v12958_v2 = vsub.f32 %v12748_v15, %v12775_v25 }
 0x192   :  { %v12866_v56 = vsel %vm53_vm0, %v10090_v28, 0  ;;  %v2184_v39 = vpop.f32.mrb[9].mxu0 }
 0x193   :  { %v10168_v23 = vpop.f32.mrb[8].mxu1  ;;  %v12869_v41 = vsel %vm53_vm0, %v2184_v39, 0  ;;  %v12876_v62 = vand.u32 4294901760, %v12866_v56  ;;  %v13937_v39 = vand.u32 4294901760, %v12533_v32 }
 0x194   :  { %v12872_v54 = vand.u32 4294901760, %v12869_v41  ;;  %v2858_v55 = vpop.f32.mrb[9].mxu1  ;;  %10538 = vmatmul.mubr.f32.gmra.mrb[18].mxu1 %v12806_v30  ;;  %v6834_v32 = vsel %vm53_vm0, %v10168_v23, 0 }
 0x195   :  { %13936 = vst [vmem:[#allocation50_spill] sm:$0xff] %v12876_v62  ;;  %v10093_v19 = vpop.f32.mrb[10].mxu0  ;;  %10544 = vmatprep.mubr.f32.mxu1 %v12574_v48  ;;  %v12887_v18 = vpack.c.bf16 %v13938_v1, %v13937_v39  ;;  %v12890_v42 = vsel %vm53_vm0, %v2858_v55, 0  ;;  %v12912_v55 = vand.u32 4294901760, %v6834_v32 }
 0x196   :  { %13935 = vst [vmem:[#allocation49_spill] sm:$0xff] %v12872_v54  ;;  %v12880_v36 = vsel %vm53_vm0, %v10093_v19, 0  ;;  %v2196_v28 = vpop.f32.mrb[11].mxu0  ;;  %10720 = vmatprep.mubr.f32.mxu0 %v12872_v54  ;;  %v12904_v5 = vand.u32 4294901760, %v12890_v42  ;;  %v12975_v15 = vsub.f32 %v12869_v41, %v12872_v54  ;;  %v13950_v41 = vand.u32 4294901760, %v12587_v20 }
 0x197   :  { %v10171_v31 = vpop.f32.mrb[10].mxu1  ;;  %v6825_v0 = vsel %vm53_vm0, %v2196_v28, 0  ;;  %10721 = vmatmul.mubr.f32.gmra.mrb[32].mxu0 %v12876_v62  ;;  %v12898_v30 = vand.u32 4294901760, %v12880_v36  ;;  %13942 = vst [vmem:[#allocation54_spill] sm:$0xff] %v12912_v55 }
 0x198   :  { %v12894_v53 = vand.u32 4294901760, %v6825_v0  ;;  %v2870_v19 = vpop.f32.mrb[11].mxu1  ;;  %10545 = vmatmul.mubr.f32.vlgmr.msra.gmra.mrb[24].mxu1 %v12587_v20  ;;  %13941 = vst [vmem:[#allocation53_spill] sm:$0xff] %v12904_v5  ;;  %v6840_v23 = vsel %vm53_vm0, %v10171_v31, 0  ;;  %v12933_v31 = vsub.f32 %v12669_v9, %v12697_v49  ;;  %v12951_v9 = vsub.f32 %v12716_v29, %v12751_v11  ;;  %v13947_v29 = vld [vmem:[#allocation45_spill] sm:$0xff]  ;;  %v13948_v11 = vld [vmem:[#allocation42_spill] sm:$0xff] }
 0x199   :  { %13940 = vst [vmem:[#allocation52_spill] sm:$0xff] %v12898_v30  ;;  %10547 = vmatprep.mubr.f32.mxu1 %v12599_v3  ;;  %11171 = vmatpush3.bf16.msra.mxu1 %v12545_v61  ;;  %v6837_v1 = vsel %vm53_vm0, %v2870_v19, 0  ;;  %v12921_v39 = vand.u32 4294901760, %v6840_v23  ;;  %v12926_v19 = vsub.f32 %v12641_v24, %v12672_v14  ;;  %v12945_v24 = vsub.f32 %v12705_v47, %v12739_v60  ;;  %v13945_v47 = vld [vmem:[#allocation43_spill] sm:$0xff]  ;;  %v13946_v60 = vld [vmem:[#allocation40_spill] sm:$0xff] }
 0x19a   :  { %13939 = vst [vmem:[#allocation51_spill] sm:$0xff] %v12894_v53  ;;  %10723 = vmatprep.mubr.f32.mxu0 %v12894_v53  ;;  %11173 = vmatprep.subr.bf16.mxu1 %v12887_v18  ;;  %v12916_v28 = vand.u32 4294901760, %v6837_v1  ;;  %v12963_v57 = vsub.f32 %v13946_v60, %v13945_v47  ;;  %v12970_v49 = vsub.f32 %v13948_v11, %v13947_v29  ;;  %v13949_v47 = vand.u32 4294901760, %v12574_v48  ;;  %v13986_v29 = vld [vmem:[#allocation15_spill] sm:$0xff] }
 0x19b   :  { %10724 = vmatmul.mubr.f32.gmra.mrb[34].mxu0 %v12898_v30  ;;  %13944 = vst [vmem:[#allocation56_spill] sm:$0xff] %v12921_v39  ;;  %v12982_v60 = vsub.f32 %v12866_v56, %v12876_v62  ;;  %v12987_v11 = vsub.f32 %v6825_v0, %v12894_v53  ;;  %v12995_v54 = vsub.f32 %v12880_v36, %v12898_v30  ;;  %v13951_v56 = vand.u32 4294901760, %v12599_v3 }
 0x19c   :  { %10548 = vmatmul.mubr.f32.gmra.mrb[0].mxu1 %v12621_v6  ;;  %10726 = vmatprep.mubr.f32.mxu0 %v12904_v5  ;;  %13943 = vst [vmem:[#allocation55_spill] sm:$0xff] %v12916_v28  ;;  %v13002_v48 = vsub.f32 %v12890_v42, %v12904_v5  ;;  %v13952_v20 = vand.u32 4294901760, %v12621_v6  ;;  %v13010_v0 = vsub.f32 %v6834_v32, %v12912_v55  ;;  %v13953_v3 = vand.u32 4294901760, %v12638_v46 }
 0x19d   :  { %10550 = vmatprep.mubr.f32.mxu1 %v12638_v46  ;;  %v13958_v6 = vand.u32 4294901760, %v12648_v45  ;;  %v13029_v46 = vsub.f32 %v6840_v23, %v12921_v39  ;;  %v13959_v32 = vand.u32 4294901760, %v12658_v63  ;;  %v13964_v23 = vand.u32 4294901760, %v12772_v8 }
 0x19f   :  { %10727 = vmatmul.mubr.f32.gmra.mrb[36].mxu0 %v12912_v55 }
 0x1a0   :  { %10551 = vmatmul.mubr.f32.gmra.mrb[26].mxu1 %v12648_v45  ;;  %10729 = vmatprep.mubr.f32.mxu0 %v12916_v28  ;;  %v13963_v45 = vand.u32 4294901760, %v12742_v12 }
 0x1a1   :  { %10553 = vmatprep.mubr.f32.mxu1 %v12658_v63  ;;  %v13965_v63 = vand.u32 4294901760, %v12779_v22 }
 0x1a3   :  { %10730 = vmatmul.mubr.f32.gmra.mrb[38].mxu0 %v12921_v39 }
 0x1a4   :  { %10554 = vmatmul.mubr.f32.gmra.mrb[6].mxu1 %v12684_v33  ;;  %10760 = vmatprep.mubr.f32.mxu0 %v12926_v19 }
 0x1a5   :  { %10556 = vmatprep.mubr.f32.mxu1 %v12692_v59 }
 0x1a7   :  { %10761 = vmatmul.mubr.f32.vlgmr.msra.gmra.mrb[24].mxu0 %v12933_v31 }
 0x1a8   :  { %10557 = vmatmul.mubr.f32.gmra.mrb[28].mxu1 %v12733_v40  ;;  %10763 = vmatprep.mubr.f32.mxu0 %v12938_v43 }
 0x1a9   :  { %10559 = vmatprep.mubr.f32.mxu1 %v12742_v12  ;;  %11195 = vmatpush3.bf16.msra.mxu0 %v12847_v4 }
 0x1ab   :  { %10764 = vmatmul.mubr.f32.gmra.mrb[26].mxu0 %v12945_v24 }
 0x1ac   :  { %10560 = vmatmul.mubr.f32.gmra.mrb[12].mxu1 %v12772_v8  ;;  %10766 = vmatprep.mubr.f32.mxu0 %v12951_v9 }
 0x1ad   :  { %10562 = vmatprep.mubr.f32.mxu1 %v12779_v22 }
 0x1af   :  { %10767 = vmatmul.mubr.f32.gmra.mrb[28].mxu0 %v12958_v2 }
 0x1b0   :  { %10563 = vmatmul.mubr.f32.gmra.mrb[30].mxu1 %v12804_v16  ;;  %10769 = vmatprep.mubr.f32.mxu0 %v12963_v57 }
 0x1b1   :  { %10565 = vmatprep.mubr.f32.mxu1 %v12813_v51 }
 0x1b3   :  { %10770 = vmatmul.mubr.f32.gmra.mrb[30].mxu0 %v12970_v49 }
 0x1b4   :  { %10566 = vmatmul.mubr.f32.gmra.mrb[18].mxu1 %v12821_v26  ;;  %10772 = vmatprep.mubr.f32.mxu0 %v12975_v15 }
 0x1b5   :  { %10572 = vmatprep.mubr.f32.mxu1 %v13949_v47  ;;  %v13956_v47 = vld [vmem:[#allocation31_spill] sm:$0xff] }
 0x1b6   :  { %v13957_v42 = vand.u32 4294901760, %v13956_v47 }
 0x1b7   :  { %10773 = vmatmul.mubr.f32.gmra.mrb[32].mxu0 %v12982_v60 }
 0x1b8   :  { %10573 = vmatmul.mubr.f32.vlgmr.msra.gmra.mrb[24].mxu1 %v13950_v41  ;;  %10775 = vmatprep.mubr.f32.mxu0 %v12987_v11 }
 0x1b9   :  { %10575 = vmatprep.mubr.f32.mxu1 %v13951_v56  ;;  %11175 = vmatpush3.bf16.msra.mxu1 %v12887_v18  ;;  %v13954_v18 = vld [vmem:[#allocation30_spill] sm:$0xff]  ;;  %v13021_v56 = vsub.f32 %v6837_v1, %v12916_v28  ;;  %v13960_v1 = vand.u32 4294901760, %v12684_v33  ;;  %v13967_v33 = vand.u32 4294901760, %v12813_v51 }
 0x1ba   :  { %11177 = vmatprep.subr.bf16.mxu1 %v12545_v61  ;;  %v13955_v36 = vand.u32 4294901760, %v13954_v18  ;;  %v13966_v18 = vand.u32 4294901760, %v12804_v16 }
 0x1bb   :  { %10776 = vmatmul.mubr.f32.gmra.mrb[34].mxu0 %v12995_v54  ;;  %v13979_v5 = vand.u32 4294901760, %v13021_v56 }
 0x1bc   :  { %10576 = vmatmul.mubr.f32.gmra.mrb[0].mxu1 %v13952_v20  ;;  %10778 = vmatprep.mubr.f32.mxu0 %v13002_v48  ;;  %v13018_v41 = vpack.c.bf16 %v13957_v42, %v13955_v36  ;;  %v13961_v20 = vand.u32 4294901760, %v12692_v59  ;;  %v13968_v59 = vand.u32 4294901760, %v12821_v26 }
 0x1bd   :  { %10578 = vmatprep.mubr.f32.mxu1 %v13953_v3  ;;  %v13962_v3 = vand.u32 4294901760, %v12733_v40 }
 0x1be   :  { %11197 = vmatprep.subr.bf16.mxu0 %v13018_v41 }
 0x1bf   :  { %10779 = vmatmul.mubr.f32.gmra.mrb[36].mxu0 %v13010_v0 }
 0x1c0   :  { %10579 = vmatmul.mubr.f32.gmra.mrb[26].mxu1 %v13958_v6  ;;  %10781 = vmatprep.mubr.f32.mxu0 %v13021_v56 }
 0x1c1   :  { %10581 = vmatprep.mubr.f32.mxu1 %v13959_v32 }
 0x1c3   :  { %10782 = vmatmul.mubr.f32.gmra.mrb[38].mxu0 %v13029_v46 }
 0x1c4   :  { %10582 = vmatmul.mubr.f32.gmra.mrb[6].mxu1 %v13960_v1 }
 0x1c5   :  { %10584 = vmatprep.mubr.f32.mxu1 %v13961_v20 }
 0x1c8   :  { %10585 = vmatmul.mubr.f32.gmra.mrb[28].mxu1 %v13962_v3 }
 0x1c9   :  { %10587 = vmatprep.mubr.f32.mxu1 %v13963_v45 }
 0x1cc   :  { %10588 = vmatmul.mubr.f32.gmra.mrb[12].mxu1 %v13964_v23 }
 0x1cd   :  { %10590 = vmatprep.mubr.f32.mxu1 %v13965_v63 }
 0x1d0   :  { %10591 = vmatmul.mubr.f32.gmra.mrb[30].mxu1 %v13966_v18 }
 0x1d1   :  { %10593 = vmatprep.mubr.f32.mxu1 %v13967_v33 }
 0x1d4   :  { %10594 = vmatmul.mubr.f32.gmra.mrb[18].mxu1 %v13968_v59 }
 0x1d5   :  { %v13052_v40 = vpop.f32.mrb[12].mxu0  ;;  %10600 = vmatprep.mubr.f32.mxu1 %v12555_v50 }
 0x1d6   :  { %13969 = vst [vmem:[#allocation40_spill] sm:$0xff] %v13052_v40  ;;  %v13055_v12 = vpop.f32.mrb[13].mxu0 }
 0x1d7   :  { %13970 = vst [vmem:[#allocation42_spill] sm:$0xff] %v13055_v12 }
 0x1d8   :  { %10601 = vmatmul.mubr.f32.vlgmr.msra.gmra.mrb[24].mxu1 %v12563_v35 }
 0x1d9   :  { %v10246_v8 = vpop.f32.mrb[14].mxu0  ;;  %10603 = vmatprep.mubr.f32.mxu1 %v12576_v17  ;;  %11179 = vmatpush3.bf16.msra.mxu1 %v12545_v61 }
 0x1da   :  { %v6846_v22 = vsel %vm53_vm0, %v10246_v8, 0  ;;  %v3532_v16 = vpop.f32.mrb[15].mxu0  ;;  %11181 = vmatprep.subr.bf16.mxu1 %v12847_v4 }
 0x1db   :  { %v13062_v51 = vand.u32 4294901760, %v6846_v22  ;;  %v10324_v26 = vpop.f32.mrb[14].mxu1  ;;  %v6843_v36 = vsel %vm53_vm0, %v3532_v16, 0 }
 0x1dc   :  { %v13065_v47 = vand.u32 4294901760, %v6843_v36  ;;  %v4206_v42 = vpop.f32.mrb[15].mxu1  ;;  %10604 = vmatmul.mubr.f32.gmra.mrb[0].mxu1 %v12592_v27  ;;  %v6858_v18 = vsel %vm53_vm0, %v10324_v26, 0 }
 0x1dd   :  { %v6855_v6 = vsel %vm53_vm0, %v4206_v42, 0  ;;  %v10249_v32 = vpop.f32.mrb[16].mxu0  ;;  %10606 = vmatprep.mubr.f32.mxu1 %v12608_v38  ;;  %v13075_v3 = vsub.f32 %v6846_v22, %v13062_v51 }
 0x1de   :  { %v13071_v61 = vsub.f32 %v6843_v36, %v13065_v47  ;;  %v6852_v1 = vsel %vm53_vm0, %v10249_v32, 0  ;;  %v3544_v20 = vpop.f32.mrb[17].mxu0  ;;  %v13081_v33 = vand.u32 4294901760, %v6855_v6  ;;  %v13093_v36 = vand.u32 4294901760, %v6858_v18 }
 0x1df   :  { %v13077_v45 = vand.u32 4294901760, %v6852_v1  ;;  %v10327_v23 = vpop.f32.mrb[16].mxu1  ;;  %v6849_v63 = vsel %vm53_vm0, %v3544_v20, 0 }
 0x1e0   :  { %v13083_v59 = vand.u32 4294901760, %v6849_v63  ;;  %v4218_v8 = vpop.f32.mrb[17].mxu1  ;;  %10607 = vmatmul.mubr.f32.gmra.mrb[26].mxu1 %v12612_v52  ;;  %10784 = vmatprep.mubr.f32.mxu0 %v13071_v61  ;;  %v13099_v42 = vsub.f32 %v6855_v6, %v13081_v33  ;;  %v6864_v32 = vsel %vm53_vm0, %v10327_v23, 0 }
 0x1e1   :  { %v6861_v16 = vsel %vm53_vm0, %v4218_v8, 0  ;;  %10609 = vmatprep.mubr.f32.mxu1 %v12623_v21  ;;  %10785 = vmatmul.mubr.f32.gmra.mrb[40].mxu0 %v13075_v3  ;;  %v13096_v26 = vsub.f32 %v6852_v1, %v13077_v45  ;;  %v13110_v1 = vsub.f32 %v6858_v18, %v13093_v36  ;;  %v13971_v18 = vld [vmem:[#allocation44_spill] sm:$0xff]  ;;  %v13972_v8 = vld [vmem:[#allocation46_spill] sm:$0xff] }
 0x1e2   :  { %v13091_v22 = vsub.f32 %v6849_v63, %v13083_v59  ;;  %v13102_v20 = vand.u32 4294901760, %v6861_v16  ;;  %v13112_v63 = vand.u32 4294901760, %v6864_v32 }
 0x1e4   :  { %10610 = vmatmul.mubr.f32.gmra.mrb[6].mxu1 %v12650_v37  ;;  %10787 = vmatprep.mubr.f32.mxu0 %v13091_v22  ;;  %v13115_v6 = vsub.f32 %v6861_v16, %v13102_v20  ;;  %v13122_v23 = vsub.f32 %v6864_v32, %v13112_v63  ;;  %v13973_v16 = vld [vmem:[#allocation32_spill] sm:$0xff] }
 0x1e5   :  { %10612 = vmatprep.mubr.f32.mxu1 %v12660_v10  ;;  %10788 = vmatmul.mubr.f32.gmra.mrb[42].mxu0 %v13096_v26 }
 0x1e6   :  { %10790 = vmatprep.mubr.f32.mxu0 %v13099_v42 }
 0x1e8   :  { %10613 = vmatmul.mubr.f32.gmra.mrb[28].mxu1 %v12694_v44 }
 0x1e9   :  { %10615 = vmatprep.mubr.f32.mxu1 %v12700_v58  ;;  %10791 = vmatmul.mubr.f32.gmra.mrb[44].mxu0 %v13110_v1 }
 0x1ea   :  { %10793 = vmatprep.mubr.f32.mxu0 %v13115_v6 }
 0x1ec   :  { %10616 = vmatmul.mubr.f32.gmra.mrb[12].mxu1 %v12735_v13 }
 0x1ed   :  { %10618 = vmatprep.mubr.f32.mxu1 %v12744_v7  ;;  %10794 = vmatmul.mubr.f32.gmra.mrb[46].mxu0 %v13122_v23 }
 0x1f0   :  { %10619 = vmatmul.mubr.f32.gmra.mrb[30].mxu1 %v12781_v34 }
 0x1f1   :  { %10621 = vmatprep.mubr.f32.mxu1 %v13971_v18 }
 0x1f4   :  { %10622 = vmatmul.mubr.f32.gmra.mrb[18].mxu1 %v13972_v8 }
 0x1f5   :  { %10628 = vmatprep.mubr.f32.mxu1 %v12555_v50  ;;  %v13863_v50 = vand.u32 4294901760, %v12926_v19 }
 0x1f8   :  { %10629 = vmatmul.mubr.f32.vlgmr.msra.gmra.mrb[24].mxu1 %v12563_v35  ;;  %v13862_v35 = vand.u32 4294901760, %v12933_v31 }
 0x1f9   :  { %10631 = vmatprep.mubr.f32.mxu1 %v12576_v17  ;;  %11183 = vmatpush3.bf16.msra.mxu1 %v12847_v4  ;;  %v13861_v17 = vand.u32 4294901760, %v12938_v43 }
 0x1fa   :  { %11204 = vmatprep.subr.bf16.mxu1 %v13973_v16 }
 0x1fc   :  { %10632 = vmatmul.mubr.f32.gmra.mrb[0].mxu1 %v12592_v27  ;;  %v6980_v27 = vsub.f32 %v12938_v43, %v13861_v17 }
 0x1fd   :  { %10634 = vmatprep.mubr.f32.mxu1 %v12608_v38 }
 0x200   :  { %10635 = vmatmul.mubr.f32.gmra.mrb[26].mxu1 %v12612_v52 }
 0x201   :  { %10637 = vmatprep.mubr.f32.mxu1 %v12623_v21  ;;  %v13858_v21 = vand.u32 4294901760, %v12963_v57 }
 0x204   :  { %10638 = vmatmul.mubr.f32.gmra.mrb[6].mxu1 %v12650_v37  ;;  %v6960_v37 = vsub.f32 %v12926_v19, %v13863_v50 }
 0x205   :  { %10640 = vmatprep.mubr.f32.mxu1 %v12660_v10 }
 0x206   :  { %v6961_v10 = vand.u32 4294901760, %v6960_v37 }
 0x208   :  { %10641 = vmatmul.mubr.f32.gmra.mrb[28].mxu1 %v12694_v44  ;;  %v6981_v44 = vand.u32 4294901760, %v6980_v27  ;;  %v7020_v27 = vsub.f32 %v12963_v57, %v13858_v21 }
 0x209   :  { %10643 = vmatprep.mubr.f32.mxu1 %v12700_v58  ;;  %v6970_v58 = vsub.f32 %v12933_v31, %v13862_v35 }
 0x20b   :  { %v6971_v38 = vand.u32 4294901760, %v6970_v58  ;;  %v13864_v58 = vand.u32 4294901760, %v12975_v15 }
 0x20c   :  { %10644 = vmatmul.mubr.f32.gmra.mrb[12].mxu1 %v12735_v13  ;;  %v13859_v13 = vand.u32 4294901760, %v12945_v24 }
 0x20d   :  { %10646 = vmatprep.mubr.f32.mxu1 %v12744_v7  ;;  %v13857_v7 = vand.u32 4294901760, %v12951_v9  ;;  %v7040_v21 = vsub.f32 %v12975_v15, %v13864_v58 }
 0x20e   :  { %v6990_v52 = vsub.f32 %v12945_v24, %v13859_v13 }
 0x20f   :  { %v7000_v32 = vsub.f32 %v12951_v9, %v13857_v7  ;;  %v13866_v7 = vand.u32 4294901760, %v12987_v11 }
 0x210   :  { %10647 = vmatmul.mubr.f32.gmra.mrb[30].mxu1 %v12781_v34  ;;  %v13856_v34 = vand.u32 4294901760, %v12958_v2 }
 0x211   :  { %10649 = vmatprep.mubr.f32.mxu1 %v13971_v18  ;;  %v13860_v18 = vand.u32 4294901760, %v12970_v49 }
 0x212   :  { %v7010_v37 = vsub.f32 %v12958_v2, %v13856_v34 }
 0x213   :  { %v7030_v34 = vsub.f32 %v12970_v49, %v13860_v18 }
 0x214   :  { %10650 = vmatmul.mubr.f32.gmra.mrb[18].mxu1 %v13972_v8  ;;  %v6991_v8 = vand.u32 4294901760, %v6990_v52  ;;  %v7011_v52 = vand.u32 4294901760, %v7010_v37 }
 0x215   :  { %10656 = vmatprep.mubr.f32.mxu1 %v6961_v10  ;;  %v7001_v10 = vand.u32 4294901760, %v7000_v32  ;;  %v7021_v32 = vand.u32 4294901760, %v7020_v27  ;;  %v7031_v35 = vand.u32 4294901760, %v7030_v34 }
 0x218   :  { %10657 = vmatmul.mubr.f32.vlgmr.msra.gmra.mrb[32].mxu1 %v6971_v38  ;;  %v13865_v38 = vand.u32 4294901760, %v12982_v60 }
 0x219   :  { %10659 = vmatprep.mubr.f32.mxu1 %v6981_v44  ;;  %11205 = vmatpush3.bf16.msra.mxu1 %v13973_v16 }
 0x21a   :  { %v7050_v37 = vsub.f32 %v12982_v60, %v13865_v38 }
 0x21c   :  { %10660 = vmatmul.mubr.f32.gmra.mrb[34].mxu1 %v6991_v8  ;;  %v7051_v13 = vand.u32 4294901760, %v7050_v37 }
 0x21d   :  { %10662 = vmatprep.mubr.f32.mxu1 %v7001_v10  ;;  %v13180_v44 = vpop.f32.mrb[18].mxu0 }
 0x21e   :  { %13974 = vst [vmem:[#allocation30_spill] sm:$0xff] %v13180_v44  ;;  %v13182_v16 = vpop.f32.mrb[19].mxu0  ;;  %v13976_v44 = vand.u32 4294901760, %v13002_v48 }
 0x21f   :  { %13975 = vst [vmem:[#allocation31_spill] sm:$0xff] %v13182_v16 }
 0x220   :  { %10663 = vmatmul.mubr.f32.gmra.mrb[36].mxu1 %v7011_v52  ;;  %v7041_v52 = vand.u32 4294901760, %v7040_v21 }
 0x221   :  { %10665 = vmatprep.mubr.f32.mxu1 %v7021_v32  ;;  %v10402_v10 = vpop.f32.mrb[20].mxu0  ;;  %v7060_v32 = vsub.f32 %v12987_v11, %v13866_v7 }
 0x222   :  { %v6870_v18 = vsel %vm53_vm0, %v10402_v10, 0  ;;  %v4880_v17 = vpop.f32.mrb[21].mxu0 }
 0x223   :  { %v13197_v27 = vand.u32 4294901760, %v6870_v18  ;;  %v10480_v50 = vpop.f32.mrb[20].mxu1  ;;  %v6867_v58 = vsel %vm53_vm0, %v4880_v17, 0  ;;  %v7080_v17 = vsub.f32 %v13002_v48, %v13976_v44  ;;  %v7061_v39 = vand.u32 4294901760, %v7060_v32 }
 0x224   :  { %v13203_v8 = vand.u32 4294901760, %v6867_v58  ;;  %v5554_v16 = vpop.f32.mrb[21].mxu1  ;;  %10666 = vmatmul.mubr.f32.gmra.mrb[38].mxu1 %v7031_v35  ;;  %v13977_v35 = vand.u32 4294901760, %v12995_v54  ;;  %v6882_v21 = vsel %vm53_vm0, %v10480_v50, 0 }
 0x225   :  { %v6879_v10 = vsel %vm53_vm0, %v5554_v16, 0  ;;  %10668 = vmatprep.mubr.f32.mxu1 %v7041_v52  ;;  %v10405_v34 = vpop.f32.mrb[22].mxu0  ;;  %v13219_v16 = vsub.f32 %v6870_v18, %v13197_v27  ;;  %v13978_v18 = vand.u32 4294901760, %v13010_v0  ;;  %v7081_v53 = vand.u32 4294901760, %v7080_v17 }
 0x226   :  { %v13212_v12 = vsub.f32 %v6867_v58, %v13203_v8  ;;  %v6876_v7 = vsel %vm53_vm0, %v10405_v34, 0  ;;  %v4892_v40 = vpop.f32.mrb[23].mxu0  ;;  %v7070_v38 = vsub.f32 %v12995_v54, %v13977_v35  ;;  %v13225_v58 = vand.u32 4294901760, %v6879_v10 }
 0x227   :  { %v13221_v37 = vand.u32 4294901760, %v6876_v7  ;;  %v10483_v52 = vpop.f32.mrb[22].mxu1  ;;  %v6873_v44 = vsel %vm53_vm0, %v4892_v40, 0  ;;  %v7090_v40 = vsub.f32 %v13010_v0, %v13978_v18  ;;  %v13982_v17 = vand.u32 4294901760, %v13029_v46 }
 0x228   :  { %v13227_v28 = vand.u32 4294901760, %v6873_v44  ;;  %v5566_v34 = vpop.f32.mrb[23].mxu1  ;;  %10669 = vmatmul.mubr.f32.gmra.mrb[40].mxu1 %v7051_v13  ;;  %10796 = vmatprep.mubr.f32.mxu0 %v13212_v12  ;;  %v7071_v55 = vand.u32 4294901760, %v7070_v38  ;;  %v7100_v13 = vsub.f32 %v13021_v56, %v13979_v5  ;;  %v13249_v18 = vsub.f32 %v6879_v10, %v13225_v58  ;;  %v13985_v5 = vld [vmem:[#allocation14_spill] sm:$0xff] }
 0x229   :  { %v6885_v35 = vsel %vm53_vm0, %v5566_v34, 0  ;;  %10671 = vmatprep.mubr.f32.mxu1 %v7061_v39  ;;  %10797 = vmatmul.mubr.f32.gmra.mrb[48].mxu0 %v13219_v16  ;;  %v13243_v34 = vand.u32 4294901760, %v6882_v21  ;;  %v13246_v39 = vsub.f32 %v6876_v7, %v13221_v37  ;;  %v6888_v32 = vsel %vm53_vm0, %v10483_v52, 0 }
 0x22a   :  { %v13237_v50 = vsub.f32 %v6873_v44, %v13227_v28  ;;  %v13252_v44 = vand.u32 4294901760, %v6885_v35  ;;  %v7091_v38 = vand.u32 4294901760, %v7090_v40  ;;  %v7101_v7 = vand.u32 4294901760, %v7100_v13 }
 0x22b   :  { %13980 = vst [vmem:[#allocation44_spill] sm:$0xff] %v13243_v34  ;;  %v7110_v10 = vsub.f32 %v13029_v46, %v13982_v17  ;;  %v13263_v30 = vsub.f32 %v6882_v21, %v13243_v34  ;;  %v109_v40 = vmul.f32 %v13985_v5, %v13985_v5  ;;  %v110_v13 = vmul.f32 %v13986_v29, %v13986_v29  ;;  %v13989_v21 = vld [vmem:[#allocation16_spill] sm:$0xff] }
 0x22c   :  { %13981 = vst [vmem:[#allocation46_spill] sm:$0xff] %v13252_v44  ;;  %10672 = vmatmul.mubr.f32.gmra.mrb[42].mxu1 %v7071_v55  ;;  %10799 = vmatprep.mubr.f32.mxu0 %v13237_v50  ;;  %v13265_v55 = vand.u32 4294901760, %v6888_v32  ;;  %v13275_v25 = vsub.f32 %v6885_v35, %v13252_v44  ;;  %v111_v44 = vmul.f32 %v13989_v21, %v13989_v21  ;;  %v13991_v5 = vand.u32 4294901760, %v13096_v26 }
 0x22d   :  { %10674 = vmatprep.mubr.f32.mxu1 %v7081_v53  ;;  %10800 = vmatmul.mubr.f32.gmra.mrb[50].mxu0 %v13246_v39  ;;  %v13984_v53 = vand.u32 4294901760, %v13071_v61  ;;  %v7111_v17 = vand.u32 4294901760, %v7110_v10  ;;  %v126_v14 = vsel %vm53_vm0, %v109_v40, 0.0  ;;  %v127_v10 = vsel %vm53_vm0, %v110_v13, 0.0 }
 0x22e   :  { %10802 = vmatprep.mubr.f32.mxu0 %v13249_v18  ;;  %13983 = vst [vmem:[#allocation32_spill] sm:$0xff] %v13265_v55  ;;  %v13285_v29 = vsub.f32 %v6888_v32, %v13265_v55  ;;  %v128_v40 = vadd.f32 %v127_v10, %v126_v14  ;;  %v7179_v13 = vand.u32 4294901760, %v13115_v6  ;;  %v13992_v21 = vand.u32 4294901760, %v13099_v42 }
 0x22f   :  { %v7120_v62 = vsub.f32 %v13071_v61, %v13984_v53  ;;  %v13987_v53 = vand.u32 4294901760, %v13075_v3  ;;  %v13995_v10 = vand.u32 4294901760, %v12938_v43  ;;  %v13996_v43 = vld [vmem:[#allocation18_spill] sm:$0xff] }
 0x230   :  { %10675 = vmatmul.mubr.f32.gmra.mrb[44].mxu1 %v7091_v38  ;;  %v13988_v38 = vand.u32 4294901760, %v13091_v22 }
 0x231   :  { %10677 = vmatprep.mubr.f32.mxu1 %v7101_v7  ;;  %10803 = vmatmul.mubr.f32.gmra.mrb[52].mxu0 %v13263_v30  ;;  %v7130_v52 = vsub.f32 %v13075_v3, %v13987_v53  ;;  %v7121_v35 = vand.u32 4294901760, %v7120_v62  ;;  %v7169_v53 = vand.u32 4294901760, %v13110_v1  ;;  %v13990_v62 = vand.u32 4294901760, %v12926_v19 }
 0x232   :  { %10805 = vmatprep.mubr.f32.mxu0 %v13275_v25  ;;  %v7140_v7 = vsub.f32 %v13091_v22, %v13988_v38  ;;  %v7150_v38 = vsub.f32 %v13096_v26, %v13991_v5  ;;  %v13994_v19 = vand.u32 4294901760, %v12933_v31  ;;  %v7189_v5 = vand.u32 4294901760, %v13122_v23 }
 0x233   :  { %v7131_v32 = vand.u32 4294901760, %v7130_v52  ;;  %v129_v52 = vsel %vm53_vm0, %v111_v44, 0.0  ;;  %v7199_v44 = vand.u32 4294901760, %v13212_v12  ;;  %v7180_v31 = vsub.f32 %v13115_v6, %v7179_v13 }
 0x234   :  { %10678 = vmatmul.mubr.f32.gmra.mrb[46].mxu1 %v7111_v17  ;;  %v7141_v55 = vand.u32 4294901760, %v7140_v7  ;;  %v7160_v17 = vsub.f32 %v13099_v42, %v13992_v21  ;;  %v7151_v14 = vand.u32 4294901760, %v7150_v38  ;;  %v7170_v7 = vsub.f32 %v13110_v1, %v7169_v53 }
 0x235   :  { %10680 = vmatprep.mubr.f32.mxu1 %v7121_v35  ;;  %10806 = vmatmul.mubr.f32.gmra.mrb[54].mxu0 %v13285_v29  ;;  %v13993_v35 = vld [vmem:[#allocation17_spill] sm:$0xff]  ;;  %v113_v38 = vmul.f32 %v13996_v43, %v13996_v43 }
 0x236   :  { %10812 = vmatprep.mubr.f32.mxu0 %v13990_v62  ;;  %v112_v34 = vmul.f32 %v13993_v35, %v13993_v35  ;;  %v130_v62 = vadd.f32 %v129_v52, %v128_v40  ;;  %v7209_v40 = vand.u32 4294901760, %v13219_v16  ;;  %v7171_v21 = vand.u32 4294901760, %v7170_v7 }
 0x237   :  { %v7190_v35 = vsub.f32 %v13122_v23, %v7189_v5  ;;  %v133_v7 = vsel %vm53_vm0, %v113_v38, 0.0 }
 0x238   :  { %10681 = vmatmul.mubr.f32.gmra.mrb[48].mxu1 %v7131_v32  ;;  %v7161_v32 = vand.u32 4294901760, %v7160_v17  ;;  %v13998_v17 = vand.u32 4294901760, %v12951_v9  ;;  %v14000_v9 = vand.u32 4294901760, %v12958_v2 }
 0x239   :  { %10683 = vmatprep.mubr.f32.mxu1 %v7141_v55  ;;  %10813 = vmatmul.mubr.f32.vlgmr.msra.gmra.mrb[24].mxu0 %v13994_v19  ;;  %v131_v55 = vsel %vm53_vm0, %v112_v34, 0.0  ;;  %v7219_v34 = vand.u32 4294901760, %v13237_v50  ;;  %v7181_v19 = vand.u32 4294901760, %v7180_v31  ;;  %v7210_v31 = vsub.f32 %v13219_v16, %v7209_v40 }
 0x23a   :  { %10815 = vmatprep.mubr.f32.mxu0 %v13995_v10  ;;  %11199 = vmatpush3.bf16.msra.mxu0 %v13018_v41  ;;  %v13997_v41 = vand.u32 4294901760, %v12945_v24  ;;  %v132_v52 = vadd.f32 %v131_v55, %v130_v62  ;;  %v13999_v24 = vld [vmem:[#allocation19_spill] sm:$0xff]  ;;  %v7191_v62 = vand.u32 4294901760, %v7190_v35  ;;  %v14001_v55 = vand.u32 4294901760, %v12963_v57 }
 0x23b   :  { %11201 = vmatprep.subr.bf16.mxu0 %v12847_v4  ;;  %v114_v10 = vmul.f32 %v13999_v24, %v13999_v24  ;;  %v7220_v38 = vsub.f32 %v13237_v50, %v7219_v34  ;;  %v14003_v57 = vand.u32 4294901760, %v12970_v49  ;;  %v14004_v24 = vand.u32 4294901760, %v12975_v15  ;;  %v14005_v49 = vld [vmem:[#allocation21_spill] sm:$0xff]  ;;  %v14026_v50 = vld [vmem:[#allocation44_spill] sm:$0xff] }
 0x23c   :  { %10684 = vmatmul.mubr.f32.gmra.mrb[50].mxu1 %v7151_v14  ;;  %v7200_v14 = vsub.f32 %v13212_v12, %v7199_v44  ;;  %v134_v43 = vadd.f32 %v133_v7, %v132_v52  ;;  %v7211_v52 = vand.u32 4294901760, %v7210_v31  ;;  %v14006_v15 = vand.u32 4294901760, %v12982_v60  ;;  %v14008_v60 = vld [vmem:[#allocation22_spill] sm:$0xff] }
 0x23d   :  { %10686 = vmatprep.mubr.f32.mxu1 %v7161_v32  ;;  %10816 = vmatmul.mubr.f32.gmra.mrb[26].mxu0 %v13997_v41  ;;  %v7229_v32 = vand.u32 4294901760, %v13246_v39  ;;  %v7239_v41 = vand.u32 4294901760, %v13249_v18  ;;  %v135_v2 = vsel %vm53_vm0, %v114_v10, 0.0  ;;  %v7259_v10 = vand.u32 4294901760, %v13275_v25 }
 0x23e   :  { %10818 = vmatprep.mubr.f32.mxu0 %v13998_v17  ;;  %v7201_v17 = vand.u32 4294901760, %v7200_v14  ;;  %v136_v7 = vadd.f32 %v135_v2, %v134_v43  ;;  %v14007_v2 = vand.u32 4294901760, %v12987_v11  ;;  %v14009_v11 = vand.u32 4294901760, %v12995_v54 }
 0x23f   :  { %v7230_v14 = vsub.f32 %v13246_v39, %v7229_v32  ;;  %v14012_v54 = vand.u32 4294901760, %v13010_v0  ;;  %v14029_v39 = vld [vmem:[#allocation35_spill] sm:$0xff] }
 0x240   :  { %10687 = vmatmul.mubr.f32.gmra.mrb[52].mxu1 %v7171_v21  ;;  %v14002_v21 = vld [vmem:[#allocation20_spill] sm:$0xff] }
 0x241   :  { %10689 = vmatprep.mubr.f32.mxu1 %v7181_v19  ;;  %10819 = vmatmul.mubr.f32.gmra.mrb[28].mxu0 %v14000_v9  ;;  %v115_v35 = vmul.f32 %v14002_v21, %v14002_v21  ;;  %v7249_v19 = vand.u32 4294901760, %v13263_v30  ;;  %v7221_v9 = vand.u32 4294901760, %v7220_v38  ;;  %v7231_v43 = vand.u32 4294901760, %v7230_v14 }
 0x242   :  { %10821 = vmatprep.mubr.f32.mxu0 %v14001_v55  ;;  %v116_v55 = vmul.f32 %v14005_v49, %v14005_v49 }
 0x243   :  { %v137_v31 = vsel %vm53_vm0, %v115_v35, 0.0  ;;  %v7250_v38 = vsub.f32 %v13263_v30, %v7249_v19  ;;  %v7260_v35 = vsub.f32 %v13275_v25, %v7259_v10  ;;  %v14032_v30 = vld [vmem:[#allocation38_spill] sm:$0xff]  ;;  %v14033_v25 = vld [vmem:[#allocation39_spill] sm:$0xff] }
 0x244   :  { %10690 = vmatmul.mubr.f32.gmra.mrb[54].mxu1 %v7191_v62  ;;  %v7240_v62 = vsub.f32 %v13249_v18, %v7239_v41  ;;  %v138_v21 = vadd.f32 %v137_v31, %v136_v7  ;;  %v14011_v31 = vld [vmem:[#allocation23_spill] sm:$0xff]  ;;  %v14030_v18 = vld [vmem:[#allocation36_spill] sm:$0xff] }
 0x245   :  { %10692 = vmatprep.mubr.f32.mxu1 %v7201_v17  ;;  %10822 = vmatmul.mubr.f32.gmra.mrb[30].mxu0 %v14003_v57  ;;  %v7269_v17 = vand.u32 4294901760, %v13285_v29  ;;  %v7251_v14 = vand.u32 4294901760, %v7250_v38  ;;  %v7261_v49 = vand.u32 4294901760, %v7260_v35  ;;  %v14015_v35 = vand.u32 4294901760, %v13029_v46 }
 0x246   :  { %10824 = vmatprep.mubr.f32.mxu0 %v14004_v24  ;;  %v7241_v57 = vand.u32 4294901760, %v7240_v62  ;;  %v117_v24 = vmul.f32 %v14008_v60, %v14008_v60  ;;  %v14017_v60 = vld [vmem:[#allocation25_spill] sm:$0xff] }
 0x247   :  { %v7270_v7 = vsub.f32 %v13285_v29, %v7269_v17  ;;  %v14036_v29 = vld [vmem:[#allocation45_spill] sm:$0xff] }
 0x248   :  { %10693 = vmatmul.mubr.f32.gmra.mrb[56].mxu1 %v7211_v52  ;;  %v139_v52 = vsel %vm53_vm0, %v116_v55, 0.0  ;;  %v118_v55 = vmul.f32 %v14011_v31, %v14011_v31  ;;  %v14023_v31 = vld [vmem:[#allocation27_spill] sm:$0xff] }
 0x249   :  { %10695 = vmatprep.mubr.f32.mxu1 %v7221_v9  ;;  %10825 = vmatmul.mubr.f32.gmra.mrb[32].mxu0 %v14006_v15  ;;  %v14010_v9 = vand.u32 4294901760, %v13002_v48  ;;  %v140_v62 = vadd.f32 %v139_v52, %v138_v21  ;;  %v141_v15 = vsel %vm53_vm0, %v117_v24, 0.0  ;;  %v14013_v48 = vand.u32 4294901760, %v13021_v56 }
 0x24a   :  { %10827 = vmatprep.mubr.f32.mxu0 %v14007_v2  ;;  %v143_v38 = vsel %vm53_vm0, %v118_v55, 0.0  ;;  %v14016_v52 = vand.u32 4294901760, %v13071_v61  ;;  %v120_v56 = vmul.f32 %v14017_v60, %v14017_v60 }
 0x24b   :  { %v142_v2 = vadd.f32 %v141_v15, %v140_v62  ;;  %v14021_v62 = vand.u32 4294901760, %v13096_v26  ;;  %v14024_v15 = vld [vmem:[#allocation28_spill] sm:$0xff] }
 0x24c   :  { %10696 = vmatmul.mubr.f32.gmra.mrb[58].mxu1 %v7231_v43  ;;  %v7271_v43 = vand.u32 4294901760, %v7270_v7  ;;  %v147_v61 = vsel %vm53_vm0, %v120_v56, 0.0  ;;  %v14046_v56 = vld [vmem:[#allocation34_spill] sm:$0xff] }
 0x24d   :  { %10698 = vmatprep.mubr.f32.mxu1 %v7241_v57  ;;  %10828 = vmatmul.mubr.f32.gmra.mrb[34].mxu0 %v14009_v11  ;;  %v14014_v57 = vld [vmem:[#allocation24_spill] sm:$0xff]  ;;  %v144_v0 = vadd.f32 %v143_v38, %v142_v2  ;;  %v14018_v11 = vand.u32 4294901760, %v13075_v3  ;;  %v14041_v38 = vld [vmem:[#allocation53_spill] sm:$0xff] }
 0x24e   :  { %10830 = vmatprep.mubr.f32.mxu0 %v14010_v9  ;;  %v119_v21 = vmul.f32 %v14014_v57, %v14014_v57  ;;  %v14020_v9 = vld [vmem:[#allocation26_spill] sm:$0xff]  ;;  %v14040_v2 = vld [vmem:[#allocation52_spill] sm:$0xff]  ;;  %v14043_v57 = vld [vmem:[#allocation55_spill] sm:$0xff] }
 0x24f   :  { %v121_v7 = vmul.f32 %v14020_v9, %v14020_v9 }
 0x250   :  { %10699 = vmatmul.mubr.f32.gmra.mrb[60].mxu1 %v7251_v14  ;;  %v145_v24 = vsel %vm53_vm0, %v119_v21, 0.0  ;;  %v14019_v14 = vand.u32 4294901760, %v13091_v22  ;;  %v122_v22 = vmul.f32 %v14023_v31, %v14023_v31  ;;  %v14044_v21 = vld [vmem:[#allocation56_spill] sm:$0xff] }
 0x251   :  { %10701 = vmatprep.mubr.f32.mxu1 %v7261_v49  ;;  %10831 = vmatmul.mubr.f32.gmra.mrb[36].mxu0 %v14012_v54  ;;  %v146_v46 = vadd.f32 %v145_v24, %v144_v0  ;;  %v14022_v49 = vand.u32 4294901760, %v13099_v42  ;;  %v149_v55 = vsel %vm53_vm0, %v121_v7, 0.0  ;;  %v123_v54 = vmul.f32 %v14024_v15, %v14024_v15 }
 0x252   :  { %10833 = vmatprep.mubr.f32.mxu0 %v14013_v48  ;;  %v151_v42 = vsel %vm53_vm0, %v122_v22, 0.0  ;;  %v14039_v48 = vld [vmem:[#allocation51_spill] sm:$0xff] }
 0x253   :  { %v148_v3 = vadd.f32 %v147_v61, %v146_v46 }
 0x254   :  { %10702 = vmatmul.mubr.f32.gmra.mrb[62].mxu1 %v7271_v43  ;;  %v14028_v43 = vld [vmem:[#allocation32_spill] sm:$0xff] }
 0x255   :  { %10732 = vmatprep.mubr.f32.mxu1 %v13065_v47  ;;  %10834 = vmatmul.mubr.f32.gmra.mrb[38].mxu0 %v14015_v35  ;;  %v150_v26 = vadd.f32 %v149_v55, %v148_v3 }
 0x256   :  { %10836 = vmatprep.mubr.f32.mxu0 %v14016_v52  ;;  %v14045_v52 = vld [vmem:[#allocation33_spill] sm:$0xff] }
 0x257   :  { %v152_v1 = vadd.f32 %v151_v42, %v150_v26  ;;  %v14047_v26 = vld [vmem:[#allocation47_spill] sm:$0xff] }
 0x258   :  { %10733 = vmatmul.mubr.f32.vlgmr.msra.gmra.mrb[48].mxu1 %v13062_v51 }
 0x259   :  { %10735 = vmatprep.mubr.f32.mxu1 %v13083_v59  ;;  %10837 = vmatmul.mubr.f32.gmra.mrb[40].mxu0 %v14018_v11 }
 0x25a   :  { %10839 = vmatprep.mubr.f32.mxu0 %v14019_v14 }
 0x25c   :  { %10736 = vmatmul.mubr.f32.gmra.mrb[50].mxu1 %v13077_v45 }
 0x25d   :  { %10738 = vmatprep.mubr.f32.mxu1 %v13081_v33  ;;  %10840 = vmatmul.mubr.f32.gmra.mrb[42].mxu0 %v14021_v62 }
 0x25e   :  { %10842 = vmatprep.mubr.f32.mxu0 %v14022_v49 }
 0x260   :  { %10739 = vmatmul.mubr.f32.gmra.mrb[52].mxu1 %v13093_v36 }
 0x261   :  { %10741 = vmatprep.mubr.f32.mxu1 %v13102_v20  ;;  %10843 = vmatmul.mubr.f32.gmra.mrb[44].mxu0 %v7169_v53  ;;  %v14025_v53 = vld [vmem:[#allocation29_spill] sm:$0xff] }
 0x262   :  { %10845 = vmatprep.mubr.f32.mxu0 %v7179_v13  ;;  %v124_v6 = vmul.f32 %v14025_v53, %v14025_v53  ;;  %v153_v13 = vsel %vm53_vm0, %v123_v54, 0.0 }
 0x263   :  { %v154_v23 = vadd.f32 %v153_v13, %v152_v1  ;;  %v14048_v1 = vld [vmem:[#allocation48_spill] sm:$0xff] }
 0x264   :  { %10742 = vmatmul.mubr.f32.gmra.mrb[54].mxu1 %v13112_v63  ;;  %v155_v12 = vsel %vm53_vm0, %v124_v6, 0.0 }
 0x265   :  { %10744 = vmatprep.mubr.f32.mxu1 %v13203_v8  ;;  %10846 = vmatmul.mubr.f32.gmra.mrb[46].mxu0 %v7189_v5  ;;  %v11828_v5 = vmov 0.0   ;;  %v156_v16 = vadd.f32 %v155_v12, %v154_v23 }
 0x266   :  { %10848 = vmatprep.mubr.f32.mxu0 %v7199_v44  ;;  %54 = vst.msk [vmem:[#allocation2] sm:$0xff] %vm53_vm0, %v11828_v5  ;;  %55 = vst.msk [vmem:[#allocation3] sm:$0xff] %vm53_vm0, %v11828_v5  ;;  %v14027_v44 = vld [vmem:[#allocation46_spill] sm:$0xff] }
 0x267   :  { %56 = vst.msk [vmem:[#allocation4] sm:$0xff] %vm53_vm0, %v11828_v5 }
 0x268   :  { %10745 = vmatmul.mubr.f32.gmra.mrb[56].mxu1 %v13197_v27 }
 0x269   :  { %10747 = vmatprep.mubr.f32.mxu1 %v13227_v28  ;;  %10849 = vmatmul.mubr.f32.gmra.mrb[48].mxu0 %v7209_v40 }
 0x26a   :  { %10851 = vmatprep.mubr.f32.mxu0 %v7219_v34 }
 0x26c   :  { %10748 = vmatmul.mubr.f32.gmra.mrb[58].mxu1 %v13221_v37 }
 0x26d   :  { %10750 = vmatprep.mubr.f32.mxu1 %v13225_v58  ;;  %10852 = vmatmul.mubr.f32.gmra.mrb[50].mxu0 %v7229_v32  ;;  %v157_v40 = vld [vmem:[#allocation2] sm:$0xff]  ;;  %v14031_v32 = vld [vmem:[#allocation37_spill] sm:$0xff] }
 0x26e   :  { %10854 = vmatprep.mubr.f32.mxu0 %v7239_v41  ;;  %v158_v34 = vadd.f32 %v157_v40, %v156_v16  ;;  %v14034_v41 = vld [vmem:[#allocation41_spill] sm:$0xff] }
 0x270   :  { %10751 = vmatmul.mubr.f32.gmra.mrb[60].mxu1 %v14026_v50  ;;  %159 = vst.msk [vmem:[#allocation2] sm:$0xff] %vm53_vm0, %v158_v34 }
 0x271   :  { %10753 = vmatprep.mubr.f32.mxu1 %v14027_v44  ;;  %10855 = vmatmul.mubr.f32.gmra.mrb[52].mxu0 %v7249_v19  ;;  %v14035_v19 = vld [vmem:[#allocation43_spill] sm:$0xff] }
 0x272   :  { %10857 = vmatprep.mubr.f32.mxu0 %v7259_v10  ;;  %v14037_v10 = vld [vmem:[#allocation49_spill] sm:$0xff] }
 0x274   :  { %10754 = vmatmul.mubr.f32.gmra.mrb[62].mxu1 %v14028_v43 }
 0x275   :  { %10858 = vmatmul.mubr.f32.gmra.mrb[54].mxu0 %v7269_v17  ;;  %v14038_v17 = vld [vmem:[#allocation50_spill] sm:$0xff] }
 0x276   :  { %10864 = vmatprep.mubr.f32.mxu0 %v14029_v39 }
 0x279   :  { %10865 = vmatmul.mubr.f32.vlgmr.msra.gmra.mrb[24].mxu0 %v14030_v18 }
 0x27a   :  { %10867 = vmatprep.mubr.f32.mxu0 %v14031_v32  ;;  %11203 = vmatpush3.bf16.msra.mxu0 %v12847_v4  ;;  %v14042_v4 = vld [vmem:[#allocation54_spill] sm:$0xff] }
 0x27d   :  { %10868 = vmatmul.mubr.f32.gmra.mrb[26].mxu0 %v14032_v30 }
 0x27e   :  { %10870 = vmatprep.mubr.f32.mxu0 %v14033_v25 }
 0x281   :  { %10871 = vmatmul.mubr.f32.gmra.mrb[28].mxu0 %v14034_v41 }
 0x282   :  { %10873 = vmatprep.mubr.f32.mxu0 %v14035_v19 }
 0x285   :  { %10874 = vmatmul.mubr.f32.gmra.mrb[30].mxu0 %v14036_v29 }
 0x286   :  { %10876 = vmatprep.mubr.f32.mxu0 %v14037_v10 }
 0x289   :  { %10877 = vmatmul.mubr.f32.gmra.mrb[32].mxu0 %v14038_v17 }
 0x28a   :  { %10879 = vmatprep.mubr.f32.mxu0 %v14039_v48 }
 0x28d   :  { %10880 = vmatmul.mubr.f32.gmra.mrb[34].mxu0 %v14040_v2 }
 0x28e   :  { %10882 = vmatprep.mubr.f32.mxu0 %v14041_v38 }
 0x291   :  { %10883 = vmatmul.mubr.f32.gmra.mrb[36].mxu0 %v14042_v4 }
 0x292   :  { %10885 = vmatprep.mubr.f32.mxu0 %v14043_v57 }
 0x295   :  { %10886 = vmatmul.mubr.f32.gmra.mrb[38].mxu0 %v14044_v21 }
 0x296   :  { %10888 = vmatprep.mubr.f32.mxu0 %v13065_v47 }
 0x299   :  { %10889 = vmatmul.mubr.f32.gmra.mrb[40].mxu0 %v13062_v51 }
 0x29a   :  { %10891 = vmatprep.mubr.f32.mxu0 %v13083_v59 }
 0x29d   :  { %10892 = vmatmul.mubr.f32.gmra.mrb[42].mxu0 %v13077_v45 }
 0x29e   :  { %10894 = vmatprep.mubr.f32.mxu0 %v13081_v33 }
 0x2a1   :  { %10895 = vmatmul.mubr.f32.gmra.mrb[44].mxu0 %v13093_v36 }
 0x2a2   :  { %10897 = vmatprep.mubr.f32.mxu0 %v13102_v20 }
 0x2a5   :  { %10898 = vmatmul.mubr.f32.gmra.mrb[46].mxu0 %v13112_v63 }
 0x2a6   :  { %10900 = vmatprep.mubr.f32.mxu0 %v13203_v8 }
 0x2a9   :  { %10901 = vmatmul.mubr.f32.gmra.mrb[48].mxu0 %v13197_v27 }
 0x2aa   :  { %10903 = vmatprep.mubr.f32.mxu0 %v13227_v28 }
 0x2ad   :  { %10904 = vmatmul.mubr.f32.gmra.mrb[50].mxu0 %v13221_v37 }
 0x2ae   :  { %10906 = vmatprep.mubr.f32.mxu0 %v13225_v58 }
 0x2b1   :  { %10907 = vmatmul.mubr.f32.gmra.mrb[52].mxu0 %v14026_v50 }
 0x2b2   :  { %10909 = vmatprep.mubr.f32.mxu0 %v14027_v44 }
 0x2b5   :  { %10910 = vmatmul.mubr.f32.gmra.mrb[54].mxu0 %v14028_v43 }
 0x2b6   :  { %10916 = vmatprep.mubr.f32.mxu0 %v14029_v39 }
 0x2b9   :  { %10917 = vmatmul.mubr.f32.vlgmr.msra.gmra.mrb[24].mxu0 %v14030_v18 }
 0x2ba   :  { %10919 = vmatprep.mubr.f32.mxu0 %v14031_v32 }
 0x2bd   :  { %10920 = vmatmul.mubr.f32.gmra.mrb[26].mxu0 %v14032_v30 }
 0x2be   :  { %10922 = vmatprep.mubr.f32.mxu0 %v14033_v25  ;;  %v14049_v25 = vld [vmem:[#allocation40_spill] sm:$0xff] }
 0x2c1   :  { %10923 = vmatmul.mubr.f32.gmra.mrb[28].mxu0 %v14034_v41 }
 0x2c2   :  { %10925 = vmatprep.mubr.f32.mxu0 %v14035_v19 }
 0x2c5   :  { %10926 = vmatmul.mubr.f32.gmra.mrb[30].mxu0 %v14036_v29  ;;  %v14050_v29 = vld [vmem:[#allocation42_spill] sm:$0xff] }
 0x2c6   :  { %10928 = vmatprep.mubr.f32.mxu0 %v14037_v10 }
 0x2c9   :  { %10929 = vmatmul.mubr.f32.gmra.mrb[32].mxu0 %v14038_v17 }
 0x2ca   :  { %10931 = vmatprep.mubr.f32.mxu0 %v14039_v48 }
 0x2cb   :  { %v10630_v35 = vpop.f32.mrb[24].mxu1 }
 0x2cc   :  { %v11206_v0 = vadd.f32 %v10630_v35, %v14045_v52  ;;  %v6634_v60 = vpop.f32.mrb[25].mxu1 }
 0x2cd   :  { %v11207_v24 = vadd.f32 %v6634_v60, %v14046_v56  ;;  %10932 = vmatmul.mubr.f32.gmra.mrb[34].mxu0 %v14040_v2  ;;  %v14051_v60 = vld [vmem:[#allocation30_spill] sm:$0xff] }
 0x2ce   :  { %v6745_v11 = vmul.f32 %v11206_v0, %v11206_v0  ;;  %10934 = vmatprep.mubr.f32.mxu0 %v14041_v38 }
 0x2cf   :  { %v6744_v14 = vmul.f32 %v11207_v24, %v11207_v24  ;;  %v10633_v46 = vpop.f32.mrb[0].mxu1 }
 0x2d0   :  { %v6761_v61 = vsel %vm53_vm0, %v6745_v11, 0.0  ;;  %v6646_v9 = vpop.f32.mrb[1].mxu1  ;;  %v6747_v62 = vmul.f32 %v10633_v46, %v10633_v46 }
 0x2d1   :  { %v6760_v7 = vsel %vm53_vm0, %v6744_v14, 0.0  ;;  %v6746_v49 = vmul.f32 %v6646_v9, %v6646_v9  ;;  %10935 = vmatmul.mubr.f32.gmra.mrb[36].mxu0 %v14042_v4  ;;  %v14052_v14 = vld [vmem:[#allocation31_spill] sm:$0xff] }
 0x2d2   :  { %v6762_v3 = vadd.f32 %v6761_v61, %v6760_v7  ;;  %10937 = vmatprep.mubr.f32.mxu0 %v14043_v57  ;;  %v6765_v54 = vsel %vm53_vm0, %v6747_v62, 0.0 }
 0x2d3   :  { %v6763_v31 = vsel %vm53_vm0, %v6746_v49, 0.0  ;;  %v10636_v22 = vpop.f32.mrb[26].mxu1 }
 0x2d4   :  { %v6764_v55 = vadd.f32 %v6763_v31, %v6762_v3  ;;  %v11208_v42 = vadd.f32 %v10636_v22, %v14047_v26  ;;  %v6658_v15 = vpop.f32.mrb[27].mxu1 }
 0x2d5   :  { %v11209_v53 = vadd.f32 %v6658_v15, %v14048_v1  ;;  %10938 = vmatmul.mubr.f32.gmra.mrb[38].mxu0 %v14044_v21 }
 0x2d6   :  { %v6766_v6 = vadd.f32 %v6765_v54, %v6764_v55  ;;  %10940 = vmatprep.mubr.f32.mxu0 %v13065_v47  ;;  %v6749_v13 = vmul.f32 %v11208_v42, %v11208_v42 }
 0x2d7   :  { %v6748_v23 = vmul.f32 %v11209_v53, %v11209_v53  ;;  %v10639_v5 = vpop.f32.mrb[6].mxu1  ;;  %v6791_v53 = vld [vmem:[#allocation3] sm:$0xff] }
 0x2d8   :  { %v6670_v12 = vpop.f32.mrb[7].mxu1  ;;  %v6769_v39 = vsel %vm53_vm0, %v6749_v13, 0.0  ;;  %v6751_v18 = vmul.f32 %v10639_v5, %v10639_v5 }
 0x2d9   :  { %v6767_v16 = vsel %vm53_vm0, %v6748_v23, 0.0  ;;  %v6750_v40 = vmul.f32 %v6670_v12, %v6670_v12  ;;  %10941 = vmatmul.mubr.f32.gmra.mrb[40].mxu0 %v13062_v51 }
 0x2da   :  { %v6768_v34 = vadd.f32 %v6767_v16, %v6766_v6  ;;  %10943 = vmatprep.mubr.f32.mxu0 %v13083_v59  ;;  %v6773_v51 = vsel %vm53_vm0, %v6751_v18, 0.0 }
 0x2db   :  { %v10642_v32 = vpop.f32.mrb[28].mxu1  ;;  %v6771_v19 = vsel %vm53_vm0, %v6750_v40, 0.0 }
 0x2dc   :  { %v6770_v30 = vadd.f32 %v6769_v39, %v6768_v34  ;;  %v11210_v41 = vadd.f32 %v10642_v32, %v14049_v25  ;;  %v6682_v47 = vpop.f32.mrb[29].mxu1 }
 0x2dd   :  { %v11211_v10 = vadd.f32 %v6682_v47, %v14050_v29  ;;  %10944 = vmatmul.mubr.f32.gmra.mrb[42].mxu0 %v13077_v45 }
 0x2de   :  { %v6772_v17 = vadd.f32 %v6771_v19, %v6770_v30  ;;  %10946 = vmatprep.mubr.f32.mxu0 %v13081_v33  ;;  %v6753_v59 = vmul.f32 %v11210_v41, %v11210_v41 }
 0x2df   :  { %v6752_v48 = vmul.f32 %v11211_v10, %v11211_v10  ;;  %v10645_v2 = vpop.f32.mrb[12].mxu1 }
 0x2e0   :  { %v6774_v38 = vadd.f32 %v6773_v51, %v6772_v17  ;;  %v6694_v4 = vpop.f32.mrb[13].mxu1  ;;  %v6777_v45 = vsel %vm53_vm0, %v6753_v59, 0.0  ;;  %v6755_v52 = vmul.f32 %v10645_v2, %v10645_v2 }
 0x2e1   :  { %v6775_v57 = vsel %vm53_vm0, %v6752_v48, 0.0  ;;  %v6754_v21 = vmul.f32 %v6694_v4, %v6694_v4  ;;  %10947 = vmatmul.mubr.f32.gmra.mrb[44].mxu0 %v13093_v36 }
 0x2e2   :  { %v6776_v35 = vadd.f32 %v6775_v57, %v6774_v38  ;;  %10949 = vmatprep.mubr.f32.mxu0 %v13102_v20  ;;  %v6781_v36 = vsel %vm53_vm0, %v6755_v52, 0.0 }
 0x2e3   :  { %v10648_v0 = vpop.f32.mrb[30].mxu1  ;;  %v6779_v11 = vsel %vm53_vm0, %v6754_v21, 0.0 }
 0x2e4   :  { %v6778_v33 = vadd.f32 %v6777_v45, %v6776_v35  ;;  %v11212_v56 = vadd.f32 %v10648_v0, %v14051_v60  ;;  %v6706_v24 = vpop.f32.mrb[31].mxu1 }
 0x2e5   :  { %v11213_v46 = vadd.f32 %v6706_v24, %v14052_v14  ;;  %10950 = vmatmul.mubr.f32.gmra.mrb[46].mxu0 %v13112_v63 }
 0x2e6   :  { %v6780_v61 = vadd.f32 %v6779_v11, %v6778_v33  ;;  %10952 = vmatprep.mubr.f32.mxu0 %v13203_v8  ;;  %v6757_v20 = vmul.f32 %v11212_v56, %v11212_v56 }
 0x2e7   :  { %v6756_v9 = vmul.f32 %v11213_v46, %v11213_v46  ;;  %v10651_v7 = vpop.f32.mrb[18].mxu1 }
 0x2e8   :  { %v6782_v62 = vadd.f32 %v6781_v36, %v6780_v61  ;;  %v6718_v49 = vpop.f32.mrb[19].mxu1  ;;  %v6785_v63 = vsel %vm53_vm0, %v6757_v20, 0.0  ;;  %v6759_v55 = vmul.f32 %v10651_v7, %v10651_v7 }
 0x2e9   :  { %v6783_v3 = vsel %vm53_vm0, %v6756_v9, 0.0  ;;  %v6758_v31 = vmul.f32 %v6718_v49, %v6718_v49  ;;  %10953 = vmatmul.mubr.f32.gmra.mrb[48].mxu0 %v13197_v27 }
 0x2ea   :  { %v6784_v22 = vadd.f32 %v6783_v3, %v6782_v62  ;;  %10955 = vmatprep.mubr.f32.mxu0 %v13227_v28  ;;  %v6789_v1 = vsel %vm53_vm0, %v6759_v55, 0.0 }
 0x2eb   :  { %v10658_v26 = vpop.f32.mrb[32].mxu1  ;;  %v6787_v15 = vsel %vm53_vm0, %v6758_v31, 0.0 }
 0x2ec   :  { %v6786_v8 = vadd.f32 %v6785_v63, %v6784_v22  ;;  %v6963_v42 = vpop.f32.mrb[33].mxu1 }
 0x2ed   :  { %10956 = vmatmul.mubr.f32.gmra.mrb[50].mxu0 %v13221_v37 }
 0x2ee   :  { %v6788_v54 = vadd.f32 %v6787_v15, %v6786_v8  ;;  %10958 = vmatprep.mubr.f32.mxu0 %v13225_v58 }
 0x2ef   :  { %v10661_v27 = vpop.f32.mrb[34].mxu1 }
 0x2f0   :  { %v6790_v6 = vadd.f32 %v6789_v1, %v6788_v54  ;;  %v6983_v13 = vpop.f32.mrb[35].mxu1 }
 0x2f1   :  { %10959 = vmatmul.mubr.f32.gmra.mrb[52].mxu0 %v14026_v50 }
 0x2f2   :  { %v6792_v28 = vadd.f32 %v6791_v53, %v6790_v6  ;;  %10961 = vmatprep.mubr.f32.mxu0 %v14027_v44 }
 0x2f3   :  { %v10664_v23 = vpop.f32.mrb[36].mxu1 }
 0x2f4   :  { %6793 = vst.msk [vmem:[#allocation3] sm:$0xff] %vm53_vm0, %v6792_v28  ;;  %v7003_v5 = vpop.f32.mrb[37].mxu1 }
 0x2f5   :  { %10962 = vmatmul.mubr.f32.gmra.mrb[54].mxu0 %v14028_v43 }
 0x2f7   :  { %v10667_v37 = vpop.f32.mrb[38].mxu1 }
 0x2f8   :  { %v7023_v12 = vpop.f32.mrb[39].mxu1 }
 0x2fb   :  { %v10670_v58 = vpop.f32.mrb[40].mxu1 }
 0x2fc   :  { %v7043_v16 = vpop.f32.mrb[41].mxu1 }
 0x2ff   :  { %v10673_v40 = vpop.f32.mrb[42].mxu1 }
 0x300   :  { %v7063_v34 = vpop.f32.mrb[43].mxu1 }
 0x303   :  { %v10676_v39 = vpop.f32.mrb[44].mxu1 }
 0x304   :  { %v7083_v18 = vpop.f32.mrb[45].mxu1 }
 0x307   :  { %v10679_v32 = vpop.f32.mrb[46].mxu1 }
 0x308   :  { %v7103_v30 = vpop.f32.mrb[47].mxu1 }
 0x32b   :  { %v10734_v50 = vpop.f32.mrb[48].mxu1 }
 0x32c   :  { %v7450_v25 = vpop.f32.mrb[49].mxu1 }
 0x32f   :  { %v10737_v41 = vpop.f32.mrb[50].mxu1 }
 0x330   :  { %v7462_v44 = vpop.f32.mrb[51].mxu1 }
 0x333   :  { %v13561_v47 = vpop.f32.mrb[52].mxu1 }
 0x334   :  { %v13563_v19 = vpop.f32.mrb[53].mxu1 }
 0x337   :  { %v13565_v29 = vpop.f32.mrb[54].mxu1 }
 0x338   :  { %v13567_v43 = vpop.f32.mrb[55].mxu1 }
 0x33b   :  { %v13569_v10 = vpop.f32.mrb[56].mxu1 }
 0x33c   :  { %v13571_v17 = vpop.f32.mrb[57].mxu1 }
 0x33f   :  { %v13573_v51 = vpop.f32.mrb[58].mxu1 }
 0x340   :  { %v13575_v59 = vpop.f32.mrb[59].mxu1 }
 0x343   :  { %v13577_v48 = vpop.f32.mrb[60].mxu1 }
 0x344   :  { %v13579_v2 = vpop.f32.mrb[61].mxu1 }
 0x347   :  { %v13581_v38 = vpop.f32.mrb[62].mxu1 }
 0x348   :  { %v13583_v4 = vpop.f32.mrb[63].mxu1 }
 0x38c   :  { %v10918_v57 = vpop.f32.mrb[24].mxu0 }
 0x38d   :  { %v13585_v21 = vadd.f32 %v10918_v57, %v10658_v26  ;;  %v8492_v35 = vpop.f32.mrb[25].mxu0 }
 0x38e   :  { %v13587_v45 = vadd.f32 %v8492_v35, %v6963_v42 }
 0x390   :  { %v10921_v52 = vpop.f32.mrb[26].mxu0 }
 0x391   :  { %v13589_v0 = vadd.f32 %v10921_v52, %v10661_v27  ;;  %v8504_v33 = vpop.f32.mrb[27].mxu0 }
 0x392   :  { %v13591_v60 = vadd.f32 %v8504_v33, %v6983_v13 }
 0x393   :  { %8764 = vrot.lane.b32.xlu0 %v13589_v0, %s11829_s3 }
 0x394   :  { %v10924_v56 = vpop.f32.mrb[28].mxu0 }
 0x395   :  { %v13595_v24 = vadd.f32 %v10924_v56, %v10664_v23  ;;  %v8516_v11 = vpop.f32.mrb[29].mxu0 }
 0x396   :  { %v13597_v14 = vadd.f32 %v8516_v11, %v7003_v5 }
 0x397   :  { %8762 = vrot.lane.b32.xlu0 %v13591_v60, %s11829_s3 }
 0x398   :  { %v10927_v46 = vpop.f32.mrb[30].mxu0 }
 0x399   :  { %v13601_v61 = vadd.f32 %v10927_v46, %v10667_v37  ;;  %v8528_v36 = vpop.f32.mrb[31].mxu0 }
 0x39a   :  { %v13603_v20 = vadd.f32 %v8528_v36, %v7023_v12 }
 0x39b   :  { %8768 = vrot.lane.b32.xlu1 %v13601_v61, %s11829_s3 }
 0x39c   :  { %v10930_v9 = vpop.f32.mrb[32].mxu0 }
 0x39d   :  { %v13607_v7 = vadd.f32 %v10930_v9, %v10670_v58  ;;  %v8540_v62 = vpop.f32.mrb[33].mxu0 }
 0x39e   :  { %v13609_v49 = vadd.f32 %v8540_v62, %v7043_v16 }
 0x39f   :  { %8766 = vrot.lane.b32.xlu1 %v13603_v20, %s11829_s3 }
 0x3a0   :  { %v10933_v3 = vpop.f32.mrb[34].mxu0 }
 0x3a1   :  { %v11224_v31 = vadd.f32 %v10933_v3, %v10673_v40  ;;  %v8552_v22 = vpop.f32.mrb[35].mxu0 }
 0x3a2   :  { %v11225_v63 = vadd.f32 %v8552_v22, %v7063_v34 }
 0x3a3   :  { %8772 = vrot.lane.b32.xlu1 %v11224_v31, %s11829_s3 }
 0x3a4   :  { %v10936_v55 = vpop.f32.mrb[36].mxu0  ;;  %8770 = vrot.lane.b32.xlu0 %v11225_v63, %s11829_s3 }
 0x3a5   :  { %v13615_v26 = vadd.f32 %v10936_v55, %v10676_v39  ;;  %v8564_v8 = vpop.f32.mrb[37].mxu0 }
 0x3a6   :  { %v13617_v42 = vadd.f32 %v8564_v8, %v7083_v18 }
 0x3a8   :  { %v10939_v15 = vpop.f32.mrb[38].mxu0 }
 0x3a9   :  { %v11228_v54 = vadd.f32 %v10939_v15, %v10679_v32  ;;  %v8576_v1 = vpop.f32.mrb[39].mxu0 }
 0x3aa   :  { %v11229_v53 = vadd.f32 %v8576_v1, %v7103_v30 }
 0x3ab   :  { %8776 = vrot.lane.b32.xlu1 %v11228_v54, %s11829_s3 }
 0x3ac   :  { %v10942_v27 = vpop.f32.mrb[40].mxu0  ;;  %8774 = vrot.lane.b32.xlu0 %v11229_v53, %s11829_s3 }
 0x3ad   :  { %v13621_v6 = vadd.f32 %v10942_v27, %v10734_v50  ;;  %v8588_v13 = vpop.f32.mrb[41].mxu0 }
 0x3ae   :  { %v13623_v28 = vadd.f32 %v8588_v13, %v7450_v25 }
 0x3b0   :  { %v10945_v23 = vpop.f32.mrb[42].mxu0 }
 0x3b1   :  { %v11232_v5 = vadd.f32 %v10945_v23, %v10737_v41  ;;  %v8600_v37 = vpop.f32.mrb[43].mxu0 }
 0x3b2   :  { %v11233_v12 = vadd.f32 %v8600_v37, %v7462_v44 }
 0x3b3   :  { %8780 = vrot.lane.b32.xlu1 %v11232_v5, %s11829_s3 }
 0x3b4   :  { %v10948_v58 = vpop.f32.mrb[44].mxu0  ;;  %8778 = vrot.lane.b32.xlu0 %v11233_v12, %s11829_s3 }
 0x3b5   :  { %v13628_v16 = vadd.f32 %v10948_v58, %v13561_v47  ;;  %v8612_v40 = vpop.f32.mrb[45].mxu0 }
 0x3b6   :  { %v13631_v34 = vadd.f32 %v8612_v40, %v13563_v19 }
 0x3b8   :  { %v10951_v39 = vpop.f32.mrb[46].mxu0 }
 0x3b9   :  { %v11236_v18 = vadd.f32 %v10951_v39, %v13565_v29  ;;  %v8624_v32 = vpop.f32.mrb[47].mxu0 }
 0x3ba   :  { %v11237_v30 = vadd.f32 %v8624_v32, %v13567_v43 }
 0x3bb   :  { %8784 = vrot.lane.b32.xlu1 %v11236_v18, %s11829_s3 }
 0x3bc   :  { %v10954_v50 = vpop.f32.mrb[48].mxu0  ;;  %8782 = vrot.lane.b32.xlu0 %v11237_v30, %s11829_s3 }
 0x3bd   :  { %v13638_v25 = vadd.f32 %v10954_v50, %v13569_v10  ;;  %v8636_v41 = vpop.f32.mrb[49].mxu0 }
 0x3be   :  { %v13641_v44 = vadd.f32 %v8636_v41, %v13571_v17 }
 0x3c0   :  { %v10957_v47 = vpop.f32.mrb[50].mxu0 }
 0x3c1   :  { %v11240_v19 = vadd.f32 %v10957_v47, %v13573_v51  ;;  %v8648_v57 = vpop.f32.mrb[51].mxu0 }
 0x3c2   :  { %v11241_v29 = vadd.f32 %v8648_v57, %v13575_v59 }
 0x3c3   :  { %8788 = vrot.lane.b32.xlu1 %v11240_v19, %s11829_s3 }
 0x3c4   :  { %v10960_v43 = vpop.f32.mrb[52].mxu0  ;;  %8786 = vrot.lane.b32.xlu0 %v11241_v29, %s11829_s3 }
 0x3c5   :  { %v13648_v35 = vadd.f32 %v10960_v43, %v13577_v48  ;;  %v8660_v10 = vpop.f32.mrb[53].mxu0 }
 0x3c6   :  { %v13651_v52 = vadd.f32 %v8660_v10, %v13579_v2 }
 0x3c8   :  { %v10963_v17 = vpop.f32.mrb[54].mxu0 }
 0x3c9   :  { %v11244_v33 = vadd.f32 %v10963_v17, %v13581_v38  ;;  %v8672_v56 = vpop.f32.mrb[55].mxu0 }
 0x3ca   :  { %v11245_v51 = vadd.f32 %v8672_v56, %v13583_v4 }
 0x3cb   :  { %8792 = vrot.lane.b32.xlu1 %v11244_v33, %s11829_s3 }
 0x3cc   :  { %8790 = vrot.lane.b32.xlu0 %v11245_v51, %s11829_s3 }
 0x3cf   :  { %8700 = vrot.lane.b32.xlu1 %v13589_v0, %s11830_s10 }
 0x3d0   :  { %8698 = vrot.lane.b32.xlu0 %v13591_v60, %s11830_s10 }
 0x3d3   :  { %8704 = vrot.lane.b32.xlu1 %v13601_v61, %s11830_s10 }
 0x3d4   :  { %8702 = vrot.lane.b32.xlu0 %v13603_v20, %s11830_s10 }
 0x3d8   :  { %8706 = vrot.lane.b32.xlu0 %v11225_v63, %s11830_s10 }
 0x3dc   :  { %8708 = vrot.lane.b32.xlu0 %v11224_v31, %s11830_s10 }
 0x3e0   :  { %8710 = vrot.lane.b32.xlu0 %v11229_v53, %s11830_s10 }
 0x3e4   :  { %8712 = vrot.lane.b32.xlu0 %v11228_v54, %s11830_s10 }
 0x3e8   :  { %8714 = vrot.lane.b32.xlu0 %v11233_v12, %s11830_s10 }
 0x3ec   :  { %8716 = vrot.lane.b32.xlu0 %v11232_v5, %s11830_s10 }
 0x405   :  { %v8765_v59 = vpop.permute.xlu0 %8764 }
 0x406   :  { %v8811_v48 = vadd.f32 %v13585_v21, %v8765_v59 }
 0x408   :  { %v8843_v2 = vmul.f32 %v8811_v48, %v8811_v48 }
 0x409   :  { %v8763_v38 = vpop.permute.xlu0 %8762 }
 0x40a   :  { %v8810_v4 = vadd.f32 %v13587_v45, %v8763_v38  ;;  %8876 = vrot.lane.b32.xlu1 %v8843_v2, %s11830_s10  ;;  %v9087_v2 = vld [vmem:[#allocation2] sm:$0xff] }
 0x40c   :  { %v8842_v0 = vmul.f32 %v8810_v4, %v8810_v4  ;;  %v9088_v4 = vsel %vm53_vm0, %v9087_v2, 0.0 }
 0x40d   :  { %v8769_v60 = vpop.permute.xlu1 %8768 }
 0x40e   :  { %v8813_v11 = vadd.f32 %v13595_v24, %v8769_v60  ;;  %8874 = vrot.lane.b32.xlu0 %v8842_v0, %s11830_s10  ;;  %v9099_v0 = vld [vmem:[#allocation3] sm:$0xff] }
 0x410   :  { %v8845_v46 = vmul.f32 %v8813_v11, %v8813_v11  ;;  %v9100_v11 = vsel %vm53_vm0, %v9099_v0, 0.0 }
 0x411   :  { %v8767_v61 = vpop.permute.xlu1 %8766 }
 0x412   :  { %v8812_v36 = vadd.f32 %v13597_v14, %v8767_v61  ;;  %8880 = vrot.lane.b32.xlu1 %v8845_v46, %s11830_s10  ;;  %8718 = vrot.lane.b32.xlu0 %v11237_v30, %s11830_s10 }
 0x414   :  { %v8844_v20 = vmul.f32 %v8812_v36, %v8812_v36 }
 0x415   :  { %v8773_v9 = vpop.permute.xlu1 %8772 }
 0x416   :  { %v8815_v62 = vadd.f32 %v13607_v7, %v8773_v9  ;;  %v8771_v3 = vpop.permute.xlu0 %8770  ;;  %8878 = vrot.lane.b32.xlu1 %v8844_v20, %s11830_s10  ;;  %8720 = vrot.lane.b32.xlu0 %v11236_v18, %s11830_s10 }
 0x417   :  { %v8814_v22 = vadd.f32 %v13609_v49, %v8771_v3 }
 0x418   :  { %v8847_v31 = vmul.f32 %v8815_v62, %v8815_v62 }
 0x419   :  { %v8846_v63 = vmul.f32 %v8814_v22, %v8814_v22 }
 0x41a   :  { %8884 = vrot.lane.b32.xlu1 %v8847_v31, %s11830_s10  ;;  %8722 = vrot.lane.b32.xlu0 %v11241_v29, %s11830_s10 }
 0x41d   :  { %v8777_v55 = vpop.permute.xlu1 %8776 }
 0x41e   :  { %v8817_v8 = vadd.f32 %v13615_v26, %v8777_v55  ;;  %v8775_v15 = vpop.permute.xlu0 %8774  ;;  %8882 = vrot.lane.b32.xlu1 %v8846_v63, %s11830_s10  ;;  %8724 = vrot.lane.b32.xlu0 %v11240_v19, %s11830_s10 }
 0x41f   :  { %v8816_v1 = vadd.f32 %v13617_v42, %v8775_v15 }
 0x420   :  { %v8849_v54 = vmul.f32 %v8817_v8, %v8817_v8 }
 0x421   :  { %v8848_v53 = vmul.f32 %v8816_v1, %v8816_v1 }
 0x422   :  { %8888 = vrot.lane.b32.xlu1 %v8849_v54, %s11830_s10  ;;  %8726 = vrot.lane.b32.xlu0 %v11245_v51, %s11830_s10 }
 0x425   :  { %v8781_v27 = vpop.permute.xlu1 %8780 }
 0x426   :  { %v8819_v13 = vadd.f32 %v13621_v6, %v8781_v27  ;;  %v8779_v23 = vpop.permute.xlu0 %8778  ;;  %8886 = vrot.lane.b32.xlu1 %v8848_v53, %s11830_s10  ;;  %8728 = vrot.lane.b32.xlu0 %v11244_v33, %s11830_s10 }
 0x427   :  { %v8818_v37 = vadd.f32 %v13623_v28, %v8779_v23 }
 0x428   :  { %v8851_v5 = vmul.f32 %v8819_v13, %v8819_v13 }
 0x429   :  { %v8850_v12 = vmul.f32 %v8818_v37, %v8818_v37 }
 0x42a   :  { %8892 = vrot.lane.b32.xlu1 %v8851_v5, %s11830_s10 }
 0x42d   :  { %v8785_v58 = vpop.permute.xlu1 %8784 }
 0x42e   :  { %v8821_v40 = vadd.f32 %v13628_v16, %v8785_v58  ;;  %v8783_v39 = vpop.permute.xlu0 %8782  ;;  %8890 = vrot.lane.b32.xlu1 %v8850_v12, %s11830_s10 }
 0x42f   :  { %v8820_v32 = vadd.f32 %v13631_v34, %v8783_v39 }
 0x430   :  { %v8853_v18 = vmul.f32 %v8821_v40, %v8821_v40 }
 0x431   :  { %v8852_v30 = vmul.f32 %v8820_v32, %v8820_v32 }
 0x432   :  { %8896 = vrot.lane.b32.xlu1 %v8853_v18, %s11830_s10 }
 0x435   :  { %v8789_v50 = vpop.permute.xlu1 %8788 }
 0x436   :  { %v8787_v41 = vpop.permute.xlu0 %8786  ;;  %8894 = vrot.lane.b32.xlu1 %v8852_v30, %s11830_s10  ;;  %v8823_v19 = vadd.f32 %v13638_v25, %v8789_v50 }
 0x437   :  { %v8822_v47 = vadd.f32 %v13641_v44, %v8787_v41 }
 0x438   :  { %v8855_v29 = vmul.f32 %v8823_v19, %v8823_v19 }
 0x439   :  { %v8854_v57 = vmul.f32 %v8822_v47, %v8822_v47 }
 0x43b   :  { %8898 = vrot.lane.b32.xlu1 %v8854_v57, %s11830_s10 }
 0x43d   :  { %v8793_v43 = vpop.permute.xlu1 %8792 }
 0x43e   :  { %v8825_v10 = vadd.f32 %v13648_v35, %v8793_v43  ;;  %v8791_v17 = vpop.permute.xlu0 %8790 }
 0x43f   :  { %v8824_v33 = vadd.f32 %v13651_v52, %v8791_v17  ;;  %8900 = vrot.lane.b32.xlu1 %v8855_v29, %s11830_s10 }
 0x440   :  { %v8857_v56 = vmul.f32 %v8825_v10, %v8825_v10 }
 0x441   :  { %v8856_v51 = vmul.f32 %v8824_v33, %v8824_v33  ;;  %v8701_v36 = vpop.permute.xlu1 %8700 }
 0x442   :  { %v8699_v59 = vpop.permute.xlu0 %8698  ;;  %v8747_v9 = vsub.f32 %v13585_v21, %v8701_v36 }
 0x443   :  { %8904 = vrot.lane.b32.xlu1 %v8857_v56, %s11830_s10  ;;  %8902 = vrot.lane.b32.xlu0 %v8856_v51, %s11830_s10  ;;  %v8746_v31 = vsub.f32 %v13587_v45, %v8699_v59 }
 0x444   :  { %v8827_v3 = vmul.f32 %v8747_v9, %v8747_v9 }
 0x445   :  { %v8705_v62 = vpop.permute.xlu1 %8704  ;;  %v8826_v8 = vmul.f32 %v8746_v31, %v8746_v31 }
 0x446   :  { %v8703_v48 = vpop.permute.xlu0 %8702  ;;  %v8749_v15 = vsub.f32 %v13595_v24, %v8705_v62 }
 0x447   :  { %v8748_v27 = vsub.f32 %v13597_v14, %v8703_v48 }
 0x448   :  { %v8829_v53 = vmul.f32 %v8749_v15, %v8749_v15 }
 0x449   :  { %v8828_v21 = vmul.f32 %v8748_v27, %v8748_v27 }
 0x44a   :  { %v8707_v38 = vpop.permute.xlu0 %8706 }
 0x44b   :  { %v8750_v58 = vsub.f32 %v13609_v49, %v8707_v38 }
 0x44d   :  { %v8830_v50 = vmul.f32 %v8750_v58, %v8750_v58 }
 0x44e   :  { %v8709_v60 = vpop.permute.xlu0 %8708 }
 0x44f   :  { %v8751_v5 = vsub.f32 %v13607_v7, %v8709_v60 }
 0x451   :  { %v8831_v24 = vmul.f32 %v8751_v5, %v8751_v5 }
 0x452   :  { %v8711_v46 = vpop.permute.xlu0 %8710 }
 0x453   :  { %v8752_v33 = vsub.f32 %v13617_v42, %v8711_v46 }
 0x455   :  { %v8832_v60 = vmul.f32 %v8752_v33, %v8752_v33 }
 0x456   :  { %v8713_v61 = vpop.permute.xlu0 %8712 }
 0x457   :  { %v8753_v41 = vsub.f32 %v13615_v26, %v8713_v61 }
 0x459   :  { %v8833_v59 = vmul.f32 %v8753_v41, %v8753_v41 }
 0x45a   :  { %v13711_v20 = vpop.permute.xlu0 %8714 }
 0x45e   :  { %v8717_v22 = vpop.permute.xlu0 %8716 }
 0x462   :  { %9089 = vadd.xlane.f32.xlu0 %v9088_v4 }
 0x467   :  { %9101 = vadd.xlane.f32.xlu1 %v9100_v11  ;;  %v8755_v11 = vsub.f32 %v13621_v6, %v8717_v22 }
 0x47c   :  { %v8877_v63 = vpop.permute.xlu1 %8876 }
 0x47d   :  { %v8923_v55 = vadd.f32 %v8877_v63, %v8827_v3 }
 0x47f   :  { %11716 = vrsqrt.f32 %v8923_v55  ;;  %vm8947_vm1 = vcmp.eq.f32.partialorder %v8923_v55, inf  ;;  %v8950_v14 = vand.u32 2147483648, %v8923_v55  ;;  %vm8949_vm2 = vcmp.eq.f32.partialorder %v8923_v55, 0.0 }
 0x480   :  { %v8875_v54 = vpop.permute.xlu0 %8874 }
 0x481   :  { %v8922_v1 = vadd.f32 %v8875_v54, %v8826_v8  ;;  %v8754_v8 = vsub.f32 %v13623_v28, %v13711_v20  ;;  %v8835_v54 = vmul.f32 %v8755_v11, %v8755_v11 }
 0x483   :  { %11718 = vrsqrt.f32 %v8922_v1  ;;  %vm8940_vm3 = vcmp.eq.f32.partialorder %v8922_v1, inf  ;;  %v8943_v49 = vand.u32 2147483648, %v8922_v1  ;;  %vm8942_vm4 = vcmp.eq.f32.partialorder %v8922_v1, 0.0 }
 0x484   :  { %v8881_v13 = vpop.permute.xlu1 %8880  ;;  %v13722_v47 = vpop.permute.xlu0 %8718  ;;  %v8834_v5 = vmul.f32 %v8754_v8, %v8754_v8 }
 0x485   :  { %v8925_v23 = vadd.f32 %v8881_v13, %v8829_v53 }
 0x487   :  { %11720 = vrsqrt.f32 %v8925_v23  ;;  %vm8961_vm5 = vcmp.eq.f32.partialorder %v8925_v23, inf  ;;  %v8964_v42 = vand.u32 2147483648, %v8925_v23  ;;  %vm8963_vm7 = vcmp.eq.f32.partialorder %v8925_v23, 0.0 }
 0x488   :  { %v8879_v45 = vpop.permute.xlu1 %8878  ;;  %v8721_v2 = vpop.permute.xlu0 %8720 }
 0x489   :  { %v11717_v37 = vpop.eup %11716  ;;  %v8924_v12 = vadd.f32 %v8879_v45, %v8828_v21  ;;  %v8757_v28 = vsub.f32 %v13628_v16, %v8721_v2  ;;  %v8756_v16 = vsub.f32 %v13631_v34, %v13722_v47 }
 0x48a   :  { %v8946_v40 = vmul.f32 %v11717_v37, %v8923_v55 }
 0x48b   :  { %11722 = vrsqrt.f32 %v8924_v12  ;;  %vm8954_vm6 = vcmp.eq.f32.partialorder %v8924_v12, inf  ;;  %v8957_v46 = vand.u32 2147483648, %v8924_v12  ;;  %vm8956_vm8 = vcmp.eq.f32.partialorder %v8924_v12, 0.0 }
 0x48c   :  { %v8948_v39 = vsel %vm8947_vm1, %v8923_v55, %v8946_v40  ;;  %v8885_v18 = vpop.permute.xlu1 %8884  ;;  %v8723_v15 = vpop.permute.xlu0 %8722 }
 0x48d   :  { %v11719_v32 = vpop.eup %11718  ;;  %v13719_v30 = vadd.f32 %v8885_v18, %v8831_v24  ;;  %v8951_v19 = vsel %vm8949_vm2, %v8950_v14, %v8948_v39  ;;  %v8758_v33 = vsub.f32 %v13641_v44, %v8723_v15 }
 0x48e   :  { %v8939_v7 = vmul.f32 %v11719_v32, %v8922_v1  ;;  %v9051_v56 = vsel %vm53_vm0, %v8951_v19, 0.0 }
 0x48f   :  { %11724 = vrsqrt.f32 %v13719_v30  ;;  %vm8975_vm9 = vcmp.eq.f32.partialorder %v13719_v30, inf  ;;  %v8978_v37 = vand.u32 2147483648, %v13719_v30  ;;  %vm8977_vm11 = vcmp.eq.f32.partialorder %v13719_v30, 0.0 }
 0x490   :  { %v8941_v57 = vsel %vm8940_vm3, %v8922_v1, %v8939_v7  ;;  %v8883_v29 = vpop.permute.xlu1 %8882  ;;  %v8725_v40 = vpop.permute.xlu0 %8724  ;;  %v8837_v7 = vmul.f32 %v8757_v28, %v8757_v28 }
 0x491   :  { %v11721_v43 = vpop.eup %11720  ;;  %v8944_v10 = vsel %vm8942_vm4, %v8943_v49, %v8941_v57  ;;  %v8926_v17 = vadd.f32 %v8883_v29, %v8830_v50 }
 0x492   :  { %v9050_v26 = vsel %vm53_vm0, %v8944_v10, 0.0  ;;  %v8960_v51 = vmul.f32 %v11721_v43, %v8925_v23  ;;  %v8836_v10 = vmul.f32 %v8756_v16, %v8756_v16 }
 0x493   :  { %v9052_v48 = vadd.f32 %v9051_v56, %v9050_v26  ;;  %11726 = vrsqrt.f32 %v8926_v17  ;;  %vm8968_vm10 = vcmp.eq.f32.partialorder %v8926_v17, inf  ;;  %vm8970_vm12 = vcmp.eq.f32.partialorder %v8926_v17, 0.0 }
 0x494   :  { %v8889_v38 = vpop.permute.xlu1 %8888  ;;  %v8962_v61 = vsel %vm8961_vm5, %v8925_v23, %v8960_v51  ;;  %v8727_v34 = vpop.permute.xlu0 %8726  ;;  %v8759_v51 = vsub.f32 %v13638_v25, %v8725_v40 }
 0x495   :  { %v11723_v4 = vpop.eup %11722  ;;  %v13728_v0 = vadd.f32 %v8889_v38, %v8833_v59  ;;  %v8965_v31 = vsel %vm8963_vm7, %v8964_v42, %v8962_v61 }
 0x496   :  { %v8953_v36 = vmul.f32 %v11723_v4, %v8924_v12  ;;  %v9055_v53 = vsel %vm53_vm0, %v8965_v31, 0.0 }
 0x497   :  { %11728 = vrsqrt.f32 %v13728_v0  ;;  %vm8989_vm13 = vcmp.eq.f32.partialorder %v13728_v0, inf  ;;  %v8992_v56 = vand.u32 2147483648, %v13728_v0  ;;  %vm8991_vm15 = vcmp.eq.f32.partialorder %v13728_v0, 0.0 }
 0x498   :  { %v8955_v9 = vsel %vm8954_vm6, %v8924_v12, %v8953_v36  ;;  %v8887_v62 = vpop.permute.xlu1 %8886  ;;  %v8971_v12 = vand.u32 2147483648, %v8926_v17  ;;  %v8838_v36 = vmul.f32 %v8758_v33, %v8758_v33  ;;  %v8729_v42 = vpop.permute.xlu0 %8728 }
 0x499   :  { %v11725_v3 = vpop.eup %11724  ;;  %v8958_v63 = vsel %vm8956_vm8, %v8957_v46, %v8955_v9  ;;  %v8928_v55 = vadd.f32 %v8887_v62, %v8832_v60  ;;  %v8839_v46 = vmul.f32 %v8759_v51, %v8759_v51  ;;  %v8761_v8 = vsub.f32 %v13648_v35, %v8729_v42 }
 0x49a   :  { %v9053_v6 = vsel %vm53_vm0, %v8958_v63, 0.0  ;;  %v8974_v22 = vmul.f32 %v11725_v3, %v13719_v30  ;;  %v8760_v3 = vsub.f32 %v13651_v52, %v8727_v34 }
 0x49b   :  { %v9054_v1 = vadd.f32 %v9053_v6, %v9052_v48  ;;  %11730 = vrsqrt.f32 %v8928_v55  ;;  %vm8982_vm14 = vcmp.eq.f32.partialorder %v8928_v55, inf  ;;  %v8985_v26 = vand.u32 2147483648, %v8928_v55 }
 0x49c   :  { %v8893_v27 = vpop.permute.xlu1 %8892  ;;  %v8976_v20 = vsel %vm8975_vm9, %v13719_v30, %v8974_v22  ;;  %vm8984_vm1 = vcmp.eq.f32.partialorder %v8928_v55, 0.0  ;;  %v8841_v28 = vmul.f32 %v8761_v8, %v8761_v8 }
 0x49d   :  { %v11727_v13 = vpop.eup %11726  ;;  %v9056_v23 = vadd.f32 %v9055_v53, %v9054_v1  ;;  %v13738_v21 = vadd.f32 %v8893_v27, %v8835_v54  ;;  %v8979_v18 = vsel %vm8977_vm11, %v8978_v37, %v8976_v20 }
 0x49e   :  { %v8967_v45 = vmul.f32 %v11727_v13, %v8926_v17  ;;  %v9059_v30 = vsel %vm53_vm0, %v8979_v18, 0.0 }
 0x49f   :  { %11732 = vrsqrt.f32 %v13738_v21  ;;  %vm9003_vm2 = vcmp.eq.f32.partialorder %v13738_v21, inf  ;;  %v9006_v6 = vand.u32 2147483648, %v13738_v21  ;;  %vm9005_vm4 = vcmp.eq.f32.partialorder %v13738_v21, 0.0 }
 0x4a0   :  { %v8969_v58 = vsel %vm8968_vm10, %v8926_v17, %v8967_v45  ;;  %v8891_v24 = vpop.permute.xlu1 %8890 }
 0x4a1   :  { %v11729_v39 = vpop.eup %11728  ;;  %v8972_v32 = vsel %vm8970_vm12, %v8971_v12, %v8969_v58  ;;  %v8930_v14 = vadd.f32 %v8891_v24, %v8834_v5  ;;  %v8840_v5 = vmul.f32 %v8760_v3, %v8760_v3 }
 0x4a2   :  { %v9057_v50 = vsel %vm53_vm0, %v8972_v32, 0.0  ;;  %v8988_v41 = vmul.f32 %v11729_v39, %v13728_v0 }
 0x4a3   :  { %v9058_v19 = vadd.f32 %v9057_v50, %v9056_v23  ;;  %11734 = vrsqrt.f32 %v8930_v14  ;;  %vm8996_vm3 = vcmp.eq.f32.partialorder %v8930_v14, inf  ;;  %v8999_v22 = vand.u32 2147483648, %v8930_v14 }
 0x4a4   :  { %v8897_v49 = vpop.permute.xlu1 %8896  ;;  %v8990_v17 = vsel %vm8989_vm13, %v13728_v0, %v8988_v41  ;;  %vm8998_vm5 = vcmp.eq.f32.partialorder %v8930_v14, 0.0 }
 0x4a5   :  { %v11731_v57 = vpop.eup %11730  ;;  %v9060_v29 = vadd.f32 %v9059_v30, %v9058_v19  ;;  %v13751_v43 = vadd.f32 %v8897_v49, %v8837_v7  ;;  %v8993_v38 = vsel %vm8991_vm15, %v8992_v56, %v8990_v17 }
 0x4a6   :  { %v8981_v47 = vmul.f32 %v11731_v57, %v8928_v55  ;;  %v9063_v25 = vsel %vm53_vm0, %v8993_v38, 0.0 }
 0x4a7   :  { %11736 = vrsqrt.f32 %v13751_v43  ;;  %vm9017_vm8 = vcmp.eq.f32.partialorder %v13751_v43, inf  ;;  %v9020_v41 = vand.u32 2147483648, %v13751_v43  ;;  %vm9019_vm9 = vcmp.eq.f32.partialorder %v13751_v43, 0.0 }
 0x4a8   :  { %v8983_v59 = vsel %vm8982_vm14, %v8928_v55, %v8981_v47  ;;  %v8895_v48 = vpop.permute.xlu1 %8894 }
 0x4a9   :  { %v11733_v2 = vpop.eup %11732  ;;  %v8986_v4 = vsel %vm8984_vm1, %v8985_v26, %v8983_v59  ;;  %v8932_v60 = vadd.f32 %v8895_v48, %v8836_v10 }
 0x4aa   :  { %v9061_v11 = vsel %vm53_vm0, %v8986_v4, 0.0  ;;  %v9002_v44 = vmul.f32 %v11733_v2, %v13738_v21 }
 0x4ab   :  { %v9062_v61 = vadd.f32 %v9061_v11, %v9060_v29  ;;  %11738 = vrsqrt.f32 %v8932_v60  ;;  %vm9010_vm6 = vcmp.eq.f32.partialorder %v8932_v60, inf  ;;  %v9013_v39 = vand.u32 2147483648, %v8932_v60 }
 0x4ac   :  { %v9004_v31 = vsel %vm9003_vm2, %v13738_v21, %v9002_v44  ;;  %vm9012_vm7 = vcmp.eq.f32.partialorder %v8932_v60, 0.0 }
 0x4ad   :  { %v11735_v0 = vpop.eup %11734  ;;  %v9064_v9 = vadd.f32 %v9063_v25, %v9062_v61  ;;  %v8899_v62 = vpop.permute.xlu1 %8898  ;;  %v9007_v54 = vsel %vm9005_vm4, %v9006_v6, %v9004_v31 }
 0x4ae   :  { %v8995_v63 = vmul.f32 %v11735_v0, %v8930_v14  ;;  %v8934_v55 = vadd.f32 %v8899_v62, %v8838_v36  ;;  %v9067_v35 = vsel %vm53_vm0, %v9007_v54, 0.0  ;;  %v9081_v62 = vld [vmem:[#allocation4] sm:$0xff] }
 0x4b0   :  { %v8997_v15 = vsel %vm8996_vm3, %v8930_v14, %v8995_v63  ;;  %11740 = vrsqrt.f32 %v8934_v55  ;;  %vm9024_vm10 = vcmp.eq.f32.partialorder %v8934_v55, inf  ;;  %v9027_v57 = vand.u32 2147483648, %v8934_v55 }
 0x4b1   :  { %v9000_v1 = vsel %vm8998_vm5, %v8999_v22, %v8997_v15  ;;  %v8901_v53 = vpop.permute.xlu1 %8900  ;;  %v11737_v13 = vpop.eup %11736  ;;  %vm9026_vm11 = vcmp.eq.f32.partialorder %v8934_v55, 0.0 }
 0x4b2   :  { %v9065_v52 = vsel %vm53_vm0, %v9000_v1, 0.0  ;;  %v8935_v27 = vadd.f32 %v8901_v53, %v8839_v46  ;;  %v9016_v12 = vmul.f32 %v11737_v13, %v13751_v43 }
 0x4b3   :  { %v9066_v23 = vadd.f32 %v9065_v52, %v9064_v9 }
 0x4b4   :  { %11742 = vrsqrt.f32 %v8935_v27  ;;  %v9018_v16 = vsel %vm9017_vm8, %v13751_v43, %v9016_v12  ;;  %vm9031_vm12 = vcmp.eq.f32.partialorder %v8935_v27, inf  ;;  %v9034_v47 = vand.u32 2147483648, %v8935_v27 }
 0x4b5   :  { %v11739_v20 = vpop.eup %11738  ;;  %v9068_v45 = vadd.f32 %v9067_v35, %v9066_v23  ;;  %v8905_v37 = vpop.permute.xlu1 %8904  ;;  %v9021_v19 = vsel %vm9019_vm9, %v9020_v41, %v9018_v16  ;;  %vm9033_vm13 = vcmp.eq.f32.partialorder %v8935_v27, 0.0 }
 0x4b6   :  { %v8903_v21 = vpop.permute.xlu0 %8902  ;;  %v9009_v58 = vmul.f32 %v11739_v20, %v8932_v60  ;;  %v8937_v40 = vadd.f32 %v8905_v37, %v8841_v28  ;;  %v9071_v34 = vsel %vm53_vm0, %v9021_v19, 0.0 }
 0x4b7   :  { %v8936_v24 = vadd.f32 %v8903_v21, %v8840_v5 }
 0x4b8   :  { %v9011_v18 = vsel %vm9010_vm6, %v8932_v60, %v9009_v58  ;;  %11744 = vrsqrt.f32 %v8937_v40  ;;  %vm9045_vm14 = vcmp.eq.f32.partialorder %v8937_v40, inf  ;;  %v9048_v38 = vand.u32 2147483648, %v8937_v40 }
 0x4b9   :  { %v9014_v32 = vsel %vm9012_vm7, %v9013_v39, %v9011_v18  ;;  %11746 = vrsqrt.f32 %v8936_v24  ;;  %vm9038_vm15 = vcmp.eq.f32.partialorder %v8936_v24, inf  ;;  %v9041_v44 = vand.u32 2147483648, %v8936_v24 }
 0x4ba   :  { %v11741_v14 = vpop.eup %11740  ;;  %v9069_v50 = vsel %vm53_vm0, %v9014_v32, 0.0  ;;  %vm9047_vm1 = vcmp.eq.f32.partialorder %v8937_v40, 0.0  ;;  %vm9040_vm2 = vcmp.eq.f32.partialorder %v8936_v24, 0.0  ;;  %vm9146_vm6 = vcmask 0  }
 0x4bb   :  { %v9023_v7 = vmul.f32 %v11741_v14, %v8934_v55  ;;  %v9070_v30 = vadd.f32 %v9069_v50, %v9068_v45 }
 0x4bd   :  { %v9025_v49 = vsel %vm9024_vm10, %v8934_v55, %v9023_v7  ;;  %v9072_v33 = vadd.f32 %v9071_v34, %v9070_v30 }
 0x4be   :  { %v11743_v29 = vpop.eup %11742  ;;  %v9028_v10 = vsel %vm9026_vm11, %v9027_v57, %v9025_v49 }
 0x4bf   :  { %v9030_v17 = vmul.f32 %v11743_v29, %v8935_v27  ;;  %v9073_v51 = vsel %vm53_vm0, %v9028_v10, 0.0 }
 0x4c0   :  { %v9074_v60 = vadd.f32 %v9073_v51, %v9072_v33 }
 0x4c1   :  { %v9032_v56 = vsel %vm9031_vm12, %v8935_v27, %v9030_v17 }
 0x4c2   :  { %v11745_v26 = vpop.eup %11744  ;;  %v9035_v43 = vsel %vm9033_vm13, %v9034_v47, %v9032_v56 }
 0x4c3   :  { %v11747_v59 = vpop.eup %11746  ;;  %v9044_v48 = vmul.f32 %v11745_v26, %v8937_v40  ;;  %v9075_v2 = vsel %vm53_vm0, %v9035_v43, 0.0 }
 0x4c4   :  { %v9037_v4 = vmul.f32 %v11747_v59, %v8936_v24  ;;  %v9076_v36 = vadd.f32 %v9075_v2, %v9074_v60 }
 0x4c5   :  { %v9046_v11 = vsel %vm9045_vm14, %v8937_v40, %v9044_v48 }
 0x4c6   :  { %v9039_v61 = vsel %vm9038_vm15, %v8936_v24, %v9037_v4  ;;  %v9049_v25 = vsel %vm9047_vm1, %v9048_v38, %v9046_v11 }
 0x4c7   :  { %v9042_v42 = vsel %vm9040_vm2, %v9041_v44, %v9039_v61  ;;  %v9079_v9 = vsel %vm53_vm0, %v9049_v25, 0.0 }
 0x4c8   :  { %v9077_v0 = vsel %vm53_vm0, %v9042_v42, 0.0 }
 0x4c9   :  { %v9078_v46 = vadd.f32 %v9077_v0, %v9076_v36 }
 0x4cb   :  { %v9080_v3 = vadd.f32 %v9079_v9, %v9078_v46 }
 0x4cd   :  { %v9082_v31 = vadd.f32 %v9081_v62, %v9080_v3 }
 0x4cf   :  { %9083 = vst.msk [vmem:[#allocation4] sm:$0xff] %vm53_vm0, %v9082_v31 }
 0x4d6   :  { %v9111_v63 = vld [vmem:[#allocation4] sm:$0xff] }
 0x4d7   :  { %v9112_v55 = vsel %vm53_vm0, %v9111_v63, 0.0 }
 0x4d8   :  { %9113 = vadd.xlane.f32.xlu0 %v9112_v55 }
 0x4ef   :  { %v9090_v8 = vpop.xlane.xlu0 %9089 }
 0x4f0   :  { %v9091_v6 = vrot.slane %v9090_v8, 4 }
 0x4f2   :  { %v9092_v22 = vadd.f32 %v9091_v6, %v9090_v8 }
 0x4f4   :  { %v9102_v15 = vpop.xlane.xlu1 %9101  ;;  %v9093_v54 = vrot.slane %v9092_v22, 2 }
 0x4f5   :  { %v9103_v1 = vrot.slane %v9102_v15, 4 }
 0x4f6   :  { %v9094_v53 = vadd.f32 %v9093_v54, %v9092_v22 }
 0x4f7   :  { %v9104_v52 = vadd.f32 %v9103_v1, %v9102_v15 }
 0x4f8   :  { %v9095_v27 = vrot.slane %v9094_v53, 1 }
 0x4f9   :  { %v9105_v13 = vrot.slane %v9104_v52, 2 }
 0x4fa   :  { %v9096_v23 = vadd.f32 %v9095_v27, %v9094_v53 }
 0x4fb   :  { %v9106_v5 = vadd.f32 %v9105_v13, %v9104_v52 }
 0x4fc   :  { %11702 = vpush %v9096_v23 }
 0x4fd   :  { %v9107_v28 = vrot.slane %v9106_v5, 1 }
 0x4ff   :  { %v9108_v35 = vadd.f32 %v9107_v28, %v9106_v5 }
 0x501   :  { %11704 = vpush %v9108_v35 }
 0x52d   :  { %s11703_s11 = spop %11702 }
 0x52e   :  { %v9098_v18 = vstv %s11703_s11 }
 0x52f   :  { %v9123_v32 = vmul.f32 0.00048828125, %v9098_v18 }
 0x531   :  { %v9124_v16 = vadd.f32 1e-06, %v9123_v32 }
 0x532   :  { %s11705_s12 = spop %11704 }
 0x533   :  { %v9110_v24 = vstv %s11705_s12  ;;  %vm9127_vm3 = vcmp.eq.f32.partialorder %v9124_v16, inf  ;;  %v9130_v57 = vand.u32 2147483648, %v9124_v16  ;;  %vm9129_vm5 = vcmp.eq.f32.partialorder %v9124_v16, 0.0 }
 0x534   :  { %v9132_v39 = vmul.f32 0.00048828125, %v9110_v24 }
 0x536   :  { %v9133_v14 = vadd.f32 1e-06, %v9132_v39 }
 0x538   :  { %11748 = vrsqrt.f32 %v9133_v14  ;;  %vm9136_vm0 = vcmp.eq.f32.partialorder %v9133_v14, inf  ;;  %v9139_v49 = vand.u32 2147483648, %v9133_v14  ;;  %vm9138_vm4 = vcmp.eq.f32.partialorder %v9133_v14, 0.0 }
 0x539   :  { %11750 = vrsqrt.f32 %v9124_v16 }
 0x542   :  { %v11749_v50 = vpop.eup %11748 }
 0x543   :  { %v9135_v41 = vmul.f32 %v11749_v50, %v9133_v14  ;;  %v11751_v7 = vpop.eup %11750 }
 0x544   :  { %v9126_v19 = vmul.f32 %v11751_v7, %v9124_v16 }
 0x545   :  { %v9137_v30 = vsel %vm9136_vm0, %v9133_v14, %v9135_v41 }
 0x546   :  { %v9140_v29 = vsel %vm9138_vm4, %v9139_v49, %v9137_v30  ;;  %v9128_v10 = vsel %vm9127_vm3, %v9124_v16, %v9126_v19 }
 0x547   :  { %v9141_v17 = vmul.f32 0.05, %v9140_v29  ;;  %v9131_v47 = vsel %vm9129_vm5, %v9130_v57, %v9128_v10 }
 0x549   :  { %v9142_v56 = vadd.f32 %v9141_v17, %v9131_v47 }
 0x565   :  { %v9114_v20 = vpop.xlane.xlu0 %9113 }
 0x566   :  { %v9115_v45 = vrot.slane %v9114_v20, 4 }
 0x568   :  { %v9116_v37 = vadd.f32 %v9115_v45, %v9114_v20 }
 0x56a   :  { %v9117_v21 = vrot.slane %v9116_v37, 2 }
 0x56c   :  { %v9118_v12 = vadd.f32 %v9117_v21, %v9116_v37 }
 0x56e   :  { %v9119_v58 = vrot.slane %v9118_v12, 1 }
 0x570   :  { %v9120_v40 = vadd.f32 %v9119_v58, %v9118_v12 }
 0x572   :  { %11706 = vpush %v9120_v40 }
 0x5a3   :  { %s11707_s13 = spop %11706 }
 0x5a4   :  { %v9122_v34 = vstv %s11707_s13 }
 0x5a5   :  { %v9143_v33 = vmul.f32 0.00048828125, %v9122_v34 }
 0x5a7   :  { %v9144_v26 = vmul.f32 0.1, %v9143_v33 }
 0x5a9   :  { %v9145_v51 = vadd.f32 %v9144_v26, %v9142_v56 }
 0x5ab   :  { %9147 = vst.msk [vmem:[#allocation10] sm:$0x1] %vm9146_vm6, %v9145_v51 }
 0x5ac   :  { %11807 = shalt.err (!%p11804_p6)
}
 0x5ad   :  { %s11808_s19 = scalar_lea.hbm %s13800_s5, 16 }
 0x5ae   :  { %p11809_p7 = scmp.ne.s32.totalorder %s13800_s5, %s11808_s19  ;;  %p11812_p8 = scmp.lt.u32.totalorder %s11808_s19, %s13800_s5 }
 0x5b0   :  { %p11814_p9 = pnand %p11812_p8, %p11809_p7 }
 0x5b2   :  { %11817 = shalt.err (!%p11814_p9)
}
 0x5b3   :  { %9157 = dma.vmem_to_hbm [thread:$0]  %s9155_s15, 16, %s13800_s5, [#allocation7]  }
 0x5b4   :  { %11822 = dma.done.wait [#allocation7], 16  }
 0x5b5   :  { %11823 = vsyncadd [#allocation7], 4294967280 }
 0x5b6   :  { %9161 = vsyncpa [#allocation6], 1 }
 0x5b7   :  { %9162 = vsyncpa [#allocation9], 1 }
 0x5b8   :  { %9163 = vsyncpa [#allocation7], 1 }

</bundles_post_ra>
